<compile_context>
chip_gen: v6e
topology: v6e:2x2x1
jax: 0.10.0
libtpu: 0.0.40
codegen_flags: <defaults>
</compile_context>

<pallas_src>
import jax
import jax.numpy as jnp
from jax.experimental import pallas as pl
from jax.experimental.pallas import tpu as pltpu


# ----------------------------------------------------------------------------
# Kernels
# ----------------------------------------------------------------------------
def _conv_relu_pool_kernel(x_ref, w_ref, b_ref, o_ref):
    """Fused Conv3x3(pad=1) + bias + ReLU + MaxPool2 for one image.

    x_ref: (1, 4, npix, 9*Cin)  im2col rows; quarter q holds the conv inputs
                                for pool-window offset (q//2, q%2)
    w_ref: (9*Cin, Cout)        taps flattened (dy, dx, cin)-major
    b_ref: (1, Cout)
    o_ref: (1, npix, Cout)      pooled output, (h//2, w//2) row-major
    """
    w = w_ref[...]
    m = jnp.dot(x_ref[0, 0], w, preferred_element_type=jnp.float32)
    for q in range(1, 4):
        m = jnp.maximum(
            m, jnp.dot(x_ref[0, q], w, preferred_element_type=jnp.float32))
    # max_q(conv_q + b) == max_q(conv_q) + b, and ReLU is monotone,
    # so a single bias + ReLU after the pooling max is exact.
    o_ref[0] = jnp.maximum(m + b_ref[...], 0.0).astype(o_ref.dtype)


def _head_kernel(x_ref, w1_ref, b1_ref, w2_ref, b2_ref, o_ref):
    """Fused AdaptiveAvgPool(1) + Linear + ReLU + Linear for the whole batch.

    x_ref: (B, S, C) flattened spatial features
    o_ref: (B, n_cls)
    """
    mean = jnp.mean(x_ref[...].astype(jnp.float32), axis=1)         # (B, C)
    h = jnp.dot(mean, w1_ref[...],
                preferred_element_type=jnp.float32) + b1_ref[...]
    h = jnp.maximum(h, 0.0)
    logits = jnp.dot(h, w2_ref[...],
                     preferred_element_type=jnp.float32) + b2_ref[...]
    o_ref[...] = logits.astype(o_ref.dtype)


# ----------------------------------------------------------------------------
# Wrappers (layout plumbing only; all compute is inside the Pallas kernels)
# ----------------------------------------------------------------------------
def _im2col_quarters(x_nhwc):
    """(B, H, W, Cin) -> (B, 4, (H//2)*(W//2), 9*Cin) im2col for 3x3 / pad=1.

    Quarter q = 2*a + c holds, for every pooled output pixel (i, j), the
    im2col row of conv-output pixel (2i+a, 2j+c); rows within a quarter are
    (i, j) row-major.  A 2x2 max-pool of the conv output is then a running
    elementwise max over the 4 quarter GEMMs inside the kernel.
    """
    B, H, W, Cin = x_nhwc.shape
    Ho, Wo = H // 2, W // 2
    npix = Ho * Wo
    xp = jnp.pad(x_nhwc, ((0, 0), (1, 1), (1, 1), (0, 0)))
    quarters = []
    for a in range(2):
        for c in range(2):
            taps = []
            for dy in range(3):
                for dx in range(3):
                    sub = xp[:, a + dy:a + dy + H:2, c + dx:c + dx + W:2, :]
                    taps.append(sub.reshape(B, npix, Cin))
            quarters.append(jnp.concatenate(taps, axis=-1))  # (B, npix, 9*Cin)
    return jnp.stack(quarters, axis=1)                       # (B, 4, npix, 9*Cin)


def _conv_relu_pool(x_nhwc, w_hwio, bias):
    B, H, W, Cin = x_nhwc.shape
    Cout = w_hwio.shape[-1]
    Ho, Wo = H // 2, W // 2
    npix = Ho * Wo
    cols = _im2col_quarters(x_nhwc)                   # (B, 4, npix, 9*Cin)
    w2d = w_hwio.reshape(9 * Cin, Cout)               # (dy, dx, cin)-major
    b2d = bias.reshape(1, Cout)
    out = pl.pallas_call(
        _conv_relu_pool_kernel,
        out_shape=jax.ShapeDtypeStruct((B, npix, Cout), x_nhwc.dtype),
        grid=(B,),
        in_specs=[
            pl.BlockSpec((1, 4, npix, 9 * Cin), lambda i: (i, 0, 0, 0)),
            pl.BlockSpec((9 * Cin, Cout), lambda i: (0, 0)),
            pl.BlockSpec((1, Cout), lambda i: (0, 0)),
        ],
        out_specs=pl.BlockSpec((1, npix, Cout), lambda i: (i, 0, 0)),
        compiler_params=pltpu.CompilerParams(
            dimension_semantics=("parallel",)),
    )(cols, w2d, b2d)
    return out.reshape(B, Ho, Wo, Cout)


def _classifier_head(feats_nhwc, w1, b1, w2, b2):
    B, Hs, Ws, C = feats_nhwc.shape
    S = Hs * Ws
    n_cls = w2.shape[-1]
    x3d = feats_nhwc.reshape(B, S, C)
    # Whole (tiny) problem fits in VMEM: single-invocation pallas_call.
    return pl.pallas_call(
        _head_kernel,
        out_shape=jax.ShapeDtypeStruct((B, n_cls), feats_nhwc.dtype),
    )(x3d, w1, b1.reshape(1, -1), w2, b2.reshape(1, -1))


@jax.jit
def simple_cnn_forward(x_nchw, params):
    x = jnp.transpose(x_nchw, (0, 2, 3, 1))   # single NCHW -> NHWC permute
    for w, b in params["convs"]:
        x = _conv_relu_pool(x, w, b)          # fused conv+relu+maxpool kernels
    return _classifier_head(x, params["w1"], params["b1"],
                            params["w2"], params["b2"])


# ----------------------------------------------------------------------------
# Pure-JAX reference (mirrors the PyTorch forward)
# ----------------------------------------------------------------------------
def _reference_forward(x_nchw, params):
    hi = jax.lax.Precision.HIGHEST
    x = jnp.transpose(x_nchw, (0, 2, 3, 1))
    for w, b in params["convs"]:
        y = jax.lax.conv_general_dilated(
            x, w, window_strides=(1, 1), padding="SAME",
            dimension_numbers=("NHWC", "HWIO", "NHWC"), precision=hi) + b
        y = jnp.maximum(y, 0.0)
        B, H, W, C = y.shape
        x = y.reshape(B, H // 2, 2, W // 2, 2, C).max(axis=(2, 4))
    feat = x.mean(axis=(1, 2))                               # AdaptiveAvgPool(1)
    h = jnp.maximum(jnp.dot(feat, params["w1"], precision=hi) + params["b1"], 0.0)
    return jnp.dot(h, params["w2"], precision=hi) + params["b2"]


if __name__ == "__main__":
    B, H, W = 2, 32, 32
    n_cls = 10
    chans = [3, 32, 64, 128, 256]

    key = jax.random.PRNGKey(0)
    key, kx = jax.random.split(key)
    x = jax.random.normal(kx, (B, chans[0], H, W), dtype=jnp.float32)

    convs = []
    for i in range(4):
        key, kw, kb = jax.random.split(key, 3)
        cin, cout = chans[i], chans[i + 1]
        w = jax.random.normal(kw, (3, 3, cin, cout), jnp.float32) * (2.0 / (9 * cin)) ** 0.5
        bb = 0.01 * jax.random.normal(kb, (cout,), jnp.float32)
        convs.append((w, bb))
    key, k1, k2, k3, k4 = jax.random.split(key, 5)
    params = {
        "convs": convs,
        "w1": jax.random.normal(k1, (chans[-1], 128), jnp.float32) * (2.0 / chans[-1]) ** 0.5,
        "b1": 0.01 * jax.random.normal(k2, (128,), jnp.float32),
        "w2": jax.random.normal(k3, (128, n_cls), jnp.float32) * (2.0 / 128) ** 0.5,
        "b2": 0.01 * jax.random.normal(k4, (n_cls,), jnp.float32),
    }

    logits = simple_cnn_forward(x, params)
    jax.block_until_ready(logits)

    ref = _reference_forward(x, params)
    assert logits.shape == (B, n_cls)
    assert jnp.allclose(logits, ref, atol=2e-3, rtol=2e-3), (
        f"max abs diff {jnp.max(jnp.abs(logits - ref))}")

    print("KERNEL_OK")
</pallas_src>

<mosaic_0001>
module attributes {stable_mosaic.version = 11 : i64} {
  func.func @_conv_relu_pool_kernel(%arg0: i32, %arg1: memref<1x4x256x27xf32, #tpu.memory_space<vmem>>, %arg2: memref<27x32xf32, #tpu.memory_space<vmem>>, %arg3: memref<1x32xf32, #tpu.memory_space<vmem>>, %arg4: memref<1x256x32xf32, #tpu.memory_space<vmem>>) attributes {dimension_semantics = [#tpu.dimension_semantics<parallel>], iteration_bounds = array<i64: 2>, scalar_prefetch = 0 : i64, scratch_operands = 0 : i64, tpu.core_type = #tpu.core_type<tc>, window_params = [{transform_indices = @transform_0, window_bounds = array<i64: 1, 4, 256, 27>}, {pipeline_mode = #tpu.pipeline_mode<synchronous>, transform_indices = @transform_1, window_bounds = array<i64: 27, 32>}, {pipeline_mode = #tpu.pipeline_mode<synchronous>, transform_indices = @transform_2, window_bounds = array<i64: 1, 32>}, {transform_indices = @transform_3, window_bounds = array<i64: 1, 256, 32>}]} {
    %c0 = arith.constant 0 : index
    %c0_0 = arith.constant 0 : index
    %0 = vector.load %arg2[%c0, %c0_0] : memref<27x32xf32, #tpu.memory_space<vmem>>, vector<27x32xf32>
    %c0_1 = arith.constant 0 : index
    %c0_2 = arith.constant 0 : index
    %c0_3 = arith.constant 0 : index
    %c0_4 = arith.constant 0 : index
    %1 = vector.load %arg1[%c0_1, %c0_2, %c0_3, %c0_4] : memref<1x4x256x27xf32, #tpu.memory_space<vmem>>, vector<1x1x256x27xf32>
    %2 = vector.shape_cast %1 : vector<1x1x256x27xf32> to vector<256x27xf32>
    %cst = arith.constant dense<0.000000e+00> : vector<256x32xf32>
    %3 = tpu.matmul %2, %0, %cst {dimension_numbers = #tpu.dot_dimension_numbers<[1], [0], [0], [1], [0, 0, 1, 1], [], []>} : vector<256x27xf32>, vector<27x32xf32>, vector<256x32xf32> -> vector<256x32xf32>
    %c0_5 = arith.constant 0 : index
    %c1 = arith.constant 1 : index
    %c0_6 = arith.constant 0 : index
    %c0_7 = arith.constant 0 : index
    %4 = vector.load %arg1[%c0_5, %c1, %c0_6, %c0_7] : memref<1x4x256x27xf32, #tpu.memory_space<vmem>>, vector<1x1x256x27xf32>
    %5 = vector.shape_cast %4 : vector<1x1x256x27xf32> to vector<256x27xf32>
    %cst_8 = arith.constant dense<0.000000e+00> : vector<256x32xf32>
    %6 = tpu.matmul %5, %0, %cst_8 {dimension_numbers = #tpu.dot_dimension_numbers<[1], [0], [0], [1], [0, 0, 1, 1], [], []>} : vector<256x27xf32>, vector<27x32xf32>, vector<256x32xf32> -> vector<256x32xf32>
    %7 = arith.maximumf %3, %6 : vector<256x32xf32>
    %c0_9 = arith.constant 0 : index
    %c2 = arith.constant 2 : index
    %c0_10 = arith.constant 0 : index
    %c0_11 = arith.constant 0 : index
    %8 = vector.load %arg1[%c0_9, %c2, %c0_10, %c0_11] : memref<1x4x256x27xf32, #tpu.memory_space<vmem>>, vector<1x1x256x27xf32>
    %9 = vector.shape_cast %8 : vector<1x1x256x27xf32> to vector<256x27xf32>
    %cst_12 = arith.constant dense<0.000000e+00> : vector<256x32xf32>
    %10 = tpu.matmul %9, %0, %cst_12 {dimension_numbers = #tpu.dot_dimension_numbers<[1], [0], [0], [1], [0, 0, 1, 1], [], []>} : vector<256x27xf32>, vector<27x32xf32>, vector<256x32xf32> -> vector<256x32xf32>
    %11 = arith.maximumf %7, %10 : vector<256x32xf32>
    %c0_13 = arith.constant 0 : index
    %c3 = arith.constant 3 : index
    %c0_14 = arith.constant 0 : index
    %c0_15 = arith.constant 0 : index
    %12 = vector.load %arg1[%c0_13, %c3, %c0_14, %c0_15] : memref<1x4x256x27xf32, #tpu.memory_space<vmem>>, vector<1x1x256x27xf32>
    %13 = vector.shape_cast %12 : vector<1x1x256x27xf32> to vector<256x27xf32>
    %cst_16 = arith.constant dense<0.000000e+00> : vector<256x32xf32>
    %14 = tpu.matmul %13, %0, %cst_16 {dimension_numbers = #tpu.dot_dimension_numbers<[1], [0], [0], [1], [0, 0, 1, 1], [], []>} : vector<256x27xf32>, vector<27x32xf32>, vector<256x32xf32> -> vector<256x32xf32>
    %15 = arith.maximumf %11, %14 : vector<256x32xf32>
    %c0_17 = arith.constant 0 : index
    %c0_18 = arith.constant 0 : index
    %16 = vector.load %arg3[%c0_17, %c0_18] : memref<1x32xf32, #tpu.memory_space<vmem>>, vector<1x32xf32>
    %17 = vector.broadcast %16 : vector<1x32xf32> to vector<256x32xf32>
    %18 = arith.addf %15, %17 : vector<256x32xf32>
    %cst_19 = arith.constant 0.000000e+00 : f32
    %19 = vector.broadcast %cst_19 : f32 to vector<256x32xf32>
    %20 = arith.maximumf %18, %19 : vector<256x32xf32>
    %c0_20 = arith.constant 0 : index
    %c0_21 = arith.constant 0 : index
    %c0_22 = arith.constant 0 : index
    %21 = vector.load %arg4[%c0_20, %c0_21, %c0_22] : memref<1x256x32xf32, #tpu.memory_space<vmem>>, vector<1x256x32xf32>
    %22 = vector.shape_cast %21 : vector<1x256x32xf32> to vector<256x32xf32>
    %23 = vector.shape_cast %20 : vector<256x32xf32> to vector<1x256x32xf32>
    tpu.vector_store %arg4[%c0_20, %c0_21, %c0_22], %23 {strides = array<i32>} : memref<1x256x32xf32, #tpu.memory_space<vmem>>, vector<1x256x32xf32>,
    return
  }
  func.func @transform_0(%arg0: i32) -> (i32, i32, i32, i32) {
    %c0_i32 = arith.constant 0 : i32
    %c0_i32_0 = arith.constant 0 : i32
    %c0_i32_1 = arith.constant 0 : i32
    %c0_i32_2 = arith.constant 0 : i32
    return %arg0, %c0_i32, %c0_i32_0, %c0_i32_1 : i32, i32, i32, i32
  }
  func.func @transform_1(%arg0: i32) -> (i32, i32) {
    %c0_i32 = arith.constant 0 : i32
    %c0_i32_0 = arith.constant 0 : i32
    %c0_i32_1 = arith.constant 0 : i32
    return %c0_i32, %c0_i32_0 : i32, i32
  }
  func.func @transform_2(%arg0: i32) -> (i32, i32) {
    %c0_i32 = arith.constant 0 : i32
    %c0_i32_0 = arith.constant 0 : i32
    %c0_i32_1 = arith.constant 0 : i32
    return %c0_i32, %c0_i32_0 : i32, i32
  }
  func.func @transform_3(%arg0: i32) -> (i32, i32, i32) {
    %c0_i32 = arith.constant 0 : i32
    %c0_i32_0 = arith.constant 0 : i32
    %c0_i32_1 = arith.constant 0 : i32
    return %arg0, %c0_i32, %c0_i32_0 : i32, i32, i32
  }
}

module attributes {stable_mosaic.version = 11 : i64} {
  func.func @_conv_relu_pool_kernel(%arg0: i32, %arg1: memref<1x4x64x288xf32, #tpu.memory_space<vmem>>, %arg2: memref<288x64xf32, #tpu.memory_space<vmem>>, %arg3: memref<1x64xf32, #tpu.memory_space<vmem>>, %arg4: memref<1x64x64xf32, #tpu.memory_space<vmem>>) attributes {dimension_semantics = [#tpu.dimension_semantics<parallel>], iteration_bounds = array<i64: 2>, scalar_prefetch = 0 : i64, scratch_operands = 0 : i64, tpu.core_type = #tpu.core_type<tc>, window_params = [{transform_indices = @transform_0, window_bounds = array<i64: 1, 4, 64, 288>}, {pipeline_mode = #tpu.pipeline_mode<synchronous>, transform_indices = @transform_1, window_bounds = array<i64: 288, 64>}, {pipeline_mode = #tpu.pipeline_mode<synchronous>, transform_indices = @transform_2, window_bounds = array<i64: 1, 64>}, {transform_indices = @transform_3, window_bounds = array<i64: 1, 64, 64>}]} {
    %c0 = arith.constant 0 : index
    %c0_0 = arith.constant 0 : index
    %0 = vector.load %arg2[%c0, %c0_0] : memref<288x64xf32, #tpu.memory_space<vmem>>, vector<288x64xf32>
    %c0_1 = arith.constant 0 : index
    %c0_2 = arith.constant 0 : index
    %c0_3 = arith.constant 0 : index
    %c0_4 = arith.constant 0 : index
    %1 = vector.load %arg1[%c0_1, %c0_2, %c0_3, %c0_4] : memref<1x4x64x288xf32, #tpu.memory_space<vmem>>, vector<1x1x64x288xf32>
    %2 = vector.shape_cast %1 : vector<1x1x64x288xf32> to vector<64x288xf32>
    %cst = arith.constant dense<0.000000e+00> : vector<64x64xf32>
    %3 = tpu.matmul %2, %0, %cst {dimension_numbers = #tpu.dot_dimension_numbers<[1], [0], [0], [1], [0, 0, 1, 1], [], []>} : vector<64x288xf32>, vector<288x64xf32>, vector<64x64xf32> -> vector<64x64xf32>
    %c0_5 = arith.constant 0 : index
    %c1 = arith.constant 1 : index
    %c0_6 = arith.constant 0 : index
    %c0_7 = arith.constant 0 : index
    %4 = vector.load %arg1[%c0_5, %c1, %c0_6, %c0_7] : memref<1x4x64x288xf32, #tpu.memory_space<vmem>>, vector<1x1x64x288xf32>
    %5 = vector.shape_cast %4 : vector<1x1x64x288xf32> to vector<64x288xf32>
    %cst_8 = arith.constant dense<0.000000e+00> : vector<64x64xf32>
    %6 = tpu.matmul %5, %0, %cst_8 {dimension_numbers = #tpu.dot_dimension_numbers<[1], [0], [0], [1], [0, 0, 1, 1], [], []>} : vector<64x288xf32>, vector<288x64xf32>, vector<64x64xf32> -> vector<64x64xf32>
    %7 = arith.maximumf %3, %6 : vector<64x64xf32>
    %c0_9 = arith.constant 0 : index
    %c2 = arith.constant 2 : index
    %c0_10 = arith.constant 0 : index
    %c0_11 = arith.constant 0 : index
    %8 = vector.load %arg1[%c0_9, %c2, %c0_10, %c0_11] : memref<1x4x64x288xf32, #tpu.memory_space<vmem>>, vector<1x1x64x288xf32>
    %9 = vector.shape_cast %8 : vector<1x1x64x288xf32> to vector<64x288xf32>
    %cst_12 = arith.constant dense<0.000000e+00> : vector<64x64xf32>
    %10 = tpu.matmul %9, %0, %cst_12 {dimension_numbers = #tpu.dot_dimension_numbers<[1], [0], [0], [1], [0, 0, 1, 1], [], []>} : vector<64x288xf32>, vector<288x64xf32>, vector<64x64xf32> -> vector<64x64xf32>
    %11 = arith.maximumf %7, %10 : vector<64x64xf32>
    %c0_13 = arith.constant 0 : index
    %c3 = arith.constant 3 : index
    %c0_14 = arith.constant 0 : index
    %c0_15 = arith.constant 0 : index
    %12 = vector.load %arg1[%c0_13, %c3, %c0_14, %c0_15] : memref<1x4x64x288xf32, #tpu.memory_space<vmem>>, vector<1x1x64x288xf32>
    %13 = vector.shape_cast %12 : vector<1x1x64x288xf32> to vector<64x288xf32>
    %cst_16 = arith.constant dense<0.000000e+00> : vector<64x64xf32>
    %14 = tpu.matmul %13, %0, %cst_16 {dimension_numbers = #tpu.dot_dimension_numbers<[1], [0], [0], [1], [0, 0, 1, 1], [], []>} : vector<64x288xf32>, vector<288x64xf32>, vector<64x64xf32> -> vector<64x64xf32>
    %15 = arith.maximumf %11, %14 : vector<64x64xf32>
    %c0_17 = arith.constant 0 : index
    %c0_18 = arith.constant 0 : index
    %16 = vector.load %arg3[%c0_17, %c0_18] : memref<1x64xf32, #tpu.memory_space<vmem>>, vector<1x64xf32>
    %17 = vector.broadcast %16 : vector<1x64xf32> to vector<64x64xf32>
    %18 = arith.addf %15, %17 : vector<64x64xf32>
    %cst_19 = arith.constant 0.000000e+00 : f32
    %19 = vector.broadcast %cst_19 : f32 to vector<64x64xf32>
    %20 = arith.maximumf %18, %19 : vector<64x64xf32>
    %c0_20 = arith.constant 0 : index
    %c0_21 = arith.constant 0 : index
    %c0_22 = arith.constant 0 : index
    %21 = vector.load %arg4[%c0_20, %c0_21, %c0_22] : memref<1x64x64xf32, #tpu.memory_space<vmem>>, vector<1x64x64xf32>
    %22 = vector.shape_cast %21 : vector<1x64x64xf32> to vector<64x64xf32>
    %23 = vector.shape_cast %20 : vector<64x64xf32> to vector<1x64x64xf32>
    tpu.vector_store %arg4[%c0_20, %c0_21, %c0_22], %23 {strides = array<i32>} : memref<1x64x64xf32, #tpu.memory_space<vmem>>, vector<1x64x64xf32>,
    return
  }
  func.func @transform_0(%arg0: i32) -> (i32, i32, i32, i32) {
    %c0_i32 = arith.constant 0 : i32
    %c0_i32_0 = arith.constant 0 : i32
    %c0_i32_1 = arith.constant 0 : i32
    %c0_i32_2 = arith.constant 0 : i32
    return %arg0, %c0_i32, %c0_i32_0, %c0_i32_1 : i32, i32, i32, i32
  }
  func.func @transform_1(%arg0: i32) -> (i32, i32) {
    %c0_i32 = arith.constant 0 : i32
    %c0_i32_0 = arith.constant 0 : i32
    %c0_i32_1 = arith.constant 0 : i32
    return %c0_i32, %c0_i32_0 : i32, i32
  }
  func.func @transform_2(%arg0: i32) -> (i32, i32) {
    %c0_i32 = arith.constant 0 : i32
    %c0_i32_0 = arith.constant 0 : i32
    %c0_i32_1 = arith.constant 0 : i32
    return %c0_i32, %c0_i32_0 : i32, i32
  }
  func.func @transform_3(%arg0: i32) -> (i32, i32, i32) {
    %c0_i32 = arith.constant 0 : i32
    %c0_i32_0 = arith.constant 0 : i32
    %c0_i32_1 = arith.constant 0 : i32
    return %arg0, %c0_i32, %c0_i32_0 : i32, i32, i32
  }
}

module attributes {stable_mosaic.version = 11 : i64} {
  func.func @_conv_relu_pool_kernel(%arg0: i32, %arg1: memref<1x4x16x576xf32, #tpu.memory_space<vmem>>, %arg2: memref<576x128xf32, #tpu.memory_space<vmem>>, %arg3: memref<1x128xf32, #tpu.memory_space<vmem>>, %arg4: memref<1x16x128xf32, #tpu.memory_space<vmem>>) attributes {dimension_semantics = [#tpu.dimension_semantics<parallel>], iteration_bounds = array<i64: 2>, scalar_prefetch = 0 : i64, scratch_operands = 0 : i64, tpu.core_type = #tpu.core_type<tc>, window_params = [{transform_indices = @transform_0, window_bounds = array<i64: 1, 4, 16, 576>}, {pipeline_mode = #tpu.pipeline_mode<synchronous>, transform_indices = @transform_1, window_bounds = array<i64: 576, 128>}, {pipeline_mode = #tpu.pipeline_mode<synchronous>, transform_indices = @transform_2, window_bounds = array<i64: 1, 128>}, {transform_indices = @transform_3, window_bounds = array<i64: 1, 16, 128>}]} {
    %c0 = arith.constant 0 : index
    %c0_0 = arith.constant 0 : index
    %0 = vector.load %arg2[%c0, %c0_0] : memref<576x128xf32, #tpu.memory_space<vmem>>, vector<576x128xf32>
    %c0_1 = arith.constant 0 : index
    %c0_2 = arith.constant 0 : index
    %c0_3 = arith.constant 0 : index
    %c0_4 = arith.constant 0 : index
    %1 = vector.load %arg1[%c0_1, %c0_2, %c0_3, %c0_4] : memref<1x4x16x576xf32, #tpu.memory_space<vmem>>, vector<1x1x16x576xf32>
    %2 = vector.shape_cast %1 : vector<1x1x16x576xf32> to vector<16x576xf32>
    %cst = arith.constant dense<0.000000e+00> : vector<16x128xf32>
    %3 = tpu.matmul %2, %0, %cst {dimension_numbers = #tpu.dot_dimension_numbers<[1], [0], [0], [1], [0, 0, 1, 1], [], []>} : vector<16x576xf32>, vector<576x128xf32>, vector<16x128xf32> -> vector<16x128xf32>
    %c0_5 = arith.constant 0 : index
    %c1 = arith.constant 1 : index
    %c0_6 = arith.constant 0 : index
    %c0_7 = arith.constant 0 : index
    %4 = vector.load %arg1[%c0_5, %c1, %c0_6, %c0_7] : memref<1x4x16x576xf32, #tpu.memory_space<vmem>>, vector<1x1x16x576xf32>
    %5 = vector.shape_cast %4 : vector<1x1x16x576xf32> to vector<16x576xf32>
    %cst_8 = arith.constant dense<0.000000e+00> : vector<16x128xf32>
    %6 = tpu.matmul %5, %0, %cst_8 {dimension_numbers = #tpu.dot_dimension_numbers<[1], [0], [0], [1], [0, 0, 1, 1], [], []>} : vector<16x576xf32>, vector<576x128xf32>, vector<16x128xf32> -> vector<16x128xf32>
    %7 = arith.maximumf %3, %6 : vector<16x128xf32>
    %c0_9 = arith.constant 0 : index
    %c2 = arith.constant 2 : index
    %c0_10 = arith.constant 0 : index
    %c0_11 = arith.constant 0 : index
    %8 = vector.load %arg1[%c0_9, %c2, %c0_10, %c0_11] : memref<1x4x16x576xf32, #tpu.memory_space<vmem>>, vector<1x1x16x576xf32>
    %9 = vector.shape_cast %8 : vector<1x1x16x576xf32> to vector<16x576xf32>
    %cst_12 = arith.constant dense<0.000000e+00> : vector<16x128xf32>
    %10 = tpu.matmul %9, %0, %cst_12 {dimension_numbers = #tpu.dot_dimension_numbers<[1], [0], [0], [1], [0, 0, 1, 1], [], []>} : vector<16x576xf32>, vector<576x128xf32>, vector<16x128xf32> -> vector<16x128xf32>
    %11 = arith.maximumf %7, %10 : vector<16x128xf32>
    %c0_13 = arith.constant 0 : index
    %c3 = arith.constant 3 : index
    %c0_14 = arith.constant 0 : index
    %c0_15 = arith.constant 0 : index
    %12 = vector.load %arg1[%c0_13, %c3, %c0_14, %c0_15] : memref<1x4x16x576xf32, #tpu.memory_space<vmem>>, vector<1x1x16x576xf32>
    %13 = vector.shape_cast %12 : vector<1x1x16x576xf32> to vector<16x576xf32>
    %cst_16 = arith.constant dense<0.000000e+00> : vector<16x128xf32>
    %14 = tpu.matmul %13, %0, %cst_16 {dimension_numbers = #tpu.dot_dimension_numbers<[1], [0], [0], [1], [0, 0, 1, 1], [], []>} : vector<16x576xf32>, vector<576x128xf32>, vector<16x128xf32> -> vector<16x128xf32>
    %15 = arith.maximumf %11, %14 : vector<16x128xf32>
    %c0_17 = arith.constant 0 : index
    %c0_18 = arith.constant 0 : index
    %16 = vector.load %arg3[%c0_17, %c0_18] : memref<1x128xf32, #tpu.memory_space<vmem>>, vector<1x128xf32>
    %17 = vector.broadcast %16 : vector<1x128xf32> to vector<16x128xf32>
    %18 = arith.addf %15, %17 : vector<16x128xf32>
    %cst_19 = arith.constant 0.000000e+00 : f32
    %19 = vector.broadcast %cst_19 : f32 to vector<16x128xf32>
    %20 = arith.maximumf %18, %19 : vector<16x128xf32>
    %c0_20 = arith.constant 0 : index
    %c0_21 = arith.constant 0 : index
    %c0_22 = arith.constant 0 : index
    %21 = vector.load %arg4[%c0_20, %c0_21, %c0_22] : memref<1x16x128xf32, #tpu.memory_space<vmem>>, vector<1x16x128xf32>
    %22 = vector.shape_cast %21 : vector<1x16x128xf32> to vector<16x128xf32>
    %23 = vector.shape_cast %20 : vector<16x128xf32> to vector<1x16x128xf32>
    tpu.vector_store %arg4[%c0_20, %c0_21, %c0_22], %23 {strides = array<i32>} : memref<1x16x128xf32, #tpu.memory_space<vmem>>, vector<1x16x128xf32>,
    return
  }
  func.func @transform_0(%arg0: i32) -> (i32, i32, i32, i32) {
    %c0_i32 = arith.constant 0 : i32
    %c0_i32_0 = arith.constant 0 : i32
    %c0_i32_1 = arith.constant 0 : i32
    %c0_i32_2 = arith.constant 0 : i32
    return %arg0, %c0_i32, %c0_i32_0, %c0_i32_1 : i32, i32, i32, i32
  }
  func.func @transform_1(%arg0: i32) -> (i32, i32) {
    %c0_i32 = arith.constant 0 : i32
    %c0_i32_0 = arith.constant 0 : i32
    %c0_i32_1 = arith.constant 0 : i32
    return %c0_i32, %c0_i32_0 : i32, i32
  }
  func.func @transform_2(%arg0: i32) -> (i32, i32) {
    %c0_i32 = arith.constant 0 : i32
    %c0_i32_0 = arith.constant 0 : i32
    %c0_i32_1 = arith.constant 0 : i32
    return %c0_i32, %c0_i32_0 : i32, i32
  }
  func.func @transform_3(%arg0: i32) -> (i32, i32, i32) {
    %c0_i32 = arith.constant 0 : i32
    %c0_i32_0 = arith.constant 0 : i32
    %c0_i32_1 = arith.constant 0 : i32
    return %arg0, %c0_i32, %c0_i32_0 : i32, i32, i32
  }
}

module attributes {stable_mosaic.version = 11 : i64} {
  func.func @_conv_relu_pool_kernel(%arg0: i32, %arg1: memref<1x4x4x1152xf32, #tpu.memory_space<vmem>>, %arg2: memref<1152x256xf32, #tpu.memory_space<vmem>>, %arg3: memref<1x256xf32, #tpu.memory_space<vmem>>, %arg4: memref<1x4x256xf32, #tpu.memory_space<vmem>>) attributes {dimension_semantics = [#tpu.dimension_semantics<parallel>], iteration_bounds = array<i64: 2>, scalar_prefetch = 0 : i64, scratch_operands = 0 : i64, tpu.core_type = #tpu.core_type<tc>, window_params = [{transform_indices = @transform_0, window_bounds = array<i64: 1, 4, 4, 1152>}, {pipeline_mode = #tpu.pipeline_mode<synchronous>, transform_indices = @transform_1, window_bounds = array<i64: 1152, 256>}, {pipeline_mode = #tpu.pipeline_mode<synchronous>, transform_indices = @transform_2, window_bounds = array<i64: 1, 256>}, {transform_indices = @transform_3, window_bounds = array<i64: 1, 4, 256>}]} {
    %c0 = arith.constant 0 : index
    %c0_0 = arith.constant 0 : index
    %0 = vector.load %arg2[%c0, %c0_0] : memref<1152x256xf32, #tpu.memory_space<vmem>>, vector<1152x256xf32>
    %c0_1 = arith.constant 0 : index
    %c0_2 = arith.constant 0 : index
    %c0_3 = arith.constant 0 : index
    %c0_4 = arith.constant 0 : index
    %1 = vector.load %arg1[%c0_1, %c0_2, %c0_3, %c0_4] : memref<1x4x4x1152xf32, #tpu.memory_space<vmem>>, vector<1x1x4x1152xf32>
    %2 = vector.shape_cast %1 : vector<1x1x4x1152xf32> to vector<4x1152xf32>
    %cst = arith.constant dense<0.000000e+00> : vector<4x256xf32>
    %3 = tpu.matmul %2, %0, %cst {dimension_numbers = #tpu.dot_dimension_numbers<[1], [0], [0], [1], [0, 0, 1, 1], [], []>} : vector<4x1152xf32>, vector<1152x256xf32>, vector<4x256xf32> -> vector<4x256xf32>
    %c0_5 = arith.constant 0 : index
    %c1 = arith.constant 1 : index
    %c0_6 = arith.constant 0 : index
    %c0_7 = arith.constant 0 : index
    %4 = vector.load %arg1[%c0_5, %c1, %c0_6, %c0_7] : memref<1x4x4x1152xf32, #tpu.memory_space<vmem>>, vector<1x1x4x1152xf32>
    %5 = vector.shape_cast %4 : vector<1x1x4x1152xf32> to vector<4x1152xf32>
    %cst_8 = arith.constant dense<0.000000e+00> : vector<4x256xf32>
    %6 = tpu.matmul %5, %0, %cst_8 {dimension_numbers = #tpu.dot_dimension_numbers<[1], [0], [0], [1], [0, 0, 1, 1], [], []>} : vector<4x1152xf32>, vector<1152x256xf32>, vector<4x256xf32> -> vector<4x256xf32>
    %7 = arith.maximumf %3, %6 : vector<4x256xf32>
    %c0_9 = arith.constant 0 : index
    %c2 = arith.constant 2 : index
    %c0_10 = arith.constant 0 : index
    %c0_11 = arith.constant 0 : index
    %8 = vector.load %arg1[%c0_9, %c2, %c0_10, %c0_11] : memref<1x4x4x1152xf32, #tpu.memory_space<vmem>>, vector<1x1x4x1152xf32>
    %9 = vector.shape_cast %8 : vector<1x1x4x1152xf32> to vector<4x1152xf32>
    %cst_12 = arith.constant dense<0.000000e+00> : vector<4x256xf32>
    %10 = tpu.matmul %9, %0, %cst_12 {dimension_numbers = #tpu.dot_dimension_numbers<[1], [0], [0], [1], [0, 0, 1, 1], [], []>} : vector<4x1152xf32>, vector<1152x256xf32>, vector<4x256xf32> -> vector<4x256xf32>
    %11 = arith.maximumf %7, %10 : vector<4x256xf32>
    %c0_13 = arith.constant 0 : index
    %c3 = arith.constant 3 : index
    %c0_14 = arith.constant 0 : index
    %c0_15 = arith.constant 0 : index
    %12 = vector.load %arg1[%c0_13, %c3, %c0_14, %c0_15] : memref<1x4x4x1152xf32, #tpu.memory_space<vmem>>, vector<1x1x4x1152xf32>
    %13 = vector.shape_cast %12 : vector<1x1x4x1152xf32> to vector<4x1152xf32>
    %cst_16 = arith.constant dense<0.000000e+00> : vector<4x256xf32>
    %14 = tpu.matmul %13, %0, %cst_16 {dimension_numbers = #tpu.dot_dimension_numbers<[1], [0], [0], [1], [0, 0, 1, 1], [], []>} : vector<4x1152xf32>, vector<1152x256xf32>, vector<4x256xf32> -> vector<4x256xf32>
    %15 = arith.maximumf %11, %14 : vector<4x256xf32>
    %c0_17 = arith.constant 0 : index
    %c0_18 = arith.constant 0 : index
    %16 = vector.load %arg3[%c0_17, %c0_18] : memref<1x256xf32, #tpu.memory_space<vmem>>, vector<1x256xf32>
    %17 = vector.broadcast %16 : vector<1x256xf32> to vector<4x256xf32>
    %18 = arith.addf %15, %17 : vector<4x256xf32>
    %cst_19 = arith.constant 0.000000e+00 : f32
    %19 = vector.broadcast %cst_19 : f32 to vector<4x256xf32>
    %20 = arith.maximumf %18, %19 : vector<4x256xf32>
    %c0_20 = arith.constant 0 : index
    %c0_21 = arith.constant 0 : index
    %c0_22 = arith.constant 0 : index
    %21 = vector.load %arg4[%c0_20, %c0_21, %c0_22] : memref<1x4x256xf32, #tpu.memory_space<vmem>>, vector<1x4x256xf32>
    %22 = vector.shape_cast %21 : vector<1x4x256xf32> to vector<4x256xf32>
    %23 = vector.shape_cast %20 : vector<4x256xf32> to vector<1x4x256xf32>
    tpu.vector_store %arg4[%c0_20, %c0_21, %c0_22], %23 {strides = array<i32>} : memref<1x4x256xf32, #tpu.memory_space<vmem>>, vector<1x4x256xf32>,
    return
  }
  func.func @transform_0(%arg0: i32) -> (i32, i32, i32, i32) {
    %c0_i32 = arith.constant 0 : i32
    %c0_i32_0 = arith.constant 0 : i32
    %c0_i32_1 = arith.constant 0 : i32
    %c0_i32_2 = arith.constant 0 : i32
    return %arg0, %c0_i32, %c0_i32_0, %c0_i32_1 : i32, i32, i32, i32
  }
  func.func @transform_1(%arg0: i32) -> (i32, i32) {
    %c0_i32 = arith.constant 0 : i32
    %c0_i32_0 = arith.constant 0 : i32
    %c0_i32_1 = arith.constant 0 : i32
    return %c0_i32, %c0_i32_0 : i32, i32
  }
  func.func @transform_2(%arg0: i32) -> (i32, i32) {
    %c0_i32 = arith.constant 0 : i32
    %c0_i32_0 = arith.constant 0 : i32
    %c0_i32_1 = arith.constant 0 : i32
    return %c0_i32, %c0_i32_0 : i32, i32
  }
  func.func @transform_3(%arg0: i32) -> (i32, i32, i32) {
    %c0_i32 = arith.constant 0 : i32
    %c0_i32_0 = arith.constant 0 : i32
    %c0_i32_1 = arith.constant 0 : i32
    return %arg0, %c0_i32, %c0_i32_0 : i32, i32, i32
  }
}

module attributes {stable_mosaic.version = 11 : i64} {
  func.func @_head_kernel(%arg0: memref<2x4x256xf32, #tpu.memory_space<vmem>>, %arg1: memref<256x128xf32, #tpu.memory_space<vmem>>, %arg2: memref<1x128xf32, #tpu.memory_space<vmem>>, %arg3: memref<128x10xf32, #tpu.memory_space<vmem>>, %arg4: memref<1x10xf32, #tpu.memory_space<vmem>>, %arg5: memref<2x10xf32, #tpu.memory_space<vmem>>) attributes {dimension_semantics = [], scalar_prefetch = 0 : i64, scratch_operands = 0 : i64, tpu.core_type = #tpu.core_type<tc>} {
    %c0 = arith.constant 0 : index
    %c0_0 = arith.constant 0 : index
    %c0_1 = arith.constant 0 : index
    %0 = vector.load %arg0[%c0, %c0_0, %c0_1] : memref<2x4x256xf32, #tpu.memory_space<vmem>>, vector<2x4x256xf32>
    %cst = arith.constant dense<0.000000e+00> : vector<2x256xf32>
    %1 = vector.multi_reduction <add>, %0, %cst [1] : vector<2x4x256xf32> to vector<2x256xf32>
    %cst_2 = arith.constant 4.000000e+00 : f32
    %2 = vector.broadcast %cst_2 : f32 to vector<2x256xf32>
    %3 = arith.divf %1, %2 : vector<2x256xf32>
    %c0_3 = arith.constant 0 : index
    %c0_4 = arith.constant 0 : index
    %4 = vector.load %arg1[%c0_3, %c0_4] : memref<256x128xf32, #tpu.memory_space<vmem>>, vector<256x128xf32>
    %cst_5 = arith.constant dense<0.000000e+00> : vector<2x128xf32>
    %5 = tpu.matmul %3, %4, %cst_5 {dimension_numbers = #tpu.dot_dimension_numbers<[1], [0], [0], [1], [0, 0, 1, 1], [], []>} : vector<2x256xf32>, vector<256x128xf32>, vector<2x128xf32> -> vector<2x128xf32>
    %c0_6 = arith.constant 0 : index
    %c0_7 = arith.constant 0 : index
    %6 = vector.load %arg2[%c0_6, %c0_7] : memref<1x128xf32, #tpu.memory_space<vmem>>, vector<1x128xf32>
    %7 = vector.broadcast %6 : vector<1x128xf32> to vector<2x128xf32>
    %8 = arith.addf %5, %7 : vector<2x128xf32>
    %cst_8 = arith.constant 0.000000e+00 : f32
    %9 = vector.broadcast %cst_8 : f32 to vector<2x128xf32>
    %10 = arith.maximumf %8, %9 : vector<2x128xf32>
    %c0_9 = arith.constant 0 : index
    %c0_10 = arith.constant 0 : index
    %11 = vector.load %arg3[%c0_9, %c0_10] : memref<128x10xf32, #tpu.memory_space<vmem>>, vector<128x10xf32>
    %cst_11 = arith.constant dense<0.000000e+00> : vector<2x10xf32>
    %12 = tpu.matmul %10, %11, %cst_11 {dimension_numbers = #tpu.dot_dimension_numbers<[1], [0], [0], [1], [0, 0, 1, 1], [], []>} : vector<2x128xf32>, vector<128x10xf32>, vector<2x10xf32> -> vector<2x10xf32>
    %c0_12 = arith.constant 0 : index
    %c0_13 = arith.constant 0 : index
    %13 = vector.load %arg4[%c0_12, %c0_13] : memref<1x10xf32, #tpu.memory_space<vmem>>, vector<1x10xf32>
    %14 = vector.broadcast %13 : vector<1x10xf32> to vector<2x10xf32>
    %15 = arith.addf %12, %14 : vector<2x10xf32>
    %c0_14 = arith.constant 0 : index
    %c0_15 = arith.constant 0 : index
    %16 = vector.load %arg5[%c0_14, %c0_15] : memref<2x10xf32, #tpu.memory_space<vmem>>, vector<2x10xf32>
    tpu.vector_store %arg5[%c0_14, %c0_15], %15 {strides = array<i32>} : memref<2x10xf32, #tpu.memory_space<vmem>>, vector<2x10xf32>,
    return
  }
}

</mosaic_0001>

<bundles_post_ra>
// kernel: simple_cnn_forward.5
= control target key start
LH: loop header
LB: loop body
LE: loop exit
PB: predicated region body
PF: predicated region fallthrough
CT: control target
= control target key end

     0   :  { %s2496_s12 = smov 0   ;;  %s3100_s0 = inlined_call_operand.vmem [shape: f32[2,4,256,27], index: 0, kind: input, shape index: {}]   ;;  %s3101_s1 = inlined_call_operand.vmem [shape: f32[27,32], index: 1, kind: input, shape index: {}]   ;;  %s3102_s2 = inlined_call_operand.vmem [shape: f32[1,32], index: 2, kind: input, shape index: {}]   ;;  %s3103_s3 = inlined_call_operand.vmem [shape: f32[2,256,32], index: 3, kind: output, shape index: {}]  }
   0x1 LB: > { %s1850_s13 = sadd.s32 4294967295, %s2474_s12   ;;  %p1854_p0 = scmp.ge.s32.totalorder %s2474_s12, 1  ;;  %s2474_s12 = sphi %s2496_s12, %s13_s12  }
   0x2   : > { %p137_p1 = scmp.lt.s32.totalorder %s2474_s12, 3 }
   0x4   : > { %p138_p2 = pnand %p1854_p0, %p137_p1 }
   0x6   : > { %141 = sbr.rel (%p138_p2) target bundleno = 349 (0x15d), region = 32 }
   0xb   : > { %v174_v0 = vld [vmem:[%s3101_s1 + $0x18] sm:$0x7]  ;;  %vm304_vm0 = vcmask 1042432   ;;  %v173_v1 = vld [vmem:[%s3101_s1 + $0x10] sm:$0xff]  ;;  %p161_p3 = scmp.lt.s32.totalorder %s1850_s13, 1  ;;  %v172_v2 = vld [vmem:[%s3101_s1 + $0x8] sm:$0xff] }
   0xc   : > { %2236 = vmatprep.subr.msk.mxu0 %vm304_vm0, %v174_v0  ;;  %2292 = vmatprep.subr.msk.mxu1 %vm304_vm0, %v174_v0  ;;  %v2522_v3 = vld [vmem:[%s3101_s1] sm:$0xff]  ;;  %vm207_vm1 = vcmask 220160   ;;  %vm1762_vm2 = vcmask 261120  }
   0xd   : > { %2237 = vmatpush3.msk.msra.mxu0 %vm304_vm0, %v174_v0  ;;  %2293 = vmatpush3.msk.msra.mxu1 %vm304_vm0, %v174_v0  ;;  %s3129_s13 = smov (!%p161_p3, %s1850_s13), 1 }
   0xe   : > { %2238 = vmatprep.subr.mxu0 %v173_v1  ;;  %2294 = vmatprep.subr.mxu1 %v173_v1  ;;  %s2090_s22 = sshll.u32 %s3129_s13, 10  ;;  %s2091_s28 = sshll.u32 %s3129_s13, 8 }
   0xf   : > { %2239 = vmatpush3.msra.mxu0 %v173_v1  ;;  %2295 = vmatpush3.msra.mxu1 %v173_v1  ;;  %s2528_s25 = scalar_lea.vmem %s3100_s0, %s2090_s22  ;;  %s2946_s4 = scalar_lea.vmem %s3103_s3, %s2091_s28 }
  0x10   : > { %2240 = vmatprep.subr.mxu0 %v172_v2  ;;  %2296 = vmatprep.subr.mxu1 %v172_v2  ;;  %v175_v4 = vld [vmem:[%s2528_s25] sm:$0xff]  ;;  %v176_v6 = vld [vmem:[%s2528_s25 + $0x8] sm:$0xff]  ;;  %v177_v8 = vld [vmem:[%s2528_s25 + $0x10] sm:$0xff] }
  0x11   : > { %2241 = vmatpush3.msra.mxu0 %v172_v2  ;;  %2297 = vmatpush3.msra.mxu1 %v172_v2  ;;  %v1892_v5 = vld [vmem:[%s2528_s25 + $0x100] sm:$0xff]  ;;  %v1893_v7 = vld [vmem:[%s2528_s25 + $0x108] sm:$0xff]  ;;  %v1894_v9 = vld [vmem:[%s2528_s25 + $0x110] sm:$0xff] }
  0x12   : > { %2242 = vmatprep.subr.mxu0 %v2522_v3  ;;  %2298 = vmatprep.subr.mxu1 %v2522_v3  ;;  %v178_v10 = vld [vmem:[%s2528_s25 + $0x18] sm:$0xff]  ;;  %v179_v12 = vld [vmem:[%s2528_s25 + $0x20] sm:$0xff]  ;;  %v180_v14 = vld [vmem:[%s2528_s25 + $0x28] sm:$0xff] }
  0x13   : > { %2243 = vmatpush3.msra.mxu0 %v2522_v3  ;;  %2244 = vmatprep.mubr.msk.f32.mxu0 %vm207_vm1, %v175_v4  ;;  %v1895_v11 = vld [vmem:[%s2528_s25 + $0x118] sm:$0xff]  ;;  %v1896_v13 = vld [vmem:[%s2528_s25 + $0x120] sm:$0xff]  ;;  %v1897_v15 = vld [vmem:[%s2528_s25 + $0x128] sm:$0xff] }
  0x14   : > { %2299 = vmatpush3.msra.mxu1 %v2522_v3  ;;  %2300 = vmatprep.mubr.msk.f32.mxu1 %vm207_vm1, %v1892_v5  ;;  %v181_v16 = vld [vmem:[%s2528_s25 + $0x30] sm:$0xff]  ;;  %v182_v18 = vld [vmem:[%s2528_s25 + $0x38] sm:$0xff]  ;;  %v183_v20 = vld [vmem:[%s2528_s25 + $0x40] sm:$0xff] }
  0x15   : > { %2245 = vmatmul.mubr.msk.f32.vlgmr.msra.gmra.mxu0 %vm207_vm1, %v176_v6  ;;  %2301 = vmatmul.mubr.msk.f32.vlgmr.msra.gmra.mxu1 %vm207_vm1, %v1893_v7  ;;  %v1898_v17 = vld [vmem:[%s2528_s25 + $0x130] sm:$0xff]  ;;  %v1899_v19 = vld [vmem:[%s2528_s25 + $0x138] sm:$0xff]  ;;  %v1900_v21 = vld [vmem:[%s2528_s25 + $0x140] sm:$0xff] }
  0x16   : > { %2348 = vmatprep.subr.msk.mxu0 %vm304_vm0, %v174_v0  ;;  %2404 = vmatprep.subr.msk.mxu1 %vm304_vm0, %v174_v0  ;;  %v184_v22 = vld [vmem:[%s2528_s25 + $0x48] sm:$0xff]  ;;  %v185_v24 = vld [vmem:[%s2528_s25 + $0x50] sm:$0xff]  ;;  %v186_v26 = vld [vmem:[%s2528_s25 + $0x58] sm:$0xff] }
  0x17   : > { %2349 = vmatpush3.msk.msra.mxu0 %vm304_vm0, %v174_v0  ;;  %2247 = vmatprep.mubr.msk.f32.mxu0 %vm207_vm1, %v177_v8  ;;  %v1901_v23 = vld [vmem:[%s2528_s25 + $0x148] sm:$0xff]  ;;  %v1902_v25 = vld [vmem:[%s2528_s25 + $0x150] sm:$0xff]  ;;  %v1903_v27 = vld [vmem:[%s2528_s25 + $0x158] sm:$0xff] }
  0x18   : > { %2303 = vmatprep.mubr.msk.f32.mxu1 %vm207_vm1, %v1894_v9  ;;  %2405 = vmatpush3.msk.msra.mxu1 %vm304_vm0, %v174_v0  ;;  %v187_v28 = vld [vmem:[%s2528_s25 + $0x60] sm:$0xff]  ;;  %v188_v30 = vld [vmem:[%s2528_s25 + $0x68] sm:$0xff]  ;;  %v189_v32 = vld [vmem:[%s2528_s25 + $0x70] sm:$0xff] }
  0x19   : > { %2248 = vmatmul.mubr.msk.f32.gmra.mxu0 %vm207_vm1, %v178_v10  ;;  %2304 = vmatmul.mubr.msk.f32.gmra.mxu1 %vm207_vm1, %v1895_v11  ;;  %v1904_v29 = vld [vmem:[%s2528_s25 + $0x160] sm:$0xff]  ;;  %v1905_v31 = vld [vmem:[%s2528_s25 + $0x168] sm:$0xff]  ;;  %v1906_v33 = vld [vmem:[%s2528_s25 + $0x170] sm:$0xff] }
  0x1a   : > { %2250 = vmatprep.mubr.msk.f32.mxu0 %vm207_vm1, %v179_v12  ;;  %2306 = vmatprep.mubr.msk.f32.mxu1 %vm207_vm1, %v1896_v13  ;;  %v190_v34 = vld [vmem:[%s2528_s25 + $0x78] sm:$0xff]  ;;  %v191_v36 = vld [vmem:[%s2528_s25 + $0x80] sm:$0xff]  ;;  %v192_v38 = vld [vmem:[%s2528_s25 + $0x88] sm:$0xff] }
  0x1b   : > { %2350 = vmatprep.subr.mxu0 %v173_v1  ;;  %2406 = vmatprep.subr.mxu1 %v173_v1  ;;  %v1907_v35 = vld [vmem:[%s2528_s25 + $0x178] sm:$0xff]  ;;  %v1908_v37 = vld [vmem:[%s2528_s25 + $0x180] sm:$0xff]  ;;  %v1909_v39 = vld [vmem:[%s2528_s25 + $0x188] sm:$0xff] }
  0x1c   : > { %2351 = vmatpush3.msra.mxu0 %v173_v1  ;;  %2407 = vmatpush3.msra.mxu1 %v173_v1  ;;  %v193_v40 = vld [vmem:[%s2528_s25 + $0x90] sm:$0xff]  ;;  %v194_v42 = vld [vmem:[%s2528_s25 + $0x98] sm:$0xff]  ;;  %v195_v44 = vld [vmem:[%s2528_s25 + $0xa0] sm:$0xff] }
  0x1d   : > { %2251 = vmatmul.mubr.msk.f32.gmra.mxu0 %vm207_vm1, %v180_v14  ;;  %2307 = vmatmul.mubr.msk.f32.gmra.mxu1 %vm207_vm1, %v1897_v15  ;;  %v1910_v41 = vld [vmem:[%s2528_s25 + $0x190] sm:$0xff]  ;;  %v1911_v43 = vld [vmem:[%s2528_s25 + $0x198] sm:$0xff]  ;;  %v1912_v45 = vld [vmem:[%s2528_s25 + $0x1a0] sm:$0xff] }
  0x1e   : > { %2253 = vmatprep.mubr.msk.f32.mxu0 %vm207_vm1, %v181_v16  ;;  %2309 = vmatprep.mubr.msk.f32.mxu1 %vm207_vm1, %v1898_v17  ;;  %v196_v46 = vld [vmem:[%s2528_s25 + $0xa8] sm:$0xff]  ;;  %v197_v48 = vld [vmem:[%s2528_s25 + $0xb0] sm:$0xff]  ;;  %v198_v50 = vld [vmem:[%s2528_s25 + $0xb8] sm:$0xff] }
  0x1f   : > { %2352 = vmatprep.subr.mxu0 %v172_v2  ;;  %2408 = vmatprep.subr.mxu1 %v172_v2  ;;  %v1913_v47 = vld [vmem:[%s2528_s25 + $0x1a8] sm:$0xff]  ;;  %v1914_v49 = vld [vmem:[%s2528_s25 + $0x1b0] sm:$0xff]  ;;  %v1915_v51 = vld [vmem:[%s2528_s25 + $0x1b8] sm:$0xff] }
  0x20   : > { %2353 = vmatpush3.msra.mxu0 %v172_v2  ;;  %2409 = vmatpush3.msra.mxu1 %v172_v2  ;;  %v199_v52 = vld [vmem:[%s2528_s25 + $0xc0] sm:$0xff]  ;;  %v200_v54 = vld [vmem:[%s2528_s25 + $0xc8] sm:$0xff]  ;;  %v201_v56 = vld [vmem:[%s2528_s25 + $0xd0] sm:$0xff] }
  0x21   : > { %2254 = vmatmul.mubr.msk.f32.gmra.mxu0 %vm207_vm1, %v182_v18  ;;  %2310 = vmatmul.mubr.msk.f32.gmra.mxu1 %vm207_vm1, %v1899_v19  ;;  %v1916_v53 = vld [vmem:[%s2528_s25 + $0x1c0] sm:$0xff]  ;;  %v1917_v55 = vld [vmem:[%s2528_s25 + $0x1c8] sm:$0xff]  ;;  %v1918_v57 = vld [vmem:[%s2528_s25 + $0x1d0] sm:$0xff] }
  0x22   : > { %2256 = vmatprep.mubr.msk.f32.mxu0 %vm207_vm1, %v183_v20  ;;  %2312 = vmatprep.mubr.msk.f32.mxu1 %vm207_vm1, %v1900_v21  ;;  %v202_v58 = vld [vmem:[%s2528_s25 + $0xd8] sm:$0xff]  ;;  %v203_v60 = vld [vmem:[%s2528_s25 + $0xe0] sm:$0xff]  ;;  %v204_v62 = vld [vmem:[%s2528_s25 + $0xe8] sm:$0xff] }
  0x23   : > { %2354 = vmatprep.subr.mxu0 %v2522_v3  ;;  %2410 = vmatprep.subr.mxu1 %v2522_v3  ;;  %v1919_v59 = vld [vmem:[%s2528_s25 + $0x1d8] sm:$0xff]  ;;  %v1920_v61 = vld [vmem:[%s2528_s25 + $0x1e0] sm:$0xff]  ;;  %v1921_v63 = vld [vmem:[%s2528_s25 + $0x1e8] sm:$0xff] }
  0x24   : > { %2355 = vmatpush3.msra.mxu0 %v2522_v3  ;;  %2411 = vmatpush3.msra.mxu1 %v2522_v3  ;;  %v205_v0 = vld [vmem:[%s2528_s25 + $0xf0] sm:$0xff]  ;;  %v206_v2 = vld [vmem:[%s2528_s25 + $0xf8] sm:$0xff]  ;;  %v1957_v4 = vld [vmem:[%s2528_s25 + $0x200] sm:$0xff] }
  0x25   : > { %2257 = vmatmul.mubr.msk.f32.gmra.mxu0 %vm207_vm1, %v184_v22  ;;  %2313 = vmatmul.mubr.msk.f32.gmra.mxu1 %vm207_vm1, %v1901_v23  ;;  %v1922_v1 = vld [vmem:[%s2528_s25 + $0x1f0] sm:$0xff]  ;;  %v1923_v3 = vld [vmem:[%s2528_s25 + $0x1f8] sm:$0xff]  ;;  %v2022_v5 = vld [vmem:[%s2528_s25 + $0x300] sm:$0xff] }
  0x26   : > { %2259 = vmatprep.mubr.msk.f32.mxu0 %vm207_vm1, %v185_v24  ;;  %2315 = vmatprep.mubr.msk.f32.mxu1 %vm207_vm1, %v1902_v25  ;;  %v1958_v6 = vld [vmem:[%s2528_s25 + $0x208] sm:$0xff]  ;;  %v1959_v8 = vld [vmem:[%s2528_s25 + $0x210] sm:$0xff]  ;;  %v1960_v10 = vld [vmem:[%s2528_s25 + $0x218] sm:$0xff] }
  0x27   : > { %v2023_v7 = vld [vmem:[%s2528_s25 + $0x308] sm:$0xff]  ;;  %v2024_v9 = vld [vmem:[%s2528_s25 + $0x310] sm:$0xff]  ;;  %v2025_v11 = vld [vmem:[%s2528_s25 + $0x318] sm:$0xff] }
  0x28   : > { %v1961_v12 = vld [vmem:[%s2528_s25 + $0x220] sm:$0xff]  ;;  %v1962_v14 = vld [vmem:[%s2528_s25 + $0x228] sm:$0xff]  ;;  %v1963_v16 = vld [vmem:[%s2528_s25 + $0x230] sm:$0xff] }
  0x29   : > { %2260 = vmatmul.mubr.msk.f32.gmra.mxu0 %vm207_vm1, %v186_v26  ;;  %2316 = vmatmul.mubr.msk.f32.gmra.mxu1 %vm207_vm1, %v1903_v27  ;;  %v2026_v13 = vld [vmem:[%s2528_s25 + $0x320] sm:$0xff]  ;;  %v2027_v15 = vld [vmem:[%s2528_s25 + $0x328] sm:$0xff]  ;;  %v2028_v17 = vld [vmem:[%s2528_s25 + $0x330] sm:$0xff] }
  0x2a   : > { %2262 = vmatprep.mubr.msk.f32.mxu0 %vm207_vm1, %v187_v28  ;;  %2318 = vmatprep.mubr.msk.f32.mxu1 %vm207_vm1, %v1904_v29  ;;  %v1964_v18 = vld [vmem:[%s2528_s25 + $0x238] sm:$0xff]  ;;  %v1965_v20 = vld [vmem:[%s2528_s25 + $0x240] sm:$0xff]  ;;  %v1966_v22 = vld [vmem:[%s2528_s25 + $0x248] sm:$0xff] }
  0x2b   : > { %v2029_v19 = vld [vmem:[%s2528_s25 + $0x338] sm:$0xff]  ;;  %v2030_v21 = vld [vmem:[%s2528_s25 + $0x340] sm:$0xff]  ;;  %v2031_v23 = vld [vmem:[%s2528_s25 + $0x348] sm:$0xff] }
  0x2c   : > { %v1967_v24 = vld [vmem:[%s2528_s25 + $0x250] sm:$0xff]  ;;  %v1968_v26 = vld [vmem:[%s2528_s25 + $0x258] sm:$0xff]  ;;  %v1969_v28 = vld [vmem:[%s2528_s25 + $0x260] sm:$0xff] }
  0x2d   : > { %2263 = vmatmul.mubr.msk.f32.gmra.mxu0 %vm207_vm1, %v188_v30  ;;  %2319 = vmatmul.mubr.msk.f32.gmra.mxu1 %vm207_vm1, %v1905_v31  ;;  %v2032_v25 = vld [vmem:[%s2528_s25 + $0x350] sm:$0xff]  ;;  %v2033_v27 = vld [vmem:[%s2528_s25 + $0x358] sm:$0xff]  ;;  %v2034_v29 = vld [vmem:[%s2528_s25 + $0x360] sm:$0xff] }
  0x2e   : > { %2265 = vmatprep.mubr.msk.f32.mxu0 %vm207_vm1, %v189_v32  ;;  %2321 = vmatprep.mubr.msk.f32.mxu1 %vm207_vm1, %v1906_v33  ;;  %v1970_v30 = vld [vmem:[%s2528_s25 + $0x268] sm:$0xff]  ;;  %v1971_v32 = vld [vmem:[%s2528_s25 + $0x270] sm:$0xff] }
  0x2f   : > { %v2035_v31 = vld [vmem:[%s2528_s25 + $0x368] sm:$0xff]  ;;  %v2036_v33 = vld [vmem:[%s2528_s25 + $0x370] sm:$0xff] }
  0x31   : > { %2266 = vmatmul.mubr.msk.f32.gmra.mxu0 %vm207_vm1, %v190_v34  ;;  %2322 = vmatmul.mubr.msk.f32.gmra.mxu1 %vm207_vm1, %v1907_v35  ;;  %v1972_v34 = vld [vmem:[%s2528_s25 + $0x278] sm:$0xff] }
  0x32   : > { %2268 = vmatprep.mubr.msk.f32.mxu0 %vm207_vm1, %v191_v36  ;;  %2324 = vmatprep.mubr.msk.f32.mxu1 %vm207_vm1, %v1908_v37  ;;  %v2037_v35 = vld [vmem:[%s2528_s25 + $0x378] sm:$0xff]  ;;  %v1973_v36 = vld [vmem:[%s2528_s25 + $0x280] sm:$0xff] }
  0x33   : > { %v2038_v37 = vld [vmem:[%s2528_s25 + $0x380] sm:$0xff] }
  0x35   : > { %2269 = vmatmul.mubr.msk.f32.gmra.mxu0 %vm207_vm1, %v192_v38  ;;  %2325 = vmatmul.mubr.msk.f32.gmra.mxu1 %vm207_vm1, %v1909_v39  ;;  %v1974_v38 = vld [vmem:[%s2528_s25 + $0x288] sm:$0xff] }
  0x36   : > { %2271 = vmatprep.mubr.msk.f32.mxu0 %vm207_vm1, %v193_v40  ;;  %2327 = vmatprep.mubr.msk.f32.mxu1 %vm207_vm1, %v1910_v41  ;;  %v2039_v39 = vld [vmem:[%s2528_s25 + $0x388] sm:$0xff]  ;;  %v1975_v40 = vld [vmem:[%s2528_s25 + $0x290] sm:$0xff] }
  0x37   : > { %v2040_v41 = vld [vmem:[%s2528_s25 + $0x390] sm:$0xff] }
  0x39   : > { %2272 = vmatmul.mubr.msk.f32.gmra.mxu0 %vm207_vm1, %v194_v42  ;;  %2328 = vmatmul.mubr.msk.f32.gmra.mxu1 %vm207_vm1, %v1911_v43  ;;  %v1976_v42 = vld [vmem:[%s2528_s25 + $0x298] sm:$0xff] }
  0x3a   : > { %2274 = vmatprep.mubr.msk.f32.mxu0 %vm207_vm1, %v195_v44  ;;  %2330 = vmatprep.mubr.msk.f32.mxu1 %vm207_vm1, %v1912_v45  ;;  %v2041_v43 = vld [vmem:[%s2528_s25 + $0x398] sm:$0xff]  ;;  %v1977_v44 = vld [vmem:[%s2528_s25 + $0x2a0] sm:$0xff] }
  0x3b   : > { %v2042_v45 = vld [vmem:[%s2528_s25 + $0x3a0] sm:$0xff] }
  0x3d   : > { %2275 = vmatmul.mubr.msk.f32.gmra.mxu0 %vm207_vm1, %v196_v46  ;;  %2331 = vmatmul.mubr.msk.f32.gmra.mxu1 %vm207_vm1, %v1913_v47  ;;  %v1978_v46 = vld [vmem:[%s2528_s25 + $0x2a8] sm:$0xff] }
  0x3e   : > { %2277 = vmatprep.mubr.msk.f32.mxu0 %vm207_vm1, %v197_v48  ;;  %2333 = vmatprep.mubr.msk.f32.mxu1 %vm207_vm1, %v1914_v49  ;;  %v2043_v47 = vld [vmem:[%s2528_s25 + $0x3a8] sm:$0xff]  ;;  %v1979_v48 = vld [vmem:[%s2528_s25 + $0x2b0] sm:$0xff] }
  0x3f   : > { %v2044_v49 = vld [vmem:[%s2528_s25 + $0x3b0] sm:$0xff] }
  0x41   : > { %2278 = vmatmul.mubr.msk.f32.gmra.mxu0 %vm207_vm1, %v198_v50  ;;  %2334 = vmatmul.mubr.msk.f32.gmra.mxu1 %vm207_vm1, %v1915_v51  ;;  %v1980_v50 = vld [vmem:[%s2528_s25 + $0x2b8] sm:$0xff] }
  0x42   : > { %2280 = vmatprep.mubr.msk.f32.mxu0 %vm207_vm1, %v199_v52  ;;  %2336 = vmatprep.mubr.msk.f32.mxu1 %vm207_vm1, %v1916_v53  ;;  %v2045_v51 = vld [vmem:[%s2528_s25 + $0x3b8] sm:$0xff]  ;;  %v1981_v52 = vld [vmem:[%s2528_s25 + $0x2c0] sm:$0xff] }
  0x43   : > { %v2046_v53 = vld [vmem:[%s2528_s25 + $0x3c0] sm:$0xff] }
  0x45   : > { %2281 = vmatmul.mubr.msk.f32.gmra.mxu0 %vm207_vm1, %v200_v54  ;;  %2337 = vmatmul.mubr.msk.f32.gmra.mxu1 %vm207_vm1, %v1917_v55  ;;  %v1982_v54 = vld [vmem:[%s2528_s25 + $0x2c8] sm:$0xff] }
  0x46   : > { %2283 = vmatprep.mubr.msk.f32.mxu0 %vm207_vm1, %v201_v56  ;;  %2339 = vmatprep.mubr.msk.f32.mxu1 %vm207_vm1, %v1918_v57  ;;  %v2047_v55 = vld [vmem:[%s2528_s25 + $0x3c8] sm:$0xff]  ;;  %v1983_v56 = vld [vmem:[%s2528_s25 + $0x2d0] sm:$0xff] }
  0x47   : > { %v2048_v57 = vld [vmem:[%s2528_s25 + $0x3d0] sm:$0xff] }
  0x49   : > { %2284 = vmatmul.mubr.msk.f32.gmra.mxu0 %vm207_vm1, %v202_v58  ;;  %2340 = vmatmul.mubr.msk.f32.gmra.mxu1 %vm207_vm1, %v1919_v59  ;;  %v1984_v58 = vld [vmem:[%s2528_s25 + $0x2d8] sm:$0xff] }
  0x4a   : > { %2286 = vmatprep.mubr.msk.f32.mxu0 %vm207_vm1, %v203_v60  ;;  %2342 = vmatprep.mubr.msk.f32.mxu1 %vm207_vm1, %v1920_v61  ;;  %v2049_v59 = vld [vmem:[%s2528_s25 + $0x3d8] sm:$0xff]  ;;  %v1985_v60 = vld [vmem:[%s2528_s25 + $0x2e0] sm:$0xff] }
  0x4b   : > { %v2050_v61 = vld [vmem:[%s2528_s25 + $0x3e0] sm:$0xff] }
  0x4d   : > { %2287 = vmatmul.mubr.msk.f32.gmra.mxu0 %vm207_vm1, %v204_v62  ;;  %2343 = vmatmul.mubr.msk.f32.gmra.mxu1 %vm207_vm1, %v1921_v63  ;;  %v1986_v62 = vld [vmem:[%s2528_s25 + $0x2e8] sm:$0xff] }
  0x4e   : > { %2289 = vmatprep.mubr.msk.f32.mxu0 %vm207_vm1, %v205_v0  ;;  %2345 = vmatprep.mubr.msk.f32.mxu1 %vm207_vm1, %v1922_v1  ;;  %v2051_v63 = vld [vmem:[%s2528_s25 + $0x3e8] sm:$0xff]  ;;  %v1987_v0 = vld [vmem:[%s2528_s25 + $0x2f0] sm:$0xff] }
  0x4f   : > { %v2052_v1 = vld [vmem:[%s2528_s25 + $0x3f0] sm:$0xff] }
  0x51   : > { %2290 = vmatmul.mubr.msk.f32.gmra.mxu0 %vm207_vm1, %v206_v2  ;;  %2346 = vmatmul.mubr.msk.f32.gmra.mxu1 %vm207_vm1, %v1923_v3  ;;  %v1988_v2 = vld [vmem:[%s2528_s25 + $0x2f8] sm:$0xff] }
  0x52   : > { %2356 = vmatprep.mubr.msk.f32.mxu0 %vm207_vm1, %v1957_v4  ;;  %2412 = vmatprep.mubr.msk.f32.mxu1 %vm207_vm1, %v2022_v5  ;;  %v2053_v3 = vld [vmem:[%s2528_s25 + $0x3f8] sm:$0xff] }
  0x55   : > { %2357 = vmatmul.mubr.msk.f32.vlgmr.msra.gmra.mxu0 %vm207_vm1, %v1958_v6  ;;  %2413 = vmatmul.mubr.msk.f32.vlgmr.msra.gmra.mxu1 %vm207_vm1, %v2023_v7 }
  0x56   : > { %2359 = vmatprep.mubr.msk.f32.mxu0 %vm207_vm1, %v1959_v8  ;;  %2415 = vmatprep.mubr.msk.f32.mxu1 %vm207_vm1, %v2024_v9 }
  0x59   : > { %2360 = vmatmul.mubr.msk.f32.gmra.mxu0 %vm207_vm1, %v1960_v10  ;;  %2416 = vmatmul.mubr.msk.f32.gmra.mxu1 %vm207_vm1, %v2025_v11 }
  0x5a   : > { %2362 = vmatprep.mubr.msk.f32.mxu0 %vm207_vm1, %v1961_v12  ;;  %2418 = vmatprep.mubr.msk.f32.mxu1 %vm207_vm1, %v2026_v13 }
  0x5d   : > { %2363 = vmatmul.mubr.msk.f32.gmra.mxu0 %vm207_vm1, %v1962_v14  ;;  %2419 = vmatmul.mubr.msk.f32.gmra.mxu1 %vm207_vm1, %v2027_v15 }
  0x5e   : > { %2365 = vmatprep.mubr.msk.f32.mxu0 %vm207_vm1, %v1963_v16  ;;  %2421 = vmatprep.mubr.msk.f32.mxu1 %vm207_vm1, %v2028_v17 }
  0x61   : > { %2366 = vmatmul.mubr.msk.f32.gmra.mxu0 %vm207_vm1, %v1964_v18  ;;  %2422 = vmatmul.mubr.msk.f32.gmra.mxu1 %vm207_vm1, %v2029_v19 }
  0x62   : > { %2368 = vmatprep.mubr.msk.f32.mxu0 %vm207_vm1, %v1965_v20  ;;  %2424 = vmatprep.mubr.msk.f32.mxu1 %vm207_vm1, %v2030_v21 }
  0x65   : > { %2369 = vmatmul.mubr.msk.f32.gmra.mxu0 %vm207_vm1, %v1966_v22  ;;  %2425 = vmatmul.mubr.msk.f32.gmra.mxu1 %vm207_vm1, %v2031_v23 }
  0x66   : > { %2371 = vmatprep.mubr.msk.f32.mxu0 %vm207_vm1, %v1967_v24  ;;  %2427 = vmatprep.mubr.msk.f32.mxu1 %vm207_vm1, %v2032_v25 }
  0x69   : > { %2372 = vmatmul.mubr.msk.f32.gmra.mxu0 %vm207_vm1, %v1968_v26  ;;  %2428 = vmatmul.mubr.msk.f32.gmra.mxu1 %vm207_vm1, %v2033_v27 }
  0x6a   : > { %2374 = vmatprep.mubr.msk.f32.mxu0 %vm207_vm1, %v1969_v28  ;;  %2430 = vmatprep.mubr.msk.f32.mxu1 %vm207_vm1, %v2034_v29 }
  0x6d   : > { %2375 = vmatmul.mubr.msk.f32.gmra.mxu0 %vm207_vm1, %v1970_v30  ;;  %2431 = vmatmul.mubr.msk.f32.gmra.mxu1 %vm207_vm1, %v2035_v31 }
  0x6e   : > { %2377 = vmatprep.mubr.msk.f32.mxu0 %vm207_vm1, %v1971_v32  ;;  %2433 = vmatprep.mubr.msk.f32.mxu1 %vm207_vm1, %v2036_v33 }
  0x71   : > { %2378 = vmatmul.mubr.msk.f32.gmra.mxu0 %vm207_vm1, %v1972_v34  ;;  %2434 = vmatmul.mubr.msk.f32.gmra.mxu1 %vm207_vm1, %v2037_v35 }
  0x72   : > { %2380 = vmatprep.mubr.msk.f32.mxu0 %vm207_vm1, %v1973_v36  ;;  %2436 = vmatprep.mubr.msk.f32.mxu1 %vm207_vm1, %v2038_v37 }
  0x75   : > { %2381 = vmatmul.mubr.msk.f32.gmra.mxu0 %vm207_vm1, %v1974_v38  ;;  %2437 = vmatmul.mubr.msk.f32.gmra.mxu1 %vm207_vm1, %v2039_v39 }
  0x76   : > { %2383 = vmatprep.mubr.msk.f32.mxu0 %vm207_vm1, %v1975_v40  ;;  %2439 = vmatprep.mubr.msk.f32.mxu1 %vm207_vm1, %v2040_v41 }
  0x79   : > { %2384 = vmatmul.mubr.msk.f32.gmra.mxu0 %vm207_vm1, %v1976_v42  ;;  %2440 = vmatmul.mubr.msk.f32.gmra.mxu1 %vm207_vm1, %v2041_v43 }
  0x7a   : > { %2386 = vmatprep.mubr.msk.f32.mxu0 %vm207_vm1, %v1977_v44  ;;  %2442 = vmatprep.mubr.msk.f32.mxu1 %vm207_vm1, %v2042_v45 }
  0x7d   : > { %2387 = vmatmul.mubr.msk.f32.gmra.mxu0 %vm207_vm1, %v1978_v46  ;;  %2443 = vmatmul.mubr.msk.f32.gmra.mxu1 %vm207_vm1, %v2043_v47 }
  0x7e   : > { %2389 = vmatprep.mubr.msk.f32.mxu0 %vm207_vm1, %v1979_v48  ;;  %2445 = vmatprep.mubr.msk.f32.mxu1 %vm207_vm1, %v2044_v49 }
  0x81   : > { %2390 = vmatmul.mubr.msk.f32.gmra.mxu0 %vm207_vm1, %v1980_v50  ;;  %2446 = vmatmul.mubr.msk.f32.gmra.mxu1 %vm207_vm1, %v2045_v51 }
  0x82   : > { %2392 = vmatprep.mubr.msk.f32.mxu0 %vm207_vm1, %v1981_v52  ;;  %2448 = vmatprep.mubr.msk.f32.mxu1 %vm207_vm1, %v2046_v53 }
  0x85   : > { %2393 = vmatmul.mubr.msk.f32.gmra.mxu0 %vm207_vm1, %v1982_v54  ;;  %2449 = vmatmul.mubr.msk.f32.gmra.mxu1 %vm207_vm1, %v2047_v55 }
  0x86   : > { %2395 = vmatprep.mubr.msk.f32.mxu0 %vm207_vm1, %v1983_v56  ;;  %2451 = vmatprep.mubr.msk.f32.mxu1 %vm207_vm1, %v2048_v57 }
  0x89   : > { %2396 = vmatmul.mubr.msk.f32.gmra.mxu0 %vm207_vm1, %v1984_v58  ;;  %2452 = vmatmul.mubr.msk.f32.gmra.mxu1 %vm207_vm1, %v2049_v59 }
  0x8a   : > { %2398 = vmatprep.mubr.msk.f32.mxu0 %vm207_vm1, %v1985_v60  ;;  %2454 = vmatprep.mubr.msk.f32.mxu1 %vm207_vm1, %v2050_v61 }
  0x8d   : > { %2399 = vmatmul.mubr.msk.f32.gmra.mxu0 %vm207_vm1, %v1986_v62  ;;  %2455 = vmatmul.mubr.msk.f32.gmra.mxu1 %vm207_vm1, %v2051_v63 }
  0x8e   : > { %2401 = vmatprep.mubr.msk.f32.mxu0 %vm207_vm1, %v1987_v0  ;;  %2457 = vmatprep.mubr.msk.f32.mxu1 %vm207_vm1, %v2052_v1 }
  0x91   : > { %2402 = vmatmul.mubr.msk.f32.gmra.mxu0 %vm207_vm1, %v1988_v2  ;;  %2458 = vmatmul.mubr.msk.f32.gmra.mxu1 %vm207_vm1, %v2053_v3 }
  0xd5   : > { %v2798_v4 = vpop.f32.mrf.mxu0  ;;  %v2800_v5 = vpop.f32.mrf.mxu1 }
  0xd7   : > { %v2802_v6 = vpop.f32.mrf.mxu0  ;;  %v2804_v7 = vpop.f32.mrf.mxu1 }
  0xd9   : > { %v2806_v8 = vpop.f32.mrf.mxu0  ;;  %v2808_v9 = vpop.f32.mrf.mxu1 }
  0xdb   : > { %v2810_v10 = vpop.f32.mrf.mxu0  ;;  %v2812_v11 = vpop.f32.mrf.mxu1 }
  0xdd   : > { %v2814_v12 = vpop.f32.mrf.mxu0  ;;  %v2816_v13 = vpop.f32.mrf.mxu1 }
  0xdf   : > { %v2818_v14 = vpop.f32.mrf.mxu0  ;;  %v2820_v15 = vpop.f32.mrf.mxu1 }
  0xe1   : > { %v2822_v16 = vpop.f32.mrf.mxu0  ;;  %v2824_v17 = vpop.f32.mrf.mxu1 }
  0xe3   : > { %v2826_v18 = vpop.f32.mrf.mxu0  ;;  %v2828_v19 = vpop.f32.mrf.mxu1 }
  0xe5   : > { %v2830_v20 = vpop.f32.mrf.mxu0  ;;  %v2832_v21 = vpop.f32.mrf.mxu1 }
  0xe7   : > { %v2834_v22 = vpop.f32.mrf.mxu0  ;;  %v2836_v23 = vpop.f32.mrf.mxu1 }
  0xe9   : > { %v2838_v24 = vpop.f32.mrf.mxu0  ;;  %v2840_v25 = vpop.f32.mrf.mxu1 }
  0xeb   : > { %v2842_v26 = vpop.f32.mrf.mxu0  ;;  %v2844_v27 = vpop.f32.mrf.mxu1 }
  0xed   : > { %v2846_v28 = vpop.f32.mrf.mxu0  ;;  %v2848_v29 = vpop.f32.mrf.mxu1 }
  0xef   : > { %v2850_v30 = vpop.f32.mrf.mxu0  ;;  %v2852_v31 = vpop.f32.mrf.mxu1 }
  0xf1   : > { %v2854_v32 = vpop.f32.mrf.mxu0  ;;  %v2856_v33 = vpop.f32.mrf.mxu1 }
  0xf3   : > { %v2858_v34 = vpop.f32.mrf.mxu0  ;;  %v2860_v35 = vpop.f32.mrf.mxu1 }
  0xf5   : > { %v2862_v36 = vpop.f32.mrf.mxu0  ;;  %v2864_v37 = vpop.f32.mrf.mxu1 }
  0xf7   : > { %v2866_v38 = vpop.f32.mrf.mxu0  ;;  %v2868_v39 = vpop.f32.mrf.mxu1 }
  0xf9   : > { %v2870_v40 = vpop.f32.mrf.mxu0  ;;  %v2872_v41 = vpop.f32.mrf.mxu1 }
  0xfb   : > { %v2874_v42 = vpop.f32.mrf.mxu0  ;;  %v2876_v43 = vpop.f32.mrf.mxu1 }
  0xfd   : > { %v2878_v44 = vpop.f32.mrf.mxu0  ;;  %v2880_v45 = vpop.f32.mrf.mxu1 }
  0xff   : > { %v2882_v46 = vpop.f32.mrf.mxu0  ;;  %v2884_v47 = vpop.f32.mrf.mxu1 }
 0x101   : > { %v2886_v48 = vpop.f32.mrf.mxu0  ;;  %v2888_v49 = vpop.f32.mrf.mxu1 }
 0x103   : > { %v2890_v50 = vpop.f32.mrf.mxu0  ;;  %v2892_v51 = vpop.f32.mrf.mxu1 }
 0x105   : > { %v2894_v52 = vpop.f32.mrf.mxu0  ;;  %v2896_v53 = vpop.f32.mrf.mxu1 }
 0x107   : > { %v2898_v54 = vpop.f32.mrf.mxu0  ;;  %v2900_v55 = vpop.f32.mrf.mxu1 }
 0x109   : > { %v2902_v56 = vpop.f32.mrf.mxu0  ;;  %v2904_v57 = vpop.f32.mrf.mxu1 }
 0x10a   : > { %3104 = vst [vmem:[#allocation2_spill] sm:$0xff] %v2902_v56  ;;  %3105 = vst [vmem:[#allocation3_spill] sm:$0xff] %v2904_v57  ;;  %v889_v57 = vmax.f32 %v2810_v10, %v2812_v11 }
 0x10b   : > { %v2906_v58 = vpop.f32.mrf.mxu0  ;;  %v2908_v59 = vpop.f32.mrf.mxu1 }
 0x10c   : > { %3106 = vst [vmem:[#allocation4_spill] sm:$0xff] %v2906_v58  ;;  %3107 = vst [vmem:[#allocation5_spill] sm:$0xff] %v2908_v59  ;;  %v888_v58 = vmax.f32 %v2798_v4, %v2800_v5 }
 0x10d   : > { %v2910_v60 = vpop.f32.mrf.mxu0  ;;  %v2912_v61 = vpop.f32.mrf.mxu1 }
 0x10e   : > { %3108 = vst [vmem:[#allocation6_spill] sm:$0xff] %v2910_v60  ;;  %3109 = vst [vmem:[#allocation7_spill] sm:$0xff] %v2912_v61  ;;  %v887_v61 = vmax.f32 %v2802_v6, %v2804_v7 }
 0x10f   : > { %v2914_v62 = vpop.f32.mrf.mxu0  ;;  %v2916_v63 = vpop.f32.mrf.mxu1 }
 0x110   : > { %3110 = vst [vmem:[#allocation8_spill] sm:$0xff] %v2914_v62  ;;  %3111 = vst [vmem:[#allocation9_spill] sm:$0xff] %v2916_v63  ;;  %v2933_v62 = vld [vmem:[%s3102_s2] ss:$0 sm:$0xff] }
 0x111   : > { %v2918_v0 = vpop.f32.mrf.mxu0  ;;  %v2920_v1 = vpop.f32.mrf.mxu1 }
 0x112   : > { %3112 = vst [vmem:[#allocation10_spill] sm:$0xff] %v2918_v0  ;;  %3113 = vst [vmem:[#allocation11_spill] sm:$0xff] %v2920_v1 }
 0x113   : > { %v2922_v2 = vpop.f32.mrf.mxu0  ;;  %v2924_v3 = vpop.f32.mrf.mxu1 }
 0x114   : > { %3114 = vst [vmem:[#allocation12_spill] sm:$0xff] %v2922_v2  ;;  %3115 = vst [vmem:[#allocation13_spill] sm:$0xff] %v2924_v3  ;;  %v890_v2 = vmax.f32 %v2806_v8, %v2808_v9 }
 0x115   : > { %v2358_v59 = vpop.f32.mrf.mxu0  ;;  %v2414_v60 = vpop.f32.mrf.mxu1 }
 0x116   : > { %v1274_v56 = vmax.f32 %v888_v58, %v2358_v59  ;;  %v892_v59 = vmax.f32 %v2814_v12, %v2816_v13 }
 0x117   : > { %v1114_v0 = vpop.f32.mrf.mxu0  ;;  %v1500_v1 = vpop.f32.mrf.mxu1 }
 0x118   : > { %v1660_v3 = vmax.f32 %v1274_v56, %v2414_v60  ;;  %v1273_v63 = vmax.f32 %v887_v61, %v1114_v0  ;;  %v891_v61 = vmax.f32 %v2818_v14, %v2820_v15 }
 0x119   : > { %v2361_v4 = vpop.f32.mrf.mxu0  ;;  %v2417_v5 = vpop.f32.mrf.mxu1 }
 0x11a   : > { %v1699_v6 = vadd.f32 %v2933_v62, %v1660_v3  ;;  %v1659_v7 = vmax.f32 %v1273_v63, %v1500_v1  ;;  %v1276_v58 = vmax.f32 %v890_v2, %v2361_v4  ;;  %v894_v3 = vmax.f32 %v2822_v16, %v2824_v17 }
 0x11b   : > { %v1124_v8 = vpop.f32.mrf.mxu0  ;;  %v1510_v9 = vpop.f32.mrf.mxu1 }
 0x11c   : > { %v1731_v56 = vmax.f32 %v1699_v6, 0.0  ;;  %v1698_v10 = vadd.f32 %v2933_v62, %v1659_v7  ;;  %v1662_v11 = vmax.f32 %v1276_v58, %v2417_v5  ;;  %v1275_v60 = vmax.f32 %v889_v57, %v1124_v8 }
 0x11d   : > { %v2364_v63 = vpop.f32.mrf.mxu0  ;;  %v2420_v12 = vpop.f32.mrf.mxu1  ;;  %v893_v7 = vmax.f32 %v2826_v18, %v2828_v19 }
 0x11e   : > { %1764 = vst.msk [vmem:[%s2946_s4 + $0x8] sm:$0xff] %vm1762_vm2, %v1731_v56  ;;  %v1730_v13 = vmax.f32 %v1698_v10, 0.0  ;;  %v1701_v0 = vadd.f32 %v2933_v62, %v1662_v11  ;;  %v1661_v1 = vmax.f32 %v1275_v60, %v1510_v9  ;;  %v1278_v2 = vmax.f32 %v892_v59, %v2364_v63 }
 0x11f   : > { %v1134_v4 = vpop.f32.mrf.mxu0  ;;  %v1520_v6 = vpop.f32.mrf.mxu1  ;;  %v896_v56 = vmax.f32 %v2830_v20, %v2832_v21  ;;  %v895_v63 = vmax.f32 %v2834_v22, %v2836_v23 }
 0x120   : > { %1763 = vst.msk [vmem:[%s2946_s4] sm:$0xff] %vm1762_vm2, %v1730_v13  ;;  %v1733_v57 = vmax.f32 %v1701_v0, 0.0  ;;  %v1700_v14 = vadd.f32 %v2933_v62, %v1661_v1  ;;  %v1664_v15 = vmax.f32 %v1278_v2, %v2420_v12  ;;  %v1277_v5 = vmax.f32 %v891_v61, %v1134_v4 }
 0x121   : > { %v2367_v58 = vpop.f32.mrf.mxu0  ;;  %v2423_v8 = vpop.f32.mrf.mxu1  ;;  %v898_v2 = vmax.f32 %v2838_v24, %v2840_v25 }
 0x122   : > { %1766 = vst.msk [vmem:[%s2946_s4 + $0x18] sm:$0xff] %vm1762_vm2, %v1733_v57  ;;  %v1732_v59 = vmax.f32 %v1700_v14, 0.0  ;;  %v1703_v16 = vadd.f32 %v2933_v62, %v1664_v15  ;;  %v1663_v17 = vmax.f32 %v1277_v5, %v1520_v6  ;;  %v1280_v9 = vmax.f32 %v894_v3, %v2367_v58 }
 0x123   : > { %v1144_v10 = vpop.f32.mrf.mxu0  ;;  %v1530_v11 = vpop.f32.mrf.mxu1  ;;  %v897_v14 = vmax.f32 %v2842_v26, %v2844_v27 }
 0x124   : > { %1765 = vst.msk [vmem:[%s2946_s4 + $0x10] sm:$0xff] %vm1762_vm2, %v1732_v59  ;;  %v1735_v60 = vmax.f32 %v1703_v16, 0.0  ;;  %v1702_v18 = vadd.f32 %v2933_v62, %v1663_v17  ;;  %v1666_v19 = vmax.f32 %v1280_v9, %v2423_v8  ;;  %v1279_v61 = vmax.f32 %v893_v7, %v1144_v10 }
 0x125   : > { %v2370_v12 = vpop.f32.mrf.mxu0  ;;  %v2426_v13 = vpop.f32.mrf.mxu1  ;;  %v900_v8 = vmax.f32 %v2846_v28, %v2848_v29 }
 0x126   : > { %1768 = vst.msk [vmem:[%s2946_s4 + $0x28] sm:$0xff] %vm1762_vm2, %v1735_v60  ;;  %v1734_v0 = vmax.f32 %v1702_v18, 0.0  ;;  %v1705_v20 = vadd.f32 %v2933_v62, %v1666_v19  ;;  %v1665_v21 = vmax.f32 %v1279_v61, %v1530_v11  ;;  %v1282_v1 = vmax.f32 %v896_v56, %v2370_v12 }
 0x127   : > { %v1154_v3 = vpop.f32.mrf.mxu0  ;;  %v1540_v4 = vpop.f32.mrf.mxu1  ;;  %v899_v56 = vmax.f32 %v2850_v30, %v2852_v31  ;;  %v902_v19 = vmax.f32 %v2854_v32, %v2856_v33 }
 0x128   : > { %1767 = vst.msk [vmem:[%s2946_s4 + $0x20] sm:$0xff] %vm1762_vm2, %v1734_v0  ;;  %v1737_v6 = vmax.f32 %v1705_v20, 0.0  ;;  %v1704_v22 = vadd.f32 %v2933_v62, %v1665_v21  ;;  %v1668_v23 = vmax.f32 %v1282_v1, %v2426_v13  ;;  %v1281_v57 = vmax.f32 %v895_v63, %v1154_v3 }
 0x129   : > { %v2373_v15 = vpop.f32.mrf.mxu0  ;;  %v2429_v5 = vpop.f32.mrf.mxu1  ;;  %v901_v0 = vmax.f32 %v2858_v34, %v2860_v35  ;;  %v904_v3 = vmax.f32 %v2862_v36, %v2864_v37 }
 0x12a   : > { %1770 = vst.msk [vmem:[%s2946_s4 + $0x38] sm:$0xff] %vm1762_vm2, %v1737_v6  ;;  %v1736_v7 = vmax.f32 %v1704_v22, 0.0  ;;  %v1707_v24 = vadd.f32 %v2933_v62, %v1668_v23  ;;  %v1667_v25 = vmax.f32 %v1281_v57, %v1540_v4  ;;  %v1284_v58 = vmax.f32 %v898_v2, %v2373_v15 }
 0x12b   : > { %v1164_v59 = vpop.f32.mrf.mxu0  ;;  %v1550_v16 = vpop.f32.mrf.mxu1  ;;  %v903_v57 = vmax.f32 %v2866_v38, %v2868_v39 }
 0x12c   : > { %1769 = vst.msk [vmem:[%s2946_s4 + $0x30] sm:$0xff] %vm1762_vm2, %v1736_v7  ;;  %v1739_v17 = vmax.f32 %v1707_v24, 0.0  ;;  %v1706_v26 = vadd.f32 %v2933_v62, %v1667_v25  ;;  %v1670_v27 = vmax.f32 %v1284_v58, %v2429_v5  ;;  %v1283_v9 = vmax.f32 %v897_v14, %v1164_v59 }
 0x12d   : > { %v2376_v10 = vpop.f32.mrf.mxu0  ;;  %v2432_v11 = vpop.f32.mrf.mxu1  ;;  %v906_v24 = vmax.f32 %v2870_v40, %v2872_v41 }
 0x12e   : > { %1772 = vst.msk [vmem:[%s2946_s4 + $0x48] sm:$0xff] %vm1762_vm2, %v1739_v17  ;;  %v1738_v60 = vmax.f32 %v1706_v26, 0.0  ;;  %v1709_v28 = vadd.f32 %v2933_v62, %v1670_v27  ;;  %v1669_v29 = vmax.f32 %v1283_v9, %v1550_v16  ;;  %v1286_v18 = vmax.f32 %v900_v8, %v2376_v10 }
 0x12f   : > { %v1174_v61 = vpop.f32.mrf.mxu0  ;;  %v1560_v63 = vpop.f32.mrf.mxu1  ;;  %v905_v16 = vmax.f32 %v2874_v42, %v2876_v43 }
 0x130   : > { %1771 = vst.msk [vmem:[%s2946_s4 + $0x40] sm:$0xff] %vm1762_vm2, %v1738_v60  ;;  %v1741_v12 = vmax.f32 %v1709_v28, 0.0  ;;  %v1708_v30 = vadd.f32 %v2933_v62, %v1669_v29  ;;  %v1672_v31 = vmax.f32 %v1286_v18, %v2432_v11  ;;  %v1285_v13 = vmax.f32 %v899_v56, %v1174_v61 }
 0x131   : > { %v2379_v20 = vpop.f32.mrf.mxu0  ;;  %v2435_v21 = vpop.f32.mrf.mxu1  ;;  %v908_v56 = vmax.f32 %v2878_v44, %v2880_v45  ;;  %v907_v29 = vmax.f32 %v2882_v46, %v2884_v47 }
 0x132   : > { %1774 = vst.msk [vmem:[%s2946_s4 + $0x58] sm:$0xff] %vm1762_vm2, %v1741_v12  ;;  %v1740_v1 = vmax.f32 %v1708_v30, 0.0  ;;  %v1711_v32 = vadd.f32 %v2933_v62, %v1672_v31  ;;  %v1671_v33 = vmax.f32 %v1285_v13, %v1560_v63  ;;  %v1288_v2 = vmax.f32 %v902_v19, %v2379_v20 }
 0x133   : > { %v1184_v4 = vpop.f32.mrf.mxu0  ;;  %v1570_v6 = vpop.f32.mrf.mxu1  ;;  %v910_v12 = vmax.f32 %v2886_v48, %v2888_v49  ;;  %v909_v20 = vmax.f32 %v2890_v50, %v2892_v51 }
 0x134   : > { %1773 = vst.msk [vmem:[%s2946_s4 + $0x50] sm:$0xff] %vm1762_vm2, %v1740_v1  ;;  %v1743_v22 = vmax.f32 %v1711_v32, 0.0  ;;  %v1710_v34 = vadd.f32 %v2933_v62, %v1671_v33  ;;  %v1674_v35 = vmax.f32 %v1288_v2, %v2435_v21  ;;  %v1287_v23 = vmax.f32 %v901_v0, %v1184_v4 }
 0x135   : > { %v2382_v14 = vpop.f32.mrf.mxu0  ;;  %v2438_v15 = vpop.f32.mrf.mxu1  ;;  %v912_v2 = vmax.f32 %v2894_v52, %v2896_v53 }
 0x136   : > { %1776 = vst.msk [vmem:[%s2946_s4 + $0x68] sm:$0xff] %vm1762_vm2, %v1743_v22  ;;  %v1742_v5 = vmax.f32 %v1710_v34, 0.0  ;;  %v1713_v36 = vadd.f32 %v2933_v62, %v1674_v35  ;;  %v1673_v37 = vmax.f32 %v1287_v23, %v1570_v6  ;;  %v1290_v7 = vmax.f32 %v904_v3, %v2382_v14 }
 0x137   : > { %v1194_v25 = vpop.f32.mrf.mxu0  ;;  %v1580_v58 = vpop.f32.mrf.mxu1  ;;  %v911_v34 = vmax.f32 %v2898_v54, %v2900_v55 }
 0x138   : > { %1775 = vst.msk [vmem:[%s2946_s4 + $0x60] sm:$0xff] %vm1762_vm2, %v1742_v5  ;;  %v1745_v8 = vmax.f32 %v1713_v36, 0.0  ;;  %v1712_v38 = vadd.f32 %v2933_v62, %v1673_v37  ;;  %v1676_v39 = vmax.f32 %v1290_v7, %v2438_v15  ;;  %v1289_v59 = vmax.f32 %v903_v57, %v1194_v25  ;;  %v3116_v15 = vld [vmem:[#allocation3_spill] sm:$0xff]  ;;  %v3117_v5 = vld [vmem:[#allocation2_spill] sm:$0xff] }
 0x139   : > { %v2385_v17 = vpop.f32.mrf.mxu0  ;;  %v2441_v26 = vpop.f32.mrf.mxu1  ;;  %v914_v36 = vmax.f32 %v3117_v5, %v3116_v15 }
 0x13a   : > { %1778 = vst.msk [vmem:[%s2946_s4 + $0x78] sm:$0xff] %vm1762_vm2, %v1745_v8  ;;  %v1744_v27 = vmax.f32 %v1712_v38, 0.0  ;;  %v1715_v40 = vadd.f32 %v2933_v62, %v1676_v39  ;;  %v1675_v41 = vmax.f32 %v1289_v59, %v1580_v58  ;;  %v1292_v9 = vmax.f32 %v906_v24, %v2385_v17  ;;  %v3118_v58 = vld [vmem:[#allocation5_spill] sm:$0xff]  ;;  %v3119_v8 = vld [vmem:[#allocation4_spill] sm:$0xff] }
 0x13b   : > { %v1204_v10 = vpop.f32.mrf.mxu0  ;;  %v1590_v11 = vpop.f32.mrf.mxu1  ;;  %v913_v38 = vmax.f32 %v3119_v8, %v3118_v58 }
 0x13c   : > { %1777 = vst.msk [vmem:[%s2946_s4 + $0x70] sm:$0xff] %vm1762_vm2, %v1744_v27  ;;  %v1747_v60 = vmax.f32 %v1715_v40, 0.0  ;;  %v1714_v42 = vadd.f32 %v2933_v62, %v1675_v41  ;;  %v1678_v43 = vmax.f32 %v1292_v9, %v2441_v26  ;;  %v1291_v28 = vmax.f32 %v905_v16, %v1204_v10  ;;  %v3120_v40 = vld [vmem:[#allocation7_spill] sm:$0xff]  ;;  %v3121_v41 = vld [vmem:[#allocation6_spill] sm:$0xff] }
 0x13d   : > { %v2388_v18 = vpop.f32.mrf.mxu0  ;;  %v2444_v19 = vpop.f32.mrf.mxu1  ;;  %v916_v9 = vmax.f32 %v3121_v41, %v3120_v40 }
 0x13e   : > { %1780 = vst.msk [vmem:[%s2946_s4 + $0x88] sm:$0xff] %vm1762_vm2, %v1747_v60  ;;  %v1746_v61 = vmax.f32 %v1714_v42, 0.0  ;;  %v1717_v44 = vadd.f32 %v2933_v62, %v1678_v43  ;;  %v1677_v45 = vmax.f32 %v1291_v28, %v1590_v11  ;;  %v1294_v63 = vmax.f32 %v908_v56, %v2388_v18  ;;  %v3122_v28 = vld [vmem:[#allocation9_spill] sm:$0xff] }
 0x13f   : > { %v1214_v30 = vpop.f32.mrf.mxu0  ;;  %v1600_v31 = vpop.f32.mrf.mxu1 }
 0x140   : > { %1779 = vst.msk [vmem:[%s2946_s4 + $0x80] sm:$0xff] %vm1762_vm2, %v1746_v61  ;;  %v1749_v13 = vmax.f32 %v1717_v44, 0.0  ;;  %v1716_v46 = vadd.f32 %v2933_v62, %v1677_v45  ;;  %v1680_v47 = vmax.f32 %v1294_v63, %v2444_v19  ;;  %v1293_v0 = vmax.f32 %v907_v29, %v1214_v30  ;;  %v3123_v29 = vld [vmem:[#allocation8_spill] sm:$0xff]  ;;  %v3124_v30 = vld [vmem:[#allocation11_spill] sm:$0xff] }
 0x141   : > { %v2391_v21 = vpop.f32.mrf.mxu0  ;;  %v2447_v1 = vpop.f32.mrf.mxu1  ;;  %v915_v18 = vmax.f32 %v3123_v29, %v3122_v28 }
 0x142   : > { %1782 = vst.msk [vmem:[%s2946_s4 + $0x98] sm:$0xff] %vm1762_vm2, %v1749_v13  ;;  %v1748_v32 = vmax.f32 %v1716_v46, 0.0  ;;  %v1719_v48 = vadd.f32 %v2933_v62, %v1680_v47  ;;  %v1679_v49 = vmax.f32 %v1293_v0, %v1600_v31  ;;  %v1296_v33 = vmax.f32 %v910_v12, %v2391_v21  ;;  %v3125_v31 = vld [vmem:[#allocation10_spill] sm:$0xff] }
 0x143   : > { %v1224_v3 = vpop.f32.mrf.mxu0  ;;  %v1610_v4 = vpop.f32.mrf.mxu1  ;;  %v918_v13 = vmax.f32 %v3125_v31, %v3124_v30 }
 0x144   : > { %1781 = vst.msk [vmem:[%s2946_s4 + $0x90] sm:$0xff] %vm1762_vm2, %v1748_v32  ;;  %v1751_v6 = vmax.f32 %v1719_v48, 0.0  ;;  %v1718_v50 = vadd.f32 %v2933_v62, %v1679_v49  ;;  %v1682_v51 = vmax.f32 %v1296_v33, %v2447_v1  ;;  %v1295_v22 = vmax.f32 %v909_v20, %v1224_v3  ;;  %v3126_v32 = vld [vmem:[#allocation13_spill] sm:$0xff]  ;;  %v3127_v48 = vld [vmem:[#allocation12_spill] sm:$0xff] }
 0x145   : > { %v2394_v35 = vpop.f32.mrf.mxu0  ;;  %v2450_v23 = vpop.f32.mrf.mxu1  ;;  %v917_v49 = vmax.f32 %v3127_v48, %v3126_v32 }
 0x146   : > { %1784 = vst.msk [vmem:[%s2946_s4 + $0xa8] sm:$0xff] %vm1762_vm2, %v1751_v6  ;;  %v1750_v57 = vmax.f32 %v1718_v50, 0.0  ;;  %v1721_v52 = vadd.f32 %v2933_v62, %v1682_v51  ;;  %v1681_v53 = vmax.f32 %v1295_v22, %v1610_v4  ;;  %v1298_v14 = vmax.f32 %v912_v2, %v2394_v35 }
 0x147   : > { %v1234_v37 = vpop.f32.mrf.mxu0  ;;  %v1620_v7 = vpop.f32.mrf.mxu1 }
 0x148   : > { %1783 = vst.msk [vmem:[%s2946_s4 + $0xa0] sm:$0xff] %vm1762_vm2, %v1750_v57  ;;  %v1753_v24 = vmax.f32 %v1721_v52, 0.0  ;;  %v1720_v54 = vadd.f32 %v2933_v62, %v1681_v53  ;;  %v1684_v55 = vmax.f32 %v1298_v14, %v2450_v23  ;;  %v1297_v25 = vmax.f32 %v911_v34, %v1234_v37 }
 0x149   : > { %v2397_v39 = vpop.f32.mrf.mxu0  ;;  %v2453_v59 = vpop.f32.mrf.mxu1 }
 0x14a   : > { %1786 = vst.msk [vmem:[%s2946_s4 + $0xb8] sm:$0xff] %vm1762_vm2, %v1753_v24  ;;  %v1752_v16 = vmax.f32 %v1720_v54, 0.0  ;;  %v1723_v17 = vadd.f32 %v2933_v62, %v1684_v55  ;;  %v1683_v26 = vmax.f32 %v1297_v25, %v1620_v7  ;;  %v1300_v27 = vmax.f32 %v914_v36, %v2397_v39 }
 0x14b   : > { %v1244_v56 = vpop.f32.mrf.mxu0  ;;  %v1630_v10 = vpop.f32.mrf.mxu1 }
 0x14c   : > { %1785 = vst.msk [vmem:[%s2946_s4 + $0xb0] sm:$0xff] %vm1762_vm2, %v1752_v16  ;;  %v1755_v11 = vmax.f32 %v1723_v17, 0.0  ;;  %v1722_v60 = vadd.f32 %v2933_v62, %v1683_v26  ;;  %v1686_v42 = vmax.f32 %v1300_v27, %v2453_v59  ;;  %v1299_v43 = vmax.f32 %v913_v38, %v1244_v56 }
 0x14d   : > { %v2400_v19 = vpop.f32.mrf.mxu0  ;;  %v2456_v61 = vpop.f32.mrf.mxu1 }
 0x14e   : > { %1788 = vst.msk [vmem:[%s2946_s4 + $0xc8] sm:$0xff] %vm1762_vm2, %v1755_v11  ;;  %v1754_v44 = vmax.f32 %v1722_v60, 0.0  ;;  %v1725_v45 = vadd.f32 %v2933_v62, %v1686_v42  ;;  %v1685_v63 = vmax.f32 %v1299_v43, %v1630_v10  ;;  %v1302_v12 = vmax.f32 %v916_v9, %v2400_v19 }
 0x14f   : > { %v1254_v46 = vpop.f32.mrf.mxu0  ;;  %v1640_v47 = vpop.f32.mrf.mxu1 }
 0x150   : > { %1787 = vst.msk [vmem:[%s2946_s4 + $0xc0] sm:$0xff] %vm1762_vm2, %v1754_v44  ;;  %v1757_v0 = vmax.f32 %v1725_v45, 0.0  ;;  %v1724_v20 = vadd.f32 %v2933_v62, %v1685_v63  ;;  %v1688_v21 = vmax.f32 %v1302_v12, %v2456_v61  ;;  %v1301_v1 = vmax.f32 %v915_v18, %v1254_v46 }
 0x151   : > { %v2403_v33 = vpop.f32.mrf.mxu0  ;;  %v2459_v2 = vpop.f32.mrf.mxu1 }
 0x152   : > { %1790 = vst.msk [vmem:[%s2946_s4 + $0xd8] sm:$0xff] %vm1762_vm2, %v1757_v0  ;;  %v1756_v3 = vmax.f32 %v1724_v20, 0.0  ;;  %v1727_v4 = vadd.f32 %v2933_v62, %v1688_v21  ;;  %v1687_v6 = vmax.f32 %v1301_v1, %v1640_v47  ;;  %v1304_v50 = vmax.f32 %v918_v13, %v2403_v33 }
 0x153   : > { %v1264_v51 = vpop.f32.mrf.mxu0  ;;  %v1650_v57 = vpop.f32.mrf.mxu1 }
 0x154   : > { %1789 = vst.msk [vmem:[%s2946_s4 + $0xd0] sm:$0xff] %vm1762_vm2, %v1756_v3  ;;  %v1759_v22 = vmax.f32 %v1727_v4, 0.0  ;;  %v1726_v34 = vadd.f32 %v2933_v62, %v1687_v6  ;;  %v1690_v35 = vmax.f32 %v1304_v50, %v2459_v2  ;;  %v1303_v23 = vmax.f32 %v917_v49, %v1264_v51 }
 0x156   : > { %1792 = vst.msk [vmem:[%s2946_s4 + $0xe8] sm:$0xff] %vm1762_vm2, %v1759_v22  ;;  %v1758_v52 = vmax.f32 %v1726_v34, 0.0  ;;  %v1729_v53 = vadd.f32 %v2933_v62, %v1690_v35  ;;  %v1689_v14 = vmax.f32 %v1303_v23, %v1650_v57 }
 0x158   : > { %1791 = vst.msk [vmem:[%s2946_s4 + $0xe0] sm:$0xff] %vm1762_vm2, %v1758_v52  ;;  %v1761_v15 = vmax.f32 %v1729_v53, 0.0  ;;  %v1728_v5 = vadd.f32 %v2933_v62, %v1689_v14 }
 0x15a   : > { %1794 = vst.msk [vmem:[%s2946_s4 + $0xf8] sm:$0xff] %vm1762_vm2, %v1761_v15  ;;  %v1760_v36 = vmax.f32 %v1728_v5, 0.0 }
 0x15c   : > { %1793 = vst.msk [vmem:[%s2946_s4 + $0xf0] sm:$0xff] %vm1762_vm2, %v1760_v36 }
 0x15d PF: > { %s13_s12 = sadd.s32 1, %s2474_s12  }
 0x15e   : > { %p10_p4 = scmp.ge.s32.totalorder %s13_s12, 4  }
 0x160   :  { %12 = sbr.rel (!%p10_p4) target bundleno = 1 (0x1), region = 65 }

// kernel: simple_cnn_forward.6
= control target key start
LH: loop header
LB: loop body
LE: loop exit
PB: predicated region body
PF: predicated region fallthrough
CT: control target
= control target key end

     0   :  { %s1859_s12 = smov 0   ;;  %s2496_s0 = inlined_call_operand.vmem [shape: f32[2,4,64,288], index: 0, kind: input, shape index: {}]   ;;  %s2497_s1 = inlined_call_operand.vmem [shape: f32[288,64], index: 1, kind: input, shape index: {}]   ;;  %s2498_s2 = inlined_call_operand.vmem [shape: f32[1,64], index: 2, kind: input, shape index: {}]   ;;  %s2499_s3 = inlined_call_operand.vmem [shape: f32[2,64,64], index: 3, kind: output, shape index: {}]  }
   0x1 LB: > { %s1354_s13 = sadd.s32 4294967295, %s1837_s12   ;;  %p1358_p0 = scmp.ge.s32.totalorder %s1837_s12, 1  ;;  %s1837_s12 = sphi %s1859_s12, %s13_s12  }
   0x2   : > { %p137_p1 = scmp.lt.s32.totalorder %s1837_s12, 3 }
   0x4   : > { %p138_p2 = pnand %p1358_p0, %p137_p1 }
   0x6   : > { %141 = sbr.rel (%p138_p2) target bundleno = 355 (0x163), region = 32 }
   0xb   : > { %v1870_v0 = vld [vmem:[%s2497_s1 + $0xf8] sm:$0xff]  ;;  %v1880_v2 = vld [vmem:[%s2497_s1 + $0xf0] sm:$0xff]  ;;  %v1894_v4 = vld [vmem:[%s2497_s1 + $0xe8] sm:$0xff]  ;;  %p161_p3 = scmp.lt.s32.totalorder %s1354_s13, 1  ;;  %vm231_vm0 = vcmask 261120   ;;  %vm1290_vm1 = vcmask 523264  }
   0xc   : > { %v1875_v1 = vld [vmem:[%s2497_s1 + $0x78] sm:$0xff]  ;;  %1470 = vmatprep.subr.mxu0 %v1870_v0  ;;  %1538 = vmatprep.subr.mxu1 %v1870_v0  ;;  %v1887_v3 = vld [vmem:[%s2497_s1 + $0x70] sm:$0xff]  ;;  %v1901_v5 = vld [vmem:[%s2497_s1 + $0x68] sm:$0xff] }
   0xd   : > { %1471 = vmatpush3.msra.mxu0 %v1875_v1  ;;  %1539 = vmatpush3.msra.mxu1 %v1875_v1  ;;  %v1908_v6 = vld [vmem:[%s2497_s1 + $0xe0] sm:$0xff]  ;;  %v1922_v8 = vld [vmem:[%s2497_s1 + $0xd8] sm:$0xff]  ;;  %v1936_v10 = vld [vmem:[%s2497_s1 + $0xd0] sm:$0xff]  ;;  %s2512_s13 = smov (!%p161_p3, %s1354_s13), 1 }
   0xe   : > { %1472 = vmatprep.subr.mxu0 %v1880_v2  ;;  %1540 = vmatprep.subr.mxu1 %v1880_v2  ;;  %v1915_v7 = vld [vmem:[%s2497_s1 + $0x60] sm:$0xff]  ;;  %v1929_v9 = vld [vmem:[%s2497_s1 + $0x58] sm:$0xff]  ;;  %v1943_v11 = vld [vmem:[%s2497_s1 + $0x50] sm:$0xff]  ;;  %s1822_s14 = smul.u32 768, %s2512_s13  ;;  %s1469_s17 = sshll.u32 %s2512_s13, 6 }
   0xf   : > { %1473 = vmatpush3.msra.mxu0 %v1887_v3  ;;  %1541 = vmatpush3.msra.mxu1 %v1887_v3  ;;  %v1950_v12 = vld [vmem:[%s2497_s1 + $0xc8] sm:$0xff]  ;;  %v1964_v14 = vld [vmem:[%s2497_s1 + $0xc0] sm:$0xff]  ;;  %v1978_v16 = vld [vmem:[%s2497_s1 + $0xb8] sm:$0xff]  ;;  %s2452_s19 = scalar_lea.vmem %s2499_s3, %s1469_s17 }
  0x10   : > { %1474 = vmatprep.subr.mxu0 %v1894_v4  ;;  %1542 = vmatprep.subr.mxu1 %v1894_v4  ;;  %v1957_v13 = vld [vmem:[%s2497_s1 + $0x48] sm:$0xff]  ;;  %v1971_v15 = vld [vmem:[%s2497_s1 + $0x40] sm:$0xff]  ;;  %v1987_v17 = vld [vmem:[%s2497_s1 + $0x38] sm:$0xff]  ;;  %s2074_s25 = scalar_lea.vmem %s2496_s0, %s1822_s14 }
  0x11   : > { %1475 = vmatpush3.msra.mxu0 %v1901_v5  ;;  %1543 = vmatpush3.msra.mxu1 %v1901_v5  ;;  %v1994_v18 = vld [vmem:[%s2497_s1 + $0xb0] sm:$0xff]  ;;  %v2008_v20 = vld [vmem:[%s2497_s1 + $0xa8] sm:$0xff]  ;;  %v2026_v22 = vld [vmem:[%s2497_s1 + $0xa0] sm:$0xff] }
  0x12   : > { %1476 = vmatprep.subr.mxu0 %v1908_v6  ;;  %1544 = vmatprep.subr.mxu1 %v1908_v6  ;;  %v2001_v19 = vld [vmem:[%s2497_s1 + $0x30] sm:$0xff]  ;;  %v2019_v21 = vld [vmem:[%s2497_s1 + $0x28] sm:$0xff]  ;;  %v2033_v23 = vld [vmem:[%s2497_s1 + $0x20] sm:$0xff] }
  0x13   : > { %1477 = vmatpush3.msra.mxu0 %v1915_v7  ;;  %1545 = vmatpush3.msra.mxu1 %v1915_v7  ;;  %v2040_v24 = vld [vmem:[%s2497_s1 + $0x98] sm:$0xff]  ;;  %v2055_v26 = vld [vmem:[%s2497_s1 + $0x90] sm:$0xff]  ;;  %v2069_v28 = vld [vmem:[%s2497_s1 + $0x88] sm:$0xff] }
  0x14   : > { %1478 = vmatprep.subr.mxu0 %v1922_v8  ;;  %1546 = vmatprep.subr.mxu1 %v1922_v8  ;;  %v2048_v25 = vld [vmem:[%s2497_s1 + $0x18] sm:$0xff]  ;;  %v2062_v27 = vld [vmem:[%s2497_s1 + $0x10] sm:$0xff]  ;;  %v2081_v29 = vld [vmem:[%s2497_s1 + $0x8] sm:$0xff] }
  0x15   : > { %1479 = vmatpush3.msra.mxu0 %v1929_v9  ;;  %1547 = vmatpush3.msra.mxu1 %v1929_v9  ;;  %v2088_v30 = vld [vmem:[%s2497_s1 + $0x80] sm:$0xff]  ;;  %v208_v32 = vld [vmem:[%s2074_s25 + $0x8] sm:$0xff]  ;;  %v2109_v36 = vld [vmem:[%s2497_s1 + $0x118] sm:$0xff] }
  0x16   : > { %1480 = vmatprep.subr.mxu0 %v1936_v10  ;;  %1548 = vmatprep.subr.mxu1 %v1936_v10  ;;  %v2095_v31 = vld [vmem:[%s2497_s1] sm:$0xff]  ;;  %v1371_v33 = vld [vmem:[%s2074_s25 + $0xc8] sm:$0xff]  ;;  %v210_v39 = vld [vmem:[%s2074_s25 + $0x18] sm:$0xff] }
  0x17   : > { %1481 = vmatpush3.msra.mxu0 %v1943_v11  ;;  %1549 = vmatpush3.msra.mxu1 %v1943_v11  ;;  %v207_v34 = vld [vmem:[%s2074_s25] sm:$0xff]  ;;  %v1373_v40 = vld [vmem:[%s2074_s25 + $0xd8] sm:$0xff]  ;;  %v2127_v43 = vld [vmem:[%s2497_s1 + $0x110] sm:$0xff] }
  0x18   : > { %1482 = vmatprep.subr.mxu0 %v1950_v12  ;;  %1550 = vmatprep.subr.mxu1 %v1950_v12  ;;  %v1370_v35 = vld [vmem:[%s2074_s25 + $0xc0] sm:$0xff]  ;;  %v214_v41 = vld [vmem:[%s2074_s25 + $0x38] sm:$0xff]  ;;  %v213_v44 = vld [vmem:[%s2074_s25 + $0x30] sm:$0xff] }
  0x19   : > { %1483 = vmatpush3.msra.mxu0 %v1957_v13  ;;  %1551 = vmatpush3.msra.mxu1 %v1957_v13  ;;  %v211_v37 = vld [vmem:[%s2074_s25 + $0x20] sm:$0xff]  ;;  %v1377_v42 = vld [vmem:[%s2074_s25 + $0xf8] sm:$0xff]  ;;  %v1376_v45 = vld [vmem:[%s2074_s25 + $0xf0] sm:$0xff] }
  0x1a   : > { %1484 = vmatprep.subr.mxu0 %v1964_v14  ;;  %1552 = vmatprep.subr.mxu1 %v1964_v14  ;;  %v1374_v38 = vld [vmem:[%s2074_s25 + $0xe0] sm:$0xff]  ;;  %v217_v46 = vld [vmem:[%s2074_s25 + $0x50] sm:$0xff]  ;;  %v216_v48 = vld [vmem:[%s2074_s25 + $0x48] sm:$0xff] }
  0x1b   : > { %1485 = vmatpush3.msra.mxu0 %v1971_v15  ;;  %1553 = vmatpush3.msra.mxu1 %v1971_v15  ;;  %v1380_v47 = vld [vmem:[%s2074_s25 + $0x110] sm:$0xff]  ;;  %v1379_v49 = vld [vmem:[%s2074_s25 + $0x108] sm:$0xff]  ;;  %v219_v53 = vld [vmem:[%s2074_s25 + $0x60] sm:$0xff] }
  0x1c   : > { %1486 = vmatprep.subr.mxu0 %v1978_v16  ;;  %1554 = vmatprep.subr.mxu1 %v1978_v16  ;;  %v220_v50 = vld [vmem:[%s2074_s25 + $0x68] sm:$0xff]  ;;  %v1382_v54 = vld [vmem:[%s2074_s25 + $0x120] sm:$0xff]  ;;  %v222_v57 = vld [vmem:[%s2074_s25 + $0x78] sm:$0xff] }
  0x1d   : > { %1487 = vmatpush3.msra.mxu0 %v1987_v17  ;;  %1555 = vmatpush3.msra.mxu1 %v1987_v17  ;;  %v1383_v51 = vld [vmem:[%s2074_s25 + $0x128] sm:$0xff]  ;;  %v223_v55 = vld [vmem:[%s2074_s25 + $0x80] sm:$0xff]  ;;  %v1385_v58 = vld [vmem:[%s2074_s25 + $0x138] sm:$0xff] }
  0x1e   : > { %1488 = vmatprep.subr.mxu0 %v1994_v18  ;;  %1556 = vmatprep.subr.mxu1 %v1994_v18  ;;  %v2150_v52 = vld [vmem:[%s2497_s1 + $0x108] sm:$0xff]  ;;  %v1386_v56 = vld [vmem:[%s2074_s25 + $0x140] sm:$0xff]  ;;  %v226_v59 = vld [vmem:[%s2074_s25 + $0x98] sm:$0xff] }
  0x1f   : > { %1489 = vmatpush3.msra.mxu0 %v2001_v19  ;;  %1557 = vmatpush3.msra.mxu1 %v2001_v19  ;;  %v1389_v60 = vld [vmem:[%s2074_s25 + $0x158] sm:$0xff]  ;;  %v2173_v61 = vld [vmem:[%s2497_s1 + $0x100] sm:$0xff]  ;;  %v225_v62 = vld [vmem:[%s2074_s25 + $0x90] sm:$0xff] }
  0x20   : > { %1490 = vmatprep.subr.mxu0 %v2008_v20  ;;  %1558 = vmatprep.subr.mxu1 %v2008_v20  ;;  %v1388_v63 = vld [vmem:[%s2074_s25 + $0x150] sm:$0xff] }
  0x21   : > { %1491 = vmatpush3.msra.mxu0 %v2019_v21  ;;  %1559 = vmatpush3.msra.mxu1 %v2019_v21 }
  0x22   : > { %1492 = vmatprep.subr.mxu0 %v2026_v22  ;;  %1560 = vmatprep.subr.mxu1 %v2026_v22 }
  0x23   : > { %1493 = vmatpush3.msra.mxu0 %v2033_v23  ;;  %1561 = vmatpush3.msra.mxu1 %v2033_v23 }
  0x24   : > { %1494 = vmatprep.subr.mxu0 %v2040_v24  ;;  %1562 = vmatprep.subr.mxu1 %v2040_v24 }
  0x25   : > { %1495 = vmatpush3.msra.mxu0 %v2048_v25  ;;  %1563 = vmatpush3.msra.mxu1 %v2048_v25 }
  0x26   : > { %1496 = vmatprep.subr.mxu0 %v2055_v26  ;;  %1564 = vmatprep.subr.mxu1 %v2055_v26 }
  0x27   : > { %1497 = vmatpush3.msra.mxu0 %v2062_v27  ;;  %1565 = vmatpush3.msra.mxu1 %v2062_v27 }
  0x28   : > { %1498 = vmatprep.subr.mxu0 %v2069_v28  ;;  %1566 = vmatprep.subr.mxu1 %v2069_v28 }
  0x29   : > { %1499 = vmatpush3.msra.mxu0 %v2081_v29  ;;  %1567 = vmatpush3.msra.mxu1 %v2081_v29 }
  0x2a   : > { %1500 = vmatprep.subr.mxu0 %v2088_v30  ;;  %1568 = vmatprep.subr.mxu1 %v2088_v30 }
  0x2b   : > { %1501 = vmatpush3.msra.mxu0 %v2095_v31  ;;  %320 = vmatprep.mubr.f32.mxu0 %v208_v32  ;;  %v229_v32 = vld [vmem:[%s2074_s25 + $0xb0] sm:$0xff] }
  0x2c   : > { %1569 = vmatpush3.msra.mxu1 %v2095_v31  ;;  %579 = vmatprep.mubr.f32.mxu1 %v1371_v33  ;;  %v1392_v33 = vld [vmem:[%s2074_s25 + $0x170] sm:$0xff] }
  0x2d   : > { %321 = vmatmul.mubr.f32.vlgmr.msra.gmra.mxu0 %v207_v34  ;;  %580 = vmatmul.mubr.f32.vlgmr.msra.gmra.mxu1 %v1370_v35  ;;  %v228_v34 = vld [vmem:[%s2074_s25 + $0xa8] sm:$0xff] }
  0x2e   : > { %1606 = vmatprep.subr.mxu1 %v1870_v0  ;;  %1742 = vmatprep.subr.mxu0 %v2109_v36  ;;  %v1391_v35 = vld [vmem:[%s2074_s25 + $0x168] sm:$0xff] }
  0x2f   : > { %1607 = vmatpush3.msra.mxu1 %v1875_v1  ;;  %325 = vmatprep.mubr.f32.mxu0 %v211_v37  ;;  %v209_v37 = vld [vmem:[%s2074_s25 + $0x10] sm:$0xff] }
  0x30   : > { %1608 = vmatprep.subr.mxu1 %v1880_v2  ;;  %1743 = vmatpush3.msra.mxu0 %v2109_v36 }
  0x31   : > { %584 = vmatprep.mubr.f32.mxu1 %v1374_v38  ;;  %1609 = vmatpush3.msra.mxu1 %v1887_v3  ;;  %v1403_v38 = vld [vmem:[%s2074_s25 + $0x188] sm:$0xff] }
  0x32   : > { %326 = vmatmul.mubr.f32.gmra.mxu0 %v210_v39  ;;  %585 = vmatmul.mubr.f32.gmra.mxu1 %v1373_v40  ;;  %v212_v39 = vld [vmem:[%s2074_s25 + $0x28] sm:$0xff]  ;;  %v1402_v40 = vld [vmem:[%s2074_s25 + $0x180] sm:$0xff] }
  0x33   : > { %1610 = vmatprep.subr.mxu1 %v1894_v4  ;;  %330 = vmatprep.mubr.f32.mxu0 %v214_v41  ;;  %v215_v41 = vld [vmem:[%s2074_s25 + $0x40] sm:$0xff] }
  0x34   : > { %1611 = vmatpush3.msra.mxu1 %v1901_v5  ;;  %589 = vmatprep.mubr.f32.mxu1 %v1377_v42  ;;  %v1406_v42 = vld [vmem:[%s2074_s25 + $0x1a0] sm:$0xff] }
  0x35   : > { %1612 = vmatprep.subr.mxu1 %v1908_v6  ;;  %1744 = vmatprep.subr.mxu0 %v2127_v43 }
  0x36   : > { %1613 = vmatpush3.msra.mxu1 %v1915_v7  ;;  %331 = vmatmul.mubr.f32.gmra.mxu0 %v213_v44  ;;  %v218_v44 = vld [vmem:[%s2074_s25 + $0x58] sm:$0xff] }
  0x37   : > { %590 = vmatmul.mubr.f32.gmra.mxu1 %v1376_v45  ;;  %1614 = vmatprep.subr.mxu1 %v1922_v8  ;;  %v1405_v45 = vld [vmem:[%s2074_s25 + $0x198] sm:$0xff] }
  0x38   : > { %1615 = vmatpush3.msra.mxu1 %v1929_v9  ;;  %335 = vmatprep.mubr.f32.mxu0 %v217_v46  ;;  %v221_v46 = vld [vmem:[%s2074_s25 + $0x70] sm:$0xff] }
  0x39   : > { %1616 = vmatprep.subr.mxu1 %v1936_v10  ;;  %1745 = vmatpush3.msra.mxu0 %v2127_v43 }
  0x3a   : > { %594 = vmatprep.mubr.f32.mxu1 %v1380_v47  ;;  %1617 = vmatpush3.msra.mxu1 %v1943_v11  ;;  %v1416_v47 = vld [vmem:[%s2074_s25 + $0x1f0] sm:$0xff] }
  0x3b   : > { %336 = vmatmul.mubr.f32.gmra.mxu0 %v216_v48  ;;  %595 = vmatmul.mubr.f32.gmra.mxu1 %v1379_v49  ;;  %v1419_v48 = vld [vmem:[%s2074_s25 + $0x208] sm:$0xff]  ;;  %v1440_v49 = vld [vmem:[%s2074_s25 + $0x270] sm:$0xff] }
  0x3c   : > { %1618 = vmatprep.subr.mxu1 %v1950_v12  ;;  %340 = vmatprep.mubr.f32.mxu0 %v220_v50  ;;  %v1422_v50 = vld [vmem:[%s2074_s25 + $0x220] sm:$0xff] }
  0x3d   : > { %1619 = vmatpush3.msra.mxu1 %v1957_v13  ;;  %599 = vmatprep.mubr.f32.mxu1 %v1383_v51  ;;  %v1425_v51 = vld [vmem:[%s2074_s25 + $0x238] sm:$0xff] }
  0x3e   : > { %1620 = vmatprep.subr.mxu1 %v1964_v14  ;;  %1746 = vmatprep.subr.mxu0 %v2150_v52 }
  0x3f   : > { %1621 = vmatpush3.msra.mxu1 %v1971_v15  ;;  %341 = vmatmul.mubr.f32.gmra.mxu0 %v219_v53  ;;  %v1443_v53 = vld [vmem:[%s2074_s25 + $0x288] sm:$0xff] }
  0x40   : > { %600 = vmatmul.mubr.f32.gmra.mxu1 %v1382_v54  ;;  %1622 = vmatprep.subr.mxu1 %v1978_v16  ;;  %v1447_v54 = vld [vmem:[%s2074_s25 + $0x2a8] sm:$0xff] }
  0x41   : > { %1623 = vmatpush3.msra.mxu1 %v1987_v17  ;;  %345 = vmatprep.mubr.f32.mxu0 %v223_v55  ;;  %v1446_v55 = vld [vmem:[%s2074_s25 + $0x2a0] sm:$0xff] }
  0x42   : > { %1624 = vmatprep.subr.mxu1 %v1994_v18  ;;  %1747 = vmatpush3.msra.mxu0 %v2150_v52 }
  0x43   : > { %604 = vmatprep.mubr.f32.mxu1 %v1386_v56  ;;  %1625 = vmatpush3.msra.mxu1 %v2001_v19  ;;  %v1439_v56 = vld [vmem:[%s2074_s25 + $0x268] sm:$0xff] }
  0x44   : > { %346 = vmatmul.mubr.f32.gmra.mxu0 %v222_v57  ;;  %605 = vmatmul.mubr.f32.gmra.mxu1 %v1385_v58  ;;  %v1442_v57 = vld [vmem:[%s2074_s25 + $0x280] sm:$0xff]  ;;  %v1449_v58 = vld [vmem:[%s2074_s25 + $0x2b8] sm:$0xff] }
  0x45   : > { %1626 = vmatprep.subr.mxu1 %v2008_v20  ;;  %350 = vmatprep.mubr.f32.mxu0 %v226_v59  ;;  %v1445_v59 = vld [vmem:[%s2074_s25 + $0x298] sm:$0xff] }
  0x46   : > { %1627 = vmatpush3.msra.mxu1 %v2019_v21  ;;  %609 = vmatprep.mubr.f32.mxu1 %v1389_v60  ;;  %v1453_v60 = vld [vmem:[%s2074_s25 + $0x2d8] sm:$0xff] }
  0x47   : > { %1628 = vmatprep.subr.mxu1 %v2026_v22  ;;  %1748 = vmatprep.subr.mxu0 %v2173_v61 }
  0x48   : > { %1629 = vmatpush3.msra.mxu1 %v2033_v23  ;;  %351 = vmatmul.mubr.f32.gmra.mxu0 %v225_v62  ;;  %v1452_v62 = vld [vmem:[%s2074_s25 + $0x2d0] sm:$0xff] }
  0x49   : > { %610 = vmatmul.mubr.f32.gmra.mxu1 %v1388_v63  ;;  %1630 = vmatprep.subr.mxu1 %v2040_v24  ;;  %v1451_v63 = vld [vmem:[%s2074_s25 + $0x2c8] sm:$0xff] }
  0x4a   : > { %1631 = vmatpush3.msra.mxu1 %v2048_v25  ;;  %355 = vmatprep.mubr.f32.mxu0 %v229_v32  ;;  %v1456_v32 = vld [vmem:[%s2074_s25 + $0x2f0] sm:$0xff] }
  0x4b   : > { %1632 = vmatprep.subr.mxu1 %v2055_v26  ;;  %1749 = vmatpush3.msra.mxu0 %v2173_v61 }
  0x4c   : > { %614 = vmatprep.mubr.f32.mxu1 %v1392_v33  ;;  %1633 = vmatpush3.msra.mxu1 %v2062_v27  ;;  %v1454_v33 = vld [vmem:[%s2074_s25 + $0x2e0] sm:$0xff] }
  0x4d   : > { %356 = vmatmul.mubr.f32.gmra.mxu0 %v228_v34  ;;  %615 = vmatmul.mubr.f32.gmra.mxu1 %v1391_v35  ;;  %v1455_v34 = vld [vmem:[%s2074_s25 + $0x2e8] sm:$0xff]  ;;  %v1457_v35 = vld [vmem:[%s2074_s25 + $0x2f8] sm:$0xff] }
  0x4e   : > { %1634 = vmatprep.subr.mxu1 %v2069_v28  ;;  %1750 = vmatprep.mubr.msk.f32.mxu0 %vm231_vm0, %v209_v37 }
  0x4f   : > { %1635 = vmatpush3.msra.mxu1 %v2081_v29  ;;  %846 = vmatprep.mubr.f32.mxu1 %v1403_v38 }
  0x50   : > { %1636 = vmatprep.subr.mxu1 %v2088_v30  ;;  %1762 = vmatprep.subr.mxu0 %v2109_v36 }
  0x51   : > { %1637 = vmatpush3.msra.mxu1 %v2095_v31  ;;  %1751 = vmatmul.mubr.msk.f32.vlgmr.msra.gmra.mxu0 %vm231_vm0, %v212_v39 }
  0x52   : > { %847 = vmatmul.mubr.f32.vlgmr.msra.gmra.mxu1 %v1402_v40  ;;  %1674 = vmatprep.subr.mxu1 %v1870_v0  ;;  %v1409_v0 = vld [vmem:[%s2074_s25 + $0x1b8] sm:$0xff] }
  0x53   : > { %1675 = vmatpush3.msra.mxu1 %v1875_v1  ;;  %1753 = vmatprep.mubr.msk.f32.mxu0 %vm231_vm0, %v215_v41  ;;  %v224_v1 = vld [vmem:[%s2074_s25 + $0x88] sm:$0xff] }
  0x54   : > { %1676 = vmatprep.subr.mxu1 %v1880_v2  ;;  %1763 = vmatpush3.msra.mxu0 %v2109_v36  ;;  %v1408_v2 = vld [vmem:[%s2074_s25 + $0x1b0] sm:$0xff] }
  0x55   : > { %851 = vmatprep.mubr.f32.mxu1 %v1406_v42  ;;  %1677 = vmatpush3.msra.mxu1 %v1887_v3  ;;  %v227_v3 = vld [vmem:[%s2074_s25 + $0xa0] sm:$0xff] }
  0x56   : > { %1754 = vmatmul.mubr.msk.f32.gmra.mxu0 %vm231_vm0, %v218_v44  ;;  %852 = vmatmul.mubr.f32.gmra.mxu1 %v1405_v45 }
  0x57   : > { %1678 = vmatprep.subr.mxu1 %v1894_v4  ;;  %1764 = vmatprep.subr.mxu0 %v2127_v43  ;;  %v1412_v4 = vld [vmem:[%s2074_s25 + $0x1d0] sm:$0xff] }
  0x58   : > { %1679 = vmatpush3.msra.mxu1 %v1901_v5  ;;  %1756 = vmatprep.mubr.msk.f32.mxu0 %vm231_vm0, %v221_v46  ;;  %v230_v5 = vld [vmem:[%s2074_s25 + $0xb8] sm:$0xff] }
  0x59   : > { %1680 = vmatprep.subr.mxu1 %v1908_v6  ;;  %1765 = vmatpush3.msra.mxu0 %v2127_v43  ;;  %v1411_v6 = vld [vmem:[%s2074_s25 + $0x1c8] sm:$0xff] }
  0x5a   : > { %856 = vmatprep.mubr.f32.mxu1 %v1409_v0  ;;  %1681 = vmatpush3.msra.mxu1 %v1915_v7  ;;  %v1372_v7 = vld [vmem:[%s2074_s25 + $0xd0] sm:$0xff] }
  0x5b   : > { %1757 = vmatmul.mubr.msk.f32.gmra.mxu0 %vm231_vm0, %v224_v1  ;;  %857 = vmatmul.mubr.f32.gmra.mxu1 %v1408_v2 }
  0x5c   : > { %1682 = vmatprep.subr.mxu1 %v1922_v8  ;;  %1766 = vmatprep.subr.mxu0 %v2150_v52  ;;  %v1415_v8 = vld [vmem:[%s2074_s25 + $0x1e8] sm:$0xff] }
  0x5d   : > { %1683 = vmatpush3.msra.mxu1 %v1929_v9  ;;  %1759 = vmatprep.mubr.msk.f32.mxu0 %vm231_vm0, %v227_v3  ;;  %v1375_v9 = vld [vmem:[%s2074_s25 + $0xe8] sm:$0xff] }
  0x5e   : > { %1684 = vmatprep.subr.mxu1 %v1936_v10  ;;  %1767 = vmatpush3.msra.mxu0 %v2150_v52  ;;  %v1414_v10 = vld [vmem:[%s2074_s25 + $0x1e0] sm:$0xff] }
  0x5f   : > { %861 = vmatprep.mubr.f32.mxu1 %v1412_v4  ;;  %1685 = vmatpush3.msra.mxu1 %v1943_v11  ;;  %v1378_v11 = vld [vmem:[%s2074_s25 + $0x100] sm:$0xff] }
  0x60   : > { %1760 = vmatmul.mubr.msk.f32.gmra.mxu0 %vm231_vm0, %v230_v5  ;;  %862 = vmatmul.mubr.f32.gmra.mxu1 %v1411_v6 }
  0x61   : > { %1686 = vmatprep.subr.mxu1 %v1950_v12  ;;  %1768 = vmatprep.subr.mxu0 %v2173_v61  ;;  %v1418_v12 = vld [vmem:[%s2074_s25 + $0x200] sm:$0xff] }
  0x62   : > { %1687 = vmatpush3.msra.mxu1 %v1957_v13  ;;  %1769 = vmatpush3.msra.mxu0 %v2173_v61  ;;  %v1381_v13 = vld [vmem:[%s2074_s25 + $0x118] sm:$0xff] }
  0x63   : > { %1688 = vmatprep.subr.mxu1 %v1964_v14  ;;  %1770 = vmatprep.mubr.msk.f32.mxu0 %vm231_vm0, %v1372_v7  ;;  %v1417_v14 = vld [vmem:[%s2074_s25 + $0x1f8] sm:$0xff] }
  0x64   : > { %866 = vmatprep.mubr.f32.mxu1 %v1415_v8  ;;  %1689 = vmatpush3.msra.mxu1 %v1971_v15  ;;  %v1384_v15 = vld [vmem:[%s2074_s25 + $0x130] sm:$0xff] }
  0x65   : > { %1771 = vmatmul.mubr.msk.f32.vlgmr.msra.gmra.mxu0 %vm231_vm0, %v1375_v9  ;;  %867 = vmatmul.mubr.f32.gmra.mxu1 %v1414_v10 }
  0x66   : > { %1690 = vmatprep.subr.mxu1 %v1978_v16  ;;  %1782 = vmatprep.subr.mxu0 %v2109_v36  ;;  %v1421_v16 = vld [vmem:[%s2074_s25 + $0x218] sm:$0xff] }
  0x67   : > { %1691 = vmatpush3.msra.mxu1 %v1987_v17  ;;  %1773 = vmatprep.mubr.msk.f32.mxu0 %vm231_vm0, %v1378_v11  ;;  %v1387_v17 = vld [vmem:[%s2074_s25 + $0x148] sm:$0xff] }
  0x68   : > { %1692 = vmatprep.subr.mxu1 %v1994_v18  ;;  %871 = vmatprep.mubr.f32.mxu1 %v1418_v12  ;;  %v1420_v18 = vld [vmem:[%s2074_s25 + $0x210] sm:$0xff] }
  0x69   : > { %1783 = vmatpush3.msra.mxu0 %v2109_v36  ;;  %1693 = vmatpush3.msra.mxu1 %v2001_v19  ;;  %v1390_v19 = vld [vmem:[%s2074_s25 + $0x160] sm:$0xff] }
  0x6a   : > { %1774 = vmatmul.mubr.msk.f32.gmra.mxu0 %vm231_vm0, %v1381_v13  ;;  %872 = vmatmul.mubr.f32.gmra.mxu1 %v1417_v14 }
  0x6b   : > { %1694 = vmatprep.subr.mxu1 %v2008_v20  ;;  %1784 = vmatprep.subr.mxu0 %v2127_v43  ;;  %v1424_v20 = vld [vmem:[%s2074_s25 + $0x230] sm:$0xff] }
  0x6c   : > { %1695 = vmatpush3.msra.mxu1 %v2019_v21  ;;  %1776 = vmatprep.mubr.msk.f32.mxu0 %vm231_vm0, %v1384_v15  ;;  %v1393_v21 = vld [vmem:[%s2074_s25 + $0x178] sm:$0xff] }
  0x6d   : > { %1696 = vmatprep.subr.mxu1 %v2026_v22  ;;  %876 = vmatprep.mubr.f32.mxu1 %v1421_v16  ;;  %v1423_v22 = vld [vmem:[%s2074_s25 + $0x228] sm:$0xff] }
  0x6e   : > { %1785 = vmatpush3.msra.mxu0 %v2127_v43  ;;  %1697 = vmatpush3.msra.mxu1 %v2033_v23  ;;  %v1404_v23 = vld [vmem:[%s2074_s25 + $0x190] sm:$0xff] }
  0x6f   : > { %1777 = vmatmul.mubr.msk.f32.gmra.mxu0 %vm231_vm0, %v1387_v17  ;;  %877 = vmatmul.mubr.f32.gmra.mxu1 %v1420_v18 }
  0x70   : > { %1698 = vmatprep.subr.mxu1 %v2040_v24  ;;  %1786 = vmatprep.subr.mxu0 %v2150_v52  ;;  %v1435_v24 = vld [vmem:[%s2074_s25 + $0x248] sm:$0xff] }
  0x71   : > { %1699 = vmatpush3.msra.mxu1 %v2048_v25  ;;  %1779 = vmatprep.mubr.msk.f32.mxu0 %vm231_vm0, %v1390_v19  ;;  %v1407_v25 = vld [vmem:[%s2074_s25 + $0x1a8] sm:$0xff] }
  0x72   : > { %1700 = vmatprep.subr.mxu1 %v2055_v26  ;;  %881 = vmatprep.mubr.f32.mxu1 %v1424_v20  ;;  %v1434_v26 = vld [vmem:[%s2074_s25 + $0x240] sm:$0xff] }
  0x73   : > { %1787 = vmatpush3.msra.mxu0 %v2150_v52  ;;  %1701 = vmatpush3.msra.mxu1 %v2062_v27  ;;  %v1410_v27 = vld [vmem:[%s2074_s25 + $0x1c0] sm:$0xff] }
  0x74   : > { %1780 = vmatmul.mubr.msk.f32.gmra.mxu0 %vm231_vm0, %v1393_v21  ;;  %882 = vmatmul.mubr.f32.gmra.mxu1 %v1423_v22 }
  0x75   : > { %1702 = vmatprep.subr.mxu1 %v2069_v28  ;;  %1788 = vmatprep.subr.mxu0 %v2173_v61  ;;  %v1438_v28 = vld [vmem:[%s2074_s25 + $0x260] sm:$0xff] }
  0x76   : > { %1703 = vmatpush3.msra.mxu1 %v2081_v29  ;;  %1789 = vmatpush3.msra.mxu0 %v2173_v61  ;;  %v1413_v29 = vld [vmem:[%s2074_s25 + $0x1d8] sm:$0xff] }
  0x77   : > { %1704 = vmatprep.subr.mxu1 %v2088_v30  ;;  %1790 = vmatprep.mubr.msk.f32.mxu0 %vm231_vm0, %v1404_v23  ;;  %v1437_v30 = vld [vmem:[%s2074_s25 + $0x258] sm:$0xff] }
  0x78   : > { %1705 = vmatpush3.msra.mxu1 %v2095_v31  ;;  %1113 = vmatprep.mubr.f32.mxu1 %v1435_v24  ;;  %v1441_v31 = vld [vmem:[%s2074_s25 + $0x278] sm:$0xff] }
  0x79   : > { %1791 = vmatmul.mubr.msk.f32.vlgmr.msra.gmra.mxu0 %vm231_vm0, %v1407_v25  ;;  %1114 = vmatmul.mubr.f32.vlgmr.msra.gmra.mxu1 %v1434_v26 }
  0x7a   : > { %1802 = vmatprep.subr.mxu0 %v2109_v36  ;;  %1793 = vmatprep.mubr.msk.f32.mxu0 %vm231_vm0, %v1410_v27 }
  0x7b   : > { %1118 = vmatprep.mubr.f32.mxu1 %v1438_v28  ;;  %1803 = vmatpush3.msra.mxu0 %v2109_v36  ;;  %v1444_v36 = vld [vmem:[%s2074_s25 + $0x290] sm:$0xff] }
  0x7c   : > { %1804 = vmatprep.subr.mxu0 %v2127_v43 }
  0x7d   : > { %1794 = vmatmul.mubr.msk.f32.gmra.mxu0 %vm231_vm0, %v1413_v29  ;;  %1119 = vmatmul.mubr.f32.gmra.mxu1 %v1437_v30 }
  0x7e   : > { %1796 = vmatprep.mubr.msk.f32.mxu0 %vm231_vm0, %v1416_v47  ;;  %1123 = vmatprep.mubr.f32.mxu1 %v1441_v31 }
  0x7f   : > { %1805 = vmatpush3.msra.mxu0 %v2127_v43  ;;  %v1436_v43 = vld [vmem:[%s2074_s25 + $0x250] sm:$0xff] }
  0x80   : > { %1806 = vmatprep.subr.mxu0 %v2150_v52 }
  0x81   : > { %1797 = vmatmul.mubr.msk.f32.gmra.mxu0 %vm231_vm0, %v1419_v48  ;;  %1124 = vmatmul.mubr.f32.gmra.mxu1 %v1440_v49 }
  0x82   : > { %1799 = vmatprep.mubr.msk.f32.mxu0 %vm231_vm0, %v1422_v50  ;;  %1128 = vmatprep.mubr.f32.mxu1 %v1444_v36 }
  0x83   : > { %1807 = vmatpush3.msra.mxu0 %v2150_v52  ;;  %v1450_v52 = vld [vmem:[%s2074_s25 + $0x2c0] sm:$0xff] }
  0x84   : > { %1808 = vmatprep.subr.mxu0 %v2173_v61 }
  0x85   : > { %1800 = vmatmul.mubr.msk.f32.gmra.mxu0 %vm231_vm0, %v1425_v51  ;;  %1129 = vmatmul.mubr.f32.gmra.mxu1 %v1443_v53 }
  0x86   : > { %1133 = vmatprep.mubr.f32.mxu1 %v1447_v54  ;;  %1809 = vmatpush3.msra.mxu0 %v2173_v61  ;;  %v1448_v61 = vld [vmem:[%s2074_s25 + $0x2b0] sm:$0xff] }
  0x87   : > { %1810 = vmatprep.mubr.msk.f32.mxu0 %vm231_vm0, %v1436_v43 }
  0x89   : > { %1134 = vmatmul.mubr.f32.gmra.mxu1 %v1446_v55  ;;  %1811 = vmatmul.mubr.msk.f32.vlgmr.msra.gmra.mxu0 %vm231_vm0, %v1439_v56 }
  0x8a   : > { %1138 = vmatprep.mubr.f32.mxu1 %v1450_v52  ;;  %1813 = vmatprep.mubr.msk.f32.mxu0 %vm231_vm0, %v1442_v57 }
  0x8d   : > { %1139 = vmatmul.mubr.f32.gmra.mxu1 %v1449_v58  ;;  %1814 = vmatmul.mubr.msk.f32.gmra.mxu0 %vm231_vm0, %v1445_v59 }
  0x8e   : > { %1143 = vmatprep.mubr.f32.mxu1 %v1453_v60  ;;  %1816 = vmatprep.mubr.msk.f32.mxu0 %vm231_vm0, %v1448_v61 }
  0x91   : > { %1144 = vmatmul.mubr.f32.gmra.mxu1 %v1452_v62  ;;  %1817 = vmatmul.mubr.msk.f32.gmra.mxu0 %vm231_vm0, %v1451_v63 }
  0x92   : > { %1148 = vmatprep.mubr.f32.mxu1 %v1456_v32  ;;  %1819 = vmatprep.mubr.msk.f32.mxu0 %vm231_vm0, %v1454_v33 }
  0x95   : > { %1149 = vmatmul.mubr.f32.gmra.mxu1 %v1455_v34  ;;  %1820 = vmatmul.mubr.msk.f32.gmra.mxu0 %vm231_vm0, %v1457_v35 }
  0xed   : > { %v1502_v37 = vpop.f32.mrf.mxu0  ;;  %v1570_v38 = vpop.f32.mrf.mxu1 }
  0xef   : > { %v1503_v39 = vpop.f32.mrf.mxu0  ;;  %v1571_v40 = vpop.f32.mrf.mxu1 }
  0xf0   : > { %v1504_v41 = vadd.f32 %v1503_v39, %v1502_v37  ;;  %v1572_v42 = vadd.f32 %v1571_v40, %v1570_v38 }
  0xf2   : > { %v1505_v44 = vpop.f32.mrf.mxu0  ;;  %v1573_v45 = vpop.f32.mrf.mxu1 }
  0xf4   : > { %v1506_v46 = vpop.f32.mrf.mxu0  ;;  %v1574_v0 = vpop.f32.mrf.mxu1 }
  0xf5   : > { %v1507_v1 = vadd.f32 %v1506_v46, %v1505_v44  ;;  %v1575_v2 = vadd.f32 %v1574_v0, %v1573_v45 }
  0xf6   : > { %v1508_v3 = vpop.f32.mrf.mxu0 }
  0xf7   : > { %v1576_v4 = vpop.f32.mrf.mxu1 }
  0xf8   : > { %v1509_v5 = vpop.f32.mrf.mxu0 }
  0xf9   : > { %v1510_v6 = vadd.f32 %v1509_v5, %v1508_v3  ;;  %v1577_v7 = vpop.f32.mrf.mxu1 }
  0xfa   : > { %v1578_v8 = vadd.f32 %v1577_v7, %v1576_v4 }
  0xfb   : > { %v1511_v9 = vpop.f32.mrf.mxu0  ;;  %v1579_v10 = vpop.f32.mrf.mxu1 }
  0xfd   : > { %v1512_v11 = vpop.f32.mrf.mxu0  ;;  %v1580_v12 = vpop.f32.mrf.mxu1 }
  0xfe   : > { %v1513_v13 = vadd.f32 %v1512_v11, %v1511_v9  ;;  %v1581_v14 = vadd.f32 %v1580_v12, %v1579_v10 }
  0xff   : > { %v1514_v15 = vpop.f32.mrf.mxu0 }
 0x100   : > { %v1582_v16 = vpop.f32.mrf.mxu1 }
 0x101   : > { %v1515_v17 = vpop.f32.mrf.mxu0 }
 0x102   : > { %v1516_v18 = vadd.f32 %v1515_v17, %v1514_v15  ;;  %v1583_v19 = vpop.f32.mrf.mxu1 }
 0x103   : > { %v1584_v20 = vadd.f32 %v1583_v19, %v1582_v16 }
 0x104   : > { %v2347_v21 = vpop.f32.mrf.mxu0  ;;  %v2349_v22 = vpop.f32.mrf.mxu1 }
 0x106   : > { %v2351_v23 = vpop.f32.mrf.mxu0  ;;  %v2353_v24 = vpop.f32.mrf.mxu1 }
 0x108   : > { %v1520_v25 = vpop.f32.mrf.mxu0 }
 0x109   : > { %v1588_v26 = vpop.f32.mrf.mxu1 }
 0x10a   : > { %v1521_v27 = vpop.f32.mrf.mxu0 }
 0x10b   : > { %v1589_v28 = vpop.f32.mrf.mxu1 }
 0x10c   : > { %v1590_v15 = vadd.f32 %v1589_v28, %v1588_v26 }
 0x10d   : > { %v2355_v29 = vpop.f32.mrf.mxu0  ;;  %v2357_v30 = vpop.f32.mrf.mxu1 }
 0x10f   : > { %v2359_v47 = vpop.f32.mrf.mxu0  ;;  %v2361_v31 = vpop.f32.mrf.mxu1 }
 0x111   : > { %v1752_v48 = vpop.f32.mrf.mxu0 }
 0x112   : > { %v2363_v49 = vpop.f32.mrf.mxu1  ;;  %v433_v32 = vadd.f32 %v1752_v48, %v1507_v1 }
 0x113   : > { %v427_v50 = vpop.f32.mrf.mxu0 }
 0x114   : > { %v2365_v36 = vpop.f32.mrf.mxu1  ;;  %v2379_v37 = vadd.f32 %v1504_v41, %v427_v50  ;;  %v1587_v41 = vadd.f32 %v2353_v24, %v2349_v22 }
 0x116   : > { %v1755_v51 = vpop.f32.mrf.mxu0  ;;  %v1641_v53 = vpop.f32.mrf.mxu1 }
 0x117   : > { %v2385_v46 = vadd.f32 %v1755_v51, %v1513_v13 }
 0x118   : > { %v437_v54 = vpop.f32.mrf.mxu0  ;;  %v1642_v43 = vpop.f32.mrf.mxu1 }
 0x11b   : > { %v2367_v55 = vpop.f32.mrf.mxu0  ;;  %v2369_v56 = vpop.f32.mrf.mxu1 }
 0x11d   : > { %v447_v52 = vpop.f32.mrf.mxu0  ;;  %v2371_v57 = vpop.f32.mrf.mxu1 }
 0x11e   : > { %v2401_v11 = vadd.f32 %v1516_v18, %v447_v52 }
 0x120   : > { %v2373_v58 = vpop.f32.mrf.mxu0  ;;  %v1647_v59 = vpop.f32.mrf.mxu1 }
 0x122   : > { %v457_v60 = vpop.f32.mrf.mxu0  ;;  %v1648_v61 = vpop.f32.mrf.mxu1 }
 0x125   : > { %v1772_v62 = vpop.f32.mrf.mxu0  ;;  %v2375_v63 = vpop.f32.mrf.mxu1 }
 0x126   : > { %v692_v33 = vadd.f32 %v1772_v62, %v1575_v2  ;;  %v2389_v2 = vadd.f32 %v1510_v6, %v437_v54 }
 0x127   : > { %v686_v34 = vpop.f32.mrf.mxu0  ;;  %v2377_v35 = vpop.f32.mrf.mxu1 }
 0x128   : > { %v726_v38 = vmax.f32 %v433_v32, %v692_v33  ;;  %v2381_v39 = vadd.f32 %v1572_v42, %v686_v34  ;;  %v1643_v34 = vadd.f32 %v1642_v43, %v1641_v53  ;;  %v1519_v42 = vadd.f32 %v2351_v23, %v2347_v21  ;;  %v2434_v21 = vld [vmem:[%s2498_s2] ss:$0 sm:$0xff] }
 0x12a   : > { %v1775_v44 = vpop.f32.mrf.mxu0  ;;  %v1653_v45 = vpop.f32.mrf.mxu1  ;;  %v2504_v24 = vmax.f32 %v2379_v37, %v2381_v39 }
 0x12b   : > { %v2387_v0 = vadd.f32 %v1775_v44, %v1581_v14  ;;  %v1522_v14 = vadd.f32 %v1521_v27, %v1520_v25 }
 0x12c   : > { %v696_v3 = vpop.f32.mrf.mxu0  ;;  %v1654_v1 = vpop.f32.mrf.mxu1 }
 0x12d   : > { %v2393_v4 = vadd.f32 %v1578_v8, %v696_v3  ;;  %v2413_v19 = vadd.f32 %v1522_v14, %v457_v60  ;;  %v1640_v3 = vadd.f32 %v2365_v36, %v2363_v49  ;;  %v1525_v36 = vadd.f32 %v2359_v47, %v2355_v29 }
 0x12e   : > { %v453_v47 = vadd.f32 %v2367_v55, %v1519_v42 }
 0x12f   : > { %v1778_v5 = vpop.f32.mrf.mxu0  ;;  %v2397_v7 = vpop.f32.mrf.mxu1  ;;  %2502 = vst [vmem:[#allocation2_spill] sm:$0xff] %v2413_v19 }
 0x131   : > { %v706_v9 = vpop.f32.mrf.mxu0  ;;  %v2399_v10 = vpop.f32.mrf.mxu1 }
 0x132   : > { %v2403_v12 = vadd.f32 %v1584_v20, %v706_v9 }
 0x134   : > { %v2407_v13 = vpop.f32.mrf.mxu0  ;;  %v2409_v8 = vpop.f32.mrf.mxu1 }
 0x136   : > { %v716_v16 = vpop.f32.mrf.mxu0  ;;  %v2411_v17 = vpop.f32.mrf.mxu1 }
 0x137   : > { %v2415_v48 = vadd.f32 %v1590_v15, %v716_v16  ;;  %v1649_v16 = vadd.f32 %v1648_v61, %v1647_v59  ;;  %v1646_v59 = vadd.f32 %v2371_v57, %v2369_v56  ;;  %v1655_v61 = vadd.f32 %v1654_v1, %v1653_v45 }
 0x138   : > { %v1652_v56 = vadd.f32 %v2377_v35, %v2375_v63 }
 0x139   : > { %2503 = vst [vmem:[#allocation3_spill] sm:$0xff] %v2415_v48  ;;  %v1792_v20 = vpop.f32.mrf.mxu0  ;;  %v1706_v50 = vpop.f32.mrf.mxu1 }
 0x13a   : > { %v959_v9 = vadd.f32 %v1792_v20, %v1643_v34  ;;  %v712_v20 = vadd.f32 %v1778_v5, %v1587_v41  ;;  %v2505_v5 = vmax.f32 %v2385_v46, %v2387_v0 }
 0x13b   : > { %v953_v51 = vpop.f32.mrf.mxu0  ;;  %v1707_v54 = vpop.f32.mrf.mxu1 }
 0x13c   : > { %v954_v18 = vadd.f32 %v1640_v3, %v953_v51  ;;  %v993_v43 = vmax.f32 %v726_v38, %v959_v9  ;;  %v1708_v48 = vadd.f32 %v1707_v54, %v1706_v50  ;;  %v730_v54 = vmax.f32 %v453_v47, %v712_v20  ;;  %v2508_v20 = vld [vmem:[#allocation2_spill] sm:$0xff] }
 0x13d   : > { %v1795_v52 = vpop.f32.mrf.mxu0  ;;  %v1709_v62 = vpop.f32.mrf.mxu1 }
 0x13e   : > { %v969_v19 = vadd.f32 %v1795_v52, %v1649_v16  ;;  %v992_v38 = vmax.f32 %v2504_v24, %v954_v18 }
 0x13f   : > { %v963_v32 = vpop.f32.mrf.mxu0  ;;  %v1710_v33 = vpop.f32.mrf.mxu1 }
 0x140   : > { %v1711_v6 = vadd.f32 %v1710_v33, %v1709_v62  ;;  %v964_v57 = vadd.f32 %v1646_v59, %v963_v32  ;;  %v995_v51 = vmax.f32 %v2505_v5, %v969_v19  ;;  %v1658_v62 = vadd.f32 %v2399_v10, %v2397_v7 }
 0x141   : > { %v1798_v25 = vpop.f32.mrf.mxu0  ;;  %v1712_v26 = vpop.f32.mrf.mxu1  ;;  %v1661_v7 = vadd.f32 %v2411_v17, %v2409_v8 }
 0x142   : > { %v979_v45 = vadd.f32 %v1798_v25, %v1655_v61 }
 0x143   : > { %v973_v27 = vpop.f32.mrf.mxu0  ;;  %v1713_v28 = vpop.f32.mrf.mxu1 }
 0x144   : > { %v974_v55 = vadd.f32 %v1652_v56, %v973_v27  ;;  %v1714_v42 = vadd.f32 %v1713_v28, %v1712_v26  ;;  %v997_v32 = vmax.f32 %v730_v54, %v979_v45 }
 0x145   : > { %v2419_v60 = vpop.f32.mrf.mxu0  ;;  %v1715_v44 = vpop.f32.mrf.mxu1 }
 0x146   : > { %v989_v17 = vadd.f32 %v2419_v60, %v1661_v7 }
 0x147   : > { %v983_v14 = vpop.f32.mrf.mxu0  ;;  %v1716_v15 = vpop.f32.mrf.mxu1 }
 0x149   : > { %v1718_v40 = vpop.f32.mrf.mxu1  ;;  %v1812_v53 = vpop.f32.mrf.mxu0 }
 0x14a   : > { %v1226_v49 = vadd.f32 %v1812_v53, %v1711_v6  ;;  %v1717_v6 = vadd.f32 %v1716_v15, %v1715_v44  ;;  %v2507_v15 = vmax.f32 %v2401_v11, %v2403_v12 }
 0x14b   : > { %v1719_v22 = vpop.f32.mrf.mxu1  ;;  %v1220_v23 = vpop.f32.mrf.mxu0 }
 0x14c   : > { %v1260_v50 = vmax.f32 %v993_v43, %v1226_v49  ;;  %v1221_v29 = vadd.f32 %v1708_v48, %v1220_v23  ;;  %v1593_v48 = vadd.f32 %v2361_v31, %v2357_v30  ;;  %v2506_v30 = vmax.f32 %v2389_v2, %v2393_v4 }
 0x14d   : > { %v1721_v1 = vpop.f32.mrf.mxu1  ;;  %v1815_v41 = vpop.f32.mrf.mxu0  ;;  %v1720_v27 = vadd.f32 %v1719_v22, %v1718_v40  ;;  %v984_v2 = vadd.f32 %v1658_v62, %v983_v14  ;;  %v996_v16 = vmax.f32 %v2507_v15, %v974_v55  ;;  %v463_v49 = vadd.f32 %v2373_v58, %v1525_v36  ;;  %v2509_v22 = vld [vmem:[#allocation3_spill] sm:$0xff] }
 0x14e   : > { %v1275_v37 = vadd.f32 %v2434_v21, %v1260_v50  ;;  %v1259_v39 = vmax.f32 %v992_v38, %v1221_v29  ;;  %v1236_v18 = vadd.f32 %v1815_v41, %v1717_v6  ;;  %v994_v31 = vmax.f32 %v2506_v30, %v964_v57 }
 0x14f   : > { %v1722_v63 = vpop.f32.mrf.mxu1  ;;  %v1230_v35 = vpop.f32.mrf.mxu0  ;;  %v722_v3 = vadd.f32 %v2407_v13, %v1593_v48  ;;  %v2510_v23 = vmax.f32 %v2508_v20, %v2509_v22 }
 0x150   : > { %v1283_v46 = vmax.f32 %v1275_v37, 0.0  ;;  %v1274_v0 = vadd.f32 %v2434_v21, %v1259_v39  ;;  %v1262_v19 = vmax.f32 %v995_v51, %v1236_v18  ;;  %v1723_v52 = vadd.f32 %v1722_v63, %v1721_v1 }
 0x151   : > { %v1231_v33 = vadd.f32 %v1714_v42, %v1230_v35  ;;  %v1724_v25 = vpop.f32.mrf.mxu1  ;;  %v1818_v26 = vpop.f32.mrf.mxu0  ;;  %v732_v61 = vmax.f32 %v463_v49, %v722_v3  ;;  %v998_v58 = vmax.f32 %v2510_v23, %v984_v2 }
 0x152   : > { %1292 = vst.msk [vmem:[%s2452_s19 + $0x8] sm:$0xff] %vm1290_vm1, %v1283_v46  ;;  %v1282_v28 = vmax.f32 %v1274_v0, 0.0  ;;  %v1277_v34 = vadd.f32 %v2434_v21, %v1262_v19  ;;  %v1246_v44 = vadd.f32 %v1818_v26, %v1723_v52 }
 0x153   : > { %v1261_v4 = vmax.f32 %v994_v31, %v1231_v33  ;;  %v1725_v10 = vpop.f32.mrf.mxu1  ;;  %v1240_v9 = vpop.f32.mrf.mxu0  ;;  %v999_v47 = vmax.f32 %v732_v61, %v989_v17 }
 0x154   : > { %1291 = vst.msk [vmem:[%s2452_s19] sm:$0xff] %vm1290_vm1, %v1282_v28  ;;  %v1285_v40 = vmax.f32 %v1277_v34, 0.0  ;;  %v1264_v53 = vmax.f32 %v997_v32, %v1246_v44  ;;  %v1241_v43 = vadd.f32 %v1720_v27, %v1240_v9  ;;  %v1726_v12 = vadd.f32 %v1725_v10, %v1724_v25 }
 0x155   : > { %v1276_v13 = vadd.f32 %v2434_v21, %v1261_v4  ;;  %v1727_v59 = vpop.f32.mrf.mxu1  ;;  %v1821_v8 = vpop.f32.mrf.mxu0 }
 0x156   : > { %1294 = vst.msk [vmem:[%s2452_s19 + $0x18] sm:$0xff] %vm1290_vm1, %v1285_v40  ;;  %v1279_v11 = vadd.f32 %v2434_v21, %v1264_v53  ;;  %v1263_v14 = vmax.f32 %v996_v16, %v1241_v43 }
 0x157   : > { %v1284_v36 = vmax.f32 %v1276_v13, 0.0  ;;  %v1728_v24 = vpop.f32.mrf.mxu1  ;;  %v1250_v38 = vpop.f32.mrf.mxu0 }
 0x158   : > { %v1287_v6 = vmax.f32 %v1279_v11, 0.0  ;;  %v1278_v60 = vadd.f32 %v2434_v21, %v1263_v14  ;;  %v1729_v50 = vadd.f32 %v1728_v24, %v1727_v59  ;;  %v1251_v29 = vadd.f32 %v1726_v12, %v1250_v38 }
 0x159   : > { %1293 = vst.msk [vmem:[%s2452_s19 + $0x10] sm:$0xff] %vm1290_vm1, %v1284_v36 }
 0x15a   : > { %1296 = vst.msk [vmem:[%s2452_s19 + $0x28] sm:$0xff] %vm1290_vm1, %v1287_v6  ;;  %v1286_v56 = vmax.f32 %v1278_v60, 0.0  ;;  %v1256_v57 = vadd.f32 %v1821_v8, %v1729_v50  ;;  %v1265_v45 = vmax.f32 %v998_v58, %v1251_v29 }
 0x15c   : > { %1295 = vst.msk [vmem:[%s2452_s19 + $0x20] sm:$0xff] %vm1290_vm1, %v1286_v56  ;;  %v1266_v1 = vmax.f32 %v999_v47, %v1256_v57  ;;  %v1280_v41 = vadd.f32 %v2434_v21, %v1265_v45 }
 0x15e   : > { %v1281_v5 = vadd.f32 %v2434_v21, %v1266_v1  ;;  %v1288_v51 = vmax.f32 %v1280_v41, 0.0 }
 0x160   : > { %v1289_v37 = vmax.f32 %v1281_v5, 0.0  ;;  %1297 = vst.msk [vmem:[%s2452_s19 + $0x30] sm:$0xff] %vm1290_vm1, %v1288_v51 }
 0x162   : > { %1298 = vst.msk [vmem:[%s2452_s19 + $0x38] sm:$0xff] %vm1290_vm1, %v1289_v37 }
 0x163 PF: > { %s13_s12 = sadd.s32 1, %s1837_s12  }
 0x164   : > { %p10_p4 = scmp.ge.s32.totalorder %s13_s12, 4  }
 0x166   :  { %12 = sbr.rel (!%p10_p4) target bundleno = 1 (0x1), region = 65 }

// kernel: simple_cnn_forward.7
= control target key start
LH: loop header
LB: loop body
LE: loop exit
PB: predicated region body
PF: predicated region fallthrough
CT: control target
= control target key end

     0   :  { %s1792_s12 = smov 0   ;;  %s2556_s0 = inlined_call_operand.vmem [shape: f32[2,4,16,576], index: 0, kind: input, shape index: {}]   ;;  %s2557_s1 = inlined_call_operand.vmem [shape: f32[576,128], index: 1, kind: input, shape index: {}]   ;;  %s2558_s2 = inlined_call_operand.vmem [shape: f32[1,128], index: 2, kind: input, shape index: {}]   ;;  %s2559_s3 = inlined_call_operand.vmem [shape: f32[2,16,128], index: 3, kind: output, shape index: {}]  }
   0x1 LB: > { %s1285_s13 = sadd.s32 4294967295, %s1770_s12   ;;  %p1289_p0 = scmp.ge.s32.totalorder %s1770_s12, 1  ;;  %s1770_s12 = sphi %s1792_s12, %s13_s12  }
   0x2   : > { %p137_p1 = scmp.lt.s32.totalorder %s1770_s12, 3 }
   0x4   : > { %p138_p2 = pnand %p1289_p0, %p137_p1 }
   0x6   : > { %141 = sbr.rel (%p138_p2) target bundleno = 400 (0x190), region = 32 }
   0xb   : > { %v1803_v0 = vld [vmem:[%s2557_s1 + $0xf8] sm:$0xff]  ;;  %v1825_v4 = vld [vmem:[%s2557_s1 + $0xf0] sm:$0xff]  ;;  %v1847_v8 = vld [vmem:[%s2557_s1 + $0xe8] sm:$0xff]  ;;  %p2000_p3 = scmp.lt.s32.totalorder %s1285_s13, 1  ;;  %vm253_vm0 = vcmask 523264  }
   0xc   : > { %v1808_v1 = vld [vmem:[%s2557_s1 + $0x1f8] sm:$0xff]  ;;  %1335 = vmatprep.subr.mxu0 %v1803_v0  ;;  %v1830_v5 = vld [vmem:[%s2557_s1 + $0x1f0] sm:$0xff]  ;;  %2609 = vst [vmem:[#allocation3_spill] sm:$0xff] %v1847_v8  ;;  %v1854_v9 = vld [vmem:[%s2557_s1 + $0x1e8] sm:$0xff] }
   0xd   : > { %v1813_v2 = vld [vmem:[%s2557_s1 + $0x78] sm:$0xff]  ;;  %1373 = vmatprep.subr.mxu1 %v1808_v1  ;;  %v1837_v6 = vld [vmem:[%s2557_s1 + $0x70] sm:$0xff]  ;;  %v1859_v10 = vld [vmem:[%s2557_s1 + $0x68] sm:$0xff]  ;;  %s2662_s13 = smov (!%p2000_p3, %s1285_s13), 1 }
   0xe   : > { %v1820_v3 = vld [vmem:[%s2557_s1 + $0x178] sm:$0xff]  ;;  %1336 = vmatpush3.msra.mxu0 %v1813_v2  ;;  %2608 = vst [vmem:[#allocation2_spill] sm:$0xff] %v1837_v6  ;;  %v1842_v7 = vld [vmem:[%s2557_s1 + $0x170] sm:$0xff]  ;;  %2610 = vst [vmem:[#allocation4_spill] sm:$0xff] %v1859_v10  ;;  %s1755_s15 = smul.u32 320, %s2662_s13 }
   0xf   : > { %1374 = vmatpush3.msra.mxu1 %v1820_v3  ;;  %1337 = vmatprep.subr.mxu0 %v1825_v4  ;;  %v1864_v11 = vld [vmem:[%s2557_s1 + $0x168] sm:$0xff]  ;;  %v1871_v12 = vld [vmem:[%s2557_s1 + $0xe0] sm:$0xff]  ;;  %v1895_v16 = vld [vmem:[%s2557_s1 + $0xd8] sm:$0xff] }
  0x10   : > { %1375 = vmatprep.subr.mxu1 %v1830_v5  ;;  %1338 = vmatpush3.msra.mxu0 %v1837_v6  ;;  %2611 = vst [vmem:[#allocation5_spill] sm:$0xff] %v1871_v12  ;;  %v1876_v13 = vld [vmem:[%s2557_s1 + $0x1e0] sm:$0xff]  ;;  %2612 = vst [vmem:[#allocation6_spill] sm:$0xff] %v1895_v16  ;;  %v1900_v17 = vld [vmem:[%s2557_s1 + $0x1d8] sm:$0xff]  ;;  %s2158_s7 = scalar_lea.vmem %s2556_s0, %s1755_s15  ;;  %s1334_s15 = sshll.u32 %s2662_s13, 4 }
  0x11   : > { %1376 = vmatpush3.msra.mxu1 %v1842_v7  ;;  %1339 = vmatprep.subr.mxu0 %v1847_v8  ;;  %v1883_v14 = vld [vmem:[%s2557_s1 + $0x60] sm:$0xff]  ;;  %v1907_v18 = vld [vmem:[%s2557_s1 + $0x58] sm:$0xff]  ;;  %v1919_v20 = vld [vmem:[%s2557_s1 + $0xd0] sm:$0xff]  ;;  %s170_s18 = scalar_lea.vmem %s2559_s3, %s1334_s15 }
  0x12   : > { %1377 = vmatprep.subr.mxu1 %v1854_v9  ;;  %v1888_v15 = vld [vmem:[%s2557_s1 + $0x160] sm:$0xff]  ;;  %1340 = vmatpush3.msra.mxu0 %v1859_v10  ;;  %v1912_v19 = vld [vmem:[%s2557_s1 + $0x158] sm:$0xff]  ;;  %v1924_v21 = vld [vmem:[%s2557_s1 + $0x1d0] sm:$0xff] }
  0x13   : > { %1378 = vmatpush3.msra.mxu1 %v1864_v11  ;;  %1341 = vmatprep.subr.mxu0 %v1871_v12  ;;  %v1931_v22 = vld [vmem:[%s2557_s1 + $0x50] sm:$0xff]  ;;  %v1943_v24 = vld [vmem:[%s2557_s1 + $0xc8] sm:$0xff]  ;;  %v1967_v28 = vld [vmem:[%s2557_s1 + $0xc0] sm:$0xff] }
  0x14   : > { %1379 = vmatprep.subr.mxu1 %v1876_v13  ;;  %1342 = vmatpush3.msra.mxu0 %v1883_v14  ;;  %v1936_v23 = vld [vmem:[%s2557_s1 + $0x150] sm:$0xff]  ;;  %v1948_v25 = vld [vmem:[%s2557_s1 + $0x1c8] sm:$0xff]  ;;  %v1972_v29 = vld [vmem:[%s2557_s1 + $0x1c0] sm:$0xff] }
  0x15   : > { %1380 = vmatpush3.msra.mxu1 %v1888_v15  ;;  %1343 = vmatprep.subr.mxu0 %v1895_v16  ;;  %v1955_v26 = vld [vmem:[%s2557_s1 + $0x48] sm:$0xff]  ;;  %v1979_v30 = vld [vmem:[%s2557_s1 + $0x40] sm:$0xff]  ;;  %v1991_v32 = vld [vmem:[%s2557_s1 + $0xb8] sm:$0xff] }
  0x16   : > { %1381 = vmatprep.subr.mxu1 %v1900_v17  ;;  %1344 = vmatpush3.msra.mxu0 %v1907_v18  ;;  %v1960_v27 = vld [vmem:[%s2557_s1 + $0x148] sm:$0xff]  ;;  %v1984_v31 = vld [vmem:[%s2557_s1 + $0x140] sm:$0xff]  ;;  %v1996_v33 = vld [vmem:[%s2557_s1 + $0x1b8] sm:$0xff] }
  0x17   : > { %1382 = vmatpush3.msra.mxu1 %v1912_v19  ;;  %1345 = vmatprep.subr.mxu0 %v1919_v20  ;;  %v2009_v34 = vld [vmem:[%s2557_s1 + $0x38] sm:$0xff]  ;;  %v2021_v36 = vld [vmem:[%s2557_s1 + $0xb0] sm:$0xff]  ;;  %v2045_v40 = vld [vmem:[%s2557_s1 + $0xa8] sm:$0xff] }
  0x18   : > { %1383 = vmatprep.subr.mxu1 %v1924_v21  ;;  %1346 = vmatpush3.msra.mxu0 %v1931_v22  ;;  %v2014_v35 = vld [vmem:[%s2557_s1 + $0x138] sm:$0xff]  ;;  %v2026_v37 = vld [vmem:[%s2557_s1 + $0x1b0] sm:$0xff]  ;;  %v2050_v41 = vld [vmem:[%s2557_s1 + $0x1a8] sm:$0xff] }
  0x19   : > { %1384 = vmatpush3.msra.mxu1 %v1936_v23  ;;  %1347 = vmatprep.subr.mxu0 %v1943_v24  ;;  %v2033_v38 = vld [vmem:[%s2557_s1 + $0x30] sm:$0xff]  ;;  %v2063_v42 = vld [vmem:[%s2557_s1 + $0x28] sm:$0xff]  ;;  %v2075_v44 = vld [vmem:[%s2557_s1 + $0xa0] sm:$0xff] }
  0x1a   : > { %1385 = vmatprep.subr.mxu1 %v1948_v25  ;;  %1348 = vmatpush3.msra.mxu0 %v1955_v26  ;;  %v2038_v39 = vld [vmem:[%s2557_s1 + $0x130] sm:$0xff]  ;;  %v2068_v43 = vld [vmem:[%s2557_s1 + $0x128] sm:$0xff]  ;;  %v2080_v45 = vld [vmem:[%s2557_s1 + $0x1a0] sm:$0xff] }
  0x1b   : > { %1386 = vmatpush3.msra.mxu1 %v1960_v27  ;;  %1349 = vmatprep.subr.mxu0 %v1967_v28  ;;  %2614 = vst [vmem:[#allocation7_spill] sm:$0xff] %v2068_v43  ;;  %2615 = vst [vmem:[#allocation8_spill] sm:$0xff] %v2080_v45  ;;  %v2087_v46 = vld [vmem:[%s2557_s1 + $0x20] sm:$0xff]  ;;  %v2099_v48 = vld [vmem:[%s2557_s1 + $0x98] sm:$0xff] }
  0x1c   : > { %1387 = vmatprep.subr.mxu1 %v1972_v29  ;;  %1350 = vmatpush3.msra.mxu0 %v1979_v30  ;;  %v2092_v47 = vld [vmem:[%s2557_s1 + $0x120] sm:$0xff]  ;;  %v2104_v49 = vld [vmem:[%s2557_s1 + $0x198] sm:$0xff]  ;;  %v2124_v52 = vld [vmem:[%s2557_s1 + $0x90] sm:$0xff] }
  0x1d   : > { %1388 = vmatpush3.msra.mxu1 %v1984_v31  ;;  %1351 = vmatprep.subr.mxu0 %v1991_v32  ;;  %2616 = vst [vmem:[#allocation9_spill] sm:$0xff] %v2092_v47  ;;  %2617 = vst [vmem:[#allocation10_spill] sm:$0xff] %v2104_v49  ;;  %v2112_v50 = vld [vmem:[%s2557_s1 + $0x18] sm:$0xff]  ;;  %v2129_v53 = vld [vmem:[%s2557_s1 + $0x190] sm:$0xff] }
  0x1e   : > { %1389 = vmatprep.subr.mxu1 %v1996_v33  ;;  %1352 = vmatpush3.msra.mxu0 %v2009_v34  ;;  %v2117_v51 = vld [vmem:[%s2557_s1 + $0x118] sm:$0xff]  ;;  %2619 = vst [vmem:[#allocation12_spill] sm:$0xff] %v2129_v53  ;;  %v2136_v54 = vld [vmem:[%s2557_s1 + $0x10] sm:$0xff]  ;;  %v2148_v56 = vld [vmem:[%s2557_s1 + $0x88] sm:$0xff] }
  0x1f   : > { %1390 = vmatpush3.msra.mxu1 %v2014_v35  ;;  %1353 = vmatprep.subr.mxu0 %v2021_v36  ;;  %2618 = vst [vmem:[#allocation11_spill] sm:$0xff] %v2117_v51  ;;  %v2141_v55 = vld [vmem:[%s2557_s1 + $0x110] sm:$0xff]  ;;  %v2153_v57 = vld [vmem:[%s2557_s1 + $0x188] sm:$0xff]  ;;  %v2177_v60 = vld [vmem:[%s2557_s1 + $0x80] sm:$0xff] }
  0x20   : > { %1391 = vmatprep.subr.mxu1 %v2026_v37  ;;  %1354 = vmatpush3.msra.mxu0 %v2033_v38  ;;  %2620 = vst [vmem:[#allocation13_spill] sm:$0xff] %v2141_v55  ;;  %2621 = vst [vmem:[#allocation14_spill] sm:$0xff] %v2153_v57  ;;  %v2165_v58 = vld [vmem:[%s2557_s1 + $0x8] sm:$0xff]  ;;  %v2182_v61 = vld [vmem:[%s2557_s1 + $0x180] sm:$0xff] }
  0x21   : > { %1392 = vmatpush3.msra.mxu1 %v2038_v39  ;;  %1355 = vmatprep.subr.mxu0 %v2045_v40  ;;  %2622 = vst [vmem:[#allocation15_spill] sm:$0xff] %v2165_v58  ;;  %v2170_v59 = vld [vmem:[%s2557_s1 + $0x108] sm:$0xff]  ;;  %2624 = vst [vmem:[#allocation17_spill] sm:$0xff] %v2177_v60  ;;  %v2189_v62 = vld [vmem:[%s2557_s1] sm:$0xff] }
  0x22   : > { %1393 = vmatprep.subr.mxu1 %v2050_v41  ;;  %1356 = vmatpush3.msra.mxu0 %v2063_v42  ;;  %2623 = vst [vmem:[#allocation16_spill] sm:$0xff] %v2170_v59  ;;  %2625 = vst [vmem:[#allocation18_spill] sm:$0xff] %v2182_v61  ;;  %v244_v63 = vld [vmem:[%s2158_s7 + $0x8] sm:$0xff] }
  0x23   : > { %1394 = vmatpush3.msra.mxu1 %v2068_v43  ;;  %1357 = vmatprep.subr.mxu0 %v2075_v44  ;;  %2626 = vst [vmem:[#allocation19_spill] sm:$0xff] %v2189_v62 }
  0x24   : > { %1395 = vmatprep.subr.mxu1 %v2080_v45  ;;  %1358 = vmatpush3.msra.mxu0 %v2087_v46 }
  0x25   : > { %1396 = vmatpush3.msra.mxu1 %v2092_v47  ;;  %1359 = vmatprep.subr.mxu0 %v2099_v48 }
  0x26   : > { %1397 = vmatprep.subr.mxu1 %v2104_v49  ;;  %1360 = vmatpush3.msra.mxu0 %v2112_v50  ;;  %v2208_v49 = vld [vmem:[%s2557_s1 + $0x238] sm:$0xff] }
  0x27   : > { %1398 = vmatpush3.msra.mxu1 %v2117_v51  ;;  %1361 = vmatprep.subr.mxu0 %v2124_v52  ;;  %v245_v51 = vld [vmem:[%s2158_s7 + $0x10] sm:$0xff]  ;;  %2627 = vst [vmem:[#allocation20_spill] sm:$0xff] %v2208_v49 }
  0x28   : > { %1399 = vmatprep.subr.mxu1 %v2129_v53  ;;  %1362 = vmatpush3.msra.mxu0 %v2136_v54  ;;  %v246_v53 = vld [vmem:[%s2158_s7 + $0x18] sm:$0xff] }
  0x29   : > { %1400 = vmatpush3.msra.mxu1 %v2141_v55  ;;  %1363 = vmatprep.subr.mxu0 %v2148_v56  ;;  %v2197_v55 = vld [vmem:[%s2557_s1 + $0x100] sm:$0xff] }
  0x2a   : > { %1401 = vmatprep.subr.mxu1 %v2153_v57  ;;  %1364 = vmatpush3.msra.mxu0 %v2165_v58  ;;  %v243_v57 = vld [vmem:[%s2158_s7] sm:$0xff] }
  0x2b   : > { %1402 = vmatpush3.msra.mxu1 %v2170_v59  ;;  %1365 = vmatprep.subr.mxu0 %v2177_v60  ;;  %v2214_v59 = vld [vmem:[%s2557_s1 + $0x230] sm:$0xff] }
  0x2c   : > { %1403 = vmatprep.subr.mxu1 %v2182_v61  ;;  %1366 = vmatpush3.msra.mxu0 %v2189_v62  ;;  %2628 = vst [vmem:[#allocation21_spill] sm:$0xff] %v2214_v59 }
  0x2d   : > { %324 = vmatprep.mubr.f32.mxu0 %v244_v63  ;;  %1404 = vmatpush3.msra.mxu1 %v2197_v55  ;;  %v249_v63 = vld [vmem:[%s2158_s7 + $0x30] sm:$0xff] }
  0x2e   : > { %399 = vmatprep.mubr.f32.mxu1 %v246_v53  ;;  %325 = vmatmul.mubr.f32.vlgmr.msra.gmra.mxu0 %v243_v57  ;;  %v2223_v53 = vld [vmem:[%s2557_s1 + $0x228] sm:$0xff]  ;;  %v2241_v57 = vld [vmem:[%s2557_s1 + $0x218] sm:$0xff] }
  0x2f   : > { %400 = vmatmul.mubr.f32.vlgmr.msra.gmra.mxu1 %v245_v51  ;;  %1679 = vmatprep.subr.mxu0 %v2208_v49  ;;  %2629 = vst [vmem:[#allocation22_spill] sm:$0xff] %v2223_v53  ;;  %v2232_v51 = vld [vmem:[%s2557_s1 + $0x220] sm:$0xff]  ;;  %2631 = vst [vmem:[#allocation24_spill] sm:$0xff] %v2241_v57 }
  0x30   : > { %1421 = vmatprep.subr.mxu1 %v1803_v0  ;;  %1680 = vmatpush3.msra.mxu0 %v2208_v49  ;;  %2630 = vst [vmem:[#allocation23_spill] sm:$0xff] %v2232_v51 }
  0x31   : > { %1422 = vmatpush3.msra.mxu1 %v1813_v2  ;;  %1681 = vmatprep.subr.mxu0 %v2214_v59 }
  0x32   : > { %1423 = vmatprep.subr.mxu1 %v1825_v4  ;;  %1682 = vmatpush3.msra.mxu0 %v2214_v59 }
  0x33   : > { %1424 = vmatpush3.msra.mxu1 %v1837_v6  ;;  %1683 = vmatprep.subr.mxu0 %v2223_v53  ;;  %v250_v6 = vld [vmem:[%s2158_s7 + $0x38] sm:$0xff] }
  0x34   : > { %1425 = vmatprep.subr.mxu1 %v1847_v8  ;;  %1684 = vmatpush3.msra.mxu0 %v2223_v53  ;;  %v251_v8 = vld [vmem:[%s2158_s7 + $0x40] sm:$0xff] }
  0x35   : > { %1426 = vmatpush3.msra.mxu1 %v1859_v10  ;;  %1685 = vmatprep.subr.mxu0 %v2232_v51  ;;  %v2254_v10 = vld [vmem:[%s2557_s1 + $0x210] sm:$0xff] }
  0x36   : > { %1427 = vmatprep.subr.mxu1 %v1871_v12  ;;  %1686 = vmatpush3.msra.mxu0 %v2232_v51  ;;  %v248_v12 = vld [vmem:[%s2158_s7 + $0x28] sm:$0xff] }
  0x37   : > { %1428 = vmatpush3.msra.mxu1 %v1883_v14  ;;  %1687 = vmatprep.subr.mxu0 %v2241_v57 }
  0x38   : > { %1429 = vmatprep.subr.mxu1 %v1895_v16  ;;  %1688 = vmatpush3.msra.mxu0 %v2241_v57  ;;  %v2265_v16 = vld [vmem:[%s2557_s1 + $0x208] sm:$0xff] }
  0x39   : > { %1430 = vmatpush3.msra.mxu1 %v1907_v18  ;;  %329 = vmatprep.mubr.f32.mxu0 %v249_v63  ;;  %2632 = vst [vmem:[#allocation25_spill] sm:$0xff] %v2265_v16  ;;  %v2272_v63 = vld [vmem:[%s2557_s1 + $0x200] sm:$0xff] }
  0x3a   : > { %404 = vmatprep.mubr.f32.mxu1 %v251_v8  ;;  %1689 = vmatprep.subr.mxu0 %v2254_v10  ;;  %v247_v8 = vld [vmem:[%s2158_s7 + $0x20] sm:$0xff] }
  0x3b   : > { %1431 = vmatprep.subr.mxu1 %v1919_v20  ;;  %330 = vmatmul.mubr.f32.gmra.mxu0 %v248_v12  ;;  %v1296_v12 = vld [vmem:[%s2158_s7 + $0x58] sm:$0xff] }
  0x3c   : > { %405 = vmatmul.mubr.f32.gmra.mxu1 %v250_v6  ;;  %1690 = vmatpush3.msra.mxu0 %v2254_v10  ;;  %v252_v6 = vld [vmem:[%s2158_s7 + $0x48] sm:$0xff] }
  0x3d   : > { %1432 = vmatpush3.msra.mxu1 %v1931_v22  ;;  %1691 = vmatprep.subr.mxu0 %v2265_v16 }
  0x3e   : > { %1433 = vmatprep.subr.mxu1 %v1943_v24  ;;  %1692 = vmatpush3.msra.mxu0 %v2265_v16 }
  0x3f   : > { %1434 = vmatpush3.msra.mxu1 %v1955_v26  ;;  %1693 = vmatprep.subr.mxu0 %v2272_v63 }
  0x40   : > { %1435 = vmatprep.subr.mxu1 %v1967_v28  ;;  %1694 = vmatpush3.msra.mxu0 %v2272_v63 }
  0x41   : > { %1695 = vmatprep.mubr.msk.f32.mxu0 %vm253_vm0, %v247_v8  ;;  %1436 = vmatpush3.msra.mxu1 %v1979_v30  ;;  %v1295_v8 = vld [vmem:[%s2158_s7 + $0x50] sm:$0xff] }
  0x42   : > { %1696 = vmatmul.mubr.msk.f32.vlgmr.msra.gmra.mxu0 %vm253_vm0, %v252_v6  ;;  %1437 = vmatprep.subr.mxu1 %v1991_v32  ;;  %v2633_v6 = vld [vmem:[#allocation10_spill] sm:$0xff] }
  0x43   : > { %1459 = vmatprep.subr.mxu0 %v1808_v1  ;;  %1438 = vmatpush3.msra.mxu1 %v2009_v34 }
  0x44   : > { %1460 = vmatpush3.msra.mxu0 %v1820_v3  ;;  %1439 = vmatprep.subr.mxu1 %v2021_v36 }
  0x45   : > { %1461 = vmatprep.subr.mxu0 %v1830_v5  ;;  %1440 = vmatpush3.msra.mxu1 %v2033_v38 }
  0x46   : > { %1462 = vmatpush3.msra.mxu0 %v1842_v7  ;;  %1441 = vmatprep.subr.mxu1 %v2045_v40 }
  0x47   : > { %1463 = vmatprep.subr.mxu0 %v1854_v9  ;;  %1442 = vmatpush3.msra.mxu1 %v2063_v42 }
  0x48   : > { %1464 = vmatpush3.msra.mxu0 %v1864_v11  ;;  %1443 = vmatprep.subr.mxu1 %v2075_v44 }
  0x49   : > { %1465 = vmatprep.subr.mxu0 %v1876_v13  ;;  %1444 = vmatpush3.msra.mxu1 %v2087_v46 }
  0x4a   : > { %1466 = vmatpush3.msra.mxu0 %v1888_v15  ;;  %1445 = vmatprep.subr.mxu1 %v2099_v48 }
  0x4b   : > { %1467 = vmatprep.subr.mxu0 %v1900_v17  ;;  %1446 = vmatpush3.msra.mxu1 %v2112_v50 }
  0x4c   : > { %1468 = vmatpush3.msra.mxu0 %v1912_v19  ;;  %1447 = vmatprep.subr.mxu1 %v2124_v52 }
  0x4d   : > { %1469 = vmatprep.subr.mxu0 %v1924_v21  ;;  %1448 = vmatpush3.msra.mxu1 %v2136_v54 }
  0x4e   : > { %1470 = vmatpush3.msra.mxu0 %v1936_v23  ;;  %1449 = vmatprep.subr.mxu1 %v2148_v56 }
  0x4f   : > { %1471 = vmatprep.subr.mxu0 %v1948_v25  ;;  %1450 = vmatpush3.msra.mxu1 %v2165_v58  ;;  %v1299_v58 = vld [vmem:[%s2158_s7 + $0x70] sm:$0xff] }
  0x50   : > { %1472 = vmatpush3.msra.mxu0 %v1960_v27  ;;  %1451 = vmatprep.subr.mxu1 %v2177_v60  ;;  %v1297_v60 = vld [vmem:[%s2158_s7 + $0x60] sm:$0xff] }
  0x51   : > { %1473 = vmatprep.subr.mxu0 %v1972_v29  ;;  %1452 = vmatpush3.msra.mxu1 %v2189_v62  ;;  %v1298_v62 = vld [vmem:[%s2158_s7 + $0x68] sm:$0xff] }
  0x52   : > { %1474 = vmatpush3.msra.mxu0 %v1984_v31  ;;  %566 = vmatprep.mubr.f32.mxu1 %v1296_v12  ;;  %v2634_v12 = vld [vmem:[#allocation11_spill] sm:$0xff] }
  0x53   : > { %1475 = vmatprep.subr.mxu0 %v1996_v33  ;;  %1698 = vmatprep.subr.mxu1 %v2208_v49 }
  0x54   : > { %567 = vmatmul.mubr.f32.vlgmr.msra.gmra.mxu1 %v1295_v8  ;;  %1476 = vmatpush3.msra.mxu0 %v2014_v35  ;;  %v1301_v8 = vld [vmem:[%s2158_s7 + $0x80] sm:$0xff] }
  0x55   : > { %1699 = vmatpush3.msra.mxu1 %v2208_v49  ;;  %1477 = vmatprep.subr.mxu0 %v2026_v37  ;;  %v2636_v49 = vld [vmem:[#allocation13_spill] sm:$0xff] }
  0x56   : > { %1700 = vmatprep.subr.mxu1 %v2214_v59  ;;  %1478 = vmatpush3.msra.mxu0 %v2038_v39 }
  0x57   : > { %1701 = vmatpush3.msra.mxu1 %v2214_v59  ;;  %1479 = vmatprep.subr.mxu0 %v2050_v41  ;;  %v1300_v59 = vld [vmem:[%s2158_s7 + $0x78] sm:$0xff] }
  0x58   : > { %1702 = vmatprep.subr.mxu1 %v2223_v53  ;;  %1480 = vmatpush3.msra.mxu0 %v2068_v43 }
  0x59   : > { %1703 = vmatpush3.msra.mxu1 %v2223_v53  ;;  %1481 = vmatprep.subr.mxu0 %v2080_v45  ;;  %v2635_v53 = vld [vmem:[#allocation12_spill] sm:$0xff] }
  0x5a   : > { %1704 = vmatprep.subr.mxu1 %v2232_v51  ;;  %1482 = vmatpush3.msra.mxu0 %v2092_v47 }
  0x5b   : > { %1705 = vmatpush3.msra.mxu1 %v2232_v51  ;;  %1483 = vmatprep.subr.mxu0 %v2633_v6  ;;  %v2637_v51 = vld [vmem:[#allocation14_spill] sm:$0xff] }
  0x5c   : > { %1706 = vmatprep.subr.mxu1 %v2241_v57  ;;  %1484 = vmatpush3.msra.mxu0 %v2634_v12 }
  0x5d   : > { %1707 = vmatpush3.msra.mxu1 %v2241_v57  ;;  %1485 = vmatprep.subr.mxu0 %v2635_v53  ;;  %v2638_v57 = vld [vmem:[#allocation16_spill] sm:$0xff] }
  0x5e   : > { %1708 = vmatprep.subr.mxu1 %v2254_v10  ;;  %1486 = vmatpush3.msra.mxu0 %v2636_v49 }
  0x5f   : > { %1709 = vmatpush3.msra.mxu1 %v2254_v10  ;;  %571 = vmatprep.mubr.f32.mxu1 %v1301_v8  ;;  %v1304_v8 = vld [vmem:[%s2158_s7 + $0x98] sm:$0xff] }
  0x60   : > { %1487 = vmatprep.subr.mxu0 %v2637_v51  ;;  %1710 = vmatprep.subr.mxu1 %v2265_v16 }
  0x61   : > { %572 = vmatmul.mubr.f32.gmra.mxu1 %v1300_v59  ;;  %1488 = vmatpush3.msra.mxu0 %v2638_v57  ;;  %v1303_v59 = vld [vmem:[%s2158_s7 + $0x90] sm:$0xff] }
  0x62   : > { %1711 = vmatpush3.msra.mxu1 %v2265_v16  ;;  %1489 = vmatprep.subr.mxu0 %v2182_v61  ;;  %v1302_v16 = vld [vmem:[%s2158_s7 + $0x88] sm:$0xff] }
  0x63   : > { %1712 = vmatprep.subr.mxu1 %v2272_v63  ;;  %1490 = vmatpush3.msra.mxu0 %v2197_v55 }
  0x64   : > { %641 = vmatprep.mubr.f32.mxu0 %v1298_v62  ;;  %1713 = vmatpush3.msra.mxu1 %v2272_v63  ;;  %v2641_v62 = vld [vmem:[#allocation4_spill] sm:$0xff] }
  0x65   : > { %642 = vmatmul.mubr.f32.vlgmr.msra.gmra.mxu0 %v1297_v60  ;;  %1714 = vmatprep.mubr.msk.f32.mxu1 %vm253_vm0, %v1299_v58  ;;  %v2639_v60 = vld [vmem:[#allocation2_spill] sm:$0xff]  ;;  %v2640_v58 = vld [vmem:[#allocation3_spill] sm:$0xff] }
  0x66   : > { %1507 = vmatprep.subr.mxu0 %v1803_v0  ;;  %1545 = vmatprep.subr.mxu1 %v1808_v1 }
  0x67   : > { %1715 = vmatmul.mubr.msk.f32.vlgmr.msra.gmra.mxu1 %vm253_vm0, %v1304_v8  ;;  %1508 = vmatpush3.msra.mxu0 %v1813_v2  ;;  %v2642_v8 = vld [vmem:[#allocation5_spill] sm:$0xff] }
  0x68   : > { %1546 = vmatpush3.msra.mxu1 %v1820_v3  ;;  %1509 = vmatprep.subr.mxu0 %v1825_v4 }
  0x69   : > { %1547 = vmatprep.subr.mxu1 %v1830_v5  ;;  %646 = vmatprep.mubr.f32.mxu0 %v1303_v59  ;;  %v2643_v59 = vld [vmem:[#allocation6_spill] sm:$0xff] }
  0x6a   : > { %1510 = vmatpush3.msra.mxu0 %v2639_v60  ;;  %1548 = vmatpush3.msra.mxu1 %v1842_v7 }
  0x6b   : > { %647 = vmatmul.mubr.f32.gmra.mxu0 %v1302_v16  ;;  %1511 = vmatprep.subr.mxu0 %v2640_v58  ;;  %v1308_v16 = vld [vmem:[%s2158_s7 + $0xa8] sm:$0xff] }
  0x6c   : > { %1549 = vmatprep.subr.mxu1 %v1854_v9  ;;  %1512 = vmatpush3.msra.mxu0 %v2641_v62 }
  0x6d   : > { %1550 = vmatpush3.msra.mxu1 %v1864_v11  ;;  %1513 = vmatprep.subr.mxu0 %v2642_v8 }
  0x6e   : > { %1551 = vmatprep.subr.mxu1 %v1876_v13  ;;  %1514 = vmatpush3.msra.mxu0 %v1883_v14 }
  0x6f   : > { %1552 = vmatpush3.msra.mxu1 %v1888_v15  ;;  %1515 = vmatprep.subr.mxu0 %v2643_v59 }
  0x70   : > { %1553 = vmatprep.subr.mxu1 %v1900_v17  ;;  %1516 = vmatpush3.msra.mxu0 %v1907_v18 }
  0x71   : > { %1554 = vmatpush3.msra.mxu1 %v1912_v19  ;;  %1517 = vmatprep.subr.mxu0 %v1919_v20 }
  0x72   : > { %1555 = vmatprep.subr.mxu1 %v1924_v21  ;;  %1518 = vmatpush3.msra.mxu0 %v1931_v22 }
  0x73   : > { %1556 = vmatpush3.msra.mxu1 %v1936_v23  ;;  %1519 = vmatprep.subr.mxu0 %v1943_v24 }
  0x74   : > { %1557 = vmatprep.subr.mxu1 %v1948_v25  ;;  %1520 = vmatpush3.msra.mxu0 %v1955_v26 }
  0x75   : > { %1558 = vmatpush3.msra.mxu1 %v1960_v27  ;;  %1521 = vmatprep.subr.mxu0 %v1967_v28 }
  0x76   : > { %1559 = vmatprep.subr.mxu1 %v1972_v29  ;;  %1522 = vmatpush3.msra.mxu0 %v1979_v30 }
  0x77   : > { %1560 = vmatpush3.msra.mxu1 %v1984_v31  ;;  %1523 = vmatprep.subr.mxu0 %v1991_v32 }
  0x78   : > { %1561 = vmatprep.subr.mxu1 %v1996_v33  ;;  %1524 = vmatpush3.msra.mxu0 %v2009_v34 }
  0x79   : > { %1562 = vmatpush3.msra.mxu1 %v2014_v35  ;;  %1525 = vmatprep.subr.mxu0 %v2021_v36 }
  0x7a   : > { %1563 = vmatprep.subr.mxu1 %v2026_v37  ;;  %1526 = vmatpush3.msra.mxu0 %v2033_v38 }
  0x7b   : > { %1564 = vmatpush3.msra.mxu1 %v2038_v39  ;;  %1527 = vmatprep.subr.mxu0 %v2045_v40 }
  0x7c   : > { %1565 = vmatprep.subr.mxu1 %v2050_v41  ;;  %1528 = vmatpush3.msra.mxu0 %v2063_v42 }
  0x7d   : > { %1566 = vmatpush3.msra.mxu1 %v2068_v43  ;;  %1529 = vmatprep.subr.mxu0 %v2075_v44  ;;  %v2646_v43 = vld [vmem:[#allocation19_spill] sm:$0xff] }
  0x7e   : > { %1567 = vmatprep.subr.mxu1 %v2080_v45  ;;  %1530 = vmatpush3.msra.mxu0 %v2087_v46  ;;  %v2645_v45 = vld [vmem:[#allocation17_spill] sm:$0xff] }
  0x7f   : > { %1568 = vmatpush3.msra.mxu1 %v2092_v47  ;;  %1531 = vmatprep.subr.mxu0 %v2099_v48  ;;  %v2644_v47 = vld [vmem:[#allocation15_spill] sm:$0xff] }
  0x80   : > { %1569 = vmatprep.subr.mxu1 %v2633_v6  ;;  %1532 = vmatpush3.msra.mxu0 %v2112_v50  ;;  %v1310_v6 = vld [vmem:[%s2158_s7 + $0xb8] sm:$0xff] }
  0x81   : > { %1570 = vmatpush3.msra.mxu1 %v2634_v12  ;;  %1533 = vmatprep.subr.mxu0 %v2124_v52  ;;  %v1309_v12 = vld [vmem:[%s2158_s7 + $0xb0] sm:$0xff] }
  0x82   : > { %1571 = vmatprep.subr.mxu1 %v2635_v53  ;;  %1534 = vmatpush3.msra.mxu0 %v2136_v54  ;;  %v1307_v53 = vld [vmem:[%s2158_s7 + $0xa0] sm:$0xff] }
  0x83   : > { %1572 = vmatpush3.msra.mxu1 %v2636_v49  ;;  %1535 = vmatprep.subr.mxu0 %v2148_v56 }
  0x84   : > { %1573 = vmatprep.subr.mxu1 %v2637_v51  ;;  %1536 = vmatpush3.msra.mxu0 %v2644_v47  ;;  %v2647_v51 = vld [vmem:[#allocation20_spill] sm:$0xff] }
  0x85   : > { %1574 = vmatpush3.msra.mxu1 %v2638_v57  ;;  %1537 = vmatprep.subr.mxu0 %v2645_v45 }
  0x86   : > { %1575 = vmatprep.subr.mxu1 %v2182_v61  ;;  %1538 = vmatpush3.msra.mxu0 %v2646_v43  ;;  %v2648_v61 = vld [vmem:[#allocation21_spill] sm:$0xff] }
  0x87   : > { %810 = vmatprep.mubr.f32.mxu0 %v1308_v16  ;;  %1576 = vmatpush3.msra.mxu1 %v2197_v55  ;;  %v1313_v16 = vld [vmem:[%s2158_s7 + $0xd0] sm:$0xff] }
  0x88   : > { %885 = vmatprep.mubr.f32.mxu1 %v1310_v6  ;;  %811 = vmatmul.mubr.f32.vlgmr.msra.gmra.mxu0 %v1307_v53  ;;  %v1315_v53 = vld [vmem:[%s2158_s7 + $0xe0] sm:$0xff] }
  0x89   : > { %886 = vmatmul.mubr.f32.vlgmr.msra.gmra.mxu1 %v1309_v12  ;;  %1717 = vmatprep.subr.mxu0 %v2647_v51  ;;  %v2649_v6 = vld [vmem:[#allocation22_spill] sm:$0xff]  ;;  %v2650_v12 = vld [vmem:[#allocation23_spill] sm:$0xff] }
  0x8a   : > { %1593 = vmatprep.subr.mxu1 %v1803_v0  ;;  %1718 = vmatpush3.msra.mxu0 %v2647_v51  ;;  %v1312_v0 = vld [vmem:[%s2158_s7 + $0xc8] sm:$0xff] }
  0x8b   : > { %1594 = vmatpush3.msra.mxu1 %v1813_v2  ;;  %1719 = vmatprep.subr.mxu0 %v2648_v61  ;;  %v1314_v2 = vld [vmem:[%s2158_s7 + $0xd8] sm:$0xff] }
  0x8c   : > { %1595 = vmatprep.subr.mxu1 %v1825_v4  ;;  %1720 = vmatpush3.msra.mxu0 %v2648_v61  ;;  %v2651_v4 = vld [vmem:[#allocation24_spill] sm:$0xff] }
  0x8d   : > { %1596 = vmatpush3.msra.mxu1 %v2639_v60  ;;  %1721 = vmatprep.subr.mxu0 %v2649_v6  ;;  %v2652_v60 = vld [vmem:[#allocation25_spill] sm:$0xff] }
  0x8e   : > { %1597 = vmatprep.subr.mxu1 %v2640_v58  ;;  %1722 = vmatpush3.msra.mxu0 %v2649_v6  ;;  %v1311_v58 = vld [vmem:[%s2158_s7 + $0xc0] sm:$0xff] }
  0x8f   : > { %815 = vmatprep.mubr.f32.mxu0 %v1313_v16  ;;  %1723 = vmatprep.subr.mxu0 %v2650_v12 }
  0x90   : > { %890 = vmatprep.mubr.f32.mxu1 %v1315_v53  ;;  %1724 = vmatpush3.msra.mxu0 %v2650_v12 }
  0x91   : > { %1598 = vmatpush3.msra.mxu1 %v2641_v62  ;;  %1725 = vmatprep.subr.mxu0 %v2651_v4  ;;  %v1316_v62 = vld [vmem:[%s2158_s7 + $0xe8] sm:$0xff] }
  0x92   : > { %816 = vmatmul.mubr.f32.gmra.mxu0 %v1312_v0  ;;  %891 = vmatmul.mubr.f32.gmra.mxu1 %v1314_v2 }
  0x93   : > { %1726 = vmatpush3.msra.mxu0 %v2651_v4  ;;  %1599 = vmatprep.subr.mxu1 %v2642_v8 }
  0x94   : > { %1727 = vmatprep.subr.mxu0 %v2254_v10  ;;  %1600 = vmatpush3.msra.mxu1 %v1883_v14  ;;  %v2658_v14 = vld [vmem:[#allocation12_spill] sm:$0xff] }
  0x95   : > { %1728 = vmatpush3.msra.mxu0 %v2254_v10  ;;  %1601 = vmatprep.subr.mxu1 %v2643_v59 }
  0x96   : > { %1729 = vmatprep.subr.mxu0 %v2652_v60  ;;  %1602 = vmatpush3.msra.mxu1 %v1907_v18  ;;  %v1322_v18 = vld [vmem:[%s2158_s7 + $0x108] sm:$0xff] }
  0x97   : > { %1730 = vmatpush3.msra.mxu0 %v2652_v60  ;;  %1603 = vmatprep.subr.mxu1 %v1919_v20  ;;  %v1324_v20 = vld [vmem:[%s2158_s7 + $0x118] sm:$0xff] }
  0x98   : > { %1731 = vmatprep.subr.mxu0 %v2272_v63  ;;  %1733 = vmatprep.mubr.msk.f32.mxu0 %vm253_vm0, %v1311_v58 }
  0x99   : > { %1732 = vmatpush3.msra.mxu0 %v2272_v63  ;;  %1604 = vmatpush3.msra.mxu1 %v1931_v22  ;;  %v1327_v22 = vld [vmem:[%s2158_s7 + $0x130] sm:$0xff] }
  0x9a   : > { %1734 = vmatmul.mubr.msk.f32.vlgmr.msra.gmra.mxu0 %vm253_vm0, %v1316_v62  ;;  %1605 = vmatprep.subr.mxu1 %v1943_v24  ;;  %v1326_v24 = vld [vmem:[%s2158_s7 + $0x128] sm:$0xff] }
  0x9b   : > { %1631 = vmatprep.subr.mxu0 %v1808_v1  ;;  %1606 = vmatpush3.msra.mxu1 %v1955_v26  ;;  %v1320_v1 = vld [vmem:[%s2158_s7 + $0xf8] sm:$0xff] }
  0x9c   : > { %1632 = vmatpush3.msra.mxu0 %v1820_v3  ;;  %1607 = vmatprep.subr.mxu1 %v1967_v28  ;;  %v1319_v3 = vld [vmem:[%s2158_s7 + $0xf0] sm:$0xff] }
  0x9d   : > { %1633 = vmatprep.subr.mxu0 %v1830_v5  ;;  %1608 = vmatpush3.msra.mxu1 %v1979_v30  ;;  %v2653_v5 = vld [vmem:[#allocation7_spill] sm:$0xff] }
  0x9e   : > { %1634 = vmatpush3.msra.mxu0 %v1842_v7  ;;  %1609 = vmatprep.subr.mxu1 %v1991_v32  ;;  %v2654_v7 = vld [vmem:[#allocation8_spill] sm:$0xff] }
  0x9f   : > { %1635 = vmatprep.subr.mxu0 %v1854_v9  ;;  %1610 = vmatpush3.msra.mxu1 %v2009_v34  ;;  %v2655_v9 = vld [vmem:[#allocation9_spill] sm:$0xff] }
  0xa0   : > { %1636 = vmatpush3.msra.mxu0 %v1864_v11  ;;  %1611 = vmatprep.subr.mxu1 %v2021_v36  ;;  %v2656_v11 = vld [vmem:[#allocation10_spill] sm:$0xff] }
  0xa1   : > { %1637 = vmatprep.subr.mxu0 %v1876_v13  ;;  %1612 = vmatpush3.msra.mxu1 %v2033_v38  ;;  %v2657_v13 = vld [vmem:[#allocation11_spill] sm:$0xff] }
  0xa2   : > { %1638 = vmatpush3.msra.mxu0 %v1888_v15  ;;  %1613 = vmatprep.subr.mxu1 %v2045_v40  ;;  %v2659_v15 = vld [vmem:[#allocation14_spill] sm:$0xff] }
  0xa3   : > { %1639 = vmatprep.subr.mxu0 %v1900_v17  ;;  %1614 = vmatpush3.msra.mxu1 %v2063_v42  ;;  %v1325_v17 = vld [vmem:[%s2158_s7 + $0x120] sm:$0xff] }
  0xa4   : > { %1640 = vmatpush3.msra.mxu0 %v1912_v19  ;;  %1615 = vmatprep.subr.mxu1 %v2075_v44  ;;  %v2660_v19 = vld [vmem:[#allocation18_spill] sm:$0xff] }
  0xa5   : > { %1641 = vmatprep.subr.mxu0 %v1924_v21  ;;  %1616 = vmatpush3.msra.mxu1 %v2087_v46  ;;  %v1321_v21 = vld [vmem:[%s2158_s7 + $0x100] sm:$0xff] }
  0xa6   : > { %1642 = vmatpush3.msra.mxu0 %v1936_v23  ;;  %1617 = vmatprep.subr.mxu1 %v2099_v48  ;;  %v1323_v23 = vld [vmem:[%s2158_s7 + $0x110] sm:$0xff] }
  0xa7   : > { %1643 = vmatprep.subr.mxu0 %v1948_v25  ;;  %1618 = vmatpush3.msra.mxu1 %v2112_v50  ;;  %v1328_v25 = vld [vmem:[%s2158_s7 + $0x138] sm:$0xff] }
  0xa8   : > { %1644 = vmatpush3.msra.mxu0 %v1960_v27  ;;  %1619 = vmatprep.subr.mxu1 %v2124_v52 }
  0xa9   : > { %1645 = vmatprep.subr.mxu0 %v1972_v29  ;;  %1620 = vmatpush3.msra.mxu1 %v2136_v54 }
  0xaa   : > { %1646 = vmatpush3.msra.mxu0 %v1984_v31  ;;  %1621 = vmatprep.subr.mxu1 %v2148_v56 }
  0xab   : > { %1647 = vmatprep.subr.mxu0 %v1996_v33  ;;  %1622 = vmatpush3.msra.mxu1 %v2644_v47 }
  0xac   : > { %1648 = vmatpush3.msra.mxu0 %v2014_v35  ;;  %1623 = vmatprep.subr.mxu1 %v2645_v45 }
  0xad   : > { %1649 = vmatprep.subr.mxu0 %v2026_v37  ;;  %1624 = vmatpush3.msra.mxu1 %v2646_v43 }
  0xae   : > { %1650 = vmatpush3.msra.mxu0 %v2038_v39  ;;  %1054 = vmatprep.mubr.f32.mxu1 %v1320_v1 }
  0xaf   : > { %1651 = vmatprep.subr.mxu0 %v2050_v41  ;;  %1736 = vmatprep.subr.mxu1 %v2647_v51 }
  0xb0   : > { %1055 = vmatmul.mubr.f32.vlgmr.msra.gmra.mxu1 %v1319_v3  ;;  %1652 = vmatpush3.msra.mxu0 %v2653_v5 }
  0xb1   : > { %1737 = vmatpush3.msra.mxu1 %v2647_v51  ;;  %1653 = vmatprep.subr.mxu0 %v2654_v7 }
  0xb2   : > { %1738 = vmatprep.subr.mxu1 %v2648_v61  ;;  %1654 = vmatpush3.msra.mxu0 %v2655_v9 }
  0xb3   : > { %1739 = vmatpush3.msra.mxu1 %v2648_v61  ;;  %1655 = vmatprep.subr.mxu0 %v2656_v11 }
  0xb4   : > { %1740 = vmatprep.subr.mxu1 %v2649_v6  ;;  %1656 = vmatpush3.msra.mxu0 %v2657_v13 }
  0xb5   : > { %1741 = vmatpush3.msra.mxu1 %v2649_v6  ;;  %1657 = vmatprep.subr.mxu0 %v2658_v14 }
  0xb6   : > { %1742 = vmatprep.subr.mxu1 %v2650_v12  ;;  %1658 = vmatpush3.msra.mxu0 %v2636_v49 }
  0xb7   : > { %1743 = vmatpush3.msra.mxu1 %v2650_v12  ;;  %1659 = vmatprep.subr.mxu0 %v2659_v15 }
  0xb8   : > { %1744 = vmatprep.subr.mxu1 %v2651_v4  ;;  %1660 = vmatpush3.msra.mxu0 %v2638_v57 }
  0xb9   : > { %1745 = vmatpush3.msra.mxu1 %v2651_v4  ;;  %1661 = vmatprep.subr.mxu0 %v2660_v19 }
  0xba   : > { %1746 = vmatprep.subr.mxu1 %v2254_v10  ;;  %1059 = vmatprep.mubr.f32.mxu1 %v1325_v17 }
  0xbb   : > { %1662 = vmatpush3.msra.mxu0 %v2197_v55  ;;  %1129 = vmatprep.mubr.f32.mxu0 %v1322_v18 }
  0xbc   : > { %1747 = vmatpush3.msra.mxu1 %v2254_v10  ;;  %1130 = vmatmul.mubr.f32.vlgmr.msra.gmra.mxu0 %v1321_v21 }
  0xbd   : > { %1060 = vmatmul.mubr.f32.gmra.mxu1 %v1324_v20  ;;  %1748 = vmatprep.subr.mxu1 %v2652_v60 }
  0xbe   : > { %1134 = vmatprep.mubr.f32.mxu0 %v1327_v22  ;;  %1749 = vmatpush3.msra.mxu1 %v2652_v60 }
  0xbf   : > { %1752 = vmatprep.mubr.msk.f32.mxu1 %vm253_vm0, %v1323_v23  ;;  %1750 = vmatprep.subr.mxu1 %v2272_v63 }
  0xc0   : > { %1751 = vmatpush3.msra.mxu1 %v2272_v63  ;;  %1135 = vmatmul.mubr.f32.gmra.mxu0 %v1326_v24 }
  0xc1   : > { %1753 = vmatmul.mubr.msk.f32.vlgmr.msra.gmra.mxu1 %vm253_vm0, %v1328_v25 }
  0xee   : > { %v1367_v10 = vpop.f32.mrf.mxu0 }
  0xef   : > { %v1405_v26 = vpop.f32.mrf.mxu1 }
  0xf0   : > { %v1368_v27 = vpop.f32.mrf.mxu0 }
  0xf1   : > { %v1406_v28 = vpop.f32.mrf.mxu1  ;;  %v1369_v57 = vadd.f32 %v1368_v27, %v1367_v10 }
  0xf2   : > { %v1407_v59 = vadd.f32 %v1406_v28, %v1405_v26 }
  0xf4   : > { %v402_v5 = vadd.f32 %v1407_v59, %v1369_v57 }
  0xfb   : > { %v1370_v29 = vpop.f32.mrf.mxu0 }
  0xfc   : > { %v1408_v30 = vpop.f32.mrf.mxu1 }
  0xfd   : > { %v1371_v31 = vpop.f32.mrf.mxu0 }
  0xfe   : > { %v1409_v32 = vpop.f32.mrf.mxu1  ;;  %v1372_v2 = vadd.f32 %v1371_v31, %v1370_v29 }
  0xff   : > { %v1410_v4 = vadd.f32 %v1409_v32, %v1408_v30 }
 0x101   : > { %v407_v14 = vadd.f32 %v1410_v4, %v1372_v2 }
 0x102   : > { %v1697_v33 = vpop.f32.mrf.mxu0 }
 0x103   : > { %v482_v26 = vadd.f32 %v1697_v33, %v407_v14 }
 0x104   : > { %v476_v35 = vpop.f32.mrf.mxu0 }
 0x105   : > { %v477_v19 = vadd.f32 %v476_v35, %v402_v5  ;;  %v1331_v35 = vld [vmem:[%s2558_s2] ss:$0 sm:$0xff] }
 0x114   : > { %v1453_v34 = vpop.f32.mrf.mxu1 }
 0x116   : > { %v1454_v36 = vpop.f32.mrf.mxu1 }
 0x117   : > { %v1455_v51 = vadd.f32 %v1454_v36, %v1453_v34 }
 0x121   : > { %v1456_v37 = vpop.f32.mrf.mxu1 }
 0x123   : > { %v1457_v39 = vpop.f32.mrf.mxu1 }
 0x124   : > { %v1458_v63 = vadd.f32 %v1457_v39, %v1456_v37 }
 0x125   : > { %v1491_v38 = vpop.f32.mrf.mxu0 }
 0x127   : > { %v1492_v40 = vpop.f32.mrf.mxu0  ;;  %v1716_v42 = vpop.f32.mrf.mxu1 }
 0x128   : > { %v1493_v55 = vadd.f32 %v1492_v40, %v1491_v38 }
 0x129   : > { %v718_v44 = vpop.f32.mrf.mxu1 }
 0x12a   : > { %v644_v16 = vadd.f32 %v1493_v55, %v1455_v51 }
 0x12b   : > { %v1494_v41 = vpop.f32.mrf.mxu0 }
 0x12c   : > { %v719_v7 = vadd.f32 %v718_v44, %v644_v16 }
 0x12d   : > { %v1495_v43 = vpop.f32.mrf.mxu0 }
 0x12e   : > { %v1496_v8 = vadd.f32 %v1495_v43, %v1494_v41  ;;  %v727_v25 = vmax.f32 %v477_v19, %v719_v7 }
 0x130   : > { %v649_v3 = vadd.f32 %v1496_v8, %v1458_v63 }
 0x132   : > { %v724_v22 = vadd.f32 %v1716_v42, %v649_v3 }
 0x134   : > { %v728_v34 = vmax.f32 %v482_v26, %v724_v22 }
 0x148   : > { %v1539_v45 = vpop.f32.mrf.mxu0 }
 0x149   : > { %v1577_v46 = vpop.f32.mrf.mxu1 }
 0x14a   : > { %v1540_v47 = vpop.f32.mrf.mxu0 }
 0x14b   : > { %v1578_v48 = vpop.f32.mrf.mxu1  ;;  %v1541_v53 = vadd.f32 %v1540_v47, %v1539_v45 }
 0x14c   : > { %v1579_v6 = vadd.f32 %v1578_v48, %v1577_v46 }
 0x14e   : > { %v888_v9 = vadd.f32 %v1579_v6, %v1541_v53 }
 0x152   : > { %v1542_v49 = vpop.f32.mrf.mxu0  ;;  %v1580_v50 = vpop.f32.mrf.mxu1 }
 0x154   : > { %v1543_v52 = vpop.f32.mrf.mxu0  ;;  %v1581_v54 = vpop.f32.mrf.mxu1 }
 0x155   : > { %v1544_v60 = vadd.f32 %v1543_v52, %v1542_v49  ;;  %v1582_v58 = vadd.f32 %v1581_v54, %v1580_v50 }
 0x157   : > { %v893_v15 = vadd.f32 %v1582_v58, %v1544_v60 }
 0x15a   : > { %v1735_v56 = vpop.f32.mrf.mxu0 }
 0x15b   : > { %v968_v27 = vadd.f32 %v1735_v56, %v893_v15 }
 0x15c   : > { %v962_v0 = vpop.f32.mrf.mxu0 }
 0x15d   : > { %v963_v20 = vadd.f32 %v962_v0, %v888_v9  ;;  %v972_v38 = vmax.f32 %v728_v34, %v968_v27 }
 0x15f   : > { %v971_v31 = vmax.f32 %v727_v25, %v963_v20 }
 0x170   : > { %v1625_v61 = vpop.f32.mrf.mxu1 }
 0x172   : > { %v1626_v12 = vpop.f32.mrf.mxu1 }
 0x173   : > { %v1627_v17 = vadd.f32 %v1626_v12, %v1625_v61 }
 0x17c   : > { %v1663_v1 = vpop.f32.mrf.mxu0 }
 0x17d   : > { %v1628_v62 = vpop.f32.mrf.mxu1 }
 0x17e   : > { %v1664_v13 = vpop.f32.mrf.mxu0 }
 0x17f   : > { %v1629_v11 = vpop.f32.mrf.mxu1  ;;  %v1665_v18 = vadd.f32 %v1664_v13, %v1663_v1 }
 0x180   : > { %v1666_v21 = vpop.f32.mrf.mxu0  ;;  %v1630_v28 = vadd.f32 %v1629_v11, %v1628_v62 }
 0x181   : > { %v1754_v23 = vpop.f32.mrf.mxu1  ;;  %v1132_v24 = vadd.f32 %v1665_v18, %v1627_v17 }
 0x182   : > { %v1667_v10 = vpop.f32.mrf.mxu0 }
 0x183   : > { %v1668_v29 = vadd.f32 %v1667_v10, %v1666_v21  ;;  %v1206_v30 = vpop.f32.mrf.mxu1 }
 0x184   : > { %v1207_v32 = vadd.f32 %v1206_v30, %v1132_v24 }
 0x185   : > { %v1137_v36 = vadd.f32 %v1668_v29, %v1630_v28 }
 0x186   : > { %v1215_v37 = vmax.f32 %v971_v31, %v1207_v32 }
 0x187   : > { %v1212_v39 = vadd.f32 %v1754_v23, %v1137_v36 }
 0x188   : > { %v1224_v40 = vadd.f32 %v1331_v35, %v1215_v37 }
 0x189   : > { %v1216_v41 = vmax.f32 %v972_v38, %v1212_v39 }
 0x18a   : > { %v1226_v33 = vmax.f32 %v1224_v40, 0.0 }
 0x18b   : > { %v1225_v42 = vadd.f32 %v1331_v35, %v1216_v41 }
 0x18c   : > { %1228 = vst [vmem:[%s170_s18] sm:$0xff] %v1226_v33 }
 0x18d   : > { %v1227_v43 = vmax.f32 %v1225_v42, 0.0 }
 0x18f   : > { %1229 = vst [vmem:[%s170_s18 + $0x8] sm:$0xff] %v1227_v43 }
 0x190 PF: > { %s13_s12 = sadd.s32 1, %s1770_s12  }
 0x191   : > { %p10_p4 = scmp.ge.s32.totalorder %s13_s12, 4  }
 0x193   :  { %12 = sbr.rel (!%p10_p4) target bundleno = 1 (0x1), region = 65 }

// kernel: simple_cnn_forward.9
= control target key start
LH: loop header
LB: loop body
LE: loop exit
PB: predicated region body
PF: predicated region fallthrough
CT: control target
= control target key end

     0   :  { %v407_v4 = vmov 0.0   ;;  %vm29_vm0 = vcmask 1043456   ;;  %s622_s0 = inlined_call_operand.vmem [shape: f32[2,4,256], index: 0, kind: input, shape index: {}]   ;;  %s623_s1 = inlined_call_operand.vmem [shape: f32[256,128], index: 1, kind: input, shape index: {}]   ;;  %s624_s2 = inlined_call_operand.vmem [shape: f32[1,128], index: 2, kind: input, shape index: {}]   ;;  %s625_s3 = inlined_call_operand.vmem [shape: f32[128,10], index: 3, kind: input, shape index: {}]   ;;  %s626_s4 = inlined_call_operand.vmem [shape: f32[1,10], index: 4, kind: input, shape index: {}]   ;;  %s627_s5 = inlined_call_operand.hbm [shape: f32[2,10], index: 5, kind: output, shape index: {}]  }
   0x1   :  { %v94_v0 = vld [vmem:[%s623_s1 + $0xf8] sm:$0xff]  ;;  %v93_v2 = vld [vmem:[%s623_s1 + $0xf0] sm:$0xff]  ;;  %345 = vmatprep.subr.mxu1 %v407_v4  ;;  %v92_v5 = vld [vmem:[%s623_s1 + $0xe8] sm:$0xff] }
   0x2   :  { %v78_v1 = vld [vmem:[%s623_s1 + $0x78] sm:$0xff]  ;;  %293 = vmatprep.subr.mxu0 %v94_v0  ;;  %v77_v3 = vld [vmem:[%s623_s1 + $0x70] sm:$0xff]  ;;  %v76_v6 = vld [vmem:[%s623_s1 + $0x68] sm:$0xff] }
   0x3   :  { %294 = vmatpush3.msra.mxu0 %v78_v1  ;;  %v91_v7 = vld [vmem:[%s623_s1 + $0xe0] sm:$0xff]  ;;  %v90_v9 = vld [vmem:[%s623_s1 + $0xd8] sm:$0xff]  ;;  %v89_v11 = vld [vmem:[%s623_s1 + $0xd0] sm:$0xff] }
   0x4   :  { %295 = vmatprep.subr.mxu0 %v93_v2  ;;  %v75_v8 = vld [vmem:[%s623_s1 + $0x60] sm:$0xff]  ;;  %v74_v10 = vld [vmem:[%s623_s1 + $0x58] sm:$0xff]  ;;  %v73_v12 = vld [vmem:[%s623_s1 + $0x50] sm:$0xff] }
   0x5   :  { %296 = vmatpush3.msra.mxu0 %v77_v3  ;;  %v88_v13 = vld [vmem:[%s623_s1 + $0xc8] sm:$0xff]  ;;  %v21_v15 = vld [vmem:[%s622_s0] sm:$0xff]  ;;  %v197_v19 = vld [vmem:[%s625_s3 + $0x78] sm:$0xff] }
   0x6   :  { %297 = vmatprep.subr.mxu0 %v92_v5  ;;  %v72_v14 = vld [vmem:[%s623_s1 + $0x48] sm:$0xff]  ;;  %v25_v17 = vcombine.high %v21_v15, %v21_v15  ;;  %v30_v18 = vsel %vm29_vm0, %v21_v15, 0.0  ;;  %v196_v20 = vld [vmem:[%s625_s3 + $0x70] sm:$0xff]  ;;  %v87_v21 = vld [vmem:[%s623_s1 + $0xc0] sm:$0xff]  ;;  %346 = vmatpush3.msra.mxu1 %v197_v19 }
   0x7   :  { %298 = vmatpush3.msra.mxu0 %v76_v6  ;;  %v22_v16 = vld [vmem:[%s622_s0 + $0x8] sm:$0xff]  ;;  %v31_v23 = vrot.slane %v30_v18, 4  ;;  %v71_v25 = vld [vmem:[%s623_s1 + $0x40] sm:$0xff]  ;;  %347 = vmatprep.subr.mxu1 %v407_v4  ;;  %v86_v29 = vld [vmem:[%s623_s1 + $0xb8] sm:$0xff] }
   0x8   :  { %299 = vmatprep.subr.mxu0 %v91_v7  ;;  %v26_v22 = vcombine.high %v22_v16, %v22_v16  ;;  %v44_v24 = vsel %vm29_vm0, %v22_v16, 0.0  ;;  %v37_v26 = vsel %vm29_vm0, %v25_v17, 0.0  ;;  %v195_v28 = vld [vmem:[%s625_s3 + $0x68] sm:$0xff]  ;;  %348 = vmatpush3.msra.mxu1 %v196_v20  ;;  %v70_v33 = vld [vmem:[%s623_s1 + $0x38] sm:$0xff]  ;;  %v194_v36 = vld [vmem:[%s625_s3 + $0x60] sm:$0xff] }
   0x9   :  { %300 = vmatpush3.msra.mxu0 %v75_v8  ;;  %v45_v27 = vrot.slane %v44_v24, 4  ;;  %v38_v30 = vrot.slane %v37_v26, 4  ;;  %v32_v32 = vadd.f32 %v31_v23, %v30_v18  ;;  %349 = vmatprep.subr.mxu1 %v407_v4 }
   0xa   :  { %301 = vmatprep.subr.mxu0 %v90_v9  ;;  %v51_v31 = vsel %vm29_vm0, %v26_v22, 0.0 }
   0xb   :  { %302 = vmatpush3.msra.mxu0 %v74_v10  ;;  %v52_v34 = vrot.slane %v51_v31, 4  ;;  %v46_v35 = vadd.f32 %v45_v27, %v44_v24 }
   0xc   :  { %303 = vmatprep.subr.mxu0 %v89_v11 }
   0xd   :  { %304 = vmatpush3.msra.mxu0 %v73_v12 }
   0xe   :  { %305 = vmatprep.subr.mxu0 %v88_v13 }
   0xf   :  { %306 = vmatpush3.msra.mxu0 %v72_v14 }
  0x10   :  { %307 = vmatprep.subr.mxu0 %v87_v21 }
  0x11   :  { %10 = vsyncpa [#allocation3], 0  ;;  %308 = vmatpush3.msra.mxu0 %v71_v25  ;;  %v85_v37 = vld [vmem:[%s623_s1 + $0xb0] sm:$0xff]  ;;  %v39_v38 = vadd.f32 %v38_v30, %v37_v26  ;;  %v33_v39 = vrot.slane %v32_v32, 2  ;;  %350 = vmatpush3.msra.mxu1 %v195_v28  ;;  %v53_v41 = vadd.f32 %v52_v34, %v51_v31  ;;  %v47_v42 = vrot.slane %v46_v35, 2  ;;  %v193_v43 = vld [vmem:[%s625_s3 + $0x58] sm:$0xff] }
  0x12   :  { %309 = vmatprep.subr.mxu0 %v86_v29  ;;  %v69_v40 = vld [vmem:[%s623_s1 + $0x30] sm:$0xff]  ;;  %351 = vmatprep.subr.mxu1 %v407_v4  ;;  %v84_v44 = vld [vmem:[%s623_s1 + $0xa8] sm:$0xff]  ;;  %v83_v51 = vld [vmem:[%s623_s1 + $0xa0] sm:$0xff]  ;;  %vm106_vm1 = vcmask 1041409   ;;  %vm408_vm2 = vmmov 0   ;;  %s409_s18 = smov [#allocation2]  }
  0x13   :  { %310 = vmatpush3.msra.mxu0 %v70_v33  ;;  %v40_v45 = vrot.slane %v39_v38, 2  ;;  %v34_v46 = vadd.f32 %v33_v39, %v32_v32  ;;  %352 = vmatpush3.msra.mxu1 %v194_v36  ;;  %v68_v47 = vld [vmem:[%s623_s1 + $0x28] sm:$0xff]  ;;  %v54_v48 = vrot.slane %v53_v41, 2  ;;  %v48_v49 = vadd.f32 %v47_v42, %v46_v35  ;;  %v192_v50 = vld [vmem:[%s625_s3 + $0x50] sm:$0xff]  ;;  %v67_v54 = vld [vmem:[%s623_s1 + $0x20] sm:$0xff] }
  0x14   :  { %311 = vmatprep.subr.mxu0 %v85_v37  ;;  %353 = vmatprep.subr.mxu1 %v407_v4  ;;  %v191_v57 = vld [vmem:[%s625_s3 + $0x48] sm:$0xff]  ;;  %v82_v58 = vld [vmem:[%s623_s1 + $0x98] sm:$0xff]  ;;  %v190_v0 = vld [vmem:[%s625_s3 + $0x40] sm:$0xff]  ;;  %vm275_vm3 = vcmask 74752  }
  0x15   :  { %312 = vmatpush3.msra.mxu0 %v69_v40  ;;  %v41_v52 = vadd.f32 %v40_v45, %v39_v38  ;;  %v35_v53 = vrot.slane %v34_v46, 1  ;;  %354 = vmatpush3.msra.mxu1 %v193_v43  ;;  %v55_v55 = vadd.f32 %v54_v48, %v53_v41  ;;  %v49_v56 = vrot.slane %v48_v49, 1  ;;  %v66_v61 = vld [vmem:[%s623_s1 + $0x18] sm:$0xff]  ;;  %v81_v1 = vld [vmem:[%s623_s1 + $0x90] sm:$0xff]  ;;  %v80_v7 = vld [vmem:[%s623_s1 + $0x88] sm:$0xff] }
  0x16   :  { %313 = vmatprep.subr.mxu0 %v84_v44  ;;  %355 = vmatprep.subr.mxu1 %v407_v4  ;;  %v65_v3 = vld [vmem:[%s623_s1 + $0x10] sm:$0xff]  ;;  %v189_v6 = vld [vmem:[%s625_s3 + $0x38] sm:$0xff]  ;;  %v64_v11 = vld [vmem:[%s623_s1 + $0x8] sm:$0xff] }
  0x17   :  { %314 = vmatpush3.msra.mxu0 %v68_v47  ;;  %v42_v59 = vrot.slane %v41_v52, 1  ;;  %v36_v60 = vadd.f32 %v35_v53, %v34_v46  ;;  %356 = vmatpush3.msra.mxu1 %v192_v50  ;;  %v56_v62 = vrot.slane %v55_v55, 1  ;;  %v50_v63 = vadd.f32 %v49_v56, %v48_v49  ;;  %v79_v13 = vld [vmem:[%s623_s1 + $0x80] sm:$0xff]  ;;  %v188_v14 = vld [vmem:[%s625_s3 + $0x30] sm:$0xff]  ;;  %v187_v18 = vld [vmem:[%s625_s3 + $0x28] sm:$0xff] }
  0x18   :  { %315 = vmatprep.subr.mxu0 %v83_v51  ;;  %357 = vmatprep.subr.mxu1 %v407_v4  ;;  %v63_v15 = vld [vmem:[%s623_s1] sm:$0xff]  ;;  %v185_v20 = vld [vmem:[%s625_s3 + $0x18] sm:$0xff]  ;;  %v184_v21 = vld [vmem:[%s625_s3 + $0x10] sm:$0xff] }
  0x19   :  { %316 = vmatpush3.msra.mxu0 %v67_v54  ;;  %v43_v2 = vadd.f32 %v42_v59, %v41_v52  ;;  %358 = vmatpush3.msra.mxu1 %v191_v57  ;;  %v57_v5 = vadd.f32 %v56_v62, %v55_v55  ;;  %v59_v9 = vmul.f32 0.25, %v36_v60  ;;  %v61_v10 = vmul.f32 0.25, %v50_v63  ;;  %v186_v19 = vld [vmem:[%s625_s3 + $0x20] sm:$0xff]  ;;  %v183_v22 = vld [vmem:[%s625_s3 + $0x8] sm:$0xff] }
  0x1a   :  { %317 = vmatprep.subr.mxu0 %v82_v58  ;;  %359 = vmatprep.subr.mxu1 %v407_v4  ;;  %v182_v23 = vld [vmem:[%s625_s3] sm:$0xff]  ;;  %s283_s3 = sshll.u32 %s409_s18, 4  ;;  %s284_s3 = int_to_ptr.vmem [resolvable:$true] %s283_s3 }
  0x1b   :  { %318 = vmatpush3.msra.mxu0 %v66_v61  ;;  %v60_v8 = vmul.f32 0.25, %v43_v2  ;;  %360 = vmatpush3.msra.mxu1 %v190_v0  ;;  %v62_v12 = vmul.f32 0.25, %v57_v5  ;;  %v107_v17 = vsel %vm106_vm1, %v61_v10, %v59_v9  ;;  %v291_v25 = vld [vmem:[%s624_s2] ss:$0 sm:$0xff]  ;;  %s385_s19 = scalar_lea.vmem %s284_s3, 32  ;;  %p390_p1 = scmp.lt.s32.totalorder %s284_s3, %s284_s3 }
  0x1c   :  { %319 = vmatprep.subr.mxu0 %v81_v1  ;;  %361 = vmatprep.subr.mxu1 %v407_v4  ;;  %v292_v30 = vld [vmem:[%s626_s4] ss:$0 sm:$0xff]  ;;  %p386_p0 = scmp.ne.s32.totalorder %s284_s3, %s385_s19  ;;  %p391_p2 = scmp.lt.s32.totalorder %s385_s19, %s385_s19 }
  0x1d   :  { %320 = vmatpush3.msra.mxu0 %v65_v3  ;;  %362 = vmatpush3.msra.mxu1 %v189_v6  ;;  %v108_v16 = vsel %vm106_vm1, %v62_v12, %v60_v8 }
  0x1e   :  { %321 = vmatprep.subr.mxu0 %v80_v7  ;;  %363 = vmatprep.subr.mxu1 %v407_v4  ;;  %p392_p3 = por %p391_p2, %p390_p1 }
  0x1f   :  { %322 = vmatpush3.msra.mxu0 %v64_v11  ;;  %175 = vmatprep.mubr.f32.mxu0 %v108_v16 }
  0x20   :  { %323 = vmatprep.subr.mxu0 %v79_v13  ;;  %364 = vmatpush3.msra.mxu1 %v188_v14  ;;  %p393_p4 = pnand %p392_p3, %p386_p0 }
  0x21   :  { %324 = vmatpush3.msra.mxu0 %v63_v15  ;;  %365 = vmatprep.subr.mxu1 %v407_v4 }
  0x22   :  { %176 = vmatmul.mubr.f32.vlgmr.msra.gmra.mxu0 %v107_v17  ;;  %366 = vmatpush3.msra.mxu1 %v187_v18 }
  0x23   :  { %367 = vmatprep.subr.mxu1 %v407_v4  ;;  %377 = vmatprep.mubr.msk.f32.mxu1 %vm408_vm2, %v407_v4 }
  0x24   :  { %368 = vmatpush3.msra.mxu1 %v186_v19 }
  0x25   :  { %369 = vmatprep.subr.mxu1 %v407_v4 }
  0x26   :  { %370 = vmatpush3.msra.mxu1 %v185_v20 }
  0x27   :  { %371 = vmatprep.subr.mxu1 %v407_v4 }
  0x28   :  { %372 = vmatpush3.msra.mxu1 %v184_v21 }
  0x29   :  { %373 = vmatprep.subr.mxu1 %v407_v4 }
  0x2a   :  { %374 = vmatpush3.msra.mxu1 %v183_v22 }
  0x2b   :  { %375 = vmatprep.subr.mxu1 %v407_v4 }
  0x2c   :  { %376 = vmatpush3.msra.mxu1 %v182_v23 }
  0xe2   :  { %v325_v24 = vpop.f32.mrf.mxu0 }
  0xe4   :  { %v326_v26 = vpop.f32.mrf.mxu0 }
  0xe5   :  { %v327_v27 = vadd.f32 %v326_v26, %v325_v24 }
  0xe7   :  { %v178_v28 = vadd.f32 %v327_v27, %v291_v25 }
  0xe9   :  { %v181_v29 = vmax.f32 %v178_v28, 0.0 }
  0xeb   :  { %378 = vmatmul.mubr.f32.vlgmr.msra.gmra.mxu1 %v181_v29 }
 0x1ab   :  { %v271_v31 = vpop.f32.mrf.mxu1 }
 0x1ac   :  { %v272_v32 = vadd.f32 %v292_v30, %v271_v31 }
 0x1ad   :  { %v379_v4 = vpop.f32.mrf.mxu1 }
 0x1ae   :  { %276 = vst.msk [vmem:[#allocation2] sm:$0x3] %vm275_vm3, %v272_v32 }
 0x1af   :  { %396 = shalt.err (!%p393_p4)
}
 0x1b0   :  { %286 = dma.vmem_to_hbm [thread:$0]  %s284_s3, 32, %s627_s5, [#allocation3]  }
 0x1b1   :  { %405 = dma.done.wait [#allocation3], 32  }
 0x1b2   :  { %406 = vsyncadd [#allocation3], 4294967264 }
 0x1b3   :  { %290 = vsyncpa [#allocation3], 1 }

// kernel: simple_cnn_forward.8
= control target key start
LH: loop header
LB: loop body
LE: loop exit
PB: predicated region body
PF: predicated region fallthrough
CT: control target
= control target key end

     0   :  { %s2493_s12 = smov 0   ;;  %s6493_s0 = inlined_call_operand.vmem [shape: f32[2,4,4,1152], index: 0, kind: input, shape index: {}]   ;;  %s6494_s1 = inlined_call_operand.vmem [shape: f32[1152,256], index: 1, kind: input, shape index: {}]   ;;  %s6495_s2 = inlined_call_operand.vmem [shape: f32[1,256], index: 2, kind: input, shape index: {}]   ;;  %s6496_s3 = inlined_call_operand.vmem [shape: f32[2,4,256], index: 3, kind: output, shape index: {}]  }
   0x1 LB: > { %s2032_s13 = sadd.s32 4294967295, %s2470_s12   ;;  %p2036_p0 = scmp.ge.s32.totalorder %s2470_s12, 1  ;;  %s2470_s12 = sphi %s2493_s12, %s13_s12  }
   0x2   : > { %p137_p1 = scmp.lt.s32.totalorder %s2470_s12, 3 }
   0x4   : > { %p138_p2 = pnand %p2036_p0, %p137_p1 }
   0x6   : > { %141 = sbr.rel (%p138_p2) target bundleno = 815 (0x32f), region = 32 }
   0xb   : > { %v202_v0 = vld [vmem:[%s6494_s1 + $0xf8] sm:$0xff]  ;;  %v201_v2 = vld [vmem:[%s6494_s1 + $0xf0] sm:$0xff]  ;;  %v200_v4 = vld [vmem:[%s6494_s1 + $0xe8] sm:$0xff]  ;;  %p2815_p3 = scmp.lt.s32.totalorder %s2032_s13, 1 }
   0xc   : > { %v266_v1 = vld [vmem:[%s6494_s1 + $0x2f8] sm:$0xff]  ;;  %476 = vmatprep.subr.mxu0 %v202_v0  ;;  %v265_v3 = vld [vmem:[%s6494_s1 + $0x2f0] sm:$0xff]  ;;  %v264_v5 = vld [vmem:[%s6494_s1 + $0x2e8] sm:$0xff] }
   0xd   : > { %547 = vmatprep.subr.mxu1 %v266_v1  ;;  %477 = vmatpush1.msra.mxu0 %v201_v2  ;;  %v199_v6 = vld [vmem:[%s6494_s1 + $0xe0] sm:$0xff]  ;;  %v198_v8 = vld [vmem:[%s6494_s1 + $0xd8] sm:$0xff]  ;;  %v197_v10 = vld [vmem:[%s6494_s1 + $0xd0] sm:$0xff]  ;;  %s7459_s13 = smov (!%p2815_p3, %s2032_s13), 1 }
   0xe   : > { %548 = vmatpush1.msra.mxu1 %v265_v3  ;;  %v263_v7 = vld [vmem:[%s6494_s1 + $0x2e0] sm:$0xff]  ;;  %478 = vmatprep.subr.mxu0 %v200_v4  ;;  %v262_v9 = vld [vmem:[%s6494_s1 + $0x2d8] sm:$0xff]  ;;  %v261_v11 = vld [vmem:[%s6494_s1 + $0x2d0] sm:$0xff]  ;;  %s2058_s27 = smul.u32 144, %s7459_s13 }
   0xf   : > { %549 = vmatprep.subr.mxu1 %v264_v5  ;;  %479 = vmatpush1.msra.mxu0 %v199_v6  ;;  %v196_v12 = vld [vmem:[%s6494_s1 + $0xc8] sm:$0xff]  ;;  %v195_v14 = vld [vmem:[%s6494_s1 + $0xc0] sm:$0xff]  ;;  %v194_v16 = vld [vmem:[%s6494_s1 + $0xb8] sm:$0xff] }
  0x10   : > { %550 = vmatpush1.msra.mxu1 %v263_v7  ;;  %v260_v13 = vld [vmem:[%s6494_s1 + $0x2c8] sm:$0xff]  ;;  %480 = vmatprep.subr.mxu0 %v198_v8  ;;  %v259_v15 = vld [vmem:[%s6494_s1 + $0x2c0] sm:$0xff]  ;;  %v258_v17 = vld [vmem:[%s6494_s1 + $0x2b8] sm:$0xff]  ;;  %s2937_s21 = scalar_lea.vmem %s6493_s0, %s2058_s27  ;;  %s2057_s27 = sshll.u32 %s7459_s13, 3 }
  0x11   : > { %551 = vmatprep.subr.mxu1 %v262_v9  ;;  %481 = vmatpush1.msra.mxu0 %v197_v10  ;;  %v193_v18 = vld [vmem:[%s6494_s1 + $0xb0] sm:$0xff]  ;;  %v192_v20 = vld [vmem:[%s6494_s1 + $0xa8] sm:$0xff]  ;;  %v191_v22 = vld [vmem:[%s6494_s1 + $0xa0] sm:$0xff]  ;;  %s170_s30 = scalar_lea.vmem %s6496_s3, %s2057_s27 }
  0x12   : > { %552 = vmatpush1.msra.mxu1 %v261_v11  ;;  %482 = vmatprep.subr.mxu0 %v196_v12  ;;  %v257_v19 = vld [vmem:[%s6494_s1 + $0x2b0] sm:$0xff]  ;;  %v256_v21 = vld [vmem:[%s6494_s1 + $0x2a8] sm:$0xff]  ;;  %v255_v23 = vld [vmem:[%s6494_s1 + $0x2a0] sm:$0xff] }
  0x13   : > { %553 = vmatprep.subr.mxu1 %v260_v13  ;;  %483 = vmatpush1.msra.mxu0 %v195_v14  ;;  %v190_v24 = vld [vmem:[%s6494_s1 + $0x98] sm:$0xff]  ;;  %v189_v26 = vld [vmem:[%s6494_s1 + $0x90] sm:$0xff]  ;;  %v188_v28 = vld [vmem:[%s6494_s1 + $0x88] sm:$0xff] }
  0x14   : > { %554 = vmatpush1.msra.mxu1 %v259_v15  ;;  %484 = vmatprep.subr.mxu0 %v194_v16  ;;  %v254_v25 = vld [vmem:[%s6494_s1 + $0x298] sm:$0xff]  ;;  %v253_v27 = vld [vmem:[%s6494_s1 + $0x290] sm:$0xff]  ;;  %v252_v29 = vld [vmem:[%s6494_s1 + $0x288] sm:$0xff] }
  0x15   : > { %555 = vmatprep.subr.mxu1 %v258_v17  ;;  %485 = vmatpush1.msra.mxu0 %v193_v18  ;;  %v187_v30 = vld [vmem:[%s6494_s1 + $0x80] sm:$0xff]  ;;  %v186_v32 = vld [vmem:[%s6494_s1 + $0x78] sm:$0xff]  ;;  %v185_v34 = vld [vmem:[%s6494_s1 + $0x70] sm:$0xff] }
  0x16   : > { %556 = vmatpush1.msra.mxu1 %v257_v19  ;;  %486 = vmatprep.subr.mxu0 %v192_v20  ;;  %v251_v31 = vld [vmem:[%s6494_s1 + $0x280] sm:$0xff]  ;;  %v250_v33 = vld [vmem:[%s6494_s1 + $0x278] sm:$0xff]  ;;  %v249_v35 = vld [vmem:[%s6494_s1 + $0x270] sm:$0xff] }
  0x17   : > { %557 = vmatprep.subr.mxu1 %v256_v21  ;;  %487 = vmatpush1.msra.mxu0 %v191_v22  ;;  %v184_v36 = vld [vmem:[%s6494_s1 + $0x68] sm:$0xff]  ;;  %v183_v38 = vld [vmem:[%s6494_s1 + $0x60] sm:$0xff]  ;;  %v182_v40 = vld [vmem:[%s6494_s1 + $0x58] sm:$0xff] }
  0x18   : > { %558 = vmatpush1.msra.mxu1 %v255_v23  ;;  %488 = vmatprep.subr.mxu0 %v190_v24  ;;  %v248_v37 = vld [vmem:[%s6494_s1 + $0x268] sm:$0xff]  ;;  %v247_v39 = vld [vmem:[%s6494_s1 + $0x260] sm:$0xff]  ;;  %v246_v41 = vld [vmem:[%s6494_s1 + $0x258] sm:$0xff] }
  0x19   : > { %559 = vmatprep.subr.mxu1 %v254_v25  ;;  %489 = vmatpush1.msra.mxu0 %v189_v26  ;;  %v181_v42 = vld [vmem:[%s6494_s1 + $0x50] sm:$0xff]  ;;  %v180_v44 = vld [vmem:[%s6494_s1 + $0x48] sm:$0xff]  ;;  %v179_v46 = vld [vmem:[%s6494_s1 + $0x40] sm:$0xff] }
  0x1a   : > { %560 = vmatpush1.msra.mxu1 %v253_v27  ;;  %490 = vmatprep.subr.mxu0 %v188_v28  ;;  %v245_v43 = vld [vmem:[%s6494_s1 + $0x250] sm:$0xff]  ;;  %v244_v45 = vld [vmem:[%s6494_s1 + $0x248] sm:$0xff]  ;;  %v243_v47 = vld [vmem:[%s6494_s1 + $0x240] sm:$0xff] }
  0x1b   : > { %561 = vmatprep.subr.mxu1 %v252_v29  ;;  %491 = vmatpush1.msra.mxu0 %v187_v30  ;;  %v178_v48 = vld [vmem:[%s6494_s1 + $0x38] sm:$0xff]  ;;  %v177_v50 = vld [vmem:[%s6494_s1 + $0x30] sm:$0xff]  ;;  %v176_v52 = vld [vmem:[%s6494_s1 + $0x28] sm:$0xff] }
  0x1c   : > { %562 = vmatpush1.msra.mxu1 %v251_v31  ;;  %492 = vmatprep.subr.mxu0 %v186_v32  ;;  %v242_v49 = vld [vmem:[%s6494_s1 + $0x238] sm:$0xff]  ;;  %v241_v51 = vld [vmem:[%s6494_s1 + $0x230] sm:$0xff]  ;;  %v240_v53 = vld [vmem:[%s6494_s1 + $0x228] sm:$0xff] }
  0x1d   : > { %563 = vmatprep.subr.mxu1 %v250_v33  ;;  %493 = vmatpush1.msra.mxu0 %v185_v34  ;;  %v175_v54 = vld [vmem:[%s6494_s1 + $0x20] sm:$0xff]  ;;  %v174_v56 = vld [vmem:[%s6494_s1 + $0x18] sm:$0xff]  ;;  %v173_v58 = vld [vmem:[%s6494_s1 + $0x10] sm:$0xff] }
  0x1e   : > { %564 = vmatpush1.msra.mxu1 %v249_v35  ;;  %494 = vmatprep.subr.mxu0 %v184_v36  ;;  %v239_v55 = vld [vmem:[%s6494_s1 + $0x220] sm:$0xff]  ;;  %v238_v57 = vld [vmem:[%s6494_s1 + $0x218] sm:$0xff]  ;;  %v237_v59 = vld [vmem:[%s6494_s1 + $0x210] sm:$0xff] }
  0x1f   : > { %565 = vmatprep.subr.mxu1 %v248_v37  ;;  %495 = vmatpush1.msra.mxu0 %v183_v38  ;;  %v2684_v60 = vld [vmem:[%s6494_s1 + $0x8] sm:$0xff]  ;;  %v2692_v62 = vld [vmem:[%s6494_s1] sm:$0xff]  ;;  %v2700_v0 = vld [vmem:[%s6494_s1 + $0x1f8] sm:$0xff] }
  0x20   : > { %566 = vmatpush1.msra.mxu1 %v247_v39  ;;  %496 = vmatprep.subr.mxu0 %v182_v40  ;;  %v236_v61 = vld [vmem:[%s6494_s1 + $0x208] sm:$0xff]  ;;  %v235_v63 = vld [vmem:[%s6494_s1 + $0x200] sm:$0xff]  ;;  %v298_v1 = vld [vmem:[%s6494_s1 + $0x3f8] sm:$0xff] }
  0x21   : > { %567 = vmatprep.subr.mxu1 %v246_v41  ;;  %497 = vmatpush1.msra.mxu0 %v181_v42  ;;  %v2709_v2 = vld [vmem:[%s6494_s1 + $0x1f0] sm:$0xff]  ;;  %v2718_v4 = vld [vmem:[%s6494_s1 + $0x1e8] sm:$0xff]  ;;  %v2727_v6 = vld [vmem:[%s6494_s1 + $0x1e0] sm:$0xff] }
  0x22   : > { %568 = vmatpush1.msra.mxu1 %v245_v43  ;;  %498 = vmatprep.subr.mxu0 %v180_v44  ;;  %v297_v3 = vld [vmem:[%s6494_s1 + $0x3f0] sm:$0xff]  ;;  %v296_v5 = vld [vmem:[%s6494_s1 + $0x3e8] sm:$0xff]  ;;  %v295_v7 = vld [vmem:[%s6494_s1 + $0x3e0] sm:$0xff] }
  0x23   : > { %569 = vmatprep.subr.mxu1 %v244_v45  ;;  %499 = vmatpush1.msra.mxu0 %v179_v46  ;;  %v2736_v8 = vld [vmem:[%s6494_s1 + $0x1d8] sm:$0xff]  ;;  %v2745_v10 = vld [vmem:[%s6494_s1 + $0x1d0] sm:$0xff]  ;;  %v2754_v12 = vld [vmem:[%s6494_s1 + $0x1c8] sm:$0xff] }
  0x24   : > { %570 = vmatpush1.msra.mxu1 %v243_v47  ;;  %500 = vmatprep.subr.mxu0 %v178_v48  ;;  %v294_v9 = vld [vmem:[%s6494_s1 + $0x3d8] sm:$0xff]  ;;  %v293_v11 = vld [vmem:[%s6494_s1 + $0x3d0] sm:$0xff]  ;;  %v292_v13 = vld [vmem:[%s6494_s1 + $0x3c8] sm:$0xff] }
  0x25   : > { %571 = vmatprep.subr.mxu1 %v242_v49  ;;  %501 = vmatpush1.msra.mxu0 %v177_v50  ;;  %v2763_v14 = vld [vmem:[%s6494_s1 + $0x1c0] sm:$0xff]  ;;  %v2772_v16 = vld [vmem:[%s6494_s1 + $0x1b8] sm:$0xff]  ;;  %v2781_v18 = vld [vmem:[%s6494_s1 + $0x1b0] sm:$0xff] }
  0x26   : > { %572 = vmatpush1.msra.mxu1 %v241_v51  ;;  %502 = vmatprep.subr.mxu0 %v176_v52  ;;  %v291_v15 = vld [vmem:[%s6494_s1 + $0x3c0] sm:$0xff]  ;;  %v290_v17 = vld [vmem:[%s6494_s1 + $0x3b8] sm:$0xff]  ;;  %v289_v19 = vld [vmem:[%s6494_s1 + $0x3b0] sm:$0xff] }
  0x27   : > { %573 = vmatprep.subr.mxu1 %v240_v53  ;;  %503 = vmatpush1.msra.mxu0 %v175_v54  ;;  %v2790_v20 = vld [vmem:[%s6494_s1 + $0x1a8] sm:$0xff]  ;;  %v2799_v22 = vld [vmem:[%s6494_s1 + $0x1a0] sm:$0xff]  ;;  %v2808_v24 = vld [vmem:[%s6494_s1 + $0x198] sm:$0xff] }
  0x28   : > { %574 = vmatpush1.msra.mxu1 %v239_v55  ;;  %504 = vmatprep.subr.mxu0 %v174_v56  ;;  %v288_v21 = vld [vmem:[%s6494_s1 + $0x3a8] sm:$0xff]  ;;  %v287_v23 = vld [vmem:[%s6494_s1 + $0x3a0] sm:$0xff]  ;;  %v286_v25 = vld [vmem:[%s6494_s1 + $0x398] sm:$0xff] }
  0x29   : > { %575 = vmatprep.subr.mxu1 %v238_v57  ;;  %505 = vmatpush1.msra.mxu0 %v173_v58  ;;  %v2823_v26 = vld [vmem:[%s6494_s1 + $0x190] sm:$0xff]  ;;  %v2832_v28 = vld [vmem:[%s6494_s1 + $0x188] sm:$0xff]  ;;  %v2841_v30 = vld [vmem:[%s6494_s1 + $0x180] sm:$0xff] }
  0x2a   : > { %576 = vmatpush1.msra.mxu1 %v237_v59  ;;  %506 = vmatprep.subr.mxu0 %v2684_v60  ;;  %v285_v27 = vld [vmem:[%s6494_s1 + $0x390] sm:$0xff]  ;;  %v284_v29 = vld [vmem:[%s6494_s1 + $0x388] sm:$0xff]  ;;  %v283_v31 = vld [vmem:[%s6494_s1 + $0x380] sm:$0xff] }
  0x2b   : > { %577 = vmatprep.subr.mxu1 %v236_v61  ;;  %507 = vmatpush1.msra.mxu0 %v2692_v62  ;;  %v2850_v32 = vld [vmem:[%s6494_s1 + $0x178] sm:$0xff]  ;;  %v2865_v34 = vld [vmem:[%s6494_s1 + $0x170] sm:$0xff]  ;;  %v2874_v36 = vld [vmem:[%s6494_s1 + $0x168] sm:$0xff] }
  0x2c   : > { %578 = vmatpush1.msra.mxu1 %v235_v63  ;;  %508 = vmatprep.subr.mxu0 %v2700_v0  ;;  %v282_v33 = vld [vmem:[%s6494_s1 + $0x378] sm:$0xff]  ;;  %v281_v35 = vld [vmem:[%s6494_s1 + $0x370] sm:$0xff]  ;;  %v280_v37 = vld [vmem:[%s6494_s1 + $0x368] sm:$0xff] }
  0x2d   : > { %579 = vmatprep.subr.mxu1 %v298_v1  ;;  %509 = vmatpush2.msra.mxu0 %v2709_v2  ;;  %v2883_v38 = vld [vmem:[%s6494_s1 + $0x160] sm:$0xff]  ;;  %v2892_v40 = vld [vmem:[%s6494_s1 + $0x158] sm:$0xff]  ;;  %v2902_v42 = vld [vmem:[%s6494_s1 + $0x150] sm:$0xff] }
  0x2e   : > { %580 = vmatpush2.msra.mxu1 %v297_v3  ;;  %510 = vmatprep.subr.mxu0 %v2718_v4  ;;  %v279_v39 = vld [vmem:[%s6494_s1 + $0x360] sm:$0xff]  ;;  %v278_v41 = vld [vmem:[%s6494_s1 + $0x358] sm:$0xff]  ;;  %v277_v43 = vld [vmem:[%s6494_s1 + $0x350] sm:$0xff] }
  0x2f   : > { %581 = vmatprep.subr.mxu1 %v296_v5  ;;  %511 = vmatpush2.msra.mxu0 %v2727_v6  ;;  %v2911_v44 = vld [vmem:[%s6494_s1 + $0x148] sm:$0xff]  ;;  %v2920_v46 = vld [vmem:[%s6494_s1 + $0x140] sm:$0xff]  ;;  %v2929_v48 = vld [vmem:[%s6494_s1 + $0x138] sm:$0xff] }
  0x30   : > { %582 = vmatpush2.msra.mxu1 %v295_v7  ;;  %512 = vmatprep.subr.mxu0 %v2736_v8  ;;  %v276_v45 = vld [vmem:[%s6494_s1 + $0x348] sm:$0xff]  ;;  %v275_v47 = vld [vmem:[%s6494_s1 + $0x340] sm:$0xff]  ;;  %v274_v49 = vld [vmem:[%s6494_s1 + $0x338] sm:$0xff] }
  0x31   : > { %583 = vmatprep.subr.mxu1 %v294_v9  ;;  %513 = vmatpush2.msra.mxu0 %v2745_v10  ;;  %v2943_v50 = vld [vmem:[%s6494_s1 + $0x130] sm:$0xff]  ;;  %v2952_v52 = vld [vmem:[%s6494_s1 + $0x128] sm:$0xff]  ;;  %v2961_v54 = vld [vmem:[%s6494_s1 + $0x120] sm:$0xff] }
  0x32   : > { %584 = vmatpush2.msra.mxu1 %v293_v11  ;;  %514 = vmatprep.subr.mxu0 %v2754_v12  ;;  %v273_v51 = vld [vmem:[%s6494_s1 + $0x330] sm:$0xff]  ;;  %v272_v53 = vld [vmem:[%s6494_s1 + $0x328] sm:$0xff]  ;;  %v271_v55 = vld [vmem:[%s6494_s1 + $0x320] sm:$0xff] }
  0x33   : > { %585 = vmatprep.subr.mxu1 %v292_v13  ;;  %515 = vmatpush2.msra.mxu0 %v2763_v14  ;;  %v459_v56 = vld [vmem:[%s2937_s21] sm:$0xff]  ;;  %v2971_v57 = vld [vmem:[%s6494_s1 + $0x118] sm:$0xff]  ;;  %v460_v59 = vld [vmem:[%s2937_s21 + $0x8] sm:$0xff] }
  0x34   : > { %586 = vmatpush2.msra.mxu1 %v291_v15  ;;  %516 = vmatprep.subr.mxu0 %v2772_v16  ;;  %v270_v58 = vld [vmem:[%s6494_s1 + $0x318] sm:$0xff]  ;;  %v2981_v61 = vld [vmem:[%s6494_s1 + $0x110] sm:$0xff]  ;;  %v2990_v1 = vld [vmem:[%s6494_s1 + $0x108] sm:$0xff]  ;;  %v468_v5 = vcombine.high %v459_v56, %v459_v56  ;;  %v469_v9 = vcombine.high %v460_v59, %v460_v59 }
  0x35   : > { %587 = vmatprep.subr.mxu1 %v290_v17  ;;  %517 = vmatpush2.msra.mxu0 %v2781_v18  ;;  %v269_v63 = vld [vmem:[%s6494_s1 + $0x310] sm:$0xff]  ;;  %v2995_v3 = vld [vmem:[%s6494_s1 + $0x308] sm:$0xff]  ;;  %v3001_v7 = vld [vmem:[%s6494_s1 + $0x100] sm:$0xff] }
  0x36   : > { %588 = vmatpush2.msra.mxu1 %v289_v19  ;;  %518 = vmatprep.subr.mxu0 %v2790_v20  ;;  %6819 = vst [vmem:[#allocation2_spill] sm:$0xff] %v2995_v3  ;;  %v3007_v11 = vld [vmem:[%s6494_s1 + $0x300] sm:$0xff]  ;;  %v3015_v13 = vld [vmem:[%s6494_s1 + $0x4f8] sm:$0xff]  ;;  %v3026_v17 = vld [vmem:[%s6494_s1 + $0x4f0] sm:$0xff] }
  0x37   : > { %589 = vmatprep.subr.mxu1 %v288_v21  ;;  %519 = vmatpush2.msra.mxu0 %v2799_v22  ;;  %6820 = vst [vmem:[#allocation3_spill] sm:$0xff] %v3007_v11  ;;  %v3020_v15 = vld [vmem:[%s6494_s1 + $0x6f8] sm:$0xff]  ;;  %v3031_v19 = vld [vmem:[%s6494_s1 + $0x6f0] sm:$0xff]  ;;  %v3036_v21 = vld [vmem:[%s6494_s1 + $0x4e8] sm:$0xff] }
  0x38   : > { %590 = vmatpush2.msra.mxu1 %v287_v23  ;;  %520 = vmatprep.subr.mxu0 %v2808_v24  ;;  %6821 = vst [vmem:[#allocation4_spill] sm:$0xff] %v3020_v15  ;;  %6822 = vst [vmem:[#allocation5_spill] sm:$0xff] %v3031_v19  ;;  %v3041_v23 = vld [vmem:[%s6494_s1 + $0x6e8] sm:$0xff] }
  0x39   : > { %591 = vmatprep.subr.mxu1 %v286_v25  ;;  %521 = vmatpush2.msra.mxu0 %v2823_v26  ;;  %6823 = vst [vmem:[#allocation6_spill] sm:$0xff] %v3041_v23  ;;  %v3048_v25 = vld [vmem:[%s6494_s1 + $0x4e0] sm:$0xff] }
  0x3a   : > { %592 = vmatpush2.msra.mxu1 %v285_v27  ;;  %522 = vmatprep.subr.mxu0 %v2832_v28  ;;  %v3053_v27 = vld [vmem:[%s6494_s1 + $0x6e0] sm:$0xff] }
  0x3b   : > { %593 = vmatprep.subr.mxu1 %v284_v29  ;;  %523 = vmatpush2.msra.mxu0 %v2841_v30  ;;  %6824 = vst [vmem:[#allocation7_spill] sm:$0xff] %v3053_v27  ;;  %v3060_v29 = vld [vmem:[%s6494_s1 + $0x4d8] sm:$0xff] }
  0x3c   : > { %594 = vmatpush2.msra.mxu1 %v283_v31  ;;  %524 = vmatprep.subr.mxu0 %v2850_v32  ;;  %v3065_v31 = vld [vmem:[%s6494_s1 + $0x6d8] sm:$0xff] }
  0x3d   : > { %595 = vmatprep.subr.mxu1 %v282_v33  ;;  %525 = vmatpush2.msra.mxu0 %v2865_v34  ;;  %6825 = vst [vmem:[#allocation8_spill] sm:$0xff] %v3065_v31  ;;  %v3072_v33 = vld [vmem:[%s6494_s1 + $0x4d0] sm:$0xff] }
  0x3e   : > { %596 = vmatpush2.msra.mxu1 %v281_v35  ;;  %526 = vmatprep.subr.mxu0 %v2874_v36  ;;  %v3077_v35 = vld [vmem:[%s6494_s1 + $0x6d0] sm:$0xff] }
  0x3f   : > { %597 = vmatprep.subr.mxu1 %v280_v37  ;;  %527 = vmatpush2.msra.mxu0 %v2883_v38  ;;  %6826 = vst [vmem:[#allocation9_spill] sm:$0xff] %v3077_v35  ;;  %v3084_v37 = vld [vmem:[%s6494_s1 + $0x4c8] sm:$0xff] }
  0x40   : > { %598 = vmatpush2.msra.mxu1 %v279_v39  ;;  %528 = vmatprep.subr.mxu0 %v2892_v40  ;;  %v3089_v39 = vld [vmem:[%s6494_s1 + $0x6c8] sm:$0xff] }
  0x41   : > { %599 = vmatprep.subr.mxu1 %v278_v41  ;;  %529 = vmatpush2.msra.mxu0 %v2902_v42  ;;  %6827 = vst [vmem:[#allocation10_spill] sm:$0xff] %v3089_v39  ;;  %v3096_v41 = vld [vmem:[%s6494_s1 + $0x4c0] sm:$0xff] }
  0x42   : > { %600 = vmatpush2.msra.mxu1 %v277_v43  ;;  %530 = vmatprep.subr.mxu0 %v2911_v44  ;;  %v3101_v43 = vld [vmem:[%s6494_s1 + $0x6c0] sm:$0xff] }
  0x43   : > { %601 = vmatprep.subr.mxu1 %v276_v45  ;;  %531 = vmatpush2.msra.mxu0 %v2920_v46  ;;  %6828 = vst [vmem:[#allocation11_spill] sm:$0xff] %v3101_v43  ;;  %v3108_v45 = vld [vmem:[%s6494_s1 + $0x4b8] sm:$0xff] }
  0x44   : > { %602 = vmatpush2.msra.mxu1 %v275_v47  ;;  %532 = vmatprep.subr.mxu0 %v2929_v48  ;;  %v3113_v47 = vld [vmem:[%s6494_s1 + $0x6b8] sm:$0xff] }
  0x45   : > { %603 = vmatprep.subr.mxu1 %v274_v49  ;;  %533 = vmatpush2.msra.mxu0 %v2943_v50  ;;  %6829 = vst [vmem:[#allocation12_spill] sm:$0xff] %v3113_v47  ;;  %v3120_v49 = vld [vmem:[%s6494_s1 + $0x4b0] sm:$0xff] }
  0x46   : > { %604 = vmatpush2.msra.mxu1 %v273_v51  ;;  %534 = vmatprep.subr.mxu0 %v2952_v52  ;;  %v3125_v51 = vld [vmem:[%s6494_s1 + $0x6b0] sm:$0xff] }
  0x47   : > { %605 = vmatprep.subr.mxu1 %v272_v53  ;;  %535 = vmatpush2.msra.mxu0 %v2961_v54  ;;  %6830 = vst [vmem:[#allocation13_spill] sm:$0xff] %v3125_v51  ;;  %v3132_v53 = vld [vmem:[%s6494_s1 + $0x4a8] sm:$0xff] }
  0x48   : > { %606 = vmatpush2.msra.mxu1 %v271_v55  ;;  %536 = vmatprep.subr.mxu0 %v2971_v57  ;;  %v3137_v55 = vld [vmem:[%s6494_s1 + $0x6a8] sm:$0xff] }
  0x49   : > { %607 = vmatprep.subr.mxu1 %v270_v58  ;;  %537 = vmatpush2.msra.mxu0 %v2981_v61  ;;  %6831 = vst [vmem:[#allocation14_spill] sm:$0xff] %v3137_v55  ;;  %v3149_v58 = vld [vmem:[%s6494_s1 + $0x6a0] sm:$0xff] }
  0x4a   : > { %608 = vmatpush2.msra.mxu1 %v269_v63  ;;  %538 = vmatprep.subr.mxu0 %v2990_v1  ;;  %6832 = vst [vmem:[#allocation15_spill] sm:$0xff] %v3149_v58  ;;  %v3161_v63 = vld [vmem:[%s6494_s1 + $0x698] sm:$0xff] }
  0x4b   : > { %609 = vmatprep.subr.mxu1 %v2995_v3  ;;  %539 = vmatpush2.msra.mxu0 %v3001_v7  ;;  %6833 = vst [vmem:[#allocation16_spill] sm:$0xff] %v3161_v63  ;;  %v3312_v3 = vld [vmem:[%s6494_s1 + $0x430] sm:$0xff] }
  0x4c   : > { %540 = vmatprep.mubr.f32.mxu0 %v468_v5  ;;  %610 = vmatpush2.msra.mxu1 %v3007_v11  ;;  %v3168_v5 = vld [vmem:[%s6494_s1 + $0x490] sm:$0xff]  ;;  %v3300_v11 = vld [vmem:[%s6494_s1 + $0x438] sm:$0xff]  ;;  %6853 = vst [vmem:[#allocation36_spill] sm:$0xff] %v3312_v3 }
  0x4d   : > { %611 = vmatprep.mubr.f32.mxu1 %v469_v9  ;;  %541 = vmatmul.mubr.f32.vlgmr.msra.gmra.mxu0 %v459_v56  ;;  %v3144_v56 = vld [vmem:[%s6494_s1 + $0x4a0] sm:$0xff]  ;;  %v3173_v9 = vld [vmem:[%s6494_s1 + $0x690] sm:$0xff]  ;;  %6851 = vst [vmem:[#allocation34_spill] sm:$0xff] %v3300_v11 }
  0x4e   : > { %612 = vmatmul.mubr.f32.vlgmr.msra.gmra.mxu1 %v460_v59  ;;  %618 = vmatprep.subr.mxu0 %v3015_v13  ;;  %v3156_v59 = vld [vmem:[%s6494_s1 + $0x498] sm:$0xff]  ;;  %6834 = vst [vmem:[#allocation17_spill] sm:$0xff] %v3173_v9 }
  0x4f   : > { %689 = vmatprep.subr.mxu1 %v3020_v15  ;;  %619 = vmatpush1.msra.mxu0 %v3026_v17  ;;  %v3288_v15 = vld [vmem:[%s6494_s1 + $0x440] sm:$0xff] }
  0x50   : > { %690 = vmatpush1.msra.mxu1 %v3031_v19  ;;  %620 = vmatprep.subr.mxu0 %v3036_v21  ;;  %v3276_v19 = vld [vmem:[%s6494_s1 + $0x448] sm:$0xff]  ;;  %6849 = vst [vmem:[#allocation32_spill] sm:$0xff] %v3288_v15 }
  0x51   : > { %691 = vmatprep.subr.mxu1 %v3041_v23  ;;  %621 = vmatpush1.msra.mxu0 %v3048_v25  ;;  %v3264_v23 = vld [vmem:[%s6494_s1 + $0x450] sm:$0xff]  ;;  %6847 = vst [vmem:[#allocation30_spill] sm:$0xff] %v3276_v19 }
  0x52   : > { %692 = vmatpush1.msra.mxu1 %v3053_v27  ;;  %622 = vmatprep.subr.mxu0 %v3060_v29  ;;  %v3252_v27 = vld [vmem:[%s6494_s1 + $0x458] sm:$0xff]  ;;  %6845 = vst [vmem:[#allocation28_spill] sm:$0xff] %v3264_v23 }
  0x53   : > { %693 = vmatprep.subr.mxu1 %v3065_v31  ;;  %623 = vmatpush1.msra.mxu0 %v3072_v33  ;;  %v3240_v31 = vld [vmem:[%s6494_s1 + $0x460] sm:$0xff]  ;;  %6843 = vst [vmem:[#allocation26_spill] sm:$0xff] %v3252_v27 }
  0x54   : > { %694 = vmatpush1.msra.mxu1 %v3077_v35  ;;  %624 = vmatprep.subr.mxu0 %v3084_v37  ;;  %v3228_v35 = vld [vmem:[%s6494_s1 + $0x468] sm:$0xff]  ;;  %6841 = vst [vmem:[#allocation24_spill] sm:$0xff] %v3240_v31 }
  0x55   : > { %695 = vmatprep.subr.mxu1 %v3089_v39  ;;  %625 = vmatpush1.msra.mxu0 %v3096_v41  ;;  %v3216_v39 = vld [vmem:[%s6494_s1 + $0x470] sm:$0xff]  ;;  %6839 = vst [vmem:[#allocation22_spill] sm:$0xff] %v3228_v35 }
  0x56   : > { %696 = vmatpush1.msra.mxu1 %v3101_v43  ;;  %626 = vmatprep.subr.mxu0 %v3108_v45  ;;  %v3204_v43 = vld [vmem:[%s6494_s1 + $0x478] sm:$0xff] }
  0x57   : > { %697 = vmatprep.subr.mxu1 %v3113_v47  ;;  %627 = vmatpush1.msra.mxu0 %v3120_v49  ;;  %v3192_v47 = vld [vmem:[%s6494_s1 + $0x480] sm:$0xff] }
  0x58   : > { %698 = vmatpush1.msra.mxu1 %v3125_v51  ;;  %628 = vmatprep.subr.mxu0 %v3132_v53  ;;  %v3180_v51 = vld [vmem:[%s6494_s1 + $0x488] sm:$0xff] }
  0x59   : > { %699 = vmatprep.subr.mxu1 %v3137_v55  ;;  %629 = vmatpush1.msra.mxu0 %v3144_v56  ;;  %v3185_v55 = vld [vmem:[%s6494_s1 + $0x688] sm:$0xff] }
  0x5a   : > { %700 = vmatpush1.msra.mxu1 %v3149_v58  ;;  %6835 = vst [vmem:[#allocation18_spill] sm:$0xff] %v3185_v55  ;;  %630 = vmatprep.subr.mxu0 %v3156_v59  ;;  %v3197_v58 = vld [vmem:[%s6494_s1 + $0x680] sm:$0xff] }
  0x5b   : > { %701 = vmatprep.subr.mxu1 %v3161_v63  ;;  %6836 = vst [vmem:[#allocation19_spill] sm:$0xff] %v3197_v58  ;;  %631 = vmatpush1.msra.mxu0 %v3168_v5  ;;  %v3209_v63 = vld [vmem:[%s6494_s1 + $0x678] sm:$0xff] }
  0x5c   : > { %702 = vmatpush1.msra.mxu1 %v3173_v9  ;;  %6837 = vst [vmem:[#allocation20_spill] sm:$0xff] %v3209_v63  ;;  %632 = vmatprep.subr.mxu0 %v3180_v51  ;;  %v3221_v9 = vld [vmem:[%s6494_s1 + $0x670] sm:$0xff] }
  0x5d   : > { %703 = vmatprep.subr.mxu1 %v3185_v55  ;;  %6838 = vst [vmem:[#allocation21_spill] sm:$0xff] %v3221_v9  ;;  %633 = vmatpush1.msra.mxu0 %v3192_v47  ;;  %v3233_v55 = vld [vmem:[%s6494_s1 + $0x668] sm:$0xff] }
  0x5e   : > { %704 = vmatpush1.msra.mxu1 %v3197_v58  ;;  %6840 = vst [vmem:[#allocation23_spill] sm:$0xff] %v3233_v55  ;;  %634 = vmatprep.subr.mxu0 %v3204_v43  ;;  %v3245_v58 = vld [vmem:[%s6494_s1 + $0x660] sm:$0xff] }
  0x5f   : > { %705 = vmatprep.subr.mxu1 %v3209_v63  ;;  %6842 = vst [vmem:[#allocation25_spill] sm:$0xff] %v3245_v58  ;;  %635 = vmatpush1.msra.mxu0 %v3216_v39  ;;  %v3257_v63 = vld [vmem:[%s6494_s1 + $0x658] sm:$0xff] }
  0x60   : > { %706 = vmatpush1.msra.mxu1 %v3221_v9  ;;  %6844 = vst [vmem:[#allocation27_spill] sm:$0xff] %v3257_v63  ;;  %636 = vmatprep.subr.mxu0 %v3228_v35  ;;  %v3269_v9 = vld [vmem:[%s6494_s1 + $0x650] sm:$0xff] }
  0x61   : > { %707 = vmatprep.subr.mxu1 %v3233_v55  ;;  %6846 = vst [vmem:[#allocation29_spill] sm:$0xff] %v3269_v9  ;;  %637 = vmatpush1.msra.mxu0 %v3240_v31  ;;  %v3281_v55 = vld [vmem:[%s6494_s1 + $0x648] sm:$0xff] }
  0x62   : > { %708 = vmatpush1.msra.mxu1 %v3245_v58  ;;  %6848 = vst [vmem:[#allocation31_spill] sm:$0xff] %v3281_v55  ;;  %638 = vmatprep.subr.mxu0 %v3252_v27  ;;  %v3293_v58 = vld [vmem:[%s6494_s1 + $0x640] sm:$0xff]  ;;  %v462_v27 = vld [vmem:[%s2937_s21 + $0x18] sm:$0xff] }
  0x63   : > { %709 = vmatprep.subr.mxu1 %v3257_v63  ;;  %6850 = vst [vmem:[#allocation33_spill] sm:$0xff] %v3293_v58  ;;  %639 = vmatpush1.msra.mxu0 %v3264_v23  ;;  %v3305_v63 = vld [vmem:[%s6494_s1 + $0x638] sm:$0xff]  ;;  %v461_v23 = vld [vmem:[%s2937_s21 + $0x10] sm:$0xff]  ;;  %v471_v35 = vcombine.high %v462_v27, %v462_v27 }
  0x64   : > { %710 = vmatpush1.msra.mxu1 %v3269_v9  ;;  %6852 = vst [vmem:[#allocation35_spill] sm:$0xff] %v3305_v63  ;;  %640 = vmatprep.subr.mxu0 %v3276_v19  ;;  %v3317_v9 = vld [vmem:[%s6494_s1 + $0x630] sm:$0xff]  ;;  %v3324_v19 = vld [vmem:[%s6494_s1 + $0x428] sm:$0xff]  ;;  %v470_v31 = vcombine.high %v461_v23, %v461_v23 }
  0x65   : > { %711 = vmatprep.subr.mxu1 %v3281_v55  ;;  %6854 = vst [vmem:[#allocation37_spill] sm:$0xff] %v3317_v9  ;;  %641 = vmatpush1.msra.mxu0 %v3288_v15  ;;  %6855 = vst [vmem:[#allocation38_spill] sm:$0xff] %v3324_v19  ;;  %v3329_v55 = vld [vmem:[%s6494_s1 + $0x628] sm:$0xff]  ;;  %v3336_v15 = vld [vmem:[%s6494_s1 + $0x420] sm:$0xff] }
  0x66   : > { %712 = vmatpush1.msra.mxu1 %v3293_v58  ;;  %6856 = vst [vmem:[#allocation39_spill] sm:$0xff] %v3329_v55  ;;  %642 = vmatprep.subr.mxu0 %v3300_v11  ;;  %6857 = vst [vmem:[#allocation40_spill] sm:$0xff] %v3336_v15  ;;  %v3341_v58 = vld [vmem:[%s6494_s1 + $0x620] sm:$0xff]  ;;  %v3348_v11 = vld [vmem:[%s6494_s1 + $0x418] sm:$0xff] }
  0x67   : > { %713 = vmatprep.subr.mxu1 %v3305_v63  ;;  %6858 = vst [vmem:[#allocation41_spill] sm:$0xff] %v3341_v58  ;;  %643 = vmatpush1.msra.mxu0 %v3312_v3  ;;  %6859 = vst [vmem:[#allocation42_spill] sm:$0xff] %v3348_v11  ;;  %v3353_v63 = vld [vmem:[%s6494_s1 + $0x618] sm:$0xff]  ;;  %v3360_v3 = vld [vmem:[%s6494_s1 + $0x410] sm:$0xff] }
  0x68   : > { %714 = vmatpush1.msra.mxu1 %v3317_v9  ;;  %6860 = vst [vmem:[#allocation43_spill] sm:$0xff] %v3353_v63  ;;  %644 = vmatprep.subr.mxu0 %v3324_v19  ;;  %6861 = vst [vmem:[#allocation44_spill] sm:$0xff] %v3360_v3  ;;  %v3365_v9 = vld [vmem:[%s6494_s1 + $0x610] sm:$0xff]  ;;  %v3372_v19 = vld [vmem:[%s6494_s1 + $0x408] sm:$0xff] }
  0x69   : > { %715 = vmatprep.subr.mxu1 %v3329_v55  ;;  %6862 = vst [vmem:[#allocation45_spill] sm:$0xff] %v3365_v9  ;;  %645 = vmatpush1.msra.mxu0 %v3336_v15  ;;  %6863 = vst [vmem:[#allocation46_spill] sm:$0xff] %v3372_v19  ;;  %v3377_v55 = vld [vmem:[%s6494_s1 + $0x608] sm:$0xff]  ;;  %v3384_v15 = vld [vmem:[%s6494_s1 + $0x400] sm:$0xff] }
  0x6a   : > { %716 = vmatpush1.msra.mxu1 %v3341_v58  ;;  %6864 = vst [vmem:[#allocation47_spill] sm:$0xff] %v3377_v55  ;;  %646 = vmatprep.subr.mxu0 %v3348_v11  ;;  %6865 = vst [vmem:[#allocation48_spill] sm:$0xff] %v3384_v15  ;;  %v3389_v58 = vld [vmem:[%s6494_s1 + $0x600] sm:$0xff]  ;;  %v3396_v11 = vld [vmem:[%s6494_s1 + $0x5f8] sm:$0xff] }
  0x6b   : > { %717 = vmatprep.subr.mxu1 %v3353_v63  ;;  %6866 = vst [vmem:[#allocation49_spill] sm:$0xff] %v3389_v58  ;;  %647 = vmatpush1.msra.mxu0 %v3360_v3  ;;  %6867 = vst [vmem:[#allocation50_spill] sm:$0xff] %v3396_v11  ;;  %v3401_v63 = vld [vmem:[%s6494_s1 + $0x7f8] sm:$0xff]  ;;  %v3408_v3 = vld [vmem:[%s6494_s1 + $0x5f0] sm:$0xff] }
  0x6c   : > { %718 = vmatpush1.msra.mxu1 %v3365_v9  ;;  %6868 = vst [vmem:[#allocation51_spill] sm:$0xff] %v3401_v63  ;;  %648 = vmatprep.subr.mxu0 %v3372_v19  ;;  %6869 = vst [vmem:[#allocation52_spill] sm:$0xff] %v3408_v3  ;;  %v3413_v9 = vld [vmem:[%s6494_s1 + $0x7f0] sm:$0xff]  ;;  %v3420_v19 = vld [vmem:[%s6494_s1 + $0x5e8] sm:$0xff] }
  0x6d   : > { %719 = vmatprep.subr.mxu1 %v3377_v55  ;;  %6870 = vst [vmem:[#allocation53_spill] sm:$0xff] %v3413_v9  ;;  %649 = vmatpush1.msra.mxu0 %v3384_v15  ;;  %6871 = vst [vmem:[#allocation54_spill] sm:$0xff] %v3420_v19  ;;  %v3425_v55 = vld [vmem:[%s6494_s1 + $0x7e8] sm:$0xff]  ;;  %v3432_v15 = vld [vmem:[%s6494_s1 + $0x5e0] sm:$0xff] }
  0x6e   : > { %720 = vmatpush1.msra.mxu1 %v3389_v58  ;;  %6872 = vst [vmem:[#allocation55_spill] sm:$0xff] %v3425_v55  ;;  %650 = vmatprep.subr.mxu0 %v3396_v11  ;;  %6873 = vst [vmem:[#allocation56_spill] sm:$0xff] %v3432_v15  ;;  %v3437_v58 = vld [vmem:[%s6494_s1 + $0x7e0] sm:$0xff]  ;;  %v3444_v11 = vld [vmem:[%s6494_s1 + $0x5d8] sm:$0xff] }
  0x6f   : > { %721 = vmatprep.subr.mxu1 %v3401_v63  ;;  %6874 = vst [vmem:[#allocation57_spill] sm:$0xff] %v3437_v58  ;;  %651 = vmatpush2.msra.mxu0 %v3408_v3  ;;  %6875 = vst [vmem:[#allocation58_spill] sm:$0xff] %v3444_v11  ;;  %v3449_v63 = vld [vmem:[%s6494_s1 + $0x7d8] sm:$0xff]  ;;  %v3456_v3 = vld [vmem:[%s6494_s1 + $0x5d0] sm:$0xff] }
  0x70   : > { %722 = vmatpush2.msra.mxu1 %v3413_v9  ;;  %6876 = vst [vmem:[#allocation59_spill] sm:$0xff] %v3449_v63  ;;  %652 = vmatprep.subr.mxu0 %v3420_v19  ;;  %6877 = vst [vmem:[#allocation60_spill] sm:$0xff] %v3456_v3  ;;  %v3461_v9 = vld [vmem:[%s6494_s1 + $0x7d0] sm:$0xff]  ;;  %v3468_v19 = vld [vmem:[%s6494_s1 + $0x5c8] sm:$0xff] }
  0x71   : > { %723 = vmatprep.subr.mxu1 %v3425_v55  ;;  %6878 = vst [vmem:[#allocation61_spill] sm:$0xff] %v3461_v9  ;;  %653 = vmatpush2.msra.mxu0 %v3432_v15  ;;  %6879 = vst [vmem:[#allocation62_spill] sm:$0xff] %v3468_v19  ;;  %v3473_v55 = vld [vmem:[%s6494_s1 + $0x7c8] sm:$0xff]  ;;  %v3480_v15 = vld [vmem:[%s6494_s1 + $0x5c0] sm:$0xff] }
  0x72   : > { %724 = vmatpush2.msra.mxu1 %v3437_v58  ;;  %6880 = vst [vmem:[#allocation63_spill] sm:$0xff] %v3473_v55  ;;  %654 = vmatprep.subr.mxu0 %v3444_v11  ;;  %6881 = vst [vmem:[#allocation64_spill] sm:$0xff] %v3480_v15  ;;  %v3485_v58 = vld [vmem:[%s6494_s1 + $0x7c0] sm:$0xff]  ;;  %v3492_v11 = vld [vmem:[%s6494_s1 + $0x5b8] sm:$0xff] }
  0x73   : > { %725 = vmatprep.subr.mxu1 %v3449_v63  ;;  %6882 = vst [vmem:[#allocation65_spill] sm:$0xff] %v3485_v58  ;;  %655 = vmatpush2.msra.mxu0 %v3456_v3  ;;  %6883 = vst [vmem:[#allocation66_spill] sm:$0xff] %v3492_v11  ;;  %v3497_v63 = vld [vmem:[%s6494_s1 + $0x7b8] sm:$0xff]  ;;  %v3504_v3 = vld [vmem:[%s6494_s1 + $0x5b0] sm:$0xff] }
  0x74   : > { %726 = vmatpush2.msra.mxu1 %v3461_v9  ;;  %6884 = vst [vmem:[#allocation67_spill] sm:$0xff] %v3497_v63  ;;  %656 = vmatprep.subr.mxu0 %v3468_v19  ;;  %6885 = vst [vmem:[#allocation68_spill] sm:$0xff] %v3504_v3  ;;  %v3509_v9 = vld [vmem:[%s6494_s1 + $0x7b0] sm:$0xff]  ;;  %v3516_v19 = vld [vmem:[%s6494_s1 + $0x5a8] sm:$0xff] }
  0x75   : > { %727 = vmatprep.subr.mxu1 %v3473_v55  ;;  %6886 = vst [vmem:[#allocation69_spill] sm:$0xff] %v3509_v9  ;;  %657 = vmatpush2.msra.mxu0 %v3480_v15  ;;  %6887 = vst [vmem:[#allocation70_spill] sm:$0xff] %v3516_v19  ;;  %v3521_v55 = vld [vmem:[%s6494_s1 + $0x7a8] sm:$0xff]  ;;  %v3528_v15 = vld [vmem:[%s6494_s1 + $0x5a0] sm:$0xff] }
  0x76   : > { %728 = vmatpush2.msra.mxu1 %v3485_v58  ;;  %6888 = vst [vmem:[#allocation71_spill] sm:$0xff] %v3521_v55  ;;  %658 = vmatprep.subr.mxu0 %v3492_v11  ;;  %6889 = vst [vmem:[#allocation72_spill] sm:$0xff] %v3528_v15  ;;  %v3533_v58 = vld [vmem:[%s6494_s1 + $0x7a0] sm:$0xff]  ;;  %v3540_v11 = vld [vmem:[%s6494_s1 + $0x598] sm:$0xff] }
  0x77   : > { %729 = vmatprep.subr.mxu1 %v3497_v63  ;;  %6890 = vst [vmem:[#allocation73_spill] sm:$0xff] %v3533_v58  ;;  %659 = vmatpush2.msra.mxu0 %v3504_v3  ;;  %6891 = vst [vmem:[#allocation74_spill] sm:$0xff] %v3540_v11  ;;  %v3545_v63 = vld [vmem:[%s6494_s1 + $0x798] sm:$0xff]  ;;  %v3552_v3 = vld [vmem:[%s6494_s1 + $0x590] sm:$0xff] }
  0x78   : > { %730 = vmatpush2.msra.mxu1 %v3509_v9  ;;  %6892 = vst [vmem:[#allocation75_spill] sm:$0xff] %v3545_v63  ;;  %660 = vmatprep.subr.mxu0 %v3516_v19  ;;  %6893 = vst [vmem:[#allocation76_spill] sm:$0xff] %v3552_v3  ;;  %v3557_v9 = vld [vmem:[%s6494_s1 + $0x790] sm:$0xff]  ;;  %v3564_v19 = vld [vmem:[%s6494_s1 + $0x588] sm:$0xff] }
  0x79   : > { %731 = vmatprep.subr.mxu1 %v3521_v55  ;;  %6894 = vst [vmem:[#allocation77_spill] sm:$0xff] %v3557_v9  ;;  %661 = vmatpush2.msra.mxu0 %v3528_v15  ;;  %6895 = vst [vmem:[#allocation78_spill] sm:$0xff] %v3564_v19  ;;  %v3569_v55 = vld [vmem:[%s6494_s1 + $0x788] sm:$0xff]  ;;  %v3576_v15 = vld [vmem:[%s6494_s1 + $0x580] sm:$0xff] }
  0x7a   : > { %732 = vmatpush2.msra.mxu1 %v3533_v58  ;;  %6896 = vst [vmem:[#allocation79_spill] sm:$0xff] %v3569_v55  ;;  %662 = vmatprep.subr.mxu0 %v3540_v11  ;;  %6897 = vst [vmem:[#allocation80_spill] sm:$0xff] %v3576_v15  ;;  %v3581_v58 = vld [vmem:[%s6494_s1 + $0x780] sm:$0xff]  ;;  %v3588_v11 = vld [vmem:[%s6494_s1 + $0x578] sm:$0xff] }
  0x7b   : > { %733 = vmatprep.subr.mxu1 %v3545_v63  ;;  %6898 = vst [vmem:[#allocation81_spill] sm:$0xff] %v3581_v58  ;;  %663 = vmatpush2.msra.mxu0 %v3552_v3  ;;  %6899 = vst [vmem:[#allocation82_spill] sm:$0xff] %v3588_v11  ;;  %v3593_v63 = vld [vmem:[%s6494_s1 + $0x778] sm:$0xff]  ;;  %v3600_v3 = vld [vmem:[%s6494_s1 + $0x570] sm:$0xff] }
  0x7c   : > { %734 = vmatpush2.msra.mxu1 %v3557_v9  ;;  %6900 = vst [vmem:[#allocation83_spill] sm:$0xff] %v3593_v63  ;;  %664 = vmatprep.subr.mxu0 %v3564_v19  ;;  %6901 = vst [vmem:[#allocation84_spill] sm:$0xff] %v3600_v3  ;;  %v3605_v9 = vld [vmem:[%s6494_s1 + $0x770] sm:$0xff]  ;;  %v3612_v19 = vld [vmem:[%s6494_s1 + $0x568] sm:$0xff] }
  0x7d   : > { %735 = vmatprep.subr.mxu1 %v3569_v55  ;;  %6902 = vst [vmem:[#allocation85_spill] sm:$0xff] %v3605_v9  ;;  %665 = vmatpush2.msra.mxu0 %v3576_v15  ;;  %6903 = vst [vmem:[#allocation86_spill] sm:$0xff] %v3612_v19  ;;  %v3617_v55 = vld [vmem:[%s6494_s1 + $0x768] sm:$0xff]  ;;  %v3624_v15 = vld [vmem:[%s6494_s1 + $0x560] sm:$0xff] }
  0x7e   : > { %736 = vmatpush2.msra.mxu1 %v3581_v58  ;;  %6904 = vst [vmem:[#allocation87_spill] sm:$0xff] %v3617_v55  ;;  %666 = vmatprep.subr.mxu0 %v3588_v11  ;;  %6905 = vst [vmem:[#allocation88_spill] sm:$0xff] %v3624_v15  ;;  %v3629_v58 = vld [vmem:[%s6494_s1 + $0x760] sm:$0xff]  ;;  %v3636_v11 = vld [vmem:[%s6494_s1 + $0x558] sm:$0xff] }
  0x7f   : > { %737 = vmatprep.subr.mxu1 %v3593_v63  ;;  %6906 = vst [vmem:[#allocation89_spill] sm:$0xff] %v3629_v58  ;;  %667 = vmatpush2.msra.mxu0 %v3600_v3  ;;  %6907 = vst [vmem:[#allocation90_spill] sm:$0xff] %v3636_v11  ;;  %v3641_v63 = vld [vmem:[%s6494_s1 + $0x758] sm:$0xff]  ;;  %v3648_v3 = vld [vmem:[%s6494_s1 + $0x550] sm:$0xff] }
  0x80   : > { %738 = vmatpush2.msra.mxu1 %v3605_v9  ;;  %6908 = vst [vmem:[#allocation91_spill] sm:$0xff] %v3641_v63  ;;  %668 = vmatprep.subr.mxu0 %v3612_v19  ;;  %6909 = vst [vmem:[#allocation92_spill] sm:$0xff] %v3648_v3  ;;  %v3653_v9 = vld [vmem:[%s6494_s1 + $0x750] sm:$0xff]  ;;  %v3660_v19 = vld [vmem:[%s6494_s1 + $0x548] sm:$0xff] }
  0x81   : > { %739 = vmatprep.subr.mxu1 %v3617_v55  ;;  %6910 = vst [vmem:[#allocation93_spill] sm:$0xff] %v3653_v9  ;;  %669 = vmatpush2.msra.mxu0 %v3624_v15  ;;  %6911 = vst [vmem:[#allocation94_spill] sm:$0xff] %v3660_v19  ;;  %v3665_v55 = vld [vmem:[%s6494_s1 + $0x748] sm:$0xff]  ;;  %v3672_v15 = vld [vmem:[%s6494_s1 + $0x540] sm:$0xff] }
  0x82   : > { %740 = vmatpush2.msra.mxu1 %v3629_v58  ;;  %6912 = vst [vmem:[#allocation95_spill] sm:$0xff] %v3665_v55  ;;  %670 = vmatprep.subr.mxu0 %v3636_v11  ;;  %6913 = vst [vmem:[#allocation96_spill] sm:$0xff] %v3672_v15  ;;  %v3677_v58 = vld [vmem:[%s6494_s1 + $0x740] sm:$0xff]  ;;  %v3684_v11 = vld [vmem:[%s6494_s1 + $0x538] sm:$0xff] }
  0x83   : > { %741 = vmatprep.subr.mxu1 %v3641_v63  ;;  %6914 = vst [vmem:[#allocation97_spill] sm:$0xff] %v3677_v58  ;;  %671 = vmatpush2.msra.mxu0 %v3648_v3  ;;  %6915 = vst [vmem:[#allocation98_spill] sm:$0xff] %v3684_v11  ;;  %v3689_v63 = vld [vmem:[%s6494_s1 + $0x738] sm:$0xff]  ;;  %v3696_v3 = vld [vmem:[%s6494_s1 + $0x530] sm:$0xff] }
  0x84   : > { %742 = vmatpush2.msra.mxu1 %v3653_v9  ;;  %6916 = vst [vmem:[#allocation99_spill] sm:$0xff] %v3689_v63  ;;  %672 = vmatprep.subr.mxu0 %v3660_v19  ;;  %6917 = vst [vmem:[#allocation100_spill] sm:$0xff] %v3696_v3  ;;  %v3701_v9 = vld [vmem:[%s6494_s1 + $0x730] sm:$0xff]  ;;  %v3708_v19 = vld [vmem:[%s6494_s1 + $0x528] sm:$0xff] }
  0x85   : > { %743 = vmatprep.subr.mxu1 %v3665_v55  ;;  %6918 = vst [vmem:[#allocation101_spill] sm:$0xff] %v3701_v9  ;;  %673 = vmatpush2.msra.mxu0 %v3672_v15  ;;  %6919 = vst [vmem:[#allocation102_spill] sm:$0xff] %v3708_v19  ;;  %v3713_v55 = vld [vmem:[%s6494_s1 + $0x728] sm:$0xff]  ;;  %v3720_v15 = vld [vmem:[%s6494_s1 + $0x520] sm:$0xff] }
  0x86   : > { %744 = vmatpush2.msra.mxu1 %v3677_v58  ;;  %6920 = vst [vmem:[#allocation103_spill] sm:$0xff] %v3713_v55  ;;  %674 = vmatprep.subr.mxu0 %v3684_v11  ;;  %6921 = vst [vmem:[#allocation104_spill] sm:$0xff] %v3720_v15  ;;  %v3725_v58 = vld [vmem:[%s6494_s1 + $0x720] sm:$0xff]  ;;  %v3733_v11 = vld [vmem:[%s6494_s1 + $0x518] sm:$0xff] }
  0x87   : > { %745 = vmatprep.subr.mxu1 %v3689_v63  ;;  %6922 = vst [vmem:[#allocation105_spill] sm:$0xff] %v3725_v58  ;;  %675 = vmatpush2.msra.mxu0 %v3696_v3  ;;  %v3738_v63 = vld [vmem:[%s6494_s1 + $0x718] sm:$0xff]  ;;  %v3745_v3 = vld [vmem:[%s6494_s1 + $0x510] sm:$0xff] }
  0x88   : > { %746 = vmatpush2.msra.mxu1 %v3701_v9  ;;  %6923 = vst [vmem:[#allocation106_spill] sm:$0xff] %v3738_v63  ;;  %676 = vmatprep.subr.mxu0 %v3708_v19  ;;  %v3750_v9 = vld [vmem:[%s6494_s1 + $0x710] sm:$0xff]  ;;  %v3758_v19 = vld [vmem:[%s6494_s1 + $0x508] sm:$0xff] }
  0x89   : > { %747 = vmatprep.subr.mxu1 %v3713_v55  ;;  %6924 = vst [vmem:[#allocation107_spill] sm:$0xff] %v3750_v9  ;;  %677 = vmatpush2.msra.mxu0 %v3720_v15  ;;  %v3763_v55 = vld [vmem:[%s6494_s1 + $0x708] sm:$0xff]  ;;  %v3770_v15 = vld [vmem:[%s6494_s1 + $0x500] sm:$0xff] }
  0x8a   : > { %748 = vmatpush2.msra.mxu1 %v3725_v58  ;;  %6925 = vst [vmem:[#allocation108_spill] sm:$0xff] %v3763_v55  ;;  %678 = vmatprep.subr.mxu0 %v3733_v11  ;;  %v3777_v58 = vld [vmem:[%s6494_s1 + $0x700] sm:$0xff] }
  0x8b   : > { %749 = vmatprep.subr.mxu1 %v3738_v63  ;;  %679 = vmatpush2.msra.mxu0 %v3745_v3  ;;  %6926 = vst [vmem:[#allocation109_spill] sm:$0xff] %v3777_v58  ;;  %v3784_v63 = vld [vmem:[%s6494_s1 + $0x8f8] sm:$0xff] }
  0x8c   : > { %750 = vmatpush2.msra.mxu1 %v3750_v9  ;;  %680 = vmatprep.subr.mxu0 %v3758_v19  ;;  %v3791_v9 = vld [vmem:[%s6494_s1 + $0x8f0] sm:$0xff] }
  0x8d   : > { %751 = vmatprep.subr.mxu1 %v3763_v55  ;;  %681 = vmatpush2.msra.mxu0 %v3770_v15  ;;  %v3797_v55 = vld [vmem:[%s6494_s1 + $0x8e8] sm:$0xff] }
  0x8e   : > { %682 = vmatprep.mubr.f32.mxu0 %v470_v31  ;;  %752 = vmatpush2.msra.mxu1 %v3777_v58  ;;  %6927 = vst [vmem:[#allocation110_spill] sm:$0xff] %v3797_v55  ;;  %v3802_v31 = vld [vmem:[%s6494_s1 + $0xf8] sm:$0xff] }
  0x8f   : > { %683 = vmatmul.mubr.f32.vlgmr.msra.gmra.mxu0 %v461_v23  ;;  %753 = vmatprep.mubr.f32.mxu1 %v471_v35  ;;  %6928 = vst [vmem:[#allocation111_spill] sm:$0xff] %v3802_v31  ;;  %v3808_v23 = vld [vmem:[%s6494_s1 + $0x8e0] sm:$0xff]  ;;  %v3814_v35 = vld [vmem:[%s6494_s1 + $0xf0] sm:$0xff]  ;;  %v3820_v58 = vld [vmem:[%s6494_s1 + $0x8d8] sm:$0xff] }
  0x90   : > { %760 = vmatprep.subr.mxu0 %v3784_v63  ;;  %849 = vmatprep.subr.mxu1 %v3802_v31  ;;  %6929 = vst [vmem:[#allocation112_spill] sm:$0xff] %v3808_v23  ;;  %6930 = vst [vmem:[#allocation113_spill] sm:$0xff] %v3814_v35  ;;  %v3832_v31 = vld [vmem:[%s6494_s1 + $0x8d0] sm:$0xff] }
  0x91   : > { %754 = vmatmul.mubr.f32.vlgmr.msra.gmra.mxu1 %v462_v27  ;;  %761 = vmatpush1.msra.mxu0 %v3791_v9  ;;  %6931 = vst [vmem:[#allocation114_spill] sm:$0xff] %v3820_v58  ;;  %v3826_v27 = vld [vmem:[%s6494_s1 + $0xe8] sm:$0xff]  ;;  %6933 = vst [vmem:[#allocation116_spill] sm:$0xff] %v3832_v31 }
  0x92   : > { %850 = vmatpush1.msra.mxu1 %v3814_v35  ;;  %762 = vmatprep.subr.mxu0 %v3797_v55  ;;  %6932 = vst [vmem:[#allocation115_spill] sm:$0xff] %v3826_v27  ;;  %v3838_v35 = vld [vmem:[%s6494_s1 + $0xe0] sm:$0xff]  ;;  %v3844_v55 = vld [vmem:[%s6494_s1 + $0x8c8] sm:$0xff] }
  0x93   : > { %851 = vmatprep.subr.mxu1 %v3826_v27  ;;  %763 = vmatpush1.msra.mxu0 %v3808_v23  ;;  %6934 = vst [vmem:[#allocation117_spill] sm:$0xff] %v3838_v35  ;;  %6935 = vst [vmem:[#allocation118_spill] sm:$0xff] %v3844_v55  ;;  %v3850_v27 = vld [vmem:[%s6494_s1 + $0xd8] sm:$0xff]  ;;  %v3856_v23 = vld [vmem:[%s6494_s1 + $0x8c0] sm:$0xff] }
  0x94   : > { %852 = vmatpush1.msra.mxu1 %v3838_v35  ;;  %764 = vmatprep.subr.mxu0 %v3820_v58  ;;  %6936 = vst [vmem:[#allocation119_spill] sm:$0xff] %v3850_v27  ;;  %6937 = vst [vmem:[#allocation120_spill] sm:$0xff] %v3856_v23  ;;  %v3862_v35 = vld [vmem:[%s6494_s1 + $0xd0] sm:$0xff]  ;;  %v3868_v58 = vld [vmem:[%s6494_s1 + $0x8b8] sm:$0xff] }
  0x95   : > { %853 = vmatprep.subr.mxu1 %v3850_v27  ;;  %765 = vmatpush1.msra.mxu0 %v3832_v31  ;;  %6938 = vst [vmem:[#allocation121_spill] sm:$0xff] %v3862_v35  ;;  %6939 = vst [vmem:[#allocation122_spill] sm:$0xff] %v3868_v58  ;;  %v3874_v27 = vld [vmem:[%s6494_s1 + $0xc8] sm:$0xff]  ;;  %v3880_v31 = vld [vmem:[%s6494_s1 + $0x8b0] sm:$0xff] }
  0x96   : > { %854 = vmatpush1.msra.mxu1 %v3862_v35  ;;  %766 = vmatprep.subr.mxu0 %v3844_v55  ;;  %6940 = vst [vmem:[#allocation123_spill] sm:$0xff] %v3874_v27  ;;  %6941 = vst [vmem:[#allocation124_spill] sm:$0xff] %v3880_v31  ;;  %v3886_v35 = vld [vmem:[%s6494_s1 + $0xc0] sm:$0xff]  ;;  %v3892_v55 = vld [vmem:[%s6494_s1 + $0x8a8] sm:$0xff] }
  0x97   : > { %855 = vmatprep.subr.mxu1 %v3874_v27  ;;  %767 = vmatpush1.msra.mxu0 %v3856_v23  ;;  %6942 = vst [vmem:[#allocation125_spill] sm:$0xff] %v3886_v35  ;;  %6943 = vst [vmem:[#allocation126_spill] sm:$0xff] %v3892_v55  ;;  %v3898_v27 = vld [vmem:[%s6494_s1 + $0xb8] sm:$0xff]  ;;  %v3904_v23 = vld [vmem:[%s6494_s1 + $0x8a0] sm:$0xff] }
  0x98   : > { %856 = vmatpush1.msra.mxu1 %v3886_v35  ;;  %768 = vmatprep.subr.mxu0 %v3868_v58  ;;  %6944 = vst [vmem:[#allocation127_spill] sm:$0xff] %v3898_v27  ;;  %6945 = vst [vmem:[#allocation128_spill] sm:$0xff] %v3904_v23  ;;  %v3910_v35 = vld [vmem:[%s6494_s1 + $0xb0] sm:$0xff]  ;;  %v3916_v58 = vld [vmem:[%s6494_s1 + $0x898] sm:$0xff] }
  0x99   : > { %857 = vmatprep.subr.mxu1 %v3898_v27  ;;  %769 = vmatpush1.msra.mxu0 %v3880_v31  ;;  %6946 = vst [vmem:[#allocation129_spill] sm:$0xff] %v3910_v35  ;;  %6947 = vst [vmem:[#allocation130_spill] sm:$0xff] %v3916_v58  ;;  %v3922_v27 = vld [vmem:[%s6494_s1 + $0xa8] sm:$0xff]  ;;  %v3928_v31 = vld [vmem:[%s6494_s1 + $0x890] sm:$0xff] }
  0x9a   : > { %858 = vmatpush1.msra.mxu1 %v3910_v35  ;;  %770 = vmatprep.subr.mxu0 %v3892_v55  ;;  %6948 = vst [vmem:[#allocation131_spill] sm:$0xff] %v3922_v27  ;;  %6949 = vst [vmem:[#allocation132_spill] sm:$0xff] %v3928_v31  ;;  %v3934_v35 = vld [vmem:[%s6494_s1 + $0xa0] sm:$0xff]  ;;  %v3940_v55 = vld [vmem:[%s6494_s1 + $0x888] sm:$0xff] }
  0x9b   : > { %859 = vmatprep.subr.mxu1 %v3922_v27  ;;  %771 = vmatpush1.msra.mxu0 %v3904_v23  ;;  %6950 = vst [vmem:[#allocation133_spill] sm:$0xff] %v3934_v35  ;;  %6951 = vst [vmem:[#allocation134_spill] sm:$0xff] %v3940_v55  ;;  %v3946_v27 = vld [vmem:[%s6494_s1 + $0x98] sm:$0xff]  ;;  %v3952_v23 = vld [vmem:[%s6494_s1 + $0x880] sm:$0xff] }
  0x9c   : > { %860 = vmatpush1.msra.mxu1 %v3934_v35  ;;  %772 = vmatprep.subr.mxu0 %v3916_v58  ;;  %6952 = vst [vmem:[#allocation135_spill] sm:$0xff] %v3946_v27  ;;  %6953 = vst [vmem:[#allocation136_spill] sm:$0xff] %v3952_v23  ;;  %v3958_v35 = vld [vmem:[%s6494_s1 + $0x90] sm:$0xff]  ;;  %v3964_v58 = vld [vmem:[%s6494_s1 + $0x878] sm:$0xff] }
  0x9d   : > { %861 = vmatprep.subr.mxu1 %v3946_v27  ;;  %773 = vmatpush1.msra.mxu0 %v3928_v31  ;;  %6954 = vst [vmem:[#allocation137_spill] sm:$0xff] %v3958_v35  ;;  %6955 = vst [vmem:[#allocation138_spill] sm:$0xff] %v3964_v58  ;;  %v3970_v27 = vld [vmem:[%s6494_s1 + $0x88] sm:$0xff]  ;;  %v3976_v31 = vld [vmem:[%s6494_s1 + $0x870] sm:$0xff] }
  0x9e   : > { %862 = vmatpush1.msra.mxu1 %v3958_v35  ;;  %774 = vmatprep.subr.mxu0 %v3940_v55  ;;  %6956 = vst [vmem:[#allocation139_spill] sm:$0xff] %v3970_v27  ;;  %6957 = vst [vmem:[#allocation140_spill] sm:$0xff] %v3976_v31  ;;  %v3982_v35 = vld [vmem:[%s6494_s1 + $0x80] sm:$0xff]  ;;  %v3988_v55 = vld [vmem:[%s6494_s1 + $0x868] sm:$0xff] }
  0x9f   : > { %863 = vmatprep.subr.mxu1 %v3970_v27  ;;  %775 = vmatpush1.msra.mxu0 %v3952_v23  ;;  %6958 = vst [vmem:[#allocation141_spill] sm:$0xff] %v3982_v35  ;;  %6959 = vst [vmem:[#allocation142_spill] sm:$0xff] %v3988_v55  ;;  %v3994_v27 = vld [vmem:[%s6494_s1 + $0x78] sm:$0xff]  ;;  %v4000_v23 = vld [vmem:[%s6494_s1 + $0x860] sm:$0xff] }
  0xa0   : > { %864 = vmatpush1.msra.mxu1 %v3982_v35  ;;  %776 = vmatprep.subr.mxu0 %v3964_v58  ;;  %6960 = vst [vmem:[#allocation143_spill] sm:$0xff] %v3994_v27  ;;  %6961 = vst [vmem:[#allocation144_spill] sm:$0xff] %v4000_v23  ;;  %v4006_v35 = vld [vmem:[%s6494_s1 + $0x70] sm:$0xff]  ;;  %v4012_v58 = vld [vmem:[%s6494_s1 + $0x858] sm:$0xff] }
  0xa1   : > { %865 = vmatprep.subr.mxu1 %v3994_v27  ;;  %777 = vmatpush1.msra.mxu0 %v3976_v31  ;;  %6962 = vst [vmem:[#allocation145_spill] sm:$0xff] %v4006_v35  ;;  %6963 = vst [vmem:[#allocation146_spill] sm:$0xff] %v4012_v58  ;;  %v4018_v27 = vld [vmem:[%s6494_s1 + $0x68] sm:$0xff]  ;;  %v4024_v31 = vld [vmem:[%s6494_s1 + $0x850] sm:$0xff] }
  0xa2   : > { %866 = vmatpush1.msra.mxu1 %v4006_v35  ;;  %778 = vmatprep.subr.mxu0 %v3988_v55  ;;  %6964 = vst [vmem:[#allocation147_spill] sm:$0xff] %v4018_v27  ;;  %6965 = vst [vmem:[#allocation148_spill] sm:$0xff] %v4024_v31  ;;  %v4030_v35 = vld [vmem:[%s6494_s1 + $0x60] sm:$0xff]  ;;  %v4036_v55 = vld [vmem:[%s6494_s1 + $0x848] sm:$0xff] }
  0xa3   : > { %867 = vmatprep.subr.mxu1 %v4018_v27  ;;  %779 = vmatpush1.msra.mxu0 %v4000_v23  ;;  %6966 = vst [vmem:[#allocation149_spill] sm:$0xff] %v4030_v35  ;;  %6967 = vst [vmem:[#allocation150_spill] sm:$0xff] %v4036_v55  ;;  %v4042_v27 = vld [vmem:[%s6494_s1 + $0x58] sm:$0xff]  ;;  %v4048_v23 = vld [vmem:[%s6494_s1 + $0x840] sm:$0xff] }
  0xa4   : > { %868 = vmatpush1.msra.mxu1 %v4030_v35  ;;  %780 = vmatprep.subr.mxu0 %v4012_v58  ;;  %6968 = vst [vmem:[#allocation151_spill] sm:$0xff] %v4042_v27  ;;  %6969 = vst [vmem:[#allocation152_spill] sm:$0xff] %v4048_v23  ;;  %v4054_v35 = vld [vmem:[%s6494_s1 + $0x50] sm:$0xff]  ;;  %v4060_v58 = vld [vmem:[%s6494_s1 + $0x838] sm:$0xff] }
  0xa5   : > { %869 = vmatprep.subr.mxu1 %v4042_v27  ;;  %781 = vmatpush1.msra.mxu0 %v4024_v31  ;;  %6970 = vst [vmem:[#allocation153_spill] sm:$0xff] %v4054_v35  ;;  %6971 = vst [vmem:[#allocation154_spill] sm:$0xff] %v4060_v58  ;;  %v4066_v27 = vld [vmem:[%s6494_s1 + $0x48] sm:$0xff]  ;;  %v4072_v31 = vld [vmem:[%s6494_s1 + $0x830] sm:$0xff] }
  0xa6   : > { %870 = vmatpush1.msra.mxu1 %v4054_v35  ;;  %782 = vmatprep.subr.mxu0 %v4036_v55  ;;  %6972 = vst [vmem:[#allocation155_spill] sm:$0xff] %v4066_v27  ;;  %6973 = vst [vmem:[#allocation156_spill] sm:$0xff] %v4072_v31  ;;  %v4078_v35 = vld [vmem:[%s6494_s1 + $0x40] sm:$0xff]  ;;  %v4084_v55 = vld [vmem:[%s6494_s1 + $0x828] sm:$0xff] }
  0xa7   : > { %871 = vmatprep.subr.mxu1 %v4066_v27  ;;  %783 = vmatpush1.msra.mxu0 %v4048_v23  ;;  %6974 = vst [vmem:[#allocation157_spill] sm:$0xff] %v4078_v35  ;;  %6975 = vst [vmem:[#allocation158_spill] sm:$0xff] %v4084_v55  ;;  %v4090_v27 = vld [vmem:[%s6494_s1 + $0x38] sm:$0xff]  ;;  %v4096_v23 = vld [vmem:[%s6494_s1 + $0x820] sm:$0xff] }
  0xa8   : > { %872 = vmatpush1.msra.mxu1 %v4078_v35  ;;  %784 = vmatprep.subr.mxu0 %v4060_v58  ;;  %6976 = vst [vmem:[#allocation159_spill] sm:$0xff] %v4090_v27  ;;  %6977 = vst [vmem:[#allocation160_spill] sm:$0xff] %v4096_v23  ;;  %v4102_v35 = vld [vmem:[%s6494_s1 + $0x30] sm:$0xff]  ;;  %v4108_v58 = vld [vmem:[%s6494_s1 + $0x818] sm:$0xff] }
  0xa9   : > { %873 = vmatprep.subr.mxu1 %v4090_v27  ;;  %785 = vmatpush1.msra.mxu0 %v4072_v31  ;;  %6978 = vst [vmem:[#allocation161_spill] sm:$0xff] %v4102_v35  ;;  %6979 = vst [vmem:[#allocation162_spill] sm:$0xff] %v4108_v58  ;;  %v4114_v27 = vld [vmem:[%s6494_s1 + $0x28] sm:$0xff]  ;;  %v4120_v31 = vld [vmem:[%s6494_s1 + $0x810] sm:$0xff] }
  0xaa   : > { %874 = vmatpush1.msra.mxu1 %v4102_v35  ;;  %786 = vmatprep.subr.mxu0 %v4084_v55  ;;  %6980 = vst [vmem:[#allocation163_spill] sm:$0xff] %v4114_v27  ;;  %6981 = vst [vmem:[#allocation164_spill] sm:$0xff] %v4120_v31  ;;  %v4126_v35 = vld [vmem:[%s6494_s1 + $0x20] sm:$0xff]  ;;  %v4132_v55 = vld [vmem:[%s6494_s1 + $0x808] sm:$0xff] }
  0xab   : > { %875 = vmatprep.subr.mxu1 %v4114_v27  ;;  %787 = vmatpush1.msra.mxu0 %v4096_v23  ;;  %6982 = vst [vmem:[#allocation165_spill] sm:$0xff] %v4126_v35  ;;  %v4138_v27 = vld [vmem:[%s6494_s1 + $0x18] sm:$0xff]  ;;  %v4144_v23 = vld [vmem:[%s6494_s1 + $0x800] sm:$0xff] }
  0xac   : > { %876 = vmatpush1.msra.mxu1 %v4126_v35  ;;  %788 = vmatprep.subr.mxu0 %v4108_v58  ;;  %6983 = vst [vmem:[#allocation166_spill] sm:$0xff] %v4138_v27  ;;  %v4150_v35 = vld [vmem:[%s6494_s1 + $0x10] sm:$0xff]  ;;  %v463_v58 = vld [vmem:[%s2937_s21 + $0x20] sm:$0xf] }
  0xad   : > { %877 = vmatprep.subr.mxu1 %v4138_v27  ;;  %789 = vmatpush1.msra.mxu0 %v4120_v31  ;;  %v6662_v27 = vmov 0.0   ;;  %v4163_v31 = vld [vmem:[%s6494_s1 + $0x2f8] sm:$0xff] }
  0xae   : > { %878 = vmatpush1.msra.mxu1 %v4150_v35  ;;  %790 = vmatprep.subr.mxu0 %v4132_v55 }
  0xaf   : > { %879 = vmatprep.subr.mxu1 %v2684_v60  ;;  %791 = vmatpush1.msra.mxu0 %v4144_v23  ;;  %v4170_v60 = vld [vmem:[%s6494_s1 + $0x2f0] sm:$0xff] }
  0xb0   : > { %824 = vmatprep.mubr.f32.mxu0 %v6662_v27  ;;  %880 = vmatpush1.msra.mxu1 %v2692_v62  ;;  %v4177_v62 = vld [vmem:[%s6494_s1 + $0x2e8] sm:$0xff]  ;;  %v6994_v27 = vld [vmem:[#allocation24_spill] sm:$0xff] }
  0xb1   : > { %825 = vmatmul.mubr.f32.vlgmr.msra.gmra.mxu0 %v463_v58  ;;  %881 = vmatprep.subr.mxu1 %v2700_v0  ;;  %v4184_v0 = vld [vmem:[%s6494_s1 + $0x2e0] sm:$0xff] }
  0xb2   : > { %920 = vmatprep.subr.mxu0 %v4163_v31  ;;  %882 = vmatpush2.msra.mxu1 %v2709_v2  ;;  %v4191_v2 = vld [vmem:[%s6494_s1 + $0x2d8] sm:$0xff] }
  0xb3   : > { %921 = vmatpush1.msra.mxu0 %v4170_v60  ;;  %883 = vmatprep.subr.mxu1 %v2718_v4  ;;  %v4198_v4 = vld [vmem:[%s6494_s1 + $0x2d0] sm:$0xff] }
  0xb4   : > { %922 = vmatprep.subr.mxu0 %v4177_v62  ;;  %884 = vmatpush2.msra.mxu1 %v2727_v6  ;;  %v4205_v6 = vld [vmem:[%s6494_s1 + $0x2c8] sm:$0xff] }
  0xb5   : > { %923 = vmatpush1.msra.mxu0 %v4184_v0  ;;  %885 = vmatprep.subr.mxu1 %v2736_v8  ;;  %v4212_v8 = vld [vmem:[%s6494_s1 + $0x2c0] sm:$0xff] }
  0xb6   : > { %924 = vmatprep.subr.mxu0 %v4191_v2  ;;  %886 = vmatpush2.msra.mxu1 %v2745_v10  ;;  %v4219_v10 = vld [vmem:[%s6494_s1 + $0x2b8] sm:$0xff] }
  0xb7   : > { %925 = vmatpush1.msra.mxu0 %v4198_v4  ;;  %887 = vmatprep.subr.mxu1 %v2754_v12  ;;  %v4226_v12 = vld [vmem:[%s6494_s1 + $0x2b0] sm:$0xff] }
  0xb8   : > { %926 = vmatprep.subr.mxu0 %v4205_v6  ;;  %888 = vmatpush2.msra.mxu1 %v2763_v14  ;;  %v4233_v14 = vld [vmem:[%s6494_s1 + $0x2a8] sm:$0xff] }
  0xb9   : > { %927 = vmatpush1.msra.mxu0 %v4212_v8  ;;  %889 = vmatprep.subr.mxu1 %v2772_v16  ;;  %v4240_v16 = vld [vmem:[%s6494_s1 + $0x2a0] sm:$0xff] }
  0xba   : > { %928 = vmatprep.subr.mxu0 %v4219_v10  ;;  %890 = vmatpush2.msra.mxu1 %v2781_v18  ;;  %v4247_v18 = vld [vmem:[%s6494_s1 + $0x298] sm:$0xff] }
  0xbb   : > { %929 = vmatpush1.msra.mxu0 %v4226_v12  ;;  %891 = vmatprep.subr.mxu1 %v2790_v20  ;;  %v4254_v20 = vld [vmem:[%s6494_s1 + $0x290] sm:$0xff] }
  0xbc   : > { %930 = vmatprep.subr.mxu0 %v4233_v14  ;;  %892 = vmatpush2.msra.mxu1 %v2799_v22  ;;  %v4261_v22 = vld [vmem:[%s6494_s1 + $0x288] sm:$0xff] }
  0xbd   : > { %931 = vmatpush1.msra.mxu0 %v4240_v16  ;;  %893 = vmatprep.subr.mxu1 %v2808_v24  ;;  %v4268_v24 = vld [vmem:[%s6494_s1 + $0x280] sm:$0xff] }
  0xbe   : > { %932 = vmatprep.subr.mxu0 %v4247_v18  ;;  %894 = vmatpush2.msra.mxu1 %v2823_v26  ;;  %v4275_v26 = vld [vmem:[%s6494_s1 + $0x278] sm:$0xff] }
  0xbf   : > { %933 = vmatpush1.msra.mxu0 %v4254_v20  ;;  %895 = vmatprep.subr.mxu1 %v2832_v28  ;;  %v4282_v28 = vld [vmem:[%s6494_s1 + $0x270] sm:$0xff] }
  0xc0   : > { %934 = vmatprep.subr.mxu0 %v4261_v22  ;;  %896 = vmatpush2.msra.mxu1 %v2841_v30  ;;  %v4289_v30 = vld [vmem:[%s6494_s1 + $0x268] sm:$0xff] }
  0xc1   : > { %935 = vmatpush1.msra.mxu0 %v4268_v24  ;;  %897 = vmatprep.subr.mxu1 %v2850_v32  ;;  %v4296_v32 = vld [vmem:[%s6494_s1 + $0x260] sm:$0xff] }
  0xc2   : > { %936 = vmatprep.subr.mxu0 %v4275_v26  ;;  %898 = vmatpush2.msra.mxu1 %v2865_v34  ;;  %v4303_v34 = vld [vmem:[%s6494_s1 + $0x258] sm:$0xff] }
  0xc3   : > { %937 = vmatpush1.msra.mxu0 %v4282_v28  ;;  %899 = vmatprep.subr.mxu1 %v2874_v36  ;;  %v4310_v36 = vld [vmem:[%s6494_s1 + $0x250] sm:$0xff] }
  0xc4   : > { %938 = vmatprep.subr.mxu0 %v4289_v30  ;;  %900 = vmatpush2.msra.mxu1 %v2883_v38  ;;  %v4317_v38 = vld [vmem:[%s6494_s1 + $0x248] sm:$0xff] }
  0xc5   : > { %939 = vmatpush1.msra.mxu0 %v4296_v32  ;;  %901 = vmatprep.subr.mxu1 %v2892_v40  ;;  %v4324_v40 = vld [vmem:[%s6494_s1 + $0x240] sm:$0xff] }
  0xc6   : > { %940 = vmatprep.subr.mxu0 %v4303_v34  ;;  %902 = vmatpush2.msra.mxu1 %v2902_v42  ;;  %v4331_v42 = vld [vmem:[%s6494_s1 + $0x238] sm:$0xff] }
  0xc7   : > { %941 = vmatpush1.msra.mxu0 %v4310_v36  ;;  %903 = vmatprep.subr.mxu1 %v2911_v44  ;;  %v4338_v44 = vld [vmem:[%s6494_s1 + $0x230] sm:$0xff] }
  0xc8   : > { %942 = vmatprep.subr.mxu0 %v4317_v38  ;;  %904 = vmatpush2.msra.mxu1 %v2920_v46  ;;  %v2040_v46 = vld [vmem:[%s2937_s21 + $0x24] sm:$0xff] }
  0xc9   : > { %943 = vmatpush1.msra.mxu0 %v4324_v40  ;;  %905 = vmatprep.subr.mxu1 %v2929_v48  ;;  %v4346_v48 = vld [vmem:[%s6494_s1 + $0x228] sm:$0xff]  ;;  %v841_v58 = vcombine.high %v2040_v46, %v2040_v46 }
  0xca   : > { %944 = vmatprep.subr.mxu0 %v4331_v42  ;;  %906 = vmatpush2.msra.mxu1 %v2943_v50  ;;  %v4353_v50 = vld [vmem:[%s6494_s1 + $0x220] sm:$0xff] }
  0xcb   : > { %945 = vmatpush1.msra.mxu0 %v4338_v44  ;;  %907 = vmatprep.subr.mxu1 %v2952_v52  ;;  %v4360_v52 = vld [vmem:[%s6494_s1 + $0x218] sm:$0xff] }
  0xcc   : > { %946 = vmatprep.subr.mxu0 %v4346_v48  ;;  %908 = vmatpush2.msra.mxu1 %v2961_v54  ;;  %v4367_v54 = vld [vmem:[%s6494_s1 + $0x210] sm:$0xff] }
  0xcd   : > { %947 = vmatpush1.msra.mxu0 %v4353_v50  ;;  %909 = vmatprep.subr.mxu1 %v2971_v57  ;;  %v4374_v57 = vld [vmem:[%s6494_s1 + $0x208] sm:$0xff] }
  0xce   : > { %948 = vmatprep.subr.mxu0 %v4360_v52  ;;  %910 = vmatpush2.msra.mxu1 %v2981_v61  ;;  %v4381_v61 = vld [vmem:[%s6494_s1 + $0x200] sm:$0xff] }
  0xcf   : > { %949 = vmatpush1.msra.mxu0 %v4367_v54  ;;  %911 = vmatprep.subr.mxu1 %v2990_v1  ;;  %v4387_v1 = vld [vmem:[%s6494_s1 + $0x3f8] sm:$0xff] }
  0xd0   : > { %950 = vmatprep.subr.mxu0 %v4374_v57  ;;  %912 = vmatpush2.msra.mxu1 %v3001_v7  ;;  %v4394_v7 = vld [vmem:[%s6494_s1 + $0x3f0] sm:$0xff] }
  0xd1   : > { %951 = vmatpush1.msra.mxu0 %v4381_v61  ;;  %913 = vmatprep.mubr.f32.mxu1 %v841_v58  ;;  %v4401_v58 = vld [vmem:[%s6494_s1 + $0x3e8] sm:$0xff] }
  0xd2   : > { %952 = vmatprep.subr.mxu0 %v4387_v1  ;;  %991 = vmatprep.subr.mxu1 %v3015_v13  ;;  %v4408_v13 = vld [vmem:[%s6494_s1 + $0x3e0] sm:$0xff] }
  0xd3   : > { %914 = vmatmul.mubr.f32.vlgmr.msra.gmra.mxu1 %v2040_v46  ;;  %953 = vmatpush2.msra.mxu0 %v4394_v7  ;;  %v6992_v46 = vld [vmem:[#allocation22_spill] sm:$0xff] }
  0xd4   : > { %992 = vmatpush1.msra.mxu1 %v3026_v17  ;;  %954 = vmatprep.subr.mxu0 %v4401_v58  ;;  %v4415_v17 = vld [vmem:[%s6494_s1 + $0x3d8] sm:$0xff] }
  0xd5   : > { %993 = vmatprep.subr.mxu1 %v3036_v21  ;;  %955 = vmatpush2.msra.mxu0 %v4408_v13  ;;  %v4422_v21 = vld [vmem:[%s6494_s1 + $0x3d0] sm:$0xff] }
  0xd6   : > { %994 = vmatpush1.msra.mxu1 %v3048_v25  ;;  %956 = vmatprep.subr.mxu0 %v4415_v17  ;;  %v4429_v25 = vld [vmem:[%s6494_s1 + $0x3c8] sm:$0xff] }
  0xd7   : > { %995 = vmatprep.subr.mxu1 %v3060_v29  ;;  %957 = vmatpush2.msra.mxu0 %v4422_v21  ;;  %v4436_v29 = vld [vmem:[%s6494_s1 + $0x3c0] sm:$0xff] }
  0xd8   : > { %996 = vmatpush1.msra.mxu1 %v3072_v33  ;;  %958 = vmatprep.subr.mxu0 %v4429_v25  ;;  %v4443_v33 = vld [vmem:[%s6494_s1 + $0x3b8] sm:$0xff] }
  0xd9   : > { %997 = vmatprep.subr.mxu1 %v3084_v37  ;;  %959 = vmatpush2.msra.mxu0 %v4436_v29  ;;  %v4450_v37 = vld [vmem:[%s6494_s1 + $0x3b0] sm:$0xff] }
  0xda   : > { %998 = vmatpush1.msra.mxu1 %v3096_v41  ;;  %960 = vmatprep.subr.mxu0 %v4443_v33  ;;  %v4457_v41 = vld [vmem:[%s6494_s1 + $0x3a8] sm:$0xff] }
  0xdb   : > { %999 = vmatprep.subr.mxu1 %v3108_v45  ;;  %961 = vmatpush2.msra.mxu0 %v4450_v37  ;;  %v4464_v45 = vld [vmem:[%s6494_s1 + $0x3a0] sm:$0xff] }
  0xdc   : > { %1000 = vmatpush1.msra.mxu1 %v3120_v49  ;;  %962 = vmatprep.subr.mxu0 %v4457_v41  ;;  %6984 = vst [vmem:[#allocation167_spill] sm:$0xff] %v4464_v45  ;;  %v4471_v49 = vld [vmem:[%s6494_s1 + $0x398] sm:$0xff] }
  0xdd   : > { %1001 = vmatprep.subr.mxu1 %v3132_v53  ;;  %963 = vmatpush2.msra.mxu0 %v4464_v45  ;;  %6985 = vst [vmem:[#allocation168_spill] sm:$0xff] %v4471_v49  ;;  %v4478_v53 = vld [vmem:[%s6494_s1 + $0x390] sm:$0xff]  ;;  %v7022_v45 = vld [vmem:[#allocation5_spill] sm:$0xff] }
  0xde   : > { %1002 = vmatpush1.msra.mxu1 %v3144_v56  ;;  %964 = vmatprep.subr.mxu0 %v4471_v49  ;;  %6986 = vst [vmem:[#allocation169_spill] sm:$0xff] %v4478_v53  ;;  %v4485_v56 = vld [vmem:[%s6494_s1 + $0x388] sm:$0xff]  ;;  %v7021_v49 = vld [vmem:[#allocation52_spill] sm:$0xff] }
  0xdf   : > { %1003 = vmatprep.subr.mxu1 %v3156_v59  ;;  %965 = vmatpush2.msra.mxu0 %v4478_v53  ;;  %6987 = vst [vmem:[#allocation170_spill] sm:$0xff] %v4485_v56  ;;  %v4492_v59 = vld [vmem:[%s6494_s1 + $0x380] sm:$0xff]  ;;  %v7018_v53 = vld [vmem:[#allocation48_spill] sm:$0xff] }
  0xe0   : > { %1004 = vmatpush1.msra.mxu1 %v3168_v5  ;;  %966 = vmatprep.subr.mxu0 %v4485_v56  ;;  %6988 = vst [vmem:[#allocation171_spill] sm:$0xff] %v4492_v59  ;;  %v4499_v5 = vld [vmem:[%s6494_s1 + $0x378] sm:$0xff]  ;;  %v7017_v56 = vld [vmem:[#allocation3_spill] sm:$0xff] }
  0xe1   : > { %1005 = vmatprep.subr.mxu1 %v3180_v51  ;;  %967 = vmatpush2.msra.mxu0 %v4492_v59  ;;  %6989 = vst [vmem:[#allocation172_spill] sm:$0xff] %v4499_v5  ;;  %v4506_v51 = vld [vmem:[%s6494_s1 + $0x370] sm:$0xff]  ;;  %v7016_v59 = vld [vmem:[#allocation46_spill] sm:$0xff] }
  0xe2   : > { %1006 = vmatpush1.msra.mxu1 %v3192_v47  ;;  %968 = vmatprep.subr.mxu0 %v4499_v5  ;;  %6990 = vst [vmem:[#allocation173_spill] sm:$0xff] %v4506_v51  ;;  %v4513_v47 = vld [vmem:[%s6494_s1 + $0x368] sm:$0xff]  ;;  %v7010_v5 = vld [vmem:[#allocation40_spill] sm:$0xff] }
  0xe3   : > { %1007 = vmatprep.subr.mxu1 %v3204_v43  ;;  %969 = vmatpush2.msra.mxu0 %v4506_v51  ;;  %6991 = vst [vmem:[#allocation174_spill] sm:$0xff] %v4513_v47  ;;  %v4520_v43 = vld [vmem:[%s6494_s1 + $0x360] sm:$0xff] }
  0xe4   : > { %1008 = vmatpush1.msra.mxu1 %v3216_v39  ;;  %970 = vmatprep.subr.mxu0 %v4513_v47  ;;  %6993 = vst [vmem:[#allocation22_spill] sm:$0xff] %v4520_v43  ;;  %v4527_v39 = vld [vmem:[%s6494_s1 + $0x358] sm:$0xff]  ;;  %v6996_v47 = vld [vmem:[#allocation26_spill] sm:$0xff] }
  0xe5   : > { %1009 = vmatprep.subr.mxu1 %v6992_v46  ;;  %971 = vmatpush2.msra.mxu0 %v4520_v43  ;;  %6995 = vst [vmem:[#allocation24_spill] sm:$0xff] %v4527_v39  ;;  %v4534_v46 = vld [vmem:[%s6494_s1 + $0x350] sm:$0xff]  ;;  %v7000_v51 = vld [vmem:[#allocation30_spill] sm:$0xff] }
  0xe6   : > { %1010 = vmatpush1.msra.mxu1 %v6994_v27  ;;  %972 = vmatprep.subr.mxu0 %v4527_v39  ;;  %6997 = vst [vmem:[#allocation26_spill] sm:$0xff] %v4534_v46  ;;  %v6998_v43 = vld [vmem:[#allocation28_spill] sm:$0xff]  ;;  %v4541_v27 = vld [vmem:[%s6494_s1 + $0x348] sm:$0xff] }
  0xe7   : > { %1011 = vmatprep.subr.mxu1 %v6996_v47  ;;  %973 = vmatpush2.msra.mxu0 %v4534_v46  ;;  %6999 = vst [vmem:[#allocation28_spill] sm:$0xff] %v4541_v27  ;;  %v4548_v47 = vld [vmem:[%s6494_s1 + $0x340] sm:$0xff]  ;;  %v7002_v39 = vld [vmem:[#allocation32_spill] sm:$0xff] }
  0xe8   : > { %1012 = vmatpush1.msra.mxu1 %v6998_v43  ;;  %974 = vmatprep.subr.mxu0 %v4541_v27  ;;  %7001 = vst [vmem:[#allocation30_spill] sm:$0xff] %v4548_v47  ;;  %v4555_v43 = vld [vmem:[%s6494_s1 + $0x338] sm:$0xff]  ;;  %v7004_v46 = vld [vmem:[#allocation34_spill] sm:$0xff]  ;;  %v2041_v27 = vld [vmem:[%s2937_s21 + $0x2c] sm:$0xff] }
  0xe9   : > { %1013 = vmatprep.subr.mxu1 %v7000_v51  ;;  %975 = vmatpush2.msra.mxu0 %v4548_v47  ;;  %7003 = vst [vmem:[#allocation32_spill] sm:$0xff] %v4555_v43  ;;  %v4563_v51 = vld [vmem:[%s6494_s1 + $0x330] sm:$0xff] }
  0xea   : > { %1014 = vmatpush1.msra.mxu1 %v7002_v39  ;;  %976 = vmatprep.subr.mxu0 %v4555_v43  ;;  %7005 = vst [vmem:[#allocation34_spill] sm:$0xff] %v4563_v51  ;;  %v7006_v47 = vld [vmem:[#allocation36_spill] sm:$0xff]  ;;  %v4570_v39 = vld [vmem:[%s6494_s1 + $0x328] sm:$0xff]  ;;  %v7008_v43 = vld [vmem:[#allocation38_spill] sm:$0xff] }
  0xeb   : > { %1015 = vmatprep.subr.mxu1 %v7004_v46  ;;  %977 = vmatpush2.msra.mxu0 %v4563_v51  ;;  %7007 = vst [vmem:[#allocation36_spill] sm:$0xff] %v4570_v39  ;;  %v4577_v46 = vld [vmem:[%s6494_s1 + $0x320] sm:$0xff]  ;;  %v842_v51 = vcombine.high %v2041_v27, %v2041_v27 }
  0xec   : > { %1016 = vmatpush1.msra.mxu1 %v7006_v47  ;;  %978 = vmatprep.subr.mxu0 %v4570_v39  ;;  %7009 = vst [vmem:[#allocation38_spill] sm:$0xff] %v4577_v46  ;;  %v4584_v47 = vld [vmem:[%s6494_s1 + $0x318] sm:$0xff]  ;;  %v7012_v39 = vld [vmem:[#allocation42_spill] sm:$0xff] }
  0xed   : > { %1017 = vmatprep.subr.mxu1 %v7008_v43  ;;  %979 = vmatpush2.msra.mxu0 %v4577_v46  ;;  %7011 = vst [vmem:[#allocation40_spill] sm:$0xff] %v4584_v47  ;;  %v4591_v43 = vld [vmem:[%s6494_s1 + $0x310] sm:$0xff] }
  0xee   : > { %1018 = vmatpush1.msra.mxu1 %v7010_v5  ;;  %980 = vmatprep.subr.mxu0 %v4584_v47  ;;  %7013 = vst [vmem:[#allocation42_spill] sm:$0xff] %v4591_v43  ;;  %v7014_v46 = vld [vmem:[#allocation44_spill] sm:$0xff]  ;;  %v7015_v5 = vld [vmem:[#allocation2_spill] sm:$0xff] }
  0xef   : > { %1019 = vmatprep.subr.mxu1 %v7012_v39  ;;  %981 = vmatpush2.msra.mxu0 %v4591_v43  ;;  %v7019_v39 = vld [vmem:[#allocation50_spill] sm:$0xff]  ;;  %v7020_v47 = vld [vmem:[#allocation4_spill] sm:$0xff] }
  0xf0   : > { %1020 = vmatpush1.msra.mxu1 %v7014_v46  ;;  %982 = vmatprep.subr.mxu0 %v7015_v5  ;;  %v7023_v43 = vld [vmem:[#allocation54_spill] sm:$0xff]  ;;  %v7025_v5 = vld [vmem:[#allocation56_spill] sm:$0xff] }
  0xf1   : > { %1021 = vmatprep.subr.mxu1 %v7016_v59  ;;  %983 = vmatpush2.msra.mxu0 %v7017_v56  ;;  %v7024_v46 = vld [vmem:[#allocation6_spill] sm:$0xff]  ;;  %v7026_v59 = vld [vmem:[#allocation7_spill] sm:$0xff] }
  0xf2   : > { %984 = vmatprep.mubr.f32.mxu0 %v842_v51  ;;  %1022 = vmatpush1.msra.mxu1 %v7018_v53  ;;  %v7027_v56 = vld [vmem:[#allocation58_spill] sm:$0xff]  ;;  %v7028_v53 = vld [vmem:[#allocation8_spill] sm:$0xff]  ;;  %v7030_v51 = vld [vmem:[#allocation9_spill] sm:$0xff] }
  0xf3   : > { %985 = vmatmul.mubr.f32.vlgmr.msra.gmra.mxu0 %v2041_v27  ;;  %1023 = vmatprep.subr.mxu1 %v7019_v39  ;;  %v7029_v27 = vld [vmem:[#allocation60_spill] sm:$0xff]  ;;  %v7035_v39 = vld [vmem:[#allocation66_spill] sm:$0xff] }
  0xf4   : > { %1062 = vmatprep.subr.mxu0 %v7020_v47  ;;  %1024 = vmatpush2.msra.mxu1 %v7021_v49  ;;  %v7031_v47 = vld [vmem:[#allocation62_spill] sm:$0xff] }
  0xf5   : > { %1063 = vmatpush1.msra.mxu0 %v7022_v45  ;;  %1025 = vmatprep.subr.mxu1 %v7023_v43  ;;  %v7032_v49 = vld [vmem:[#allocation10_spill] sm:$0xff]  ;;  %v7033_v45 = vld [vmem:[#allocation64_spill] sm:$0xff]  ;;  %v7034_v43 = vld [vmem:[#allocation11_spill] sm:$0xff] }
  0xf6   : > { %1064 = vmatprep.subr.mxu0 %v7024_v46  ;;  %1026 = vmatpush2.msra.mxu1 %v7025_v5  ;;  %v7036_v46 = vld [vmem:[#allocation12_spill] sm:$0xff] }
  0xf7   : > { %1065 = vmatpush1.msra.mxu0 %v7026_v59  ;;  %1027 = vmatprep.subr.mxu1 %v7027_v56  ;;  %v7037_v5 = vld [vmem:[#allocation68_spill] sm:$0xff]  ;;  %v7038_v59 = vld [vmem:[#allocation13_spill] sm:$0xff]  ;;  %v7039_v56 = vld [vmem:[#allocation70_spill] sm:$0xff] }
  0xf8   : > { %1066 = vmatprep.subr.mxu0 %v7028_v53  ;;  %1028 = vmatpush2.msra.mxu1 %v7029_v27  ;;  %v7040_v53 = vld [vmem:[#allocation14_spill] sm:$0xff]  ;;  %v7041_v27 = vld [vmem:[#allocation72_spill] sm:$0xff] }
  0xf9   : > { %1067 = vmatpush1.msra.mxu0 %v7030_v51  ;;  %1029 = vmatprep.subr.mxu1 %v7031_v47  ;;  %v7042_v51 = vld [vmem:[#allocation15_spill] sm:$0xff]  ;;  %v7043_v47 = vld [vmem:[#allocation74_spill] sm:$0xff] }
  0xfa   : > { %1068 = vmatprep.subr.mxu0 %v7032_v49  ;;  %1030 = vmatpush2.msra.mxu1 %v7033_v45  ;;  %v7044_v49 = vld [vmem:[#allocation16_spill] sm:$0xff] }
  0xfb   : > { %1069 = vmatpush1.msra.mxu0 %v7034_v43  ;;  %1031 = vmatprep.subr.mxu1 %v7035_v39  ;;  %v7045_v45 = vld [vmem:[#allocation76_spill] sm:$0xff]  ;;  %v7046_v43 = vld [vmem:[#allocation17_spill] sm:$0xff]  ;;  %v7047_v39 = vld [vmem:[#allocation78_spill] sm:$0xff] }
  0xfc   : > { %1070 = vmatprep.subr.mxu0 %v7036_v46  ;;  %1032 = vmatpush2.msra.mxu1 %v7037_v5  ;;  %v7048_v46 = vld [vmem:[#allocation18_spill] sm:$0xff]  ;;  %v7049_v5 = vld [vmem:[#allocation80_spill] sm:$0xff] }
  0xfd   : > { %1071 = vmatpush1.msra.mxu0 %v7038_v59  ;;  %1033 = vmatprep.subr.mxu1 %v7039_v56  ;;  %v7050_v59 = vld [vmem:[#allocation19_spill] sm:$0xff]  ;;  %v7051_v56 = vld [vmem:[#allocation82_spill] sm:$0xff] }
  0xfe   : > { %1072 = vmatprep.subr.mxu0 %v7040_v53  ;;  %1034 = vmatpush2.msra.mxu1 %v7041_v27  ;;  %v7052_v53 = vld [vmem:[#allocation20_spill] sm:$0xff] }
  0xff   : > { %1073 = vmatpush1.msra.mxu0 %v7042_v51  ;;  %1035 = vmatprep.subr.mxu1 %v7043_v47  ;;  %v7053_v27 = vld [vmem:[#allocation84_spill] sm:$0xff]  ;;  %v7054_v51 = vld [vmem:[#allocation21_spill] sm:$0xff]  ;;  %v7055_v47 = vld [vmem:[#allocation86_spill] sm:$0xff] }
 0x100   : > { %1074 = vmatprep.subr.mxu0 %v7044_v49  ;;  %1036 = vmatpush2.msra.mxu1 %v7045_v45  ;;  %v7056_v49 = vld [vmem:[#allocation23_spill] sm:$0xff]  ;;  %v7057_v45 = vld [vmem:[#allocation88_spill] sm:$0xff] }
 0x101   : > { %1075 = vmatpush1.msra.mxu0 %v7046_v43  ;;  %1037 = vmatprep.subr.mxu1 %v7047_v39  ;;  %v7058_v43 = vld [vmem:[#allocation25_spill] sm:$0xff]  ;;  %v7059_v39 = vld [vmem:[#allocation90_spill] sm:$0xff] }
 0x102   : > { %1076 = vmatprep.subr.mxu0 %v7048_v46  ;;  %1038 = vmatpush2.msra.mxu1 %v7049_v5  ;;  %v7060_v46 = vld [vmem:[#allocation27_spill] sm:$0xff]  ;;  %v7061_v5 = vld [vmem:[#allocation92_spill] sm:$0xff] }
 0x103   : > { %1077 = vmatpush1.msra.mxu0 %v7050_v59  ;;  %1039 = vmatprep.subr.mxu1 %v7051_v56  ;;  %v7062_v59 = vld [vmem:[#allocation29_spill] sm:$0xff]  ;;  %v7063_v56 = vld [vmem:[#allocation94_spill] sm:$0xff] }
 0x104   : > { %1078 = vmatprep.subr.mxu0 %v7052_v53  ;;  %1040 = vmatpush2.msra.mxu1 %v7053_v27  ;;  %v7064_v53 = vld [vmem:[#allocation31_spill] sm:$0xff]  ;;  %v7065_v27 = vld [vmem:[#allocation96_spill] sm:$0xff] }
 0x105   : > { %1079 = vmatpush1.msra.mxu0 %v7054_v51  ;;  %1041 = vmatprep.subr.mxu1 %v7055_v47  ;;  %v7066_v51 = vld [vmem:[#allocation33_spill] sm:$0xff]  ;;  %v7067_v47 = vld [vmem:[#allocation98_spill] sm:$0xff] }
 0x106   : > { %1080 = vmatprep.subr.mxu0 %v7056_v49  ;;  %1042 = vmatpush2.msra.mxu1 %v7057_v45  ;;  %v7068_v49 = vld [vmem:[#allocation35_spill] sm:$0xff]  ;;  %v2042_v45 = vld [vmem:[%s2937_s21 + $0x34] sm:$0xff] }
 0x107   : > { %1081 = vmatpush1.msra.mxu0 %v7058_v43  ;;  %1043 = vmatprep.subr.mxu1 %v7059_v39  ;;  %v7069_v43 = vld [vmem:[#allocation100_spill] sm:$0xff]  ;;  %v7070_v39 = vld [vmem:[#allocation37_spill] sm:$0xff] }
 0x108   : > { %1082 = vmatprep.subr.mxu0 %v7060_v46  ;;  %1044 = vmatpush2.msra.mxu1 %v7061_v5  ;;  %v7071_v46 = vld [vmem:[#allocation102_spill] sm:$0xff]  ;;  %v7072_v5 = vld [vmem:[#allocation39_spill] sm:$0xff] }
 0x109   : > { %1083 = vmatpush1.msra.mxu0 %v7062_v59  ;;  %1045 = vmatprep.subr.mxu1 %v7063_v56  ;;  %v7073_v59 = vld [vmem:[#allocation104_spill] sm:$0xff]  ;;  %v7074_v56 = vld [vmem:[#allocation41_spill] sm:$0xff] }
 0x10a   : > { %1084 = vmatprep.subr.mxu0 %v7064_v53  ;;  %1046 = vmatpush2.msra.mxu1 %v7065_v27  ;;  %v843_v53 = vcombine.high %v2042_v45, %v2042_v45  ;;  %v7075_v27 = vld [vmem:[#allocation43_spill] sm:$0xff] }
 0x10b   : > { %1085 = vmatpush1.msra.mxu0 %v7066_v51  ;;  %1047 = vmatprep.subr.mxu1 %v7067_v47  ;;  %v7076_v51 = vld [vmem:[#allocation45_spill] sm:$0xff]  ;;  %v7077_v47 = vld [vmem:[#allocation47_spill] sm:$0xff] }
 0x10c   : > { %1086 = vmatprep.subr.mxu0 %v7068_v49  ;;  %1048 = vmatpush2.msra.mxu1 %v7069_v43  ;;  %v7078_v49 = vld [vmem:[#allocation49_spill] sm:$0xff]  ;;  %v7079_v43 = vld [vmem:[#allocation51_spill] sm:$0xff] }
 0x10d   : > { %1087 = vmatpush1.msra.mxu0 %v7070_v39  ;;  %1049 = vmatprep.subr.mxu1 %v7071_v46  ;;  %v7082_v39 = vld [vmem:[#allocation110_spill] sm:$0xff]  ;;  %v7084_v46 = vld [vmem:[#allocation112_spill] sm:$0xff] }
 0x10e   : > { %1088 = vmatprep.subr.mxu0 %v7072_v5  ;;  %1050 = vmatpush2.msra.mxu1 %v7073_v59  ;;  %v7086_v5 = vld [vmem:[#allocation114_spill] sm:$0xff]  ;;  %v7088_v59 = vld [vmem:[#allocation116_spill] sm:$0xff] }
 0x10f   : > { %1089 = vmatpush1.msra.mxu0 %v7074_v56  ;;  %1051 = vmatprep.subr.mxu1 %v3733_v11  ;;  %v7080_v11 = vld [vmem:[#allocation53_spill] sm:$0xff]  ;;  %v7090_v56 = vld [vmem:[#allocation118_spill] sm:$0xff] }
 0x110   : > { %1090 = vmatprep.subr.mxu0 %v7075_v27  ;;  %1052 = vmatpush2.msra.mxu1 %v3745_v3  ;;  %v7081_v3 = vld [vmem:[#allocation55_spill] sm:$0xff] }
 0x111   : > { %1091 = vmatpush1.msra.mxu0 %v7076_v51  ;;  %1053 = vmatprep.subr.mxu1 %v3758_v19  ;;  %v7083_v19 = vld [vmem:[#allocation57_spill] sm:$0xff]  ;;  %v7093_v27 = vld [vmem:[#allocation67_spill] sm:$0xff]  ;;  %v7094_v51 = vld [vmem:[#allocation122_spill] sm:$0xff] }
 0x112   : > { %1092 = vmatprep.subr.mxu0 %v7077_v47  ;;  %1054 = vmatpush2.msra.mxu1 %v3770_v15  ;;  %v7085_v15 = vld [vmem:[#allocation59_spill] sm:$0xff]  ;;  %v7095_v47 = vld [vmem:[#allocation69_spill] sm:$0xff] }
 0x113   : > { %1055 = vmatprep.mubr.f32.mxu1 %v843_v53  ;;  %1093 = vmatpush1.msra.mxu0 %v7078_v49  ;;  %v7092_v53 = vld [vmem:[#allocation120_spill] sm:$0xff] }
 0x114   : > { %1056 = vmatmul.mubr.f32.vlgmr.msra.gmra.mxu1 %v2042_v45  ;;  %1094 = vmatprep.subr.mxu0 %v7079_v43  ;;  %v7087_v45 = vld [vmem:[#allocation61_spill] sm:$0xff]  ;;  %v7096_v49 = vld [vmem:[#allocation124_spill] sm:$0xff]  ;;  %v7097_v43 = vld [vmem:[#allocation71_spill] sm:$0xff] }
 0x115   : > { %1133 = vmatprep.subr.mxu1 %v3784_v63  ;;  %1095 = vmatpush2.msra.mxu0 %v7080_v11  ;;  %v7089_v63 = vld [vmem:[#allocation63_spill] sm:$0xff]  ;;  %v7098_v11 = vld [vmem:[#allocation126_spill] sm:$0xff] }
 0x116   : > { %1134 = vmatpush1.msra.mxu1 %v3791_v9  ;;  %1096 = vmatprep.subr.mxu0 %v7081_v3  ;;  %v7091_v9 = vld [vmem:[#allocation65_spill] sm:$0xff] }
 0x117   : > { %1135 = vmatprep.subr.mxu1 %v7082_v39  ;;  %1097 = vmatpush2.msra.mxu0 %v7083_v19  ;;  %v7099_v3 = vld [vmem:[#allocation73_spill] sm:$0xff]  ;;  %v7100_v39 = vld [vmem:[#allocation128_spill] sm:$0xff]  ;;  %v7101_v19 = vld [vmem:[#allocation75_spill] sm:$0xff] }
 0x118   : > { %1136 = vmatpush1.msra.mxu1 %v7084_v46  ;;  %1098 = vmatprep.subr.mxu0 %v7085_v15  ;;  %v7102_v46 = vld [vmem:[#allocation130_spill] sm:$0xff]  ;;  %v7103_v15 = vld [vmem:[#allocation77_spill] sm:$0xff] }
 0x119   : > { %1137 = vmatprep.subr.mxu1 %v7086_v5  ;;  %1099 = vmatpush2.msra.mxu0 %v7087_v45  ;;  %v7104_v5 = vld [vmem:[#allocation132_spill] sm:$0xff]  ;;  %v7105_v45 = vld [vmem:[#allocation79_spill] sm:$0xff] }
 0x11a   : > { %1138 = vmatpush1.msra.mxu1 %v7088_v59  ;;  %1100 = vmatprep.subr.mxu0 %v7089_v63  ;;  %v7106_v59 = vld [vmem:[#allocation134_spill] sm:$0xff]  ;;  %v7107_v63 = vld [vmem:[#allocation81_spill] sm:$0xff] }
 0x11b   : > { %1139 = vmatprep.subr.mxu1 %v7090_v56  ;;  %1101 = vmatpush2.msra.mxu0 %v7091_v9  ;;  %v7108_v56 = vld [vmem:[#allocation136_spill] sm:$0xff]  ;;  %v7109_v9 = vld [vmem:[#allocation83_spill] sm:$0xff] }
 0x11c   : > { %1140 = vmatpush1.msra.mxu1 %v7092_v53  ;;  %1102 = vmatprep.subr.mxu0 %v7093_v27  ;;  %v7110_v53 = vld [vmem:[#allocation138_spill] sm:$0xff]  ;;  %v7111_v27 = vld [vmem:[#allocation85_spill] sm:$0xff] }
 0x11d   : > { %1141 = vmatprep.subr.mxu1 %v7094_v51  ;;  %1103 = vmatpush2.msra.mxu0 %v7095_v47  ;;  %v7112_v51 = vld [vmem:[#allocation140_spill] sm:$0xff]  ;;  %v7113_v47 = vld [vmem:[#allocation87_spill] sm:$0xff] }
 0x11e   : > { %1142 = vmatpush1.msra.mxu1 %v7096_v49  ;;  %1104 = vmatprep.subr.mxu0 %v7097_v43  ;;  %v7114_v49 = vld [vmem:[#allocation142_spill] sm:$0xff]  ;;  %v7115_v43 = vld [vmem:[#allocation89_spill] sm:$0xff] }
 0x11f   : > { %1143 = vmatprep.subr.mxu1 %v7098_v11  ;;  %1105 = vmatpush2.msra.mxu0 %v7099_v3  ;;  %v7116_v11 = vld [vmem:[#allocation144_spill] sm:$0xff]  ;;  %v7117_v3 = vld [vmem:[#allocation91_spill] sm:$0xff] }
 0x120   : > { %1144 = vmatpush1.msra.mxu1 %v7100_v39  ;;  %1106 = vmatprep.subr.mxu0 %v7101_v19  ;;  %v7118_v39 = vld [vmem:[#allocation146_spill] sm:$0xff]  ;;  %v7119_v19 = vld [vmem:[#allocation93_spill] sm:$0xff] }
 0x121   : > { %1145 = vmatprep.subr.mxu1 %v7102_v46  ;;  %1107 = vmatpush2.msra.mxu0 %v7103_v15  ;;  %v7120_v46 = vld [vmem:[#allocation148_spill] sm:$0xff]  ;;  %v7121_v15 = vld [vmem:[#allocation95_spill] sm:$0xff] }
 0x122   : > { %1146 = vmatpush1.msra.mxu1 %v7104_v5  ;;  %1108 = vmatprep.subr.mxu0 %v7105_v45  ;;  %v7122_v5 = vld [vmem:[#allocation150_spill] sm:$0xff]  ;;  %v7123_v45 = vld [vmem:[#allocation97_spill] sm:$0xff] }
 0x123   : > { %1147 = vmatprep.subr.mxu1 %v7106_v59  ;;  %1109 = vmatpush2.msra.mxu0 %v7107_v63  ;;  %v7124_v59 = vld [vmem:[#allocation152_spill] sm:$0xff]  ;;  %v7125_v63 = vld [vmem:[#allocation99_spill] sm:$0xff] }
 0x124   : > { %1148 = vmatpush1.msra.mxu1 %v7108_v56  ;;  %1110 = vmatprep.subr.mxu0 %v7109_v9  ;;  %v7126_v56 = vld [vmem:[#allocation154_spill] sm:$0xff] }
 0x125   : > { %1149 = vmatprep.subr.mxu1 %v7110_v53  ;;  %1111 = vmatpush2.msra.mxu0 %v7111_v27  ;;  %v2043_v9 = vld [vmem:[%s2937_s21 + $0x3c] sm:$0xff]  ;;  %v7128_v27 = vld [vmem:[#allocation156_spill] sm:$0xff] }
 0x126   : > { %1150 = vmatpush1.msra.mxu1 %v7112_v51  ;;  %1112 = vmatprep.subr.mxu0 %v7113_v47  ;;  %v7127_v53 = vld [vmem:[#allocation101_spill] sm:$0xff]  ;;  %v7129_v51 = vld [vmem:[#allocation103_spill] sm:$0xff]  ;;  %v7130_v47 = vld [vmem:[#allocation158_spill] sm:$0xff] }
 0x127   : > { %1151 = vmatprep.subr.mxu1 %v7114_v49  ;;  %1113 = vmatpush2.msra.mxu0 %v7115_v43  ;;  %v7131_v49 = vld [vmem:[#allocation105_spill] sm:$0xff]  ;;  %v7132_v43 = vld [vmem:[#allocation160_spill] sm:$0xff] }
 0x128   : > { %1152 = vmatpush1.msra.mxu1 %v7116_v11  ;;  %1114 = vmatprep.subr.mxu0 %v7117_v3  ;;  %v844_v11 = vcombine.high %v2043_v9, %v2043_v9  ;;  %v7133_v3 = vld [vmem:[#allocation106_spill] sm:$0xff] }
 0x129   : > { %1153 = vmatprep.subr.mxu1 %v7118_v39  ;;  %1115 = vmatpush2.msra.mxu0 %v7119_v19  ;;  %v7134_v39 = vld [vmem:[#allocation162_spill] sm:$0xff]  ;;  %v7135_v19 = vld [vmem:[#allocation107_spill] sm:$0xff] }
 0x12a   : > { %1154 = vmatpush1.msra.mxu1 %v7120_v46  ;;  %1116 = vmatprep.subr.mxu0 %v7121_v15  ;;  %v7136_v46 = vld [vmem:[#allocation164_spill] sm:$0xff] }
 0x12b   : > { %1155 = vmatprep.subr.mxu1 %v7122_v5  ;;  %1117 = vmatpush2.msra.mxu0 %v7123_v45  ;;  %v7137_v15 = vld [vmem:[#allocation108_spill] sm:$0xff]  ;;  %v7138_v5 = vld [vmem:[#allocation109_spill] sm:$0xff]  ;;  %v2044_v45 = vld [vmem:[%s2937_s21 + $0x44] sm:$0xf] }
 0x12c   : > { %1156 = vmatpush1.msra.mxu1 %v7124_v59  ;;  %1118 = vmatprep.subr.mxu0 %v7125_v63  ;;  %v7139_v59 = vmov 0.0   ;;  %v7140_v63 = vld [vmem:[#allocation111_spill] sm:$0xff] }
 0x12d   : > { %1157 = vmatprep.subr.mxu1 %v7126_v56  ;;  %1119 = vmatpush2.msra.mxu0 %v7127_v53  ;;  %v7141_v56 = vld [vmem:[#allocation113_spill] sm:$0xff]  ;;  %v7142_v53 = vld [vmem:[#allocation115_spill] sm:$0xff] }
 0x12e   : > { %1158 = vmatpush1.msra.mxu1 %v7128_v27  ;;  %1120 = vmatprep.subr.mxu0 %v7129_v51  ;;  %v4913_v27 = vld [vmem:[%s6494_s1 + $0x180] sm:$0xff]  ;;  %v7173_v51 = vld [vmem:[#allocation171_spill] sm:$0xff] }
 0x12f   : > { %1159 = vmatprep.subr.mxu1 %v7130_v47  ;;  %1121 = vmatpush2.msra.mxu0 %v7131_v49  ;;  %v4920_v47 = vld [vmem:[%s6494_s1 + $0x178] sm:$0xff]  ;;  %v7174_v49 = vld [vmem:[#allocation172_spill] sm:$0xff] }
 0x130   : > { %1160 = vmatpush1.msra.mxu1 %v7132_v43  ;;  %1122 = vmatprep.subr.mxu0 %v7133_v3  ;;  %v4927_v43 = vld [vmem:[%s6494_s1 + $0x170] sm:$0xff]  ;;  %v4934_v3 = vld [vmem:[%s6494_s1 + $0x168] sm:$0xff] }
 0x131   : > { %1161 = vmatprep.subr.mxu1 %v7134_v39  ;;  %1123 = vmatpush2.msra.mxu0 %v7135_v19  ;;  %v7176_v39 = vld [vmem:[#allocation174_spill] sm:$0xff] }
 0x132   : > { %1162 = vmatpush1.msra.mxu1 %v7136_v46  ;;  %1124 = vmatprep.subr.mxu0 %v7137_v15  ;;  %v4941_v19 = vld [vmem:[%s6494_s1 + $0x160] sm:$0xff]  ;;  %v4948_v15 = vld [vmem:[%s6494_s1 + $0x158] sm:$0xff] }
 0x133   : > { %1163 = vmatprep.subr.mxu1 %v4132_v55  ;;  %1125 = vmatpush2.msra.mxu0 %v7138_v5  ;;  %v7143_v55 = vld [vmem:[#allocation117_spill] sm:$0xff]  ;;  %v7177_v46 = vld [vmem:[#allocation22_spill] sm:$0xff]  ;;  %v7178_v5 = vld [vmem:[#allocation24_spill] sm:$0xff] }
 0x134   : > { %1126 = vmatprep.mubr.f32.mxu0 %v844_v11  ;;  %1164 = vmatpush1.msra.mxu1 %v4144_v23  ;;  %v7144_v23 = vld [vmem:[#allocation119_spill] sm:$0xff]  ;;  %v7175_v11 = vld [vmem:[#allocation173_spill] sm:$0xff] }
 0x135   : > { %1127 = vmatmul.mubr.f32.vlgmr.msra.gmra.mxu0 %v2043_v9  ;;  %1197 = vmatprep.mubr.f32.mxu1 %v7139_v59  ;;  %v7145_v9 = vld [vmem:[#allocation121_spill] sm:$0xff] }
 0x136   : > { %1224 = vmatprep.subr.mxu0 %v7140_v63  ;;  %1295 = vmatprep.subr.mxu1 %v4163_v31  ;;  %v7146_v31 = vld [vmem:[#allocation123_spill] sm:$0xff]  ;;  %v7179_v63 = vld [vmem:[#allocation26_spill] sm:$0xff] }
 0x137   : > { %1198 = vmatmul.mubr.f32.vlgmr.msra.gmra.mxu1 %v2044_v45  ;;  %1225 = vmatpush1.msra.mxu0 %v7141_v56  ;;  %v4955_v45 = vld [vmem:[%s6494_s1 + $0x150] sm:$0xff]  ;;  %v4962_v56 = vld [vmem:[%s6494_s1 + $0x148] sm:$0xff] }
 0x138   : > { %1296 = vmatpush1.msra.mxu1 %v4170_v60  ;;  %1226 = vmatprep.subr.mxu0 %v7142_v53  ;;  %v7147_v60 = vld [vmem:[#allocation125_spill] sm:$0xff]  ;;  %v7180_v53 = vld [vmem:[#allocation28_spill] sm:$0xff] }
 0x139   : > { %1297 = vmatprep.subr.mxu1 %v4177_v62  ;;  %1227 = vmatpush1.msra.mxu0 %v7143_v55  ;;  %v7148_v62 = vld [vmem:[#allocation127_spill] sm:$0xff]  ;;  %v4969_v55 = vld [vmem:[%s6494_s1 + $0x140] sm:$0xff] }
 0x13a   : > { %1298 = vmatpush1.msra.mxu1 %v4184_v0  ;;  %1228 = vmatprep.subr.mxu0 %v7144_v23  ;;  %v7149_v0 = vld [vmem:[#allocation129_spill] sm:$0xff]  ;;  %v7181_v23 = vld [vmem:[#allocation30_spill] sm:$0xff] }
 0x13b   : > { %1299 = vmatprep.subr.mxu1 %v4191_v2  ;;  %1229 = vmatpush1.msra.mxu0 %v7145_v9  ;;  %v7150_v2 = vld [vmem:[#allocation131_spill] sm:$0xff]  ;;  %v4976_v9 = vld [vmem:[%s6494_s1 + $0x138] sm:$0xff] }
 0x13c   : > { %1300 = vmatpush1.msra.mxu1 %v4198_v4  ;;  %1230 = vmatprep.subr.mxu0 %v7146_v31  ;;  %v7151_v4 = vld [vmem:[#allocation133_spill] sm:$0xff]  ;;  %v7182_v31 = vld [vmem:[#allocation32_spill] sm:$0xff] }
 0x13d   : > { %1301 = vmatprep.subr.mxu1 %v4205_v6  ;;  %1231 = vmatpush1.msra.mxu0 %v7147_v60  ;;  %v7152_v6 = vld [vmem:[#allocation135_spill] sm:$0xff] }
 0x13e   : > { %1302 = vmatpush1.msra.mxu1 %v4212_v8  ;;  %1232 = vmatprep.subr.mxu0 %v7148_v62  ;;  %v7153_v8 = vld [vmem:[#allocation137_spill] sm:$0xff]  ;;  %v2045_v60 = vld [vmem:[%s2937_s21 + $0x48] sm:$0xff]  ;;  %v4984_v62 = vld [vmem:[%s6494_s1 + $0x130] sm:$0xff] }
 0x13f   : > { %1303 = vmatprep.subr.mxu1 %v4219_v10  ;;  %1233 = vmatpush1.msra.mxu0 %v7149_v0  ;;  %v7154_v10 = vld [vmem:[#allocation139_spill] sm:$0xff]  ;;  %v7183_v0 = vld [vmem:[#allocation34_spill] sm:$0xff] }
 0x140   : > { %1304 = vmatpush1.msra.mxu1 %v4226_v12  ;;  %1234 = vmatprep.subr.mxu0 %v7150_v2  ;;  %v7155_v12 = vld [vmem:[#allocation141_spill] sm:$0xff]  ;;  %v2046_v2 = vld [vmem:[%s2937_s21 + $0x50] sm:$0xff] }
 0x141   : > { %1305 = vmatprep.subr.mxu1 %v4233_v14  ;;  %1235 = vmatpush1.msra.mxu0 %v7151_v4  ;;  %v7156_v14 = vld [vmem:[#allocation143_spill] sm:$0xff] }
 0x142   : > { %1306 = vmatpush1.msra.mxu1 %v4240_v16  ;;  %1236 = vmatprep.subr.mxu0 %v7152_v6  ;;  %v7157_v16 = vld [vmem:[#allocation145_spill] sm:$0xff]  ;;  %v4992_v4 = vld [vmem:[%s6494_s1 + $0x128] sm:$0xff]  ;;  %v7184_v6 = vld [vmem:[#allocation36_spill] sm:$0xff] }
 0x143   : > { %1307 = vmatprep.subr.mxu1 %v4247_v18  ;;  %1237 = vmatpush1.msra.mxu0 %v7153_v8  ;;  %v7158_v18 = vld [vmem:[#allocation147_spill] sm:$0xff]  ;;  %v4999_v8 = vld [vmem:[%s6494_s1 + $0x120] sm:$0xff] }
 0x144   : > { %1308 = vmatpush1.msra.mxu1 %v4254_v20  ;;  %1238 = vmatprep.subr.mxu0 %v7154_v10  ;;  %v7159_v20 = vld [vmem:[#allocation149_spill] sm:$0xff]  ;;  %v7185_v10 = vld [vmem:[#allocation38_spill] sm:$0xff] }
 0x145   : > { %1309 = vmatprep.subr.mxu1 %v4261_v22  ;;  %1239 = vmatpush1.msra.mxu0 %v7155_v12  ;;  %v7160_v22 = vld [vmem:[#allocation151_spill] sm:$0xff]  ;;  %v1216_v12 = vcombine.high %v2045_v60, %v2045_v60 }
 0x146   : > { %1310 = vmatpush1.msra.mxu1 %v4268_v24  ;;  %1240 = vmatprep.subr.mxu0 %v7156_v14  ;;  %v7161_v24 = vld [vmem:[#allocation153_spill] sm:$0xff] }
 0x147   : > { %1311 = vmatprep.subr.mxu1 %v4275_v26  ;;  %1241 = vmatpush1.msra.mxu0 %v7157_v16  ;;  %v7162_v26 = vld [vmem:[#allocation155_spill] sm:$0xff]  ;;  %v5006_v14 = vld [vmem:[%s6494_s1 + $0x118] sm:$0xff]  ;;  %v7186_v16 = vld [vmem:[#allocation40_spill] sm:$0xff] }
 0x148   : > { %1312 = vmatpush1.msra.mxu1 %v4282_v28  ;;  %1242 = vmatprep.subr.mxu0 %v7158_v18  ;;  %v7163_v28 = vld [vmem:[#allocation157_spill] sm:$0xff]  ;;  %v1217_v18 = vcombine.high %v2046_v2, %v2046_v2 }
 0x149   : > { %1313 = vmatprep.subr.mxu1 %v4289_v30  ;;  %1243 = vmatpush1.msra.mxu0 %v7159_v20  ;;  %v7164_v30 = vld [vmem:[#allocation159_spill] sm:$0xff]  ;;  %v5013_v20 = vld [vmem:[%s6494_s1 + $0x110] sm:$0xff] }
 0x14a   : > { %1314 = vmatpush1.msra.mxu1 %v4296_v32  ;;  %1244 = vmatprep.subr.mxu0 %v7160_v22  ;;  %v7165_v32 = vld [vmem:[#allocation161_spill] sm:$0xff]  ;;  %v7187_v22 = vld [vmem:[#allocation42_spill] sm:$0xff] }
 0x14b   : > { %1315 = vmatprep.subr.mxu1 %v4303_v34  ;;  %1245 = vmatpush1.msra.mxu0 %v7161_v24  ;;  %v7166_v34 = vld [vmem:[#allocation163_spill] sm:$0xff] }
 0x14c   : > { %1316 = vmatpush1.msra.mxu1 %v4310_v36  ;;  %1246 = vmatprep.subr.mxu0 %v7162_v26  ;;  %v7167_v36 = vld [vmem:[#allocation165_spill] sm:$0xff]  ;;  %v5020_v24 = vld [vmem:[%s6494_s1 + $0x108] sm:$0xff] }
 0x14d   : > { %1317 = vmatprep.subr.mxu1 %v4317_v38  ;;  %1247 = vmatpush1.msra.mxu0 %v7163_v28  ;;  %v7168_v38 = vld [vmem:[#allocation166_spill] sm:$0xff]  ;;  %v5026_v26 = vld [vmem:[%s6494_s1 + $0x308] sm:$0xff] }
 0x14e   : > { %1318 = vmatpush1.msra.mxu1 %v4324_v40  ;;  %1248 = vmatprep.subr.mxu0 %v7164_v30  ;;  %v4794_v40 = vld [vmem:[%s6494_s1 + $0x8] sm:$0xff]  ;;  %7188 = vst [vmem:[#allocation44_spill] sm:$0xff] %v5026_v26  ;;  %v5032_v28 = vld [vmem:[%s6494_s1 + $0x100] sm:$0xff] }
 0x14f   : > { %1319 = vmatprep.subr.mxu1 %v4331_v42  ;;  %1249 = vmatpush1.msra.mxu0 %v7165_v32  ;;  %v4801_v42 = vld [vmem:[%s6494_s1] sm:$0xff]  ;;  %v5044_v32 = vld [vmem:[%s6494_s1 + $0x4f8] sm:$0xff] }
 0x150   : > { %1320 = vmatpush1.msra.mxu1 %v4338_v44  ;;  %1250 = vmatprep.subr.mxu0 %v7166_v34  ;;  %v4815_v44 = vld [vmem:[%s6494_s1 + $0x1f0] sm:$0xff]  ;;  %v5038_v30 = vld [vmem:[%s6494_s1 + $0x300] sm:$0xff]  ;;  %v5050_v34 = vld [vmem:[%s6494_s1 + $0x6f8] sm:$0xff] }
 0x151   : > { %1321 = vmatprep.subr.mxu1 %v4346_v48  ;;  %1251 = vmatpush1.msra.mxu0 %v7167_v36  ;;  %v4822_v48 = vld [vmem:[%s6494_s1 + $0x1e8] sm:$0xff]  ;;  %7189 = vst [vmem:[#allocation2_spill] sm:$0xff] %v5038_v30  ;;  %7190 = vst [vmem:[#allocation46_spill] sm:$0xff] %v5050_v34  ;;  %v5056_v36 = vld [vmem:[%s6494_s1 + $0x4f0] sm:$0xff] }
 0x152   : > { %1322 = vmatpush1.msra.mxu1 %v4353_v50  ;;  %1252 = vmatprep.subr.mxu0 %v7168_v38  ;;  %v4829_v50 = vld [vmem:[%s6494_s1 + $0x1e0] sm:$0xff]  ;;  %v5062_v38 = vld [vmem:[%s6494_s1 + $0x6f0] sm:$0xff] }
 0x153   : > { %1323 = vmatprep.subr.mxu1 %v4360_v52  ;;  %1253 = vmatpush1.msra.mxu0 %v4150_v35  ;;  %v4808_v35 = vld [vmem:[%s6494_s1 + $0x1f8] sm:$0xff]  ;;  %7191 = vst [vmem:[#allocation3_spill] sm:$0xff] %v5062_v38 }
 0x154   : > { %1324 = vmatpush1.msra.mxu1 %v4367_v54  ;;  %1254 = vmatprep.subr.mxu0 %v4794_v40  ;;  %v4836_v52 = vld [vmem:[%s6494_s1 + $0x1d8] sm:$0xff]  ;;  %v4843_v54 = vld [vmem:[%s6494_s1 + $0x1d0] sm:$0xff] }
 0x155   : > { %1325 = vmatprep.subr.mxu1 %v4374_v57  ;;  %1255 = vmatpush1.msra.mxu0 %v4801_v42  ;;  %v4850_v57 = vld [vmem:[%s6494_s1 + $0x1c8] sm:$0xff] }
 0x156   : > { %1326 = vmatpush1.msra.mxu1 %v4381_v61  ;;  %1256 = vmatprep.subr.mxu0 %v4808_v35  ;;  %v4857_v61 = vld [vmem:[%s6494_s1 + $0x1c0] sm:$0xff] }
 0x157   : > { %1327 = vmatprep.subr.mxu1 %v4387_v1  ;;  %1257 = vmatpush2.msra.mxu0 %v4815_v44  ;;  %v4864_v1 = vld [vmem:[%s6494_s1 + $0x1b8] sm:$0xff] }
 0x158   : > { %1328 = vmatpush2.msra.mxu1 %v4394_v7  ;;  %1258 = vmatprep.subr.mxu0 %v4822_v48  ;;  %v4871_v7 = vld [vmem:[%s6494_s1 + $0x1b0] sm:$0xff] }
 0x159   : > { %1329 = vmatprep.subr.mxu1 %v4401_v58  ;;  %1259 = vmatpush2.msra.mxu0 %v4829_v50  ;;  %v4878_v58 = vld [vmem:[%s6494_s1 + $0x1a8] sm:$0xff] }
 0x15a   : > { %1330 = vmatpush2.msra.mxu1 %v4408_v13  ;;  %1260 = vmatprep.subr.mxu0 %v4836_v52  ;;  %v4885_v13 = vld [vmem:[%s6494_s1 + $0x1a0] sm:$0xff] }
 0x15b   : > { %1331 = vmatprep.subr.mxu1 %v4415_v17  ;;  %1261 = vmatpush2.msra.mxu0 %v4843_v54  ;;  %v7169_v17 = vld [vmem:[#allocation167_spill] sm:$0xff] }
 0x15c   : > { %1332 = vmatpush2.msra.mxu1 %v4422_v21  ;;  %1262 = vmatprep.subr.mxu0 %v4850_v57  ;;  %v4892_v21 = vld [vmem:[%s6494_s1 + $0x198] sm:$0xff] }
 0x15d   : > { %1333 = vmatprep.subr.mxu1 %v4429_v25  ;;  %1263 = vmatpush2.msra.mxu0 %v4857_v61  ;;  %v7170_v25 = vld [vmem:[#allocation168_spill] sm:$0xff] }
 0x15e   : > { %1334 = vmatpush2.msra.mxu1 %v4436_v29  ;;  %1264 = vmatprep.subr.mxu0 %v4864_v1  ;;  %v4899_v29 = vld [vmem:[%s6494_s1 + $0x190] sm:$0xff] }
 0x15f   : > { %1335 = vmatprep.subr.mxu1 %v4443_v33  ;;  %1265 = vmatpush2.msra.mxu0 %v4871_v7  ;;  %v7171_v33 = vld [vmem:[#allocation169_spill] sm:$0xff] }
 0x160   : > { %1336 = vmatpush2.msra.mxu1 %v4450_v37  ;;  %1266 = vmatprep.subr.mxu0 %v4878_v58  ;;  %v4906_v37 = vld [vmem:[%s6494_s1 + $0x188] sm:$0xff] }
 0x161   : > { %1337 = vmatprep.subr.mxu1 %v4457_v41  ;;  %1267 = vmatpush2.msra.mxu0 %v4885_v13  ;;  %v7172_v41 = vld [vmem:[#allocation170_spill] sm:$0xff] }
 0x162   : > { %1338 = vmatpush2.msra.mxu1 %v7169_v17  ;;  %1268 = vmatprep.subr.mxu0 %v4892_v21  ;;  %v5068_v17 = vld [vmem:[%s6494_s1 + $0x4e8] sm:$0xff] }
 0x163   : > { %1339 = vmatprep.subr.mxu1 %v7170_v25  ;;  %1269 = vmatpush2.msra.mxu0 %v4899_v29  ;;  %v5074_v25 = vld [vmem:[%s6494_s1 + $0x6e8] sm:$0xff] }
 0x164   : > { %1340 = vmatpush2.msra.mxu1 %v7171_v33  ;;  %1270 = vmatprep.subr.mxu0 %v4906_v37  ;;  %7192 = vst [vmem:[#allocation48_spill] sm:$0xff] %v5074_v25  ;;  %v5080_v33 = vld [vmem:[%s6494_s1 + $0x4e0] sm:$0xff] }
 0x165   : > { %1341 = vmatprep.subr.mxu1 %v7172_v41  ;;  %1271 = vmatpush2.msra.mxu0 %v4913_v27  ;;  %v5086_v41 = vld [vmem:[%s6494_s1 + $0x6e0] sm:$0xff] }
 0x166   : > { %1342 = vmatpush2.msra.mxu1 %v7173_v51  ;;  %1272 = vmatprep.subr.mxu0 %v4920_v47  ;;  %7193 = vst [vmem:[#allocation50_spill] sm:$0xff] %v5086_v41  ;;  %v5092_v51 = vld [vmem:[%s6494_s1 + $0x4d8] sm:$0xff] }
 0x167   : > { %1343 = vmatprep.subr.mxu1 %v7174_v49  ;;  %1273 = vmatpush2.msra.mxu0 %v4927_v43  ;;  %v5098_v49 = vld [vmem:[%s6494_s1 + $0x6d8] sm:$0xff] }
 0x168   : > { %1344 = vmatpush2.msra.mxu1 %v7175_v11  ;;  %1274 = vmatprep.subr.mxu0 %v4934_v3  ;;  %7194 = vst [vmem:[#allocation4_spill] sm:$0xff] %v5098_v49  ;;  %v5104_v11 = vld [vmem:[%s6494_s1 + $0x4d0] sm:$0xff] }
 0x169   : > { %1345 = vmatprep.subr.mxu1 %v7176_v39  ;;  %1275 = vmatpush2.msra.mxu0 %v4941_v19  ;;  %v5110_v39 = vld [vmem:[%s6494_s1 + $0x6d0] sm:$0xff] }
 0x16a   : > { %1346 = vmatpush2.msra.mxu1 %v7177_v46  ;;  %1276 = vmatprep.subr.mxu0 %v4948_v15  ;;  %7195 = vst [vmem:[#allocation52_spill] sm:$0xff] %v5110_v39  ;;  %v5116_v46 = vld [vmem:[%s6494_s1 + $0x4c8] sm:$0xff] }
 0x16b   : > { %1347 = vmatprep.subr.mxu1 %v7178_v5  ;;  %1277 = vmatpush2.msra.mxu0 %v4955_v45  ;;  %v5122_v5 = vld [vmem:[%s6494_s1 + $0x6c8] sm:$0xff] }
 0x16c   : > { %1348 = vmatpush2.msra.mxu1 %v7179_v63  ;;  %1278 = vmatprep.subr.mxu0 %v4962_v56  ;;  %7196 = vst [vmem:[#allocation5_spill] sm:$0xff] %v5122_v5  ;;  %v5128_v63 = vld [vmem:[%s6494_s1 + $0x4c0] sm:$0xff] }
 0x16d   : > { %1349 = vmatprep.subr.mxu1 %v7180_v53  ;;  %1279 = vmatpush2.msra.mxu0 %v4969_v55  ;;  %v5134_v53 = vld [vmem:[%s6494_s1 + $0x6c0] sm:$0xff] }
 0x16e   : > { %1350 = vmatpush2.msra.mxu1 %v7181_v23  ;;  %1280 = vmatprep.subr.mxu0 %v4976_v9  ;;  %7197 = vst [vmem:[#allocation54_spill] sm:$0xff] %v5134_v53  ;;  %v5140_v23 = vld [vmem:[%s6494_s1 + $0x4b8] sm:$0xff] }
 0x16f   : > { %1351 = vmatprep.subr.mxu1 %v7182_v31  ;;  %1281 = vmatpush2.msra.mxu0 %v4984_v62  ;;  %v5146_v31 = vld [vmem:[%s6494_s1 + $0x6b8] sm:$0xff] }
 0x170   : > { %1352 = vmatpush2.msra.mxu1 %v7183_v0  ;;  %1282 = vmatprep.subr.mxu0 %v4992_v4  ;;  %7198 = vst [vmem:[#allocation6_spill] sm:$0xff] %v5146_v31  ;;  %v5158_v0 = vld [vmem:[%s6494_s1 + $0x6b0] sm:$0xff] }
 0x171   : > { %1353 = vmatprep.subr.mxu1 %v7184_v6  ;;  %1283 = vmatpush2.msra.mxu0 %v4999_v8  ;;  %7199 = vst [vmem:[#allocation56_spill] sm:$0xff] %v5158_v0  ;;  %v5170_v6 = vld [vmem:[%s6494_s1 + $0x6a8] sm:$0xff] }
 0x172   : > { %1354 = vmatpush2.msra.mxu1 %v7185_v10  ;;  %1284 = vmatprep.subr.mxu0 %v5006_v14  ;;  %7200 = vst [vmem:[#allocation7_spill] sm:$0xff] %v5170_v6  ;;  %v5176_v10 = vld [vmem:[%s6494_s1 + $0x4a0] sm:$0xff] }
 0x173   : > { %1355 = vmatprep.subr.mxu1 %v7186_v16  ;;  %1285 = vmatpush2.msra.mxu0 %v5013_v20  ;;  %v5188_v16 = vld [vmem:[%s6494_s1 + $0x498] sm:$0xff] }
 0x174   : > { %1356 = vmatpush2.msra.mxu1 %v7187_v22  ;;  %1286 = vmatprep.subr.mxu0 %v5020_v24  ;;  %v5200_v22 = vld [vmem:[%s6494_s1 + $0x490] sm:$0xff] }
 0x175   : > { %1357 = vmatprep.subr.mxu1 %v5026_v26  ;;  %1287 = vmatpush2.msra.mxu0 %v5032_v28  ;;  %v5356_v26 = vld [vmem:[%s6494_s1 + $0x428] sm:$0xff] }
 0x176   : > { %1288 = vmatprep.mubr.f32.mxu0 %v1216_v12  ;;  %1358 = vmatpush2.msra.mxu1 %v5038_v30  ;;  %v5182_v12 = vld [vmem:[%s6494_s1 + $0x6a0] sm:$0xff]  ;;  %v5344_v30 = vld [vmem:[%s6494_s1 + $0x430] sm:$0xff]  ;;  %7221 = vst [vmem:[#allocation78_spill] sm:$0xff] %v5356_v26 }
 0x177   : > { %1359 = vmatprep.mubr.f32.mxu1 %v1217_v18  ;;  %1289 = vmatmul.mubr.f32.vlgmr.msra.gmra.mxu0 %v2045_v60  ;;  %v5152_v60 = vld [vmem:[%s6494_s1 + $0x4b0] sm:$0xff]  ;;  %7201 = vst [vmem:[#allocation58_spill] sm:$0xff] %v5182_v12  ;;  %v5194_v18 = vld [vmem:[%s6494_s1 + $0x698] sm:$0xff]  ;;  %7219 = vst [vmem:[#allocation76_spill] sm:$0xff] %v5344_v30 }
 0x178   : > { %1360 = vmatmul.mubr.f32.vlgmr.msra.gmra.mxu1 %v2046_v2  ;;  %1366 = vmatprep.subr.mxu0 %v5044_v32  ;;  %v5164_v2 = vld [vmem:[%s6494_s1 + $0x4a8] sm:$0xff]  ;;  %7202 = vst [vmem:[#allocation8_spill] sm:$0xff] %v5194_v18 }
 0x179   : > { %1437 = vmatprep.subr.mxu1 %v5050_v34  ;;  %1367 = vmatpush1.msra.mxu0 %v5056_v36  ;;  %v5332_v34 = vld [vmem:[%s6494_s1 + $0x438] sm:$0xff] }
 0x17a   : > { %1438 = vmatpush1.msra.mxu1 %v5062_v38  ;;  %1368 = vmatprep.subr.mxu0 %v5068_v17  ;;  %v5320_v38 = vld [vmem:[%s6494_s1 + $0x440] sm:$0xff]  ;;  %7217 = vst [vmem:[#allocation74_spill] sm:$0xff] %v5332_v34 }
 0x17b   : > { %1439 = vmatprep.subr.mxu1 %v5074_v25  ;;  %1369 = vmatpush1.msra.mxu0 %v5080_v33  ;;  %v5308_v25 = vld [vmem:[%s6494_s1 + $0x448] sm:$0xff]  ;;  %7215 = vst [vmem:[#allocation72_spill] sm:$0xff] %v5320_v38 }
 0x17c   : > { %1440 = vmatpush1.msra.mxu1 %v5086_v41  ;;  %1370 = vmatprep.subr.mxu0 %v5092_v51  ;;  %v5296_v41 = vld [vmem:[%s6494_s1 + $0x450] sm:$0xff]  ;;  %7213 = vst [vmem:[#allocation70_spill] sm:$0xff] %v5308_v25 }
 0x17d   : > { %1441 = vmatprep.subr.mxu1 %v5098_v49  ;;  %1371 = vmatpush1.msra.mxu0 %v5104_v11  ;;  %v5284_v49 = vld [vmem:[%s6494_s1 + $0x458] sm:$0xff]  ;;  %7211 = vst [vmem:[#allocation68_spill] sm:$0xff] %v5296_v41 }
 0x17e   : > { %1442 = vmatpush1.msra.mxu1 %v5110_v39  ;;  %1372 = vmatprep.subr.mxu0 %v5116_v46  ;;  %v5272_v39 = vld [vmem:[%s6494_s1 + $0x460] sm:$0xff] }
 0x17f   : > { %1443 = vmatprep.subr.mxu1 %v5122_v5  ;;  %1373 = vmatpush1.msra.mxu0 %v5128_v63  ;;  %v5260_v5 = vld [vmem:[%s6494_s1 + $0x468] sm:$0xff] }
 0x180   : > { %1444 = vmatpush1.msra.mxu1 %v5134_v53  ;;  %1374 = vmatprep.subr.mxu0 %v5140_v23  ;;  %v5248_v53 = vld [vmem:[%s6494_s1 + $0x470] sm:$0xff] }
 0x181   : > { %1445 = vmatprep.subr.mxu1 %v5146_v31  ;;  %1375 = vmatpush1.msra.mxu0 %v5152_v60  ;;  %v5236_v31 = vld [vmem:[%s6494_s1 + $0x478] sm:$0xff] }
 0x182   : > { %1446 = vmatpush1.msra.mxu1 %v5158_v0  ;;  %1376 = vmatprep.subr.mxu0 %v5164_v2  ;;  %v5224_v0 = vld [vmem:[%s6494_s1 + $0x480] sm:$0xff] }
 0x183   : > { %1447 = vmatprep.subr.mxu1 %v5170_v6  ;;  %1377 = vmatpush1.msra.mxu0 %v5176_v10  ;;  %v5212_v6 = vld [vmem:[%s6494_s1 + $0x488] sm:$0xff] }
 0x184   : > { %1448 = vmatpush1.msra.mxu1 %v5182_v12  ;;  %1378 = vmatprep.subr.mxu0 %v5188_v16  ;;  %v5206_v12 = vld [vmem:[%s6494_s1 + $0x690] sm:$0xff] }
 0x185   : > { %1449 = vmatprep.subr.mxu1 %v5194_v18  ;;  %1379 = vmatpush1.msra.mxu0 %v5200_v22  ;;  %7203 = vst [vmem:[#allocation60_spill] sm:$0xff] %v5206_v12  ;;  %v5218_v18 = vld [vmem:[%s6494_s1 + $0x688] sm:$0xff] }
 0x186   : > { %1450 = vmatpush1.msra.mxu1 %v5206_v12  ;;  %1380 = vmatprep.subr.mxu0 %v5212_v6  ;;  %7204 = vst [vmem:[#allocation9_spill] sm:$0xff] %v5218_v18  ;;  %v5230_v12 = vld [vmem:[%s6494_s1 + $0x680] sm:$0xff] }
 0x187   : > { %1451 = vmatprep.subr.mxu1 %v5218_v18  ;;  %1381 = vmatpush1.msra.mxu0 %v5224_v0  ;;  %7205 = vst [vmem:[#allocation62_spill] sm:$0xff] %v5230_v12  ;;  %v5242_v18 = vld [vmem:[%s6494_s1 + $0x678] sm:$0xff] }
 0x188   : > { %1452 = vmatpush1.msra.mxu1 %v5230_v12  ;;  %1382 = vmatprep.subr.mxu0 %v5236_v31  ;;  %7206 = vst [vmem:[#allocation10_spill] sm:$0xff] %v5242_v18  ;;  %v5254_v12 = vld [vmem:[%s6494_s1 + $0x670] sm:$0xff] }
 0x189   : > { %1453 = vmatprep.subr.mxu1 %v5242_v18  ;;  %1383 = vmatpush1.msra.mxu0 %v5248_v53  ;;  %7207 = vst [vmem:[#allocation64_spill] sm:$0xff] %v5254_v12  ;;  %v5266_v18 = vld [vmem:[%s6494_s1 + $0x668] sm:$0xff] }
 0x18a   : > { %1454 = vmatpush1.msra.mxu1 %v5254_v12  ;;  %1384 = vmatprep.subr.mxu0 %v5260_v5  ;;  %7208 = vst [vmem:[#allocation11_spill] sm:$0xff] %v5266_v18  ;;  %v5278_v12 = vld [vmem:[%s6494_s1 + $0x660] sm:$0xff] }
 0x18b   : > { %1455 = vmatprep.subr.mxu1 %v5266_v18  ;;  %1385 = vmatpush1.msra.mxu0 %v5272_v39  ;;  %7209 = vst [vmem:[#allocation66_spill] sm:$0xff] %v5278_v12  ;;  %v5290_v18 = vld [vmem:[%s6494_s1 + $0x658] sm:$0xff] }
 0x18c   : > { %1456 = vmatpush1.msra.mxu1 %v5278_v12  ;;  %1386 = vmatprep.subr.mxu0 %v5284_v49  ;;  %7210 = vst [vmem:[#allocation12_spill] sm:$0xff] %v5290_v18  ;;  %v5302_v12 = vld [vmem:[%s6494_s1 + $0x650] sm:$0xff] }
 0x18d   : > { %1457 = vmatprep.subr.mxu1 %v5290_v18  ;;  %1387 = vmatpush1.msra.mxu0 %v5296_v41  ;;  %7212 = vst [vmem:[#allocation13_spill] sm:$0xff] %v5302_v12  ;;  %v5314_v18 = vld [vmem:[%s6494_s1 + $0x648] sm:$0xff] }
 0x18e   : > { %1458 = vmatpush1.msra.mxu1 %v5302_v12  ;;  %1388 = vmatprep.subr.mxu0 %v5308_v25  ;;  %7214 = vst [vmem:[#allocation14_spill] sm:$0xff] %v5314_v18  ;;  %v5326_v12 = vld [vmem:[%s6494_s1 + $0x640] sm:$0xff]  ;;  %v5772_v25 = vld [vmem:[%s6494_s1 + $0x718] sm:$0xff]  ;;  %v5790_v41 = vld [vmem:[%s6494_s1 + $0x508] sm:$0xff] }
 0x18f   : > { %1459 = vmatprep.subr.mxu1 %v5314_v18  ;;  %1389 = vmatpush1.msra.mxu0 %v5320_v38  ;;  %7216 = vst [vmem:[#allocation15_spill] sm:$0xff] %v5326_v12  ;;  %v5338_v18 = vld [vmem:[%s6494_s1 + $0x638] sm:$0xff]  ;;  %v5754_v38 = vld [vmem:[%s6494_s1 + $0x520] sm:$0xff]  ;;  %7290 = vst [vmem:[#allocation144_spill] sm:$0xff] %v5772_v25 }
 0x190   : > { %1460 = vmatpush1.msra.mxu1 %v5326_v12  ;;  %1390 = vmatprep.subr.mxu0 %v5332_v34  ;;  %7218 = vst [vmem:[#allocation16_spill] sm:$0xff] %v5338_v18  ;;  %v5350_v12 = vld [vmem:[%s6494_s1 + $0x630] sm:$0xff]  ;;  %7287 = vst [vmem:[#allocation87_spill] sm:$0xff] %v5754_v38 }
 0x191   : > { %1461 = vmatprep.subr.mxu1 %v5338_v18  ;;  %1391 = vmatpush1.msra.mxu0 %v5344_v30  ;;  %7220 = vst [vmem:[#allocation17_spill] sm:$0xff] %v5350_v12  ;;  %v5362_v18 = vld [vmem:[%s6494_s1 + $0x628] sm:$0xff]  ;;  %v5368_v30 = vld [vmem:[%s6494_s1 + $0x420] sm:$0xff]  ;;  %v5729_v34 = vld [vmem:[%s6494_s1 + $0x530] sm:$0xff] }
 0x192   : > { %1462 = vmatpush1.msra.mxu1 %v5350_v12  ;;  %1392 = vmatprep.subr.mxu0 %v5356_v26  ;;  %7222 = vst [vmem:[#allocation18_spill] sm:$0xff] %v5362_v18  ;;  %7223 = vst [vmem:[#allocation80_spill] sm:$0xff] %v5368_v30  ;;  %v5374_v12 = vld [vmem:[%s6494_s1 + $0x620] sm:$0xff]  ;;  %v5380_v26 = vld [vmem:[%s6494_s1 + $0x418] sm:$0xff] }
 0x193   : > { %1463 = vmatprep.subr.mxu1 %v5362_v18  ;;  %1393 = vmatpush1.msra.mxu0 %v5368_v30  ;;  %7224 = vst [vmem:[#allocation19_spill] sm:$0xff] %v5374_v12  ;;  %7225 = vst [vmem:[#allocation82_spill] sm:$0xff] %v5380_v26  ;;  %v5386_v18 = vld [vmem:[%s6494_s1 + $0x618] sm:$0xff]  ;;  %v5392_v30 = vld [vmem:[%s6494_s1 + $0x410] sm:$0xff] }
 0x194   : > { %1464 = vmatpush1.msra.mxu1 %v5374_v12  ;;  %1394 = vmatprep.subr.mxu0 %v5380_v26  ;;  %7226 = vst [vmem:[#allocation20_spill] sm:$0xff] %v5386_v18  ;;  %7227 = vst [vmem:[#allocation84_spill] sm:$0xff] %v5392_v30  ;;  %v5398_v12 = vld [vmem:[%s6494_s1 + $0x610] sm:$0xff]  ;;  %v5404_v26 = vld [vmem:[%s6494_s1 + $0x408] sm:$0xff] }
 0x195   : > { %1465 = vmatprep.subr.mxu1 %v5386_v18  ;;  %1395 = vmatpush1.msra.mxu0 %v5392_v30  ;;  %7228 = vst [vmem:[#allocation21_spill] sm:$0xff] %v5398_v12  ;;  %7229 = vst [vmem:[#allocation86_spill] sm:$0xff] %v5404_v26  ;;  %v5410_v18 = vld [vmem:[%s6494_s1 + $0x608] sm:$0xff]  ;;  %v5416_v30 = vld [vmem:[%s6494_s1 + $0x400] sm:$0xff] }
 0x196   : > { %1466 = vmatpush1.msra.mxu1 %v5398_v12  ;;  %1396 = vmatprep.subr.mxu0 %v5404_v26  ;;  %7230 = vst [vmem:[#allocation23_spill] sm:$0xff] %v5410_v18  ;;  %7231 = vst [vmem:[#allocation88_spill] sm:$0xff] %v5416_v30  ;;  %v5422_v12 = vld [vmem:[%s6494_s1 + $0x600] sm:$0xff]  ;;  %v5428_v26 = vld [vmem:[%s6494_s1 + $0x5f8] sm:$0xff] }
 0x197   : > { %1467 = vmatprep.subr.mxu1 %v5410_v18  ;;  %1397 = vmatpush1.msra.mxu0 %v5416_v30  ;;  %7232 = vst [vmem:[#allocation25_spill] sm:$0xff] %v5422_v12  ;;  %7233 = vst [vmem:[#allocation90_spill] sm:$0xff] %v5428_v26  ;;  %v5434_v18 = vld [vmem:[%s6494_s1 + $0x7f8] sm:$0xff]  ;;  %v5440_v30 = vld [vmem:[%s6494_s1 + $0x5f0] sm:$0xff] }
 0x198   : > { %1468 = vmatpush1.msra.mxu1 %v5422_v12  ;;  %1398 = vmatprep.subr.mxu0 %v5428_v26  ;;  %7234 = vst [vmem:[#allocation27_spill] sm:$0xff] %v5434_v18  ;;  %7235 = vst [vmem:[#allocation92_spill] sm:$0xff] %v5440_v30  ;;  %v5446_v12 = vld [vmem:[%s6494_s1 + $0x7f0] sm:$0xff]  ;;  %v5452_v26 = vld [vmem:[%s6494_s1 + $0x5e8] sm:$0xff] }
 0x199   : > { %1469 = vmatprep.subr.mxu1 %v5434_v18  ;;  %1399 = vmatpush2.msra.mxu0 %v5440_v30  ;;  %7236 = vst [vmem:[#allocation29_spill] sm:$0xff] %v5446_v12  ;;  %7237 = vst [vmem:[#allocation94_spill] sm:$0xff] %v5452_v26  ;;  %v5458_v18 = vld [vmem:[%s6494_s1 + $0x7e8] sm:$0xff]  ;;  %v5464_v30 = vld [vmem:[%s6494_s1 + $0x5e0] sm:$0xff] }
 0x19a   : > { %1470 = vmatpush2.msra.mxu1 %v5446_v12  ;;  %1400 = vmatprep.subr.mxu0 %v5452_v26  ;;  %7238 = vst [vmem:[#allocation31_spill] sm:$0xff] %v5458_v18  ;;  %7239 = vst [vmem:[#allocation96_spill] sm:$0xff] %v5464_v30  ;;  %v5470_v12 = vld [vmem:[%s6494_s1 + $0x7e0] sm:$0xff]  ;;  %v5476_v26 = vld [vmem:[%s6494_s1 + $0x5d8] sm:$0xff] }
 0x19b   : > { %1471 = vmatprep.subr.mxu1 %v5458_v18  ;;  %1401 = vmatpush2.msra.mxu0 %v5464_v30  ;;  %7240 = vst [vmem:[#allocation33_spill] sm:$0xff] %v5470_v12  ;;  %7241 = vst [vmem:[#allocation98_spill] sm:$0xff] %v5476_v26  ;;  %v5482_v18 = vld [vmem:[%s6494_s1 + $0x7d8] sm:$0xff]  ;;  %v5488_v30 = vld [vmem:[%s6494_s1 + $0x5d0] sm:$0xff] }
 0x19c   : > { %1472 = vmatpush2.msra.mxu1 %v5470_v12  ;;  %1402 = vmatprep.subr.mxu0 %v5476_v26  ;;  %7242 = vst [vmem:[#allocation35_spill] sm:$0xff] %v5482_v18  ;;  %7243 = vst [vmem:[#allocation100_spill] sm:$0xff] %v5488_v30  ;;  %v5494_v12 = vld [vmem:[%s6494_s1 + $0x7d0] sm:$0xff]  ;;  %v5500_v26 = vld [vmem:[%s6494_s1 + $0x5c8] sm:$0xff] }
 0x19d   : > { %1473 = vmatprep.subr.mxu1 %v5482_v18  ;;  %1403 = vmatpush2.msra.mxu0 %v5488_v30  ;;  %7244 = vst [vmem:[#allocation37_spill] sm:$0xff] %v5494_v12  ;;  %7245 = vst [vmem:[#allocation102_spill] sm:$0xff] %v5500_v26  ;;  %v5506_v18 = vld [vmem:[%s6494_s1 + $0x7c8] sm:$0xff]  ;;  %v5512_v30 = vld [vmem:[%s6494_s1 + $0x5c0] sm:$0xff] }
 0x19e   : > { %1474 = vmatpush2.msra.mxu1 %v5494_v12  ;;  %1404 = vmatprep.subr.mxu0 %v5500_v26  ;;  %7246 = vst [vmem:[#allocation39_spill] sm:$0xff] %v5506_v18  ;;  %7247 = vst [vmem:[#allocation104_spill] sm:$0xff] %v5512_v30  ;;  %v5518_v12 = vld [vmem:[%s6494_s1 + $0x7c0] sm:$0xff]  ;;  %v5524_v26 = vld [vmem:[%s6494_s1 + $0x5b8] sm:$0xff] }
 0x19f   : > { %1475 = vmatprep.subr.mxu1 %v5506_v18  ;;  %1405 = vmatpush2.msra.mxu0 %v5512_v30  ;;  %7248 = vst [vmem:[#allocation41_spill] sm:$0xff] %v5518_v12  ;;  %7249 = vst [vmem:[#allocation43_spill] sm:$0xff] %v5524_v26  ;;  %v5530_v18 = vld [vmem:[%s6494_s1 + $0x7b8] sm:$0xff]  ;;  %v5536_v30 = vld [vmem:[%s6494_s1 + $0x5b0] sm:$0xff] }
 0x1a0   : > { %1476 = vmatpush2.msra.mxu1 %v5518_v12  ;;  %1406 = vmatprep.subr.mxu0 %v5524_v26  ;;  %7250 = vst [vmem:[#allocation45_spill] sm:$0xff] %v5530_v18  ;;  %7251 = vst [vmem:[#allocation47_spill] sm:$0xff] %v5536_v30  ;;  %v5542_v12 = vld [vmem:[%s6494_s1 + $0x7b0] sm:$0xff]  ;;  %v5548_v26 = vld [vmem:[%s6494_s1 + $0x5a8] sm:$0xff] }
 0x1a1   : > { %1477 = vmatprep.subr.mxu1 %v5530_v18  ;;  %1407 = vmatpush2.msra.mxu0 %v5536_v30  ;;  %7252 = vst [vmem:[#allocation49_spill] sm:$0xff] %v5542_v12  ;;  %7253 = vst [vmem:[#allocation51_spill] sm:$0xff] %v5548_v26  ;;  %v5554_v18 = vld [vmem:[%s6494_s1 + $0x7a8] sm:$0xff]  ;;  %v5560_v30 = vld [vmem:[%s6494_s1 + $0x5a0] sm:$0xff] }
 0x1a2   : > { %1478 = vmatpush2.msra.mxu1 %v5542_v12  ;;  %1408 = vmatprep.subr.mxu0 %v5548_v26  ;;  %7254 = vst [vmem:[#allocation53_spill] sm:$0xff] %v5554_v18  ;;  %7255 = vst [vmem:[#allocation55_spill] sm:$0xff] %v5560_v30  ;;  %v5566_v12 = vld [vmem:[%s6494_s1 + $0x7a0] sm:$0xff]  ;;  %v5572_v26 = vld [vmem:[%s6494_s1 + $0x598] sm:$0xff] }
 0x1a3   : > { %1479 = vmatprep.subr.mxu1 %v5554_v18  ;;  %1409 = vmatpush2.msra.mxu0 %v5560_v30  ;;  %7256 = vst [vmem:[#allocation110_spill] sm:$0xff] %v5566_v12  ;;  %7257 = vst [vmem:[#allocation57_spill] sm:$0xff] %v5572_v26  ;;  %v5578_v18 = vld [vmem:[%s6494_s1 + $0x798] sm:$0xff]  ;;  %v5584_v30 = vld [vmem:[%s6494_s1 + $0x590] sm:$0xff] }
 0x1a4   : > { %1480 = vmatpush2.msra.mxu1 %v5566_v12  ;;  %1410 = vmatprep.subr.mxu0 %v5572_v26  ;;  %7258 = vst [vmem:[#allocation112_spill] sm:$0xff] %v5578_v18  ;;  %7259 = vst [vmem:[#allocation59_spill] sm:$0xff] %v5584_v30  ;;  %v5590_v12 = vld [vmem:[%s6494_s1 + $0x790] sm:$0xff]  ;;  %v5596_v26 = vld [vmem:[%s6494_s1 + $0x588] sm:$0xff] }
 0x1a5   : > { %1481 = vmatprep.subr.mxu1 %v5578_v18  ;;  %1411 = vmatpush2.msra.mxu0 %v5584_v30  ;;  %7260 = vst [vmem:[#allocation114_spill] sm:$0xff] %v5590_v12  ;;  %7261 = vst [vmem:[#allocation61_spill] sm:$0xff] %v5596_v26  ;;  %v5602_v18 = vld [vmem:[%s6494_s1 + $0x788] sm:$0xff]  ;;  %v5608_v30 = vld [vmem:[%s6494_s1 + $0x580] sm:$0xff] }
 0x1a6   : > { %1482 = vmatpush2.msra.mxu1 %v5590_v12  ;;  %1412 = vmatprep.subr.mxu0 %v5596_v26  ;;  %7262 = vst [vmem:[#allocation116_spill] sm:$0xff] %v5602_v18  ;;  %7263 = vst [vmem:[#allocation63_spill] sm:$0xff] %v5608_v30  ;;  %v5614_v12 = vld [vmem:[%s6494_s1 + $0x780] sm:$0xff]  ;;  %v5620_v26 = vld [vmem:[%s6494_s1 + $0x578] sm:$0xff] }
 0x1a7   : > { %1483 = vmatprep.subr.mxu1 %v5602_v18  ;;  %1413 = vmatpush2.msra.mxu0 %v5608_v30  ;;  %7264 = vst [vmem:[#allocation118_spill] sm:$0xff] %v5614_v12  ;;  %7265 = vst [vmem:[#allocation65_spill] sm:$0xff] %v5620_v26  ;;  %v5626_v18 = vld [vmem:[%s6494_s1 + $0x778] sm:$0xff]  ;;  %v5632_v30 = vld [vmem:[%s6494_s1 + $0x570] sm:$0xff] }
 0x1a8   : > { %1484 = vmatpush2.msra.mxu1 %v5614_v12  ;;  %1414 = vmatprep.subr.mxu0 %v5620_v26  ;;  %7266 = vst [vmem:[#allocation120_spill] sm:$0xff] %v5626_v18  ;;  %7267 = vst [vmem:[#allocation67_spill] sm:$0xff] %v5632_v30  ;;  %v5638_v12 = vld [vmem:[%s6494_s1 + $0x770] sm:$0xff]  ;;  %v5644_v26 = vld [vmem:[%s6494_s1 + $0x568] sm:$0xff] }
 0x1a9   : > { %1485 = vmatprep.subr.mxu1 %v5626_v18  ;;  %1415 = vmatpush2.msra.mxu0 %v5632_v30  ;;  %7268 = vst [vmem:[#allocation122_spill] sm:$0xff] %v5638_v12  ;;  %7269 = vst [vmem:[#allocation69_spill] sm:$0xff] %v5644_v26  ;;  %v5650_v18 = vld [vmem:[%s6494_s1 + $0x768] sm:$0xff]  ;;  %v5656_v30 = vld [vmem:[%s6494_s1 + $0x560] sm:$0xff] }
 0x1aa   : > { %1486 = vmatpush2.msra.mxu1 %v5638_v12  ;;  %1416 = vmatprep.subr.mxu0 %v5644_v26  ;;  %7270 = vst [vmem:[#allocation124_spill] sm:$0xff] %v5650_v18  ;;  %7271 = vst [vmem:[#allocation71_spill] sm:$0xff] %v5656_v30  ;;  %v5662_v12 = vld [vmem:[%s6494_s1 + $0x760] sm:$0xff]  ;;  %v5668_v26 = vld [vmem:[%s6494_s1 + $0x558] sm:$0xff] }
 0x1ab   : > { %1487 = vmatprep.subr.mxu1 %v5650_v18  ;;  %1417 = vmatpush2.msra.mxu0 %v5656_v30  ;;  %7272 = vst [vmem:[#allocation126_spill] sm:$0xff] %v5662_v12  ;;  %7273 = vst [vmem:[#allocation73_spill] sm:$0xff] %v5668_v26  ;;  %v5674_v18 = vld [vmem:[%s6494_s1 + $0x758] sm:$0xff]  ;;  %v5680_v30 = vld [vmem:[%s6494_s1 + $0x550] sm:$0xff] }
 0x1ac   : > { %1488 = vmatpush2.msra.mxu1 %v5662_v12  ;;  %1418 = vmatprep.subr.mxu0 %v5668_v26  ;;  %7274 = vst [vmem:[#allocation128_spill] sm:$0xff] %v5674_v18  ;;  %7275 = vst [vmem:[#allocation75_spill] sm:$0xff] %v5680_v30  ;;  %v5686_v12 = vld [vmem:[%s6494_s1 + $0x750] sm:$0xff]  ;;  %v5692_v26 = vld [vmem:[%s6494_s1 + $0x548] sm:$0xff] }
 0x1ad   : > { %1489 = vmatprep.subr.mxu1 %v5674_v18  ;;  %1419 = vmatpush2.msra.mxu0 %v5680_v30  ;;  %7276 = vst [vmem:[#allocation130_spill] sm:$0xff] %v5686_v12  ;;  %7277 = vst [vmem:[#allocation77_spill] sm:$0xff] %v5692_v26  ;;  %v5698_v18 = vld [vmem:[%s6494_s1 + $0x748] sm:$0xff]  ;;  %v5704_v30 = vld [vmem:[%s6494_s1 + $0x540] sm:$0xff] }
 0x1ae   : > { %1490 = vmatpush2.msra.mxu1 %v5686_v12  ;;  %1420 = vmatprep.subr.mxu0 %v5692_v26  ;;  %7278 = vst [vmem:[#allocation132_spill] sm:$0xff] %v5698_v18  ;;  %7279 = vst [vmem:[#allocation79_spill] sm:$0xff] %v5704_v30  ;;  %v5710_v12 = vld [vmem:[%s6494_s1 + $0x740] sm:$0xff]  ;;  %v5716_v26 = vld [vmem:[%s6494_s1 + $0x538] sm:$0xff] }
 0x1af   : > { %1491 = vmatprep.subr.mxu1 %v5698_v18  ;;  %1421 = vmatpush2.msra.mxu0 %v5704_v30  ;;  %7280 = vst [vmem:[#allocation134_spill] sm:$0xff] %v5710_v12  ;;  %7281 = vst [vmem:[#allocation81_spill] sm:$0xff] %v5716_v26  ;;  %v5722_v18 = vld [vmem:[%s6494_s1 + $0x738] sm:$0xff] }
 0x1b0   : > { %1492 = vmatpush2.msra.mxu1 %v5710_v12  ;;  %1422 = vmatprep.subr.mxu0 %v5716_v26  ;;  %7282 = vst [vmem:[#allocation136_spill] sm:$0xff] %v5722_v18  ;;  %v2047_v30 = vld [vmem:[%s2937_s21 + $0x58] sm:$0xff]  ;;  %7283 = vst [vmem:[#allocation83_spill] sm:$0xff] %v5729_v34  ;;  %v5735_v12 = vld [vmem:[%s6494_s1 + $0x730] sm:$0xff] }
 0x1b1   : > { %1493 = vmatprep.subr.mxu1 %v5722_v18  ;;  %1423 = vmatpush2.msra.mxu0 %v5729_v34  ;;  %7284 = vst [vmem:[#allocation138_spill] sm:$0xff] %v5735_v12  ;;  %v5741_v26 = vld [vmem:[%s6494_s1 + $0x528] sm:$0xff]  ;;  %v2048_v34 = vld [vmem:[%s2937_s21 + $0x60] sm:$0xff] }
 0x1b2   : > { %1494 = vmatpush2.msra.mxu1 %v5735_v12  ;;  %7285 = vst [vmem:[#allocation85_spill] sm:$0xff] %v5741_v26  ;;  %1424 = vmatprep.subr.mxu0 %v5741_v26  ;;  %v5747_v18 = vld [vmem:[%s6494_s1 + $0x728] sm:$0xff]  ;;  %v5760_v12 = vld [vmem:[%s6494_s1 + $0x720] sm:$0xff]  ;;  %v1218_v26 = vcombine.high %v2047_v30, %v2047_v30 }
 0x1b3   : > { %7286 = vst [vmem:[#allocation140_spill] sm:$0xff] %v5747_v18  ;;  %1495 = vmatprep.subr.mxu1 %v5747_v18  ;;  %1425 = vmatpush2.msra.mxu0 %v5754_v38  ;;  %7288 = vst [vmem:[#allocation142_spill] sm:$0xff] %v5760_v12  ;;  %v5766_v18 = vld [vmem:[%s6494_s1 + $0x518] sm:$0xff]  ;;  %v5778_v38 = vld [vmem:[%s6494_s1 + $0x510] sm:$0xff] }
 0x1b4   : > { %1496 = vmatpush2.msra.mxu1 %v5760_v12  ;;  %7289 = vst [vmem:[#allocation89_spill] sm:$0xff] %v5766_v18  ;;  %1426 = vmatprep.subr.mxu0 %v5766_v18  ;;  %7291 = vst [vmem:[#allocation91_spill] sm:$0xff] %v5778_v38  ;;  %v5784_v12 = vld [vmem:[%s6494_s1 + $0x710] sm:$0xff]  ;;  %v1219_v18 = vcombine.high %v2048_v34, %v2048_v34 }
 0x1b5   : > { %1497 = vmatprep.subr.mxu1 %v5772_v25  ;;  %1427 = vmatpush2.msra.mxu0 %v5778_v38  ;;  %7292 = vst [vmem:[#allocation146_spill] sm:$0xff] %v5784_v12  ;;  %v5796_v25 = vld [vmem:[%s6494_s1 + $0x708] sm:$0xff]  ;;  %v5802_v38 = vld [vmem:[%s6494_s1 + $0x500] sm:$0xff] }
 0x1b6   : > { %1498 = vmatpush2.msra.mxu1 %v5784_v12  ;;  %1428 = vmatprep.subr.mxu0 %v5790_v41  ;;  %7293 = vst [vmem:[#allocation93_spill] sm:$0xff] %v5796_v25  ;;  %7294 = vst [vmem:[#allocation148_spill] sm:$0xff] %v5802_v38  ;;  %v5808_v12 = vld [vmem:[%s6494_s1 + $0x700] sm:$0xff] }
 0x1b7   : > { %1499 = vmatprep.subr.mxu1 %v5796_v25  ;;  %1429 = vmatpush2.msra.mxu0 %v5802_v38  ;;  %7295 = vst [vmem:[#allocation95_spill] sm:$0xff] %v5808_v12  ;;  %v5814_v25 = vld [vmem:[%s6494_s1 + $0x8f8] sm:$0xff]  ;;  %v5823_v38 = vld [vmem:[%s6494_s1 + $0x8f0] sm:$0xff] }
 0x1b8   : > { %1430 = vmatprep.mubr.f32.mxu0 %v1218_v26  ;;  %1500 = vmatpush2.msra.mxu1 %v5808_v12  ;;  %v2341_v26 = vld [vmem:[%s6494_s1 + $0xf8] sm:$0xff] }
 0x1b9   : > { %1431 = vmatmul.mubr.f32.vlgmr.msra.gmra.mxu0 %v2047_v30  ;;  %1501 = vmatprep.mubr.f32.mxu1 %v1219_v18  ;;  %v2343_v30 = vld [vmem:[%s6494_s1 + $0xf0] sm:$0xff]  ;;  %v5832_v18 = vld [vmem:[%s6494_s1 + $0x8e8] sm:$0xff]  ;;  %v5850_v12 = vld [vmem:[%s6494_s1 + $0x8d8] sm:$0xff] }
 0x1ba   : > { %1508 = vmatprep.subr.mxu0 %v5814_v25  ;;  %1599 = vmatprep.subr.mxu1 %v2341_v26  ;;  %7296 = vst [vmem:[#allocation150_spill] sm:$0xff] %v5832_v18  ;;  %v5841_v26 = vld [vmem:[%s6494_s1 + $0x8e0] sm:$0xff]  ;;  %7298 = vst [vmem:[#allocation152_spill] sm:$0xff] %v5850_v12 }
 0x1bb   : > { %1502 = vmatmul.mubr.f32.vlgmr.msra.gmra.mxu1 %v2048_v34  ;;  %1509 = vmatpush1.msra.mxu0 %v5823_v38  ;;  %v2345_v34 = vld [vmem:[%s6494_s1 + $0xe8] sm:$0xff]  ;;  %7297 = vst [vmem:[#allocation97_spill] sm:$0xff] %v5841_v26 }
 0x1bc   : > { %1600 = vmatpush1.msra.mxu1 %v2343_v30  ;;  %1510 = vmatprep.subr.mxu0 %v5832_v18  ;;  %v2347_v30 = vld [vmem:[%s6494_s1 + $0xe0] sm:$0xff]  ;;  %v2049_v18 = vld [vmem:[%s2937_s21 + $0x68] sm:$0xf] }
 0x1bd   : > { %1601 = vmatprep.subr.mxu1 %v2345_v34  ;;  %1511 = vmatpush1.msra.mxu0 %v5841_v26  ;;  %v2349_v34 = vld [vmem:[%s6494_s1 + $0xd8] sm:$0xff]  ;;  %v5859_v26 = vld [vmem:[%s6494_s1 + $0x8d0] sm:$0xff] }
 0x1be   : > { %1602 = vmatpush1.msra.mxu1 %v2347_v30  ;;  %1512 = vmatprep.subr.mxu0 %v5850_v12  ;;  %7299 = vst [vmem:[#allocation99_spill] sm:$0xff] %v5859_v26  ;;  %v2351_v30 = vld [vmem:[%s6494_s1 + $0xd0] sm:$0xff]  ;;  %v5868_v12 = vld [vmem:[%s6494_s1 + $0x8c8] sm:$0xff] }
 0x1bf   : > { %1603 = vmatprep.subr.mxu1 %v2349_v34  ;;  %1513 = vmatpush1.msra.mxu0 %v5859_v26  ;;  %7300 = vst [vmem:[#allocation154_spill] sm:$0xff] %v5868_v12  ;;  %v2353_v34 = vld [vmem:[%s6494_s1 + $0xc8] sm:$0xff]  ;;  %v5877_v26 = vld [vmem:[%s6494_s1 + $0x8c0] sm:$0xff] }
 0x1c0   : > { %1604 = vmatpush1.msra.mxu1 %v2351_v30  ;;  %1514 = vmatprep.subr.mxu0 %v5868_v12  ;;  %7301 = vst [vmem:[#allocation101_spill] sm:$0xff] %v5877_v26  ;;  %v2355_v30 = vld [vmem:[%s6494_s1 + $0xc0] sm:$0xff]  ;;  %v5886_v12 = vld [vmem:[%s6494_s1 + $0x8b8] sm:$0xff] }
 0x1c1   : > { %1605 = vmatprep.subr.mxu1 %v2353_v34  ;;  %1515 = vmatpush1.msra.mxu0 %v5877_v26  ;;  %7302 = vst [vmem:[#allocation156_spill] sm:$0xff] %v5886_v12  ;;  %v2357_v34 = vld [vmem:[%s6494_s1 + $0xb8] sm:$0xff]  ;;  %v5895_v26 = vld [vmem:[%s6494_s1 + $0x8b0] sm:$0xff] }
 0x1c2   : > { %1606 = vmatpush1.msra.mxu1 %v2355_v30  ;;  %1516 = vmatprep.subr.mxu0 %v5886_v12  ;;  %7303 = vst [vmem:[#allocation103_spill] sm:$0xff] %v5895_v26  ;;  %v2359_v30 = vld [vmem:[%s6494_s1 + $0xb0] sm:$0xff]  ;;  %v5904_v12 = vld [vmem:[%s6494_s1 + $0x8a8] sm:$0xff] }
 0x1c3   : > { %1607 = vmatprep.subr.mxu1 %v2357_v34  ;;  %1517 = vmatpush1.msra.mxu0 %v5895_v26  ;;  %7304 = vst [vmem:[#allocation158_spill] sm:$0xff] %v5904_v12  ;;  %v2361_v34 = vld [vmem:[%s6494_s1 + $0xa8] sm:$0xff]  ;;  %v5913_v26 = vld [vmem:[%s6494_s1 + $0x8a0] sm:$0xff] }
 0x1c4   : > { %1608 = vmatpush1.msra.mxu1 %v2359_v30  ;;  %1518 = vmatprep.subr.mxu0 %v5904_v12  ;;  %7305 = vst [vmem:[#allocation105_spill] sm:$0xff] %v5913_v26  ;;  %v2363_v30 = vld [vmem:[%s6494_s1 + $0xa0] sm:$0xff]  ;;  %v5922_v12 = vld [vmem:[%s6494_s1 + $0x898] sm:$0xff] }
 0x1c5   : > { %1609 = vmatprep.subr.mxu1 %v2361_v34  ;;  %1519 = vmatpush1.msra.mxu0 %v5913_v26  ;;  %7306 = vst [vmem:[#allocation160_spill] sm:$0xff] %v5922_v12  ;;  %v2365_v34 = vld [vmem:[%s6494_s1 + $0x98] sm:$0xff]  ;;  %v5931_v26 = vld [vmem:[%s6494_s1 + $0x890] sm:$0xff] }
 0x1c6   : > { %1610 = vmatpush1.msra.mxu1 %v2363_v30  ;;  %1520 = vmatprep.subr.mxu0 %v5922_v12  ;;  %7307 = vst [vmem:[#allocation106_spill] sm:$0xff] %v5931_v26  ;;  %v2367_v30 = vld [vmem:[%s6494_s1 + $0x90] sm:$0xff]  ;;  %v5940_v12 = vld [vmem:[%s6494_s1 + $0x888] sm:$0xff] }
 0x1c7   : > { %1611 = vmatprep.subr.mxu1 %v2365_v34  ;;  %1521 = vmatpush1.msra.mxu0 %v5931_v26  ;;  %7308 = vst [vmem:[#allocation162_spill] sm:$0xff] %v5940_v12  ;;  %v2369_v34 = vld [vmem:[%s6494_s1 + $0x88] sm:$0xff]  ;;  %v5949_v26 = vld [vmem:[%s6494_s1 + $0x880] sm:$0xff] }
 0x1c8   : > { %1612 = vmatpush1.msra.mxu1 %v2367_v30  ;;  %1522 = vmatprep.subr.mxu0 %v5940_v12  ;;  %7309 = vst [vmem:[#allocation107_spill] sm:$0xff] %v5949_v26  ;;  %v2371_v30 = vld [vmem:[%s6494_s1 + $0x80] sm:$0xff]  ;;  %v5958_v12 = vld [vmem:[%s6494_s1 + $0x878] sm:$0xff] }
 0x1c9   : > { %1613 = vmatprep.subr.mxu1 %v2369_v34  ;;  %1523 = vmatpush1.msra.mxu0 %v5949_v26  ;;  %7310 = vst [vmem:[#allocation164_spill] sm:$0xff] %v5958_v12  ;;  %v2373_v34 = vld [vmem:[%s6494_s1 + $0x78] sm:$0xff]  ;;  %v5967_v26 = vld [vmem:[%s6494_s1 + $0x870] sm:$0xff] }
 0x1ca   : > { %1614 = vmatpush1.msra.mxu1 %v2371_v30  ;;  %1524 = vmatprep.subr.mxu0 %v5958_v12  ;;  %7311 = vst [vmem:[#allocation108_spill] sm:$0xff] %v5967_v26  ;;  %v2375_v30 = vld [vmem:[%s6494_s1 + $0x70] sm:$0xff]  ;;  %v5976_v12 = vld [vmem:[%s6494_s1 + $0x868] sm:$0xff] }
 0x1cb   : > { %1615 = vmatprep.subr.mxu1 %v2373_v34  ;;  %1525 = vmatpush1.msra.mxu0 %v5967_v26  ;;  %7312 = vst [vmem:[#allocation109_spill] sm:$0xff] %v5976_v12  ;;  %v2377_v34 = vld [vmem:[%s6494_s1 + $0x68] sm:$0xff]  ;;  %v5985_v26 = vld [vmem:[%s6494_s1 + $0x860] sm:$0xff] }
 0x1cc   : > { %1616 = vmatpush1.msra.mxu1 %v2375_v30  ;;  %1526 = vmatprep.subr.mxu0 %v5976_v12  ;;  %7313 = vst [vmem:[#allocation111_spill] sm:$0xff] %v5985_v26  ;;  %v2379_v30 = vld [vmem:[%s6494_s1 + $0x60] sm:$0xff]  ;;  %v5994_v12 = vld [vmem:[%s6494_s1 + $0x858] sm:$0xff] }
 0x1cd   : > { %1617 = vmatprep.subr.mxu1 %v2377_v34  ;;  %1527 = vmatpush1.msra.mxu0 %v5985_v26  ;;  %7314 = vst [vmem:[#allocation113_spill] sm:$0xff] %v5994_v12  ;;  %v2381_v34 = vld [vmem:[%s6494_s1 + $0x58] sm:$0xff]  ;;  %v6003_v26 = vld [vmem:[%s6494_s1 + $0x850] sm:$0xff] }
 0x1ce   : > { %1618 = vmatpush1.msra.mxu1 %v2379_v30  ;;  %1528 = vmatprep.subr.mxu0 %v5994_v12  ;;  %7315 = vst [vmem:[#allocation115_spill] sm:$0xff] %v6003_v26  ;;  %v2383_v30 = vld [vmem:[%s6494_s1 + $0x50] sm:$0xff]  ;;  %v6012_v12 = vld [vmem:[%s6494_s1 + $0x848] sm:$0xff] }
 0x1cf   : > { %1619 = vmatprep.subr.mxu1 %v2381_v34  ;;  %1529 = vmatpush1.msra.mxu0 %v6003_v26  ;;  %7316 = vst [vmem:[#allocation117_spill] sm:$0xff] %v6012_v12  ;;  %v2385_v34 = vld [vmem:[%s6494_s1 + $0x48] sm:$0xff]  ;;  %v6021_v26 = vld [vmem:[%s6494_s1 + $0x840] sm:$0xff] }
 0x1d0   : > { %1620 = vmatpush1.msra.mxu1 %v2383_v30  ;;  %1530 = vmatprep.subr.mxu0 %v6012_v12  ;;  %7317 = vst [vmem:[#allocation119_spill] sm:$0xff] %v6021_v26  ;;  %v2387_v30 = vld [vmem:[%s6494_s1 + $0x40] sm:$0xff]  ;;  %v6030_v12 = vld [vmem:[%s6494_s1 + $0x838] sm:$0xff] }
 0x1d1   : > { %1621 = vmatprep.subr.mxu1 %v2385_v34  ;;  %1531 = vmatpush1.msra.mxu0 %v6021_v26  ;;  %7318 = vst [vmem:[#allocation121_spill] sm:$0xff] %v6030_v12  ;;  %v2389_v34 = vld [vmem:[%s6494_s1 + $0x38] sm:$0xff]  ;;  %v6039_v26 = vld [vmem:[%s6494_s1 + $0x830] sm:$0xff] }
 0x1d2   : > { %1622 = vmatpush1.msra.mxu1 %v2387_v30  ;;  %1532 = vmatprep.subr.mxu0 %v6030_v12  ;;  %7319 = vst [vmem:[#allocation123_spill] sm:$0xff] %v6039_v26  ;;  %v2391_v30 = vld [vmem:[%s6494_s1 + $0x30] sm:$0xff]  ;;  %v6048_v12 = vld [vmem:[%s6494_s1 + $0x828] sm:$0xff] }
 0x1d3   : > { %1623 = vmatprep.subr.mxu1 %v2389_v34  ;;  %1533 = vmatpush1.msra.mxu0 %v6039_v26  ;;  %7320 = vst [vmem:[#allocation125_spill] sm:$0xff] %v6048_v12  ;;  %v2393_v34 = vld [vmem:[%s6494_s1 + $0x28] sm:$0xff]  ;;  %v6057_v26 = vld [vmem:[%s6494_s1 + $0x820] sm:$0xff] }
 0x1d4   : > { %1624 = vmatpush1.msra.mxu1 %v2391_v30  ;;  %1534 = vmatprep.subr.mxu0 %v6048_v12  ;;  %7321 = vst [vmem:[#allocation127_spill] sm:$0xff] %v6057_v26  ;;  %v2395_v30 = vld [vmem:[%s6494_s1 + $0x20] sm:$0xff]  ;;  %v6066_v12 = vld [vmem:[%s6494_s1 + $0x818] sm:$0xff] }
 0x1d5   : > { %1625 = vmatprep.subr.mxu1 %v2393_v34  ;;  %1535 = vmatpush1.msra.mxu0 %v6057_v26  ;;  %7322 = vst [vmem:[#allocation129_spill] sm:$0xff] %v6066_v12  ;;  %v2397_v34 = vld [vmem:[%s6494_s1 + $0x18] sm:$0xff]  ;;  %v6075_v26 = vld [vmem:[%s6494_s1 + $0x810] sm:$0xff] }
 0x1d6   : > { %1626 = vmatpush1.msra.mxu1 %v2395_v30  ;;  %1536 = vmatprep.subr.mxu0 %v6066_v12  ;;  %v2399_v30 = vld [vmem:[%s6494_s1 + $0x10] sm:$0xff]  ;;  %v6085_v12 = vld [vmem:[%s6494_s1 + $0x808] sm:$0xff] }
 0x1d7   : > { %1627 = vmatprep.subr.mxu1 %v2397_v34  ;;  %1537 = vmatpush1.msra.mxu0 %v6075_v26  ;;  %v6092_v34 = vld [vmem:[%s6494_s1 + $0x800] sm:$0xff] }
 0x1d8   : > { %1628 = vmatpush1.msra.mxu1 %v2399_v30  ;;  %1538 = vmatprep.subr.mxu0 %v6085_v12  ;;  %v2402_v30 = vld [vmem:[%s6494_s1 + $0x2f8] sm:$0xff] }
 0x1d9   : > { %1629 = vmatprep.subr.mxu1 %v4794_v40  ;;  %1539 = vmatpush1.msra.mxu0 %v6092_v34  ;;  %v2403_v40 = vld [vmem:[%s6494_s1 + $0x2f0] sm:$0xff] }
 0x1da   : > { %1572 = vmatprep.mubr.f32.mxu0 %v7139_v59  ;;  %1630 = vmatpush1.msra.mxu1 %v4801_v42  ;;  %v2404_v42 = vld [vmem:[%s6494_s1 + $0x2e8] sm:$0xff] }
 0x1db   : > { %1573 = vmatmul.mubr.f32.vlgmr.msra.gmra.mxu0 %v2049_v18  ;;  %1631 = vmatprep.subr.mxu1 %v4808_v35  ;;  %v2405_v35 = vld [vmem:[%s6494_s1 + $0x2e0] sm:$0xff]  ;;  %v2428_v18 = vld [vmem:[%s6494_s1 + $0x228] sm:$0xff] }
 0x1dc   : > { %1670 = vmatprep.subr.mxu0 %v2402_v30  ;;  %1632 = vmatpush2.msra.mxu1 %v4815_v44  ;;  %v2406_v44 = vld [vmem:[%s6494_s1 + $0x2d8] sm:$0xff]  ;;  %v2431_v30 = vld [vmem:[%s6494_s1 + $0x210] sm:$0xff] }
 0x1dd   : > { %1671 = vmatpush1.msra.mxu0 %v2403_v40  ;;  %1633 = vmatprep.subr.mxu1 %v4822_v48  ;;  %v2407_v48 = vld [vmem:[%s6494_s1 + $0x2d0] sm:$0xff]  ;;  %v2437_v40 = vld [vmem:[%s6494_s1 + $0x3e0] sm:$0xff] }
 0x1de   : > { %1672 = vmatprep.subr.mxu0 %v2404_v42  ;;  %1634 = vmatpush2.msra.mxu1 %v4829_v50  ;;  %v2408_v50 = vld [vmem:[%s6494_s1 + $0x2c8] sm:$0xff] }
 0x1df   : > { %1673 = vmatpush1.msra.mxu0 %v2405_v35  ;;  %1635 = vmatprep.subr.mxu1 %v4836_v52  ;;  %v2409_v52 = vld [vmem:[%s6494_s1 + $0x2c0] sm:$0xff]  ;;  %v2456_v42 = vld [vmem:[%s6494_s1 + $0x348] sm:$0xff] }
 0x1e0   : > { %1674 = vmatprep.subr.mxu0 %v2406_v44  ;;  %1636 = vmatpush2.msra.mxu1 %v4843_v54  ;;  %v2410_v54 = vld [vmem:[%s6494_s1 + $0x2b8] sm:$0xff]  ;;  %v2457_v35 = vld [vmem:[%s6494_s1 + $0x340] sm:$0xff] }
 0x1e1   : > { %1675 = vmatpush1.msra.mxu0 %v2407_v48  ;;  %1637 = vmatprep.subr.mxu1 %v4850_v57  ;;  %v2411_v57 = vld [vmem:[%s6494_s1 + $0x2b0] sm:$0xff]  ;;  %v2458_v44 = vld [vmem:[%s6494_s1 + $0x338] sm:$0xff]  ;;  %v7326_v48 = vld [vmem:[#allocation74_spill] sm:$0xff] }
 0x1e2   : > { %1676 = vmatprep.subr.mxu0 %v2408_v50  ;;  %1638 = vmatpush2.msra.mxu1 %v4857_v61  ;;  %v2412_v61 = vld [vmem:[%s6494_s1 + $0x2a8] sm:$0xff]  ;;  %v2051_v50 = vld [vmem:[%s2937_s21 + $0x74] sm:$0xff] }
 0x1e3   : > { %1677 = vmatpush1.msra.mxu0 %v2409_v52  ;;  %1639 = vmatprep.subr.mxu1 %v4864_v1  ;;  %v2413_v1 = vld [vmem:[%s6494_s1 + $0x2a0] sm:$0xff]  ;;  %v2459_v52 = vld [vmem:[%s6494_s1 + $0x330] sm:$0xff] }
 0x1e4   : > { %1678 = vmatprep.subr.mxu0 %v2410_v54  ;;  %1640 = vmatpush2.msra.mxu1 %v4871_v7  ;;  %v2414_v7 = vld [vmem:[%s6494_s1 + $0x298] sm:$0xff]  ;;  %v7327_v54 = vld [vmem:[#allocation76_spill] sm:$0xff] }
 0x1e5   : > { %1679 = vmatpush1.msra.mxu0 %v2411_v57  ;;  %1641 = vmatprep.subr.mxu1 %v4878_v58  ;;  %v2415_v58 = vld [vmem:[%s6494_s1 + $0x290] sm:$0xff]  ;;  %v2460_v57 = vld [vmem:[%s6494_s1 + $0x328] sm:$0xff] }
 0x1e6   : > { %1680 = vmatprep.subr.mxu0 %v2412_v61  ;;  %1642 = vmatpush2.msra.mxu1 %v4885_v13  ;;  %v2416_v13 = vld [vmem:[%s6494_s1 + $0x288] sm:$0xff]  ;;  %v7328_v61 = vld [vmem:[#allocation78_spill] sm:$0xff] }
 0x1e7   : > { %1681 = vmatpush1.msra.mxu0 %v2413_v1  ;;  %1643 = vmatprep.subr.mxu1 %v4892_v21  ;;  %v2417_v21 = vld [vmem:[%s6494_s1 + $0x280] sm:$0xff] }
 0x1e8   : > { %1682 = vmatprep.subr.mxu0 %v2414_v7  ;;  %1644 = vmatpush2.msra.mxu1 %v4899_v29  ;;  %v2418_v29 = vld [vmem:[%s6494_s1 + $0x278] sm:$0xff]  ;;  %v2461_v1 = vld [vmem:[%s6494_s1 + $0x320] sm:$0xff]  ;;  %v7329_v7 = vld [vmem:[#allocation80_spill] sm:$0xff] }
 0x1e9   : > { %1683 = vmatpush1.msra.mxu0 %v2415_v58  ;;  %1645 = vmatprep.subr.mxu1 %v4906_v37  ;;  %v2419_v37 = vld [vmem:[%s6494_s1 + $0x270] sm:$0xff]  ;;  %v1592_v58 = vcombine.high %v2051_v50, %v2051_v50 }
 0x1ea   : > { %1684 = vmatprep.subr.mxu0 %v2416_v13  ;;  %1646 = vmatpush2.msra.mxu1 %v4913_v27  ;;  %v2420_v27 = vld [vmem:[%s6494_s1 + $0x268] sm:$0xff]  ;;  %v2462_v13 = vld [vmem:[%s6494_s1 + $0x318] sm:$0xff] }
 0x1eb   : > { %1685 = vmatpush1.msra.mxu0 %v2417_v21  ;;  %1647 = vmatprep.subr.mxu1 %v4920_v47  ;;  %v2421_v47 = vld [vmem:[%s6494_s1 + $0x260] sm:$0xff] }
 0x1ec   : > { %1686 = vmatprep.subr.mxu0 %v2418_v29  ;;  %1648 = vmatpush2.msra.mxu1 %v4927_v43  ;;  %v2422_v43 = vld [vmem:[%s6494_s1 + $0x258] sm:$0xff]  ;;  %v7330_v21 = vld [vmem:[#allocation82_spill] sm:$0xff]  ;;  %v2463_v29 = vld [vmem:[%s6494_s1 + $0x310] sm:$0xff] }
 0x1ed   : > { %1687 = vmatpush1.msra.mxu0 %v2419_v37  ;;  %1649 = vmatprep.subr.mxu1 %v4934_v3  ;;  %v2423_v3 = vld [vmem:[%s6494_s1 + $0x250] sm:$0xff] }
 0x1ee   : > { %1688 = vmatprep.subr.mxu0 %v2420_v27  ;;  %1650 = vmatpush2.msra.mxu1 %v4941_v19  ;;  %v2424_v19 = vld [vmem:[%s6494_s1 + $0x248] sm:$0xff]  ;;  %v7331_v37 = vld [vmem:[#allocation84_spill] sm:$0xff] }
 0x1ef   : > { %1689 = vmatpush1.msra.mxu0 %v2421_v47  ;;  %1651 = vmatprep.subr.mxu1 %v4948_v15  ;;  %v2425_v15 = vld [vmem:[%s6494_s1 + $0x240] sm:$0xff]  ;;  %v7332_v27 = vld [vmem:[#allocation44_spill] sm:$0xff] }
 0x1f0   : > { %1690 = vmatprep.subr.mxu0 %v2422_v43  ;;  %1652 = vmatpush2.msra.mxu1 %v4955_v45  ;;  %v2426_v45 = vld [vmem:[%s6494_s1 + $0x238] sm:$0xff]  ;;  %v7333_v47 = vld [vmem:[#allocation86_spill] sm:$0xff] }
 0x1f1   : > { %1691 = vmatpush1.msra.mxu0 %v2423_v3  ;;  %1653 = vmatprep.subr.mxu1 %v4962_v56  ;;  %v2427_v56 = vld [vmem:[%s6494_s1 + $0x230] sm:$0xff]  ;;  %v7334_v43 = vld [vmem:[#allocation2_spill] sm:$0xff] }
 0x1f2   : > { %1692 = vmatprep.subr.mxu0 %v2424_v19  ;;  %1654 = vmatpush2.msra.mxu1 %v4969_v55  ;;  %v2050_v55 = vld [vmem:[%s2937_s21 + $0x6c] sm:$0xff]  ;;  %v7336_v19 = vld [vmem:[#allocation90_spill] sm:$0xff] }
 0x1f3   : > { %1693 = vmatpush1.msra.mxu0 %v2425_v15  ;;  %1655 = vmatprep.subr.mxu1 %v4976_v9  ;;  %v2429_v9 = vld [vmem:[%s6494_s1 + $0x220] sm:$0xff]  ;;  %v7335_v3 = vld [vmem:[#allocation88_spill] sm:$0xff] }
 0x1f4   : > { %1694 = vmatprep.subr.mxu0 %v2426_v45  ;;  %1656 = vmatpush2.msra.mxu1 %v4984_v62  ;;  %v2430_v62 = vld [vmem:[%s6494_s1 + $0x218] sm:$0xff]  ;;  %v7337_v15 = vld [vmem:[#allocation46_spill] sm:$0xff]  ;;  %v7338_v45 = vld [vmem:[#allocation92_spill] sm:$0xff] }
 0x1f5   : > { %1695 = vmatpush1.msra.mxu0 %v2427_v56  ;;  %1657 = vmatprep.subr.mxu1 %v4992_v4  ;;  %v1591_v4 = vcombine.high %v2050_v55, %v2050_v55  ;;  %v7339_v56 = vld [vmem:[#allocation3_spill] sm:$0xff] }
 0x1f6   : > { %1696 = vmatprep.subr.mxu0 %v2428_v18  ;;  %1658 = vmatpush2.msra.mxu1 %v4999_v8  ;;  %v2432_v8 = vld [vmem:[%s6494_s1 + $0x208] sm:$0xff]  ;;  %v7341_v18 = vld [vmem:[#allocation48_spill] sm:$0xff] }
 0x1f7   : > { %1697 = vmatpush1.msra.mxu0 %v2429_v9  ;;  %1659 = vmatprep.subr.mxu1 %v5006_v14  ;;  %v2433_v14 = vld [vmem:[%s6494_s1 + $0x200] sm:$0xff]  ;;  %v7342_v9 = vld [vmem:[#allocation96_spill] sm:$0xff] }
 0x1f8   : > { %1698 = vmatprep.subr.mxu0 %v2430_v62  ;;  %1660 = vmatpush2.msra.mxu1 %v5013_v20  ;;  %v2434_v20 = vld [vmem:[%s6494_s1 + $0x3f8] sm:$0xff]  ;;  %v7343_v62 = vld [vmem:[#allocation50_spill] sm:$0xff] }
 0x1f9   : > { %1699 = vmatpush1.msra.mxu0 %v2431_v30  ;;  %1661 = vmatprep.subr.mxu1 %v5020_v24  ;;  %v2435_v24 = vld [vmem:[%s6494_s1 + $0x3f0] sm:$0xff] }
 0x1fa   : > { %1700 = vmatprep.subr.mxu0 %v2432_v8  ;;  %1662 = vmatpush2.msra.mxu1 %v5032_v28  ;;  %v2436_v28 = vld [vmem:[%s6494_s1 + $0x3e8] sm:$0xff]  ;;  %v7345_v30 = vld [vmem:[#allocation4_spill] sm:$0xff] }
 0x1fb   : > { %1701 = vmatpush1.msra.mxu0 %v2433_v14  ;;  %1663 = vmatprep.mubr.f32.mxu1 %v1591_v4  ;;  %v7344_v4 = vld [vmem:[#allocation98_spill] sm:$0xff]  ;;  %v7346_v8 = vld [vmem:[#allocation100_spill] sm:$0xff] }
 0x1fc   : > { %1702 = vmatprep.subr.mxu0 %v2434_v20  ;;  %1741 = vmatprep.subr.mxu1 %v5044_v32  ;;  %v2438_v32 = vld [vmem:[%s6494_s1 + $0x3d8] sm:$0xff]  ;;  %v7347_v14 = vld [vmem:[#allocation52_spill] sm:$0xff]  ;;  %v7348_v20 = vld [vmem:[#allocation102_spill] sm:$0xff] }
 0x1fd   : > { %1664 = vmatmul.mubr.f32.vlgmr.msra.gmra.mxu1 %v2050_v55  ;;  %1703 = vmatpush2.msra.mxu0 %v2435_v24  ;;  %v7340_v55 = vld [vmem:[#allocation94_spill] sm:$0xff]  ;;  %v7349_v24 = vld [vmem:[#allocation5_spill] sm:$0xff] }
 0x1fe   : > { %1742 = vmatpush1.msra.mxu1 %v5056_v36  ;;  %1704 = vmatprep.subr.mxu0 %v2436_v28  ;;  %v2439_v36 = vld [vmem:[%s6494_s1 + $0x3d0] sm:$0xff] }
 0x1ff   : > { %1743 = vmatprep.subr.mxu1 %v5068_v17  ;;  %1705 = vmatpush2.msra.mxu0 %v2437_v40  ;;  %v2440_v17 = vld [vmem:[%s6494_s1 + $0x3c8] sm:$0xff]  ;;  %v7350_v28 = vld [vmem:[#allocation104_spill] sm:$0xff]  ;;  %v7351_v40 = vld [vmem:[#allocation54_spill] sm:$0xff] }
 0x200   : > { %1744 = vmatpush1.msra.mxu1 %v5080_v33  ;;  %1706 = vmatprep.subr.mxu0 %v2438_v32  ;;  %v2441_v33 = vld [vmem:[%s6494_s1 + $0x3c0] sm:$0xff]  ;;  %v7352_v32 = vld [vmem:[#allocation43_spill] sm:$0xff] }
 0x201   : > { %1745 = vmatprep.subr.mxu1 %v5092_v51  ;;  %1707 = vmatpush2.msra.mxu0 %v2439_v36  ;;  %v2442_v51 = vld [vmem:[%s6494_s1 + $0x3b8] sm:$0xff]  ;;  %v7353_v36 = vld [vmem:[#allocation6_spill] sm:$0xff] }
 0x202   : > { %1746 = vmatpush1.msra.mxu1 %v5104_v11  ;;  %1708 = vmatprep.subr.mxu0 %v2440_v17  ;;  %v2443_v11 = vld [vmem:[%s6494_s1 + $0x3b0] sm:$0xff]  ;;  %v7354_v17 = vld [vmem:[#allocation47_spill] sm:$0xff] }
 0x203   : > { %1747 = vmatprep.subr.mxu1 %v5116_v46  ;;  %1709 = vmatpush2.msra.mxu0 %v2441_v33  ;;  %v2444_v46 = vld [vmem:[%s6494_s1 + $0x3a8] sm:$0xff]  ;;  %v7355_v33 = vld [vmem:[#allocation56_spill] sm:$0xff] }
 0x204   : > { %1748 = vmatpush1.msra.mxu1 %v5128_v63  ;;  %1710 = vmatprep.subr.mxu0 %v2442_v51  ;;  %v2445_v63 = vld [vmem:[%s6494_s1 + $0x3a0] sm:$0xff]  ;;  %v7356_v51 = vld [vmem:[#allocation51_spill] sm:$0xff] }
 0x205   : > { %1749 = vmatprep.subr.mxu1 %v5140_v23  ;;  %1711 = vmatpush2.msra.mxu0 %v2443_v11  ;;  %v2446_v23 = vld [vmem:[%s6494_s1 + $0x398] sm:$0xff]  ;;  %v7357_v11 = vld [vmem:[#allocation7_spill] sm:$0xff] }
 0x206   : > { %1750 = vmatpush1.msra.mxu1 %v5152_v60  ;;  %1712 = vmatprep.subr.mxu0 %v2444_v46  ;;  %v2447_v60 = vld [vmem:[%s6494_s1 + $0x390] sm:$0xff]  ;;  %v7358_v46 = vld [vmem:[#allocation55_spill] sm:$0xff] }
 0x207   : > { %1751 = vmatprep.subr.mxu1 %v5164_v2  ;;  %1713 = vmatpush2.msra.mxu0 %v2445_v63  ;;  %v2448_v2 = vld [vmem:[%s6494_s1 + $0x388] sm:$0xff]  ;;  %v7359_v63 = vld [vmem:[#allocation58_spill] sm:$0xff] }
 0x208   : > { %1752 = vmatpush1.msra.mxu1 %v5176_v10  ;;  %1714 = vmatprep.subr.mxu0 %v2446_v23  ;;  %v2449_v10 = vld [vmem:[%s6494_s1 + $0x380] sm:$0xff]  ;;  %v7360_v23 = vld [vmem:[#allocation57_spill] sm:$0xff] }
 0x209   : > { %1753 = vmatprep.subr.mxu1 %v5188_v16  ;;  %1715 = vmatpush2.msra.mxu0 %v2447_v60  ;;  %v2450_v16 = vld [vmem:[%s6494_s1 + $0x378] sm:$0xff]  ;;  %v7361_v60 = vld [vmem:[#allocation8_spill] sm:$0xff] }
 0x20a   : > { %1754 = vmatpush1.msra.mxu1 %v5200_v22  ;;  %1716 = vmatprep.subr.mxu0 %v2448_v2  ;;  %v2451_v22 = vld [vmem:[%s6494_s1 + $0x370] sm:$0xff]  ;;  %v7362_v2 = vld [vmem:[#allocation59_spill] sm:$0xff] }
 0x20b   : > { %1755 = vmatprep.subr.mxu1 %v5212_v6  ;;  %1717 = vmatpush2.msra.mxu0 %v2449_v10  ;;  %v2452_v6 = vld [vmem:[%s6494_s1 + $0x368] sm:$0xff]  ;;  %v7363_v10 = vld [vmem:[#allocation60_spill] sm:$0xff] }
 0x20c   : > { %1756 = vmatpush1.msra.mxu1 %v5224_v0  ;;  %1718 = vmatprep.subr.mxu0 %v2450_v16  ;;  %v2453_v0 = vld [vmem:[%s6494_s1 + $0x360] sm:$0xff]  ;;  %v7364_v16 = vld [vmem:[#allocation61_spill] sm:$0xff] }
 0x20d   : > { %1757 = vmatprep.subr.mxu1 %v5236_v31  ;;  %1719 = vmatpush2.msra.mxu0 %v2451_v22  ;;  %v2454_v31 = vld [vmem:[%s6494_s1 + $0x358] sm:$0xff] }
 0x20e   : > { %1758 = vmatpush1.msra.mxu1 %v5248_v53  ;;  %1720 = vmatprep.subr.mxu0 %v2452_v6  ;;  %v2455_v53 = vld [vmem:[%s6494_s1 + $0x350] sm:$0xff]  ;;  %v7365_v22 = vld [vmem:[#allocation9_spill] sm:$0xff]  ;;  %v7366_v6 = vld [vmem:[#allocation63_spill] sm:$0xff] }
 0x20f   : > { %1759 = vmatprep.subr.mxu1 %v5260_v5  ;;  %1721 = vmatpush2.msra.mxu0 %v2453_v0  ;;  %v7323_v5 = vld [vmem:[#allocation68_spill] sm:$0xff]  ;;  %v7367_v0 = vld [vmem:[#allocation62_spill] sm:$0xff] }
 0x210   : > { %1760 = vmatpush1.msra.mxu1 %v5272_v39  ;;  %1722 = vmatprep.subr.mxu0 %v2454_v31  ;;  %v7324_v39 = vld [vmem:[#allocation70_spill] sm:$0xff]  ;;  %v7368_v31 = vld [vmem:[#allocation65_spill] sm:$0xff] }
 0x211   : > { %1761 = vmatprep.subr.mxu1 %v5284_v49  ;;  %1723 = vmatpush2.msra.mxu0 %v2455_v53  ;;  %v7325_v49 = vld [vmem:[#allocation72_spill] sm:$0xff]  ;;  %v7369_v53 = vld [vmem:[#allocation10_spill] sm:$0xff] }
 0x212   : > { %1762 = vmatpush1.msra.mxu1 %v7323_v5  ;;  %1724 = vmatprep.subr.mxu0 %v2456_v42  ;;  %v7370_v5 = vld [vmem:[#allocation67_spill] sm:$0xff]  ;;  %v7371_v42 = vld [vmem:[#allocation64_spill] sm:$0xff] }
 0x213   : > { %1763 = vmatprep.subr.mxu1 %v7324_v39  ;;  %1725 = vmatpush2.msra.mxu0 %v2457_v35  ;;  %v7372_v39 = vld [vmem:[#allocation69_spill] sm:$0xff]  ;;  %v7373_v35 = vld [vmem:[#allocation11_spill] sm:$0xff] }
 0x214   : > { %1764 = vmatpush1.msra.mxu1 %v7325_v49  ;;  %1726 = vmatprep.subr.mxu0 %v2458_v44  ;;  %v7374_v49 = vld [vmem:[#allocation71_spill] sm:$0xff]  ;;  %v7375_v44 = vld [vmem:[#allocation66_spill] sm:$0xff] }
 0x215   : > { %1765 = vmatprep.subr.mxu1 %v7326_v48  ;;  %1727 = vmatpush2.msra.mxu0 %v2459_v52  ;;  %v7376_v48 = vld [vmem:[#allocation73_spill] sm:$0xff]  ;;  %v7378_v52 = vld [vmem:[#allocation75_spill] sm:$0xff] }
 0x216   : > { %1766 = vmatpush1.msra.mxu1 %v7327_v54  ;;  %1728 = vmatprep.subr.mxu0 %v2460_v57  ;;  %v7379_v54 = vld [vmem:[#allocation13_spill] sm:$0xff] }
 0x217   : > { %1767 = vmatprep.subr.mxu1 %v7328_v61  ;;  %1729 = vmatpush2.msra.mxu0 %v2461_v1  ;;  %v7380_v57 = vld [vmem:[#allocation77_spill] sm:$0xff]  ;;  %v7381_v61 = vld [vmem:[#allocation14_spill] sm:$0xff]  ;;  %v7382_v1 = vld [vmem:[#allocation79_spill] sm:$0xff] }
 0x218   : > { %1768 = vmatpush1.msra.mxu1 %v7329_v7  ;;  %1730 = vmatprep.subr.mxu0 %v2462_v13  ;;  %v7383_v7 = vld [vmem:[#allocation15_spill] sm:$0xff]  ;;  %v7385_v13 = vld [vmem:[#allocation16_spill] sm:$0xff] }
 0x219   : > { %1769 = vmatprep.subr.mxu1 %v7330_v21  ;;  %1731 = vmatpush2.msra.mxu0 %v2463_v29  ;;  %v2052_v21 = vld [vmem:[%s2937_s21 + $0x7c] sm:$0xff]  ;;  %v7386_v29 = vld [vmem:[#allocation83_spill] sm:$0xff] }
 0x21a   : > { %1770 = vmatpush1.msra.mxu1 %v7331_v37  ;;  %1732 = vmatprep.subr.mxu0 %v7332_v27  ;;  %v7387_v37 = vld [vmem:[#allocation17_spill] sm:$0xff] }
 0x21b   : > { %1771 = vmatprep.subr.mxu1 %v7333_v47  ;;  %1733 = vmatpush2.msra.mxu0 %v7334_v43  ;;  %v7388_v27 = vld [vmem:[#allocation85_spill] sm:$0xff]  ;;  %v7389_v47 = vld [vmem:[#allocation18_spill] sm:$0xff]  ;;  %v7390_v43 = vld [vmem:[#allocation87_spill] sm:$0xff] }
 0x21c   : > { %1734 = vmatprep.mubr.f32.mxu0 %v1592_v58  ;;  %1772 = vmatpush1.msra.mxu1 %v7335_v3  ;;  %v7384_v58 = vld [vmem:[#allocation81_spill] sm:$0xff]  ;;  %v7391_v3 = vld [vmem:[#allocation19_spill] sm:$0xff] }
 0x21d   : > { %1735 = vmatmul.mubr.f32.vlgmr.msra.gmra.mxu0 %v2051_v50  ;;  %1773 = vmatprep.subr.mxu1 %v7336_v19  ;;  %v7377_v50 = vld [vmem:[#allocation12_spill] sm:$0xff]  ;;  %v1593_v19 = vcombine.high %v2052_v21, %v2052_v21 }
 0x21e   : > { %1812 = vmatprep.subr.mxu0 %v7337_v15  ;;  %1774 = vmatpush2.msra.mxu1 %v7338_v45  ;;  %v7392_v15 = vld [vmem:[#allocation89_spill] sm:$0xff]  ;;  %v7393_v45 = vld [vmem:[#allocation20_spill] sm:$0xff] }
 0x21f   : > { %1813 = vmatpush1.msra.mxu0 %v7339_v56  ;;  %1775 = vmatprep.subr.mxu1 %v7340_v55  ;;  %v7394_v56 = vld [vmem:[#allocation91_spill] sm:$0xff]  ;;  %v7395_v55 = vld [vmem:[#allocation21_spill] sm:$0xff] }
 0x220   : > { %1814 = vmatprep.subr.mxu0 %v7341_v18  ;;  %1776 = vmatpush2.msra.mxu1 %v7342_v9  ;;  %v7396_v18 = vld [vmem:[#allocation23_spill] sm:$0xff]  ;;  %v7397_v9 = vld [vmem:[#allocation148_spill] sm:$0xff] }
 0x221   : > { %1815 = vmatpush1.msra.mxu0 %v7343_v62  ;;  %1777 = vmatprep.subr.mxu1 %v7344_v4  ;;  %v7398_v62 = vld [vmem:[#allocation25_spill] sm:$0xff]  ;;  %v7399_v4 = vld [vmem:[#allocation27_spill] sm:$0xff] }
 0x222   : > { %1816 = vmatprep.subr.mxu0 %v7345_v30  ;;  %1778 = vmatpush2.msra.mxu1 %v7346_v8  ;;  %v7400_v30 = vld [vmem:[#allocation29_spill] sm:$0xff]  ;;  %v7401_v8 = vld [vmem:[#allocation31_spill] sm:$0xff] }
 0x223   : > { %1817 = vmatpush1.msra.mxu0 %v7347_v14  ;;  %1779 = vmatprep.subr.mxu1 %v7348_v20  ;;  %v7402_v14 = vld [vmem:[#allocation150_spill] sm:$0xff]  ;;  %v7404_v20 = vld [vmem:[#allocation97_spill] sm:$0xff] }
 0x224   : > { %1818 = vmatprep.subr.mxu0 %v7349_v24  ;;  %1780 = vmatpush2.msra.mxu1 %v7350_v28  ;;  %v7405_v24 = vld [vmem:[#allocation35_spill] sm:$0xff]  ;;  %v7406_v28 = vld [vmem:[#allocation152_spill] sm:$0xff] }
 0x225   : > { %1819 = vmatpush1.msra.mxu0 %v7351_v40  ;;  %1781 = vmatprep.subr.mxu1 %v7352_v32  ;;  %v7407_v40 = vld [vmem:[#allocation37_spill] sm:$0xff]  ;;  %v7408_v32 = vld [vmem:[#allocation99_spill] sm:$0xff] }
 0x226   : > { %1820 = vmatprep.subr.mxu0 %v7353_v36  ;;  %1782 = vmatpush2.msra.mxu1 %v7354_v17  ;;  %v7410_v36 = vld [vmem:[#allocation154_spill] sm:$0xff]  ;;  %v7412_v17 = vld [vmem:[#allocation101_spill] sm:$0xff] }
 0x227   : > { %1821 = vmatpush1.msra.mxu0 %v7355_v33  ;;  %1783 = vmatprep.subr.mxu1 %v7356_v51  ;;  %v7413_v33 = vld [vmem:[#allocation45_spill] sm:$0xff]  ;;  %v7414_v51 = vld [vmem:[#allocation156_spill] sm:$0xff] }
 0x228   : > { %1822 = vmatprep.subr.mxu0 %v7357_v11  ;;  %1784 = vmatpush2.msra.mxu1 %v7358_v46  ;;  %v7415_v11 = vld [vmem:[#allocation49_spill] sm:$0xff]  ;;  %v7416_v46 = vld [vmem:[#allocation103_spill] sm:$0xff] }
 0x229   : > { %1823 = vmatpush1.msra.mxu0 %v7359_v63  ;;  %1785 = vmatprep.subr.mxu1 %v7360_v23  ;;  %v7417_v63 = vld [vmem:[#allocation53_spill] sm:$0xff]  ;;  %v7418_v23 = vld [vmem:[#allocation158_spill] sm:$0xff] }
 0x22a   : > { %1824 = vmatprep.subr.mxu0 %v7361_v60  ;;  %1786 = vmatpush2.msra.mxu1 %v7362_v2  ;;  %v7419_v60 = vld [vmem:[#allocation110_spill] sm:$0xff]  ;;  %v7420_v2 = vld [vmem:[#allocation105_spill] sm:$0xff] }
 0x22b   : > { %1825 = vmatpush1.msra.mxu0 %v7363_v10  ;;  %1787 = vmatprep.subr.mxu1 %v7364_v16  ;;  %v7421_v10 = vld [vmem:[#allocation112_spill] sm:$0xff] }
 0x22c   : > { %1826 = vmatprep.subr.mxu0 %v7365_v22  ;;  %1788 = vmatpush2.msra.mxu1 %v7366_v6  ;;  %v7422_v16 = vld [vmem:[#allocation160_spill] sm:$0xff]  ;;  %v7423_v22 = vld [vmem:[#allocation114_spill] sm:$0xff] }
 0x22d   : > { %1827 = vmatpush1.msra.mxu0 %v7367_v0  ;;  %1789 = vmatprep.subr.mxu1 %v7368_v31  ;;  %v7424_v6 = vld [vmem:[#allocation106_spill] sm:$0xff]  ;;  %v7425_v0 = vld [vmem:[#allocation116_spill] sm:$0xff] }
 0x22e   : > { %1828 = vmatprep.subr.mxu0 %v7369_v53  ;;  %1790 = vmatpush2.msra.mxu1 %v7370_v5  ;;  %v7426_v31 = vld [vmem:[#allocation162_spill] sm:$0xff]  ;;  %v7428_v5 = vld [vmem:[#allocation107_spill] sm:$0xff] }
 0x22f   : > { %1829 = vmatpush1.msra.mxu0 %v7371_v42  ;;  %1791 = vmatprep.subr.mxu1 %v7372_v39  ;;  %v7427_v53 = vld [vmem:[#allocation118_spill] sm:$0xff]  ;;  %v7429_v42 = vld [vmem:[#allocation120_spill] sm:$0xff] }
 0x230   : > { %1830 = vmatprep.subr.mxu0 %v7373_v35  ;;  %1792 = vmatpush2.msra.mxu1 %v7374_v49  ;;  %v7430_v39 = vld [vmem:[#allocation164_spill] sm:$0xff]  ;;  %v7431_v35 = vld [vmem:[#allocation122_spill] sm:$0xff] }
 0x231   : > { %1831 = vmatpush1.msra.mxu0 %v7375_v44  ;;  %1793 = vmatprep.subr.mxu1 %v7376_v48  ;;  %v7432_v49 = vld [vmem:[#allocation108_spill] sm:$0xff]  ;;  %v7434_v48 = vld [vmem:[#allocation109_spill] sm:$0xff] }
 0x232   : > { %1832 = vmatprep.subr.mxu0 %v7377_v50  ;;  %1794 = vmatpush2.msra.mxu1 %v7378_v52  ;;  %v7433_v44 = vld [vmem:[#allocation124_spill] sm:$0xff]  ;;  %v7435_v50 = vld [vmem:[#allocation126_spill] sm:$0xff]  ;;  %v7436_v52 = vld [vmem:[#allocation111_spill] sm:$0xff] }
 0x233   : > { %1833 = vmatpush1.msra.mxu0 %v7379_v54  ;;  %1795 = vmatprep.subr.mxu1 %v7380_v57  ;;  %v7437_v54 = vld [vmem:[#allocation128_spill] sm:$0xff]  ;;  %v7438_v57 = vld [vmem:[#allocation113_spill] sm:$0xff] }
 0x234   : > { %1834 = vmatprep.subr.mxu0 %v7381_v61  ;;  %1796 = vmatpush2.msra.mxu1 %v7382_v1  ;;  %v7439_v61 = vld [vmem:[#allocation130_spill] sm:$0xff]  ;;  %v7440_v1 = vld [vmem:[#allocation115_spill] sm:$0xff] }
 0x235   : > { %1835 = vmatpush1.msra.mxu0 %v7383_v7  ;;  %1797 = vmatprep.subr.mxu1 %v7384_v58  ;;  %v7441_v7 = vld [vmem:[#allocation132_spill] sm:$0xff]  ;;  %v7442_v58 = vld [vmem:[#allocation117_spill] sm:$0xff] }
 0x236   : > { %1836 = vmatprep.subr.mxu0 %v7385_v13  ;;  %1798 = vmatpush2.msra.mxu1 %v7386_v29  ;;  %v7443_v13 = vld [vmem:[#allocation134_spill] sm:$0xff]  ;;  %v7445_v29 = vld [vmem:[#allocation136_spill] sm:$0xff] }
 0x237   : > { %1837 = vmatpush1.msra.mxu0 %v7387_v37  ;;  %1799 = vmatprep.subr.mxu1 %v7388_v27  ;;  %v7446_v37 = vld [vmem:[#allocation121_spill] sm:$0xff]  ;;  %v2053_v27 = vld [vmem:[%s2937_s21 + $0x84] sm:$0xff] }
 0x238   : > { %1838 = vmatprep.subr.mxu0 %v7389_v47  ;;  %1800 = vmatpush2.msra.mxu1 %v7390_v43  ;;  %v7447_v47 = vld [vmem:[#allocation138_spill] sm:$0xff]  ;;  %v7448_v43 = vld [vmem:[#allocation123_spill] sm:$0xff] }
 0x239   : > { %1839 = vmatpush1.msra.mxu0 %v7391_v3  ;;  %1801 = vmatprep.subr.mxu1 %v7392_v15  ;;  %v7449_v3 = vld [vmem:[#allocation140_spill] sm:$0xff]  ;;  %v7451_v15 = vld [vmem:[#allocation142_spill] sm:$0xff] }
 0x23a   : > { %1840 = vmatprep.subr.mxu0 %v7393_v45  ;;  %1802 = vmatpush2.msra.mxu1 %v7394_v56  ;;  %v7452_v45 = vld [vmem:[#allocation127_spill] sm:$0xff]  ;;  %v1594_v56 = vcombine.high %v2053_v27, %v2053_v27 }
 0x23b   : > { %1841 = vmatpush1.msra.mxu0 %v7395_v55  ;;  %1803 = vmatprep.subr.mxu1 %v5790_v41  ;;  %v7403_v41 = vld [vmem:[#allocation33_spill] sm:$0xff]  ;;  %v7453_v55 = vld [vmem:[#allocation144_spill] sm:$0xff] }
 0x23c   : > { %1842 = vmatprep.subr.mxu0 %v7396_v18  ;;  %1804 = vmatpush2.msra.mxu1 %v7397_v9  ;;  %v7454_v18 = vld [vmem:[#allocation129_spill] sm:$0xff]  ;;  %v7455_v9 = vld [vmem:[#allocation146_spill] sm:$0xff] }
 0x23d   : > { %1805 = vmatprep.mubr.f32.mxu1 %v1593_v19  ;;  %1843 = vmatpush1.msra.mxu0 %v7398_v62  ;;  %v7450_v19 = vld [vmem:[#allocation125_spill] sm:$0xff] }
 0x23e   : > { %1806 = vmatmul.mubr.f32.vlgmr.msra.gmra.mxu1 %v2052_v21  ;;  %1844 = vmatprep.subr.mxu0 %v7399_v4  ;;  %v7444_v21 = vld [vmem:[#allocation119_spill] sm:$0xff]  ;;  %v7456_v62 = vld [vmem:[#allocation93_spill] sm:$0xff] }
 0x23f   : > { %1883 = vmatprep.subr.mxu1 %v5814_v25  ;;  %1845 = vmatpush2.msra.mxu0 %v7400_v30  ;;  %v7409_v25 = vld [vmem:[#allocation39_spill] sm:$0xff] }
 0x240   : > { %1884 = vmatpush1.msra.mxu1 %v5823_v38  ;;  %1846 = vmatprep.subr.mxu0 %v7401_v8  ;;  %v7411_v38 = vld [vmem:[#allocation41_spill] sm:$0xff]  ;;  %v2054_v4 = vld [vmem:[%s2937_s21 + $0x8c] sm:$0xf]  ;;  %v542_v8 = vpop.f32.mrf.mxu0 }
 0x241   : > { %1885 = vmatprep.subr.mxu1 %v7402_v14  ;;  %1847 = vmatpush2.msra.mxu0 %v7403_v41  ;;  %v7457_v30 = vld [vmem:[#allocation95_spill] sm:$0xff]  ;;  %v613_v14 = vpop.f32.mrf.mxu1 }
 0x242   : > { %1886 = vmatpush1.msra.mxu1 %v7404_v20  ;;  %1848 = vmatprep.subr.mxu0 %v7405_v24  ;;  %v544_v41 = vpop.f32.mrf.mxu0 }
 0x243   : > { %1887 = vmatprep.subr.mxu1 %v7406_v28  ;;  %1849 = vmatpush2.msra.mxu0 %v7407_v40  ;;  %v615_v20 = vpop.f32.mrf.mxu1 }
 0x244   : > { %1888 = vmatpush1.msra.mxu1 %v7408_v32  ;;  %1850 = vmatprep.subr.mxu0 %v7409_v25  ;;  %v684_v24 = vpop.f32.mrf.mxu0 }
 0x245   : > { %1889 = vmatprep.subr.mxu1 %v7410_v36  ;;  %1851 = vmatpush2.msra.mxu0 %v7411_v38 }
 0x246   : > { %1890 = vmatpush1.msra.mxu1 %v7412_v17  ;;  %1852 = vmatprep.subr.mxu0 %v7413_v33  ;;  %v686_v28 = vpop.f32.mrf.mxu0 }
 0x247   : > { %1891 = vmatprep.subr.mxu1 %v7414_v51  ;;  %1853 = vmatpush2.msra.mxu0 %v7415_v11 }
 0x248   : > { %1892 = vmatpush1.msra.mxu1 %v7416_v46  ;;  %1854 = vmatprep.subr.mxu0 %v7417_v63  ;;  %v826_v32 = vpop.f32.mrf.mxu0 }
 0x249   : > { %1893 = vmatprep.subr.mxu1 %v7418_v23  ;;  %1855 = vmatpush2.msra.mxu0 %v7419_v60 }
 0x24a   : > { %1894 = vmatpush1.msra.mxu1 %v7420_v2  ;;  %1856 = vmatprep.subr.mxu0 %v7421_v10  ;;  %v828_v25 = vpop.f32.mrf.mxu0 }
 0x24b   : > { %1895 = vmatprep.subr.mxu1 %v7422_v16  ;;  %1857 = vmatpush2.msra.mxu0 %v7423_v22 }
 0x24c   : > { %1896 = vmatpush1.msra.mxu1 %v7424_v6  ;;  %1858 = vmatprep.subr.mxu0 %v7425_v0  ;;  %v986_v38 = vpop.f32.mrf.mxu0 }
 0x24d   : > { %1897 = vmatprep.subr.mxu1 %v7426_v31  ;;  %1859 = vmatpush2.msra.mxu0 %v7427_v53 }
 0x24e   : > { %1898 = vmatpush1.msra.mxu1 %v7428_v5  ;;  %1860 = vmatprep.subr.mxu0 %v7429_v42  ;;  %v988_v33 = vpop.f32.mrf.mxu0  ;;  %v614_v5 = vadd.f32 %v613_v14, %v542_v8 }
 0x24f   : > { %1899 = vmatprep.subr.mxu1 %v7430_v39  ;;  %1861 = vmatpush2.msra.mxu0 %v7431_v35 }
 0x250   : > { %1900 = vmatpush1.msra.mxu1 %v7432_v49  ;;  %1862 = vmatprep.subr.mxu0 %v7433_v44  ;;  %v1128_v51 = vpop.f32.mrf.mxu0  ;;  %v616_v49 = vadd.f32 %v615_v20, %v544_v41 }
 0x251   : > { %1901 = vmatprep.subr.mxu1 %v7434_v48  ;;  %1863 = vmatpush2.msra.mxu0 %v7435_v50  ;;  %v1958_v48 = vlaneseq  ;;  %v685_v50 = vadd.f32 %v684_v24, %v614_v5  ;;  %v1956_v24 = vld [vmem:[%s6495_s2] sm:$0x3] }
 0x252   : > { %1902 = vmatpush1.msra.mxu1 %v7436_v52  ;;  %1864 = vmatprep.subr.mxu0 %v7437_v54  ;;  %v1130_v11 = vpop.f32.mrf.mxu0 }
 0x253   : > { %1903 = vmatprep.subr.mxu1 %v7438_v57  ;;  %1865 = vmatpush2.msra.mxu0 %v7439_v61 }
 0x254   : > { %1904 = vmatpush1.msra.mxu1 %v7440_v1  ;;  %1866 = vmatprep.subr.mxu0 %v7441_v7  ;;  %v1290_v63 = vpop.f32.mrf.mxu0 }
 0x255   : > { %1905 = vmatprep.subr.mxu1 %v7442_v58  ;;  %1867 = vmatpush2.msra.mxu0 %v7443_v13  ;;  %v687_v58 = vadd.f32 %v686_v28, %v616_v49 }
 0x256   : > { %1906 = vmatpush1.msra.mxu1 %v7444_v21  ;;  %1868 = vmatprep.subr.mxu0 %v7445_v29  ;;  %v1292_v60 = vpop.f32.mrf.mxu0 }
 0x257   : > { %1907 = vmatprep.subr.mxu1 %v7446_v37  ;;  %1869 = vmatpush2.msra.mxu0 %v7447_v47  ;;  %v1959_v37 = vshrl.u32 %v1958_v48, 7 }
 0x258   : > { %1908 = vmatpush1.msra.mxu1 %v7448_v43  ;;  %1870 = vmatprep.subr.mxu0 %v7449_v3 }
 0x259   : > { %1909 = vmatprep.subr.mxu1 %v7450_v19  ;;  %1871 = vmatpush2.msra.mxu0 %v7451_v15 }
 0x25a   : > { %1910 = vmatpush1.msra.mxu1 %v7452_v45  ;;  %1872 = vmatprep.subr.mxu0 %v7453_v55 }
 0x25b   : > { %1911 = vmatprep.subr.mxu1 %v7454_v18  ;;  %1873 = vmatpush2.msra.mxu0 %v7455_v9 }
 0x25c   : > { %1912 = vmatpush1.msra.mxu1 %v6075_v26  ;;  %1874 = vmatprep.subr.mxu0 %v7456_v62  ;;  %v755_v26 = vpop.f32.mrf.mxu1 }
 0x25d   : > { %1913 = vmatprep.subr.mxu1 %v6085_v12  ;;  %1875 = vmatpush2.msra.mxu0 %v7457_v30  ;;  %v1960_v30 = vsub.s32 0, %v1959_v37 }
 0x25e   : > { %1876 = vmatprep.mubr.f32.mxu0 %v1594_v56  ;;  %1914 = vmatpush1.msra.mxu1 %v6092_v34  ;;  %v757_v40 = vpop.f32.mrf.mxu1 }
 0x25f   : > { %1947 = vmatprep.mubr.f32.mxu1 %v7139_v59  ;;  %1877 = vmatmul.mubr.f32.vlgmr.msra.gmra.mxu0 %v2053_v27  ;;  %v756_v27 = vadd.f32 %v755_v26, %v685_v50  ;;  %v758_v15 = vadd.f32 %v757_v40, %v687_v58 }
 0x260   : > { %1948 = vmatmul.mubr.f32.vlgmr.msra.gmra.mxu1 %v2054_v4  ;;  %v915_v12 = vpop.f32.mrf.mxu1 }
 0x261   : > { %v987_v31 = vadd.f32 %v986_v38, %v915_v12  ;;  %v827_v45 = vadd.f32 %v826_v32, %v756_v27  ;;  %v829_v8 = vadd.f32 %v828_v25, %v758_v15  ;;  %v1964_v32 = vsub.s32 1, %v1959_v37 }
 0x262   : > { %v917_v36 = vpop.f32.mrf.mxu1 }
 0x263   : > { %v989_v42 = vadd.f32 %v988_v33, %v917_v36  ;;  %v1961_v33 = vrot.slane %v1956_v24, %v1960_v30 }
 0x264   : > { %v1057_v17 = vpop.f32.mrf.mxu1 }
 0x265   : > { %v1058_v39 = vadd.f32 %v1057_v17, %v987_v31 }
 0x266   : > { %v1059_v34 = vpop.f32.mrf.mxu1 }
 0x267   : > { %v1060_v52 = vadd.f32 %v1059_v34, %v989_v42  ;;  %v1129_v54 = vadd.f32 %v1128_v51, %v1058_v39 }
 0x268   : > { %v1199_v59 = vpop.f32.mrf.mxu1 }
 0x269   : > { %v1131_v13 = vadd.f32 %v1130_v11, %v1060_v52  ;;  %v1200_v47 = vadd.f32 %v1199_v59, %v1129_v54 }
 0x26a   : > { %v1201_v46 = vpop.f32.mrf.mxu1 }
 0x26b   : > { %v1202_v56 = vadd.f32 %v1201_v46, %v1131_v13  ;;  %v1204_v14 = vmax.f32 %v827_v45, %v1200_v47  ;;  %v1965_v46 = vrot.slane %v1956_v24, %v1964_v32 }
 0x26c   : > { %v1361_v23 = vpop.f32.mrf.mxu1 }
 0x26d   : > { %v1362_v44 = vadd.f32 %v1361_v23, %v1290_v63  ;;  %v1205_v12 = vmax.f32 %v829_v8, %v1202_v56 }
 0x26e   : > { %v1363_v2 = vpop.f32.mrf.mxu1 }
 0x26f   : > { %v1364_v57 = vadd.f32 %v1363_v2, %v1292_v60 }
 0x279   : > { %v1432_v10 = vpop.f32.mrf.mxu0 }
 0x27a   : > { %v1433_v7 = vadd.f32 %v1432_v10, %v1362_v44 }
 0x27b   : > { %v1503_v16 = vpop.f32.mrf.mxu1  ;;  %v1434_v22 = vpop.f32.mrf.mxu0 }
 0x27c   : > { %v1435_v21 = vadd.f32 %v1434_v22, %v1364_v57  ;;  %v1504_v3 = vadd.f32 %v1503_v16, %v1433_v7 }
 0x27d   : > { %v1505_v6 = vpop.f32.mrf.mxu1 }
 0x27e   : > { %v1506_v55 = vadd.f32 %v1505_v6, %v1435_v21 }
 0x29b   : > { %v1574_v0 = vpop.f32.mrf.mxu0 }
 0x29c   : > { %v1575_v9 = vadd.f32 %v1574_v0, %v1504_v3 }
 0x29d   : > { %v1576_v35 = vpop.f32.mrf.mxu0 }
 0x29e   : > { %v1577_v26 = vadd.f32 %v1576_v35, %v1506_v55  ;;  %v1579_v38 = vmax.f32 %v1204_v14, %v1575_v9 }
 0x2a0   : > { %v1580_v25 = vmax.f32 %v1205_v12, %v1577_v26 }
 0x2bd   : > { %v1665_v53 = vpop.f32.mrf.mxu1 }
 0x2bf   : > { %v1667_v61 = vpop.f32.mrf.mxu1 }
 0x2dd   : > { %v1736_v1 = vpop.f32.mrf.mxu0 }
 0x2de   : > { %v1737_v19 = vadd.f32 %v1736_v1, %v1665_v53 }
 0x2df   : > { %v1738_v43 = vpop.f32.mrf.mxu0 }
 0x2e0   : > { %v1739_v62 = vadd.f32 %v1738_v43, %v1667_v61 }
 0x2fe   : > { %v1807_v29 = vpop.f32.mrf.mxu1 }
 0x2ff   : > { %v1808_v4 = vadd.f32 %v1807_v29, %v1737_v19 }
 0x300   : > { %v1809_v18 = vpop.f32.mrf.mxu1 }
 0x301   : > { %v1810_v28 = vadd.f32 %v1809_v18, %v1739_v62 }
 0x31f   : > { %v1878_v41 = vpop.f32.mrf.mxu0 }
 0x320   : > { %v1949_v20 = vpop.f32.mrf.mxu1  ;;  %v1879_v40 = vadd.f32 %v1878_v41, %v1808_v4 }
 0x321   : > { %v1880_v36 = vpop.f32.mrf.mxu0 }
 0x322   : > { %v1950_v17 = vadd.f32 %v1949_v20, %v1879_v40  ;;  %v1881_v34 = vadd.f32 %v1880_v36, %v1810_v28  ;;  %v1951_v51 = vpop.f32.mrf.mxu1 }
 0x324   : > { %v1954_v59 = vmax.f32 %v1579_v38, %v1950_v17  ;;  %v1952_v11 = vadd.f32 %v1951_v51, %v1881_v34 }
 0x326   : > { %v1968_v63 = vadd.f32 %v1961_v33, %v1954_v59  ;;  %v1955_v23 = vmax.f32 %v1580_v25, %v1952_v11 }
 0x328   : > { %v1969_v60 = vadd.f32 %v1965_v46, %v1955_v23  ;;  %v1970_v2 = vmax.f32 %v1968_v63, 0.0 }
 0x32a   : > { %v1971_v10 = vmax.f32 %v1969_v60, 0.0 }
 0x32c   : > { %v1974_v16 = vcombine.low %v1970_v2, %v1971_v10 }
 0x32e   : > { %1976 = vst [vmem:[%s170_s30] sm:$0xff] %v1974_v16 }
 0x32f PF: > { %s13_s12 = sadd.s32 1, %s2470_s12  }
 0x330   : > { %p10_p4 = scmp.ge.s32.totalorder %s13_s12, 4  }
 0x332   :  { %12 = sbr.rel (!%p10_p4) target bundleno = 1 (0x1), region = 65 }

</bundles_post_ra>
